<compile_context>
chip_gen: v5e
topology: v5e:2x2
jax: 0.10.0
libtpu: 0.0.40
codegen_flags: <defaults>
</compile_context>

<pallas_src>
import jax
import jax.numpy as jnp
import numpy as np
from jax.experimental import pallas as pl
from jax.experimental.pallas import tpu as pltpu

P = 128  # lane width: padded gate / hidden / feature size


# --------------------------------------------------------------------------
# Kernel
# --------------------------------------------------------------------------
def _make_kernel(B, T, L, P):
    n_params = 2 * L + 2

    def kernel(x_ref, m_ref, *rest):
        param_refs = rest[:n_params]
        h_out_ref, comp_out_ref, imp_out_ref = rest[n_params:]

        # Hoist all weight / bias loads out of the recurrence (loaded once).
        Ws = [param_refs[2 * l][...] for l in range(L)]        # (2P,4P) / (P,4P)
        Bs = [param_refs[2 * l + 1][...] for l in range(L)]    # (B, 4P), pre-broadcast
        w_proj = param_refs[2 * L][...]                        # (P, P)
        b_proj = param_refs[2 * L + 1][...]                    # (B, P), pre-broadcast

        h = jnp.zeros((B, P), jnp.float32)
        inp = x_ref[0]                                         # (B, P) full-tile read

        for t in range(T):
            for l in range(L):
                if l == 0:
                    # [inp | h]: both full 128-lane tiles -> cheap lane-aligned concat.
                    cat = jnp.concatenate([inp, h], axis=-1)   # (B, 2P)
                else:
                    # deeper layers: input == hidden; W_ih/W_hh pre-folded in wrapper.
                    cat = h                                    # (B, P)
                # One fused MXU matmul per GRU cell; bias already includes
                # b_ih (+ b_hh where applicable) per gate column block.
                g = jnp.dot(cat, Ws[l], preferred_element_type=jnp.float32) + Bs[l]
                r = jax.nn.sigmoid(g[:, 0 * P:1 * P])
                z = jax.nn.sigmoid(g[:, 1 * P:2 * P])
                n = jnp.tanh(g[:, 2 * P:3 * P] + r * g[:, 3 * P:4 * P])
                h = n + z * (h - n)        # == (1 - z) * n + z * h

            if t < T - 1:
                imp = jnp.dot(h, w_proj, preferred_element_type=jnp.float32) + b_proj
                m_t = m_ref[t]                                 # (B, P) pre-broadcast mask
                comp = m_t * x_ref[t] + (1.0 - m_t) * imp
                imp_out_ref[t] = imp                           # full-tile unmasked store
                comp_out_ref[t] = comp
                inp = comp                                     # feeds next step (layer 0)

        h_out_ref[...] = h

    return kernel


# --------------------------------------------------------------------------
# Parameter packing (wrapper-side layout plumbing, runs as plain XLA ops)
# --------------------------------------------------------------------------
def _pack_params(params, B, D, H):
    """Pack / pad GRU + projection params into the fused, lane-padded layout.

    Per layer: weight (rows = packed input, cols = [r | z | n_in | n_hid],
    each gate block padded to P lanes) and a (B, 4P) pre-broadcast bias.
    """
    f32 = jnp.float32
    L = len(params["w_ih"])
    assert H <= P and D <= P, "this small-shape kernel assumes H, D <= 128"
    packed = []
    for l in range(L):
        w_ih = jnp.asarray(params["w_ih"][l], f32)             # (in_dim, 3H)
        w_hh = jnp.asarray(params["w_hh"][l], f32)             # (H, 3H)
        b_ih = jnp.asarray(params["b_ih"][l], f32).reshape(3 * H)
        b_hh = jnp.asarray(params["b_hh"][l], f32).reshape(3 * H)
        in_dim = w_ih.shape[0]
        wi = [w_ih[:, g * H:(g + 1) * H] for g in range(3)]    # r, z, n
        wh = [w_hh[:, g * H:(g + 1) * H] for g in range(3)]
        bi = [b_ih[g * H:(g + 1) * H] for g in range(3)]
        bh = [b_hh[g * H:(g + 1) * H] for g in range(3)]
        if l == 0:
            # rows 0:P   <-> padded input lanes (real features in 0:in_dim)
            # rows P:2P  <-> padded hidden lanes (real state in 0:H)
            W = jnp.zeros((2 * P, 4 * P), f32)
            W = W.at[0:in_dim, 0 * P:0 * P + H].set(wi[0])
            W = W.at[P:P + H, 0 * P:0 * P + H].set(wh[0])
            W = W.at[0:in_dim, 1 * P:1 * P + H].set(wi[1])
            W = W.at[P:P + H, 1 * P:1 * P + H].set(wh[1])
            W = W.at[0:in_dim, 2 * P:2 * P + H].set(wi[2])
            W = W.at[P:P + H, 3 * P:3 * P + H].set(wh[2])
        else:
            # input == hidden for deeper layers -> fold W_ih + W_hh for r/z;
            # keep the n-gate input/hidden contributions in separate column
            # blocks (GRUCell multiplies only the hidden part by r).
            W = jnp.zeros((P, 4 * P), f32)
            W = W.at[0:H, 0 * P:0 * P + H].set(wi[0] + wh[0])
            W = W.at[0:H, 1 * P:1 * P + H].set(wi[1] + wh[1])
            W = W.at[0:H, 2 * P:2 * P + H].set(wi[2])
            W = W.at[0:H, 3 * P:3 * P + H].set(wh[2])
        b = jnp.zeros((4 * P,), f32)
        b = b.at[0 * P:0 * P + H].set(bi[0] + bh[0])
        b = b.at[1 * P:1 * P + H].set(bi[1] + bh[1])
        b = b.at[2 * P:2 * P + H].set(bi[2])
        b = b.at[3 * P:3 * P + H].set(bh[2])
        packed += [W, jnp.broadcast_to(b[None, :], (B, 4 * P))]

    w_proj = jnp.zeros((P, P), f32).at[:H, :D].set(jnp.asarray(params["w_proj"], f32))
    b_proj = jnp.zeros((P,), f32).at[:D].set(jnp.asarray(params["b_proj"], f32).reshape(D))
    packed += [w_proj, jnp.broadcast_to(b_proj[None, :], (B, P))]
    return packed


# --------------------------------------------------------------------------
# Wrapper
# --------------------------------------------------------------------------
def generator_forward(x, masks, params):
    """Runs the Generator forward pass as one Pallas TPU kernel.

    Returns (hidden_state (B,H), completed_sequence (B,T-1,D),
    imputation_sequence (B,T-1,D)); the sequences are the PyTorch lists of
    (B,1,D) tensors concatenated along time.
    """
    B, T, D = x.shape
    H = params["w_hh"][0].shape[0]
    L = len(params["w_ih"])
    assert T >= 2

    packed = _pack_params(params, B, D, H)

    # Time-major, lane-padded inputs: per-step kernel reads are full tiles.
    x_tm = jnp.transpose(jnp.asarray(x, jnp.float32), (1, 0, 2))        # (T, B, D)
    x_pad = jnp.zeros((T, B, P), jnp.float32).at[:, :, :D].set(x_tm)
    m_tm = jnp.transpose(jnp.asarray(masks, jnp.float32), (1, 0))       # (T, B)
    m_pad = jnp.broadcast_to(m_tm[:, :, None], (T, B, P))

    kernel = _make_kernel(B, T, L, P)
    vmem = pl.BlockSpec(memory_space=pltpu.MemorySpace.VMEM)
    out_shapes = (
        jax.ShapeDtypeStruct((B, P), jnp.float32),
        jax.ShapeDtypeStruct((T - 1, B, P), jnp.float32),
        jax.ShapeDtypeStruct((T - 1, B, P), jnp.float32),
    )
    # Single invocation (no grid): the T x L recurrence is inherently serial;
    # total VMEM footprint is ~1 MiB, far below any generation's limit.
    # TODO(synk): for B >= 16 on v7x, add a parallel batch grid dimension to
    # use both TensorCores.
    h_pad, comp_pad, imp_pad = pl.pallas_call(
        kernel,
        out_shape=out_shapes,
        in_specs=[vmem] * (2 + len(packed)),
        out_specs=(vmem, vmem, vmem),
    )(x_pad, m_pad, *packed)

    h_out = h_pad[:, :H]
    comp = jnp.transpose(comp_pad, (1, 0, 2))[:, :, :D]
    imp = jnp.transpose(imp_pad, (1, 0, 2))[:, :, :D]
    return h_out, comp, imp


# --------------------------------------------------------------------------
# Pure-JAX reference (unpacked params) for correctness checking
# --------------------------------------------------------------------------
def _gru_cell_ref(inp, h, w_ih, w_hh, b_ih, b_hh, H):
    gi = jnp.dot(inp, w_ih) + b_ih
    gh = jnp.dot(h, w_hh) + b_hh
    r = jax.nn.sigmoid(gi[:, 0:H] + gh[:, 0:H])
    z = jax.nn.sigmoid(gi[:, H:2 * H] + gh[:, H:2 * H])
    n = jnp.tanh(gi[:, 2 * H:3 * H] + r * gh[:, 2 * H:3 * H])
    return (1.0 - z) * n + z * h


def generator_forward_ref(x, masks, params):
    B, T, D = x.shape
    H = params["w_hh"][0].shape[0]
    L = len(params["w_ih"])
    h = jnp.zeros((B, H), jnp.float32)
    completed, imputed = [], []
    for t in range(T):
        inp = x[:, 0, :] if t == 0 else completed[t - 1]
        for l in range(L):
            cell_in = inp if l == 0 else h
            h = _gru_cell_ref(cell_in, h,
                              params["w_ih"][l], params["w_hh"][l],
                              params["b_ih"][l], params["b_hh"][l], H)
        if t < T - 1:
            imp = jnp.dot(h, params["w_proj"]) + params["b_proj"]
            m_t = masks[:, t][:, None]
            comp = m_t * x[:, t, :] + (1.0 - m_t) * imp
            imputed.append(imp)
            completed.append(comp)
    return h, jnp.stack(completed, axis=1), jnp.stack(imputed, axis=1)


def init_params(key, D, H, L):
    """Deterministic parameter init mirroring torch.nn.GRUCell / Linear shapes
    (stored pre-transposed: (in_features, out_features); gate order r,z,n)."""
    params = {"w_ih": [], "w_hh": [], "b_ih": [], "b_hh": []}
    k = 1.0 / np.sqrt(H)
    for l in range(L):
        in_dim = D if l == 0 else H
        key, k1, k2, k3, k4 = jax.random.split(key, 5)
        params["w_ih"].append(jax.random.uniform(k1, (in_dim, 3 * H), jnp.float32, -k, k))
        params["w_hh"].append(jax.random.uniform(k2, (H, 3 * H), jnp.float32, -k, k))
        params["b_ih"].append(jax.random.uniform(k3, (1, 3 * H), jnp.float32, -k, k))
        params["b_hh"].append(jax.random.uniform(k4, (1, 3 * H), jnp.float32, -k, k))
    key, k1, k2 = jax.random.split(key, 3)
    kp = 1.0 / np.sqrt(H)
    params["w_proj"] = jax.random.uniform(k1, (H, D), jnp.float32, -kp, kp)
    params["b_proj"] = jax.random.uniform(k2, (1, D), jnp.float32, -kp, kp)
    return params


if __name__ == "__main__":
    # Config consistent with the module:
    #   batch=8, num_steps=8, input_dimension_size=16, hidden_size=32, layer_num=2
    B, T, D, H, L = 8, 8, 16, 32, 2

    key = jax.random.PRNGKey(0)
    key, kx, km, kp = jax.random.split(key, 4)
    x = jax.random.normal(kx, (B, T, D), jnp.float32)
    masks = (jax.random.uniform(km, (B, T)) > 0.3).astype(jnp.float32)
    params = init_params(kp, D, H, L)

    h_out, comp_out, imp_out = generator_forward(x, masks, params)
    jax.block_until_ready((h_out, comp_out, imp_out))

    h_ref, comp_ref, imp_ref = generator_forward_ref(x, masks, params)
    # Slightly looser tolerance than bitwise: the fused/folded weight packing
    # reassociates the f32 matmul sums relative to the reference.
    np.testing.assert_allclose(np.asarray(h_out), np.asarray(h_ref), rtol=1e-4, atol=1e-4)
    np.testing.assert_allclose(np.asarray(comp_out), np.asarray(comp_ref), rtol=1e-4, atol=1e-4)
    np.testing.assert_allclose(np.asarray(imp_out), np.asarray(imp_ref), rtol=1e-4, atol=1e-4)

    print("KERNEL_OK")
</pallas_src>

<mosaic_0001>
module attributes {stable_mosaic.version = 11 : i64} {
  func.func @kernel(%arg0: memref<8x8x128xf32, #tpu.memory_space<vmem>>, %arg1: memref<8x8x128xf32, #tpu.memory_space<vmem>>, %arg2: memref<256x512xf32, #tpu.memory_space<vmem>>, %arg3: memref<8x512xf32, #tpu.memory_space<vmem>>, %arg4: memref<128x512xf32, #tpu.memory_space<vmem>>, %arg5: memref<8x512xf32, #tpu.memory_space<vmem>>, %arg6: memref<128x128xf32, #tpu.memory_space<vmem>>, %arg7: memref<8x128xf32, #tpu.memory_space<vmem>>, %arg8: memref<8x128xf32, #tpu.memory_space<vmem>>, %arg9: memref<7x8x128xf32, #tpu.memory_space<vmem>>, %arg10: memref<7x8x128xf32, #tpu.memory_space<vmem>>) attributes {dimension_semantics = [], scalar_prefetch = 0 : i64, scratch_operands = 0 : i64, tpu.core_type = #tpu.core_type<tc>} {
    %c0 = arith.constant 0 : index
    %c0_0 = arith.constant 0 : index
    %0 = vector.load %arg2[%c0, %c0_0] : memref<256x512xf32, #tpu.memory_space<vmem>>, vector<256x512xf32>
    %c0_1 = arith.constant 0 : index
    %c0_2 = arith.constant 0 : index
    %1 = vector.load %arg4[%c0_1, %c0_2] : memref<128x512xf32, #tpu.memory_space<vmem>>, vector<128x512xf32>
    %c0_3 = arith.constant 0 : index
    %c0_4 = arith.constant 0 : index
    %2 = vector.load %arg3[%c0_3, %c0_4] : memref<8x512xf32, #tpu.memory_space<vmem>>, vector<8x512xf32>
    %c0_5 = arith.constant 0 : index
    %c0_6 = arith.constant 0 : index
    %3 = vector.load %arg5[%c0_5, %c0_6] : memref<8x512xf32, #tpu.memory_space<vmem>>, vector<8x512xf32>
    %c0_7 = arith.constant 0 : index
    %c0_8 = arith.constant 0 : index
    %4 = vector.load %arg6[%c0_7, %c0_8] : memref<128x128xf32, #tpu.memory_space<vmem>>, vector<128x128xf32>
    %c0_9 = arith.constant 0 : index
    %c0_10 = arith.constant 0 : index
    %5 = vector.load %arg7[%c0_9, %c0_10] : memref<8x128xf32, #tpu.memory_space<vmem>>, vector<8x128xf32>
    %cst = arith.constant 0.000000e+00 : f32
    %6 = vector.broadcast %cst : f32 to vector<8x128xf32>
    %c0_11 = arith.constant 0 : index
    %c0_12 = arith.constant 0 : index
    %c0_13 = arith.constant 0 : index
    %7 = vector.load %arg0[%c0_11, %c0_12, %c0_13] : memref<8x8x128xf32, #tpu.memory_space<vmem>>, vector<1x8x128xf32>
    %8 = vector.shape_cast %7 : vector<1x8x128xf32> to vector<8x128xf32>
    %9 = tpu.concatenate %8, %6 in 1 : vector<8x128xf32>, vector<8x128xf32> -> vector<8x256xf32>
    %cst_14 = arith.constant dense<0.000000e+00> : vector<8x512xf32>
    %10 = tpu.matmul %9, %0, %cst_14 {dimension_numbers = #tpu.dot_dimension_numbers<[1], [0], [0], [1], [0, 0, 1, 1], [], []>} : vector<8x256xf32>, vector<256x512xf32>, vector<8x512xf32> -> vector<8x512xf32>
    %11 = arith.addf %10, %2 : vector<8x512xf32>
    %12 = vector.extract_strided_slice %11 {offsets = [0, 0], sizes = [8, 128], strides = [1, 1]} : vector<8x512xf32> to vector<8x128xf32>
    %13 = arith.negf %12 : vector<8x128xf32>
    %14 = math.exp %13 : vector<8x128xf32>
    %cst_15 = arith.constant 1.000000e+00 : f32
    %15 = vector.broadcast %cst_15 : f32 to vector<8x128xf32>
    %16 = arith.addf %15, %14 : vector<8x128xf32>
    %17 = arith.divf %15, %16 : vector<8x128xf32>
    %18 = vector.extract_strided_slice %11 {offsets = [0, 128], sizes = [8, 128], strides = [1, 1]} : vector<8x512xf32> to vector<8x128xf32>
    %19 = arith.negf %18 : vector<8x128xf32>
    %20 = math.exp %19 : vector<8x128xf32>
    %cst_16 = arith.constant 1.000000e+00 : f32
    %21 = vector.broadcast %cst_16 : f32 to vector<8x128xf32>
    %22 = arith.addf %21, %20 : vector<8x128xf32>
    %23 = arith.divf %21, %22 : vector<8x128xf32>
    %24 = vector.extract_strided_slice %11 {offsets = [0, 256], sizes = [8, 128], strides = [1, 1]} : vector<8x512xf32> to vector<8x128xf32>
    %25 = vector.extract_strided_slice %11 {offsets = [0, 384], sizes = [8, 128], strides = [1, 1]} : vector<8x512xf32> to vector<8x128xf32>
    %26 = arith.mulf %17, %25 : vector<8x128xf32>
    %27 = arith.addf %24, %26 : vector<8x128xf32>
    %28 = math.tanh %27 : vector<8x128xf32>
    %29 = arith.subf %6, %28 : vector<8x128xf32>
    %30 = arith.mulf %23, %29 : vector<8x128xf32>
    %31 = arith.addf %28, %30 : vector<8x128xf32>
    %cst_17 = arith.constant dense<0.000000e+00> : vector<8x512xf32>
    %32 = tpu.matmul %31, %1, %cst_17 {dimension_numbers = #tpu.dot_dimension_numbers<[1], [0], [0], [1], [0, 0, 1, 1], [], []>} : vector<8x128xf32>, vector<128x512xf32>, vector<8x512xf32> -> vector<8x512xf32>
    %33 = arith.addf %32, %3 : vector<8x512xf32>
    %34 = vector.extract_strided_slice %33 {offsets = [0, 0], sizes = [8, 128], strides = [1, 1]} : vector<8x512xf32> to vector<8x128xf32>
    %35 = arith.negf %34 : vector<8x128xf32>
    %36 = math.exp %35 : vector<8x128xf32>
    %cst_18 = arith.constant 1.000000e+00 : f32
    %37 = vector.broadcast %cst_18 : f32 to vector<8x128xf32>
    %38 = arith.addf %37, %36 : vector<8x128xf32>
    %39 = arith.divf %37, %38 : vector<8x128xf32>
    %40 = vector.extract_strided_slice %33 {offsets = [0, 128], sizes = [8, 128], strides = [1, 1]} : vector<8x512xf32> to vector<8x128xf32>
    %41 = arith.negf %40 : vector<8x128xf32>
    %42 = math.exp %41 : vector<8x128xf32>
    %cst_19 = arith.constant 1.000000e+00 : f32
    %43 = vector.broadcast %cst_19 : f32 to vector<8x128xf32>
    %44 = arith.addf %43, %42 : vector<8x128xf32>
    %45 = arith.divf %43, %44 : vector<8x128xf32>
    %46 = vector.extract_strided_slice %33 {offsets = [0, 256], sizes = [8, 128], strides = [1, 1]} : vector<8x512xf32> to vector<8x128xf32>
    %47 = vector.extract_strided_slice %33 {offsets = [0, 384], sizes = [8, 128], strides = [1, 1]} : vector<8x512xf32> to vector<8x128xf32>
    %48 = arith.mulf %39, %47 : vector<8x128xf32>
    %49 = arith.addf %46, %48 : vector<8x128xf32>
    %50 = math.tanh %49 : vector<8x128xf32>
    %51 = arith.subf %31, %50 : vector<8x128xf32>
    %52 = arith.mulf %45, %51 : vector<8x128xf32>
    %53 = arith.addf %50, %52 : vector<8x128xf32>
    %cst_20 = arith.constant dense<0.000000e+00> : vector<8x128xf32>
    %54 = tpu.matmul %53, %4, %cst_20 {dimension_numbers = #tpu.dot_dimension_numbers<[1], [0], [0], [1], [0, 0, 1, 1], [], []>} : vector<8x128xf32>, vector<128x128xf32>, vector<8x128xf32> -> vector<8x128xf32>
    %55 = arith.addf %54, %5 : vector<8x128xf32>
    %c0_21 = arith.constant 0 : index
    %c0_22 = arith.constant 0 : index
    %c0_23 = arith.constant 0 : index
    %56 = vector.load %arg1[%c0_21, %c0_22, %c0_23] : memref<8x8x128xf32, #tpu.memory_space<vmem>>, vector<1x8x128xf32>
    %57 = vector.shape_cast %56 : vector<1x8x128xf32> to vector<8x128xf32>
    %c0_24 = arith.constant 0 : index
    %c0_25 = arith.constant 0 : index
    %c0_26 = arith.constant 0 : index
    %58 = vector.load %arg0[%c0_24, %c0_25, %c0_26] : memref<8x8x128xf32, #tpu.memory_space<vmem>>, vector<1x8x128xf32>
    %59 = vector.shape_cast %58 : vector<1x8x128xf32> to vector<8x128xf32>
    %60 = arith.mulf %57, %59 : vector<8x128xf32>
    %cst_27 = arith.constant 1.000000e+00 : f32
    %61 = vector.broadcast %cst_27 : f32 to vector<8x128xf32>
    %62 = arith.subf %61, %57 : vector<8x128xf32>
    %63 = arith.mulf %62, %55 : vector<8x128xf32>
    %64 = arith.addf %60, %63 : vector<8x128xf32>
    %c0_28 = arith.constant 0 : index
    %c0_29 = arith.constant 0 : index
    %c0_30 = arith.constant 0 : index
    %65 = vector.load %arg10[%c0_28, %c0_29, %c0_30] : memref<7x8x128xf32, #tpu.memory_space<vmem>>, vector<1x8x128xf32>
    %66 = vector.shape_cast %65 : vector<1x8x128xf32> to vector<8x128xf32>
    %67 = vector.shape_cast %55 : vector<8x128xf32> to vector<1x8x128xf32>
    tpu.vector_store %arg10[%c0_28, %c0_29, %c0_30], %67 {strides = array<i32>} : memref<7x8x128xf32, #tpu.memory_space<vmem>>, vector<1x8x128xf32>,
    %c0_31 = arith.constant 0 : index
    %c0_32 = arith.constant 0 : index
    %c0_33 = arith.constant 0 : index
    %68 = vector.load %arg9[%c0_31, %c0_32, %c0_33] : memref<7x8x128xf32, #tpu.memory_space<vmem>>, vector<1x8x128xf32>
    %69 = vector.shape_cast %68 : vector<1x8x128xf32> to vector<8x128xf32>
    %70 = vector.shape_cast %64 : vector<8x128xf32> to vector<1x8x128xf32>
    tpu.vector_store %arg9[%c0_31, %c0_32, %c0_33], %70 {strides = array<i32>} : memref<7x8x128xf32, #tpu.memory_space<vmem>>, vector<1x8x128xf32>,
    %71 = tpu.concatenate %64, %53 in 1 : vector<8x128xf32>, vector<8x128xf32> -> vector<8x256xf32>
    %cst_34 = arith.constant dense<0.000000e+00> : vector<8x512xf32>
    %72 = tpu.matmul %71, %0, %cst_34 {dimension_numbers = #tpu.dot_dimension_numbers<[1], [0], [0], [1], [0, 0, 1, 1], [], []>} : vector<8x256xf32>, vector<256x512xf32>, vector<8x512xf32> -> vector<8x512xf32>
    %73 = arith.addf %72, %2 : vector<8x512xf32>
    %74 = vector.extract_strided_slice %73 {offsets = [0, 0], sizes = [8, 128], strides = [1, 1]} : vector<8x512xf32> to vector<8x128xf32>
    %75 = arith.negf %74 : vector<8x128xf32>
    %76 = math.exp %75 : vector<8x128xf32>
    %cst_35 = arith.constant 1.000000e+00 : f32
    %77 = vector.broadcast %cst_35 : f32 to vector<8x128xf32>
    %78 = arith.addf %77, %76 : vector<8x128xf32>
    %79 = arith.divf %77, %78 : vector<8x128xf32>
    %80 = vector.extract_strided_slice %73 {offsets = [0, 128], sizes = [8, 128], strides = [1, 1]} : vector<8x512xf32> to vector<8x128xf32>
    %81 = arith.negf %80 : vector<8x128xf32>
    %82 = math.exp %81 : vector<8x128xf32>
    %cst_36 = arith.constant 1.000000e+00 : f32
    %83 = vector.broadcast %cst_36 : f32 to vector<8x128xf32>
    %84 = arith.addf %83, %82 : vector<8x128xf32>
    %85 = arith.divf %83, %84 : vector<8x128xf32>
    %86 = vector.extract_strided_slice %73 {offsets = [0, 256], sizes = [8, 128], strides = [1, 1]} : vector<8x512xf32> to vector<8x128xf32>
    %87 = vector.extract_strided_slice %73 {offsets = [0, 384], sizes = [8, 128], strides = [1, 1]} : vector<8x512xf32> to vector<8x128xf32>
    %88 = arith.mulf %79, %87 : vector<8x128xf32>
    %89 = arith.addf %86, %88 : vector<8x128xf32>
    %90 = math.tanh %89 : vector<8x128xf32>
    %91 = arith.subf %53, %90 : vector<8x128xf32>
    %92 = arith.mulf %85, %91 : vector<8x128xf32>
    %93 = arith.addf %90, %92 : vector<8x128xf32>
    %cst_37 = arith.constant dense<0.000000e+00> : vector<8x512xf32>
    %94 = tpu.matmul %93, %1, %cst_37 {dimension_numbers = #tpu.dot_dimension_numbers<[1], [0], [0], [1], [0, 0, 1, 1], [], []>} : vector<8x128xf32>, vector<128x512xf32>, vector<8x512xf32> -> vector<8x512xf32>
    %95 = arith.addf %94, %3 : vector<8x512xf32>
    %96 = vector.extract_strided_slice %95 {offsets = [0, 0], sizes = [8, 128], strides = [1, 1]} : vector<8x512xf32> to vector<8x128xf32>
    %97 = arith.negf %96 : vector<8x128xf32>
    %98 = math.exp %97 : vector<8x128xf32>
    %cst_38 = arith.constant 1.000000e+00 : f32
    %99 = vector.broadcast %cst_38 : f32 to vector<8x128xf32>
    %100 = arith.addf %99, %98 : vector<8x128xf32>
    %101 = arith.divf %99, %100 : vector<8x128xf32>
    %102 = vector.extract_strided_slice %95 {offsets = [0, 128], sizes = [8, 128], strides = [1, 1]} : vector<8x512xf32> to vector<8x128xf32>
    %103 = arith.negf %102 : vector<8x128xf32>
    %104 = math.exp %103 : vector<8x128xf32>
    %cst_39 = arith.constant 1.000000e+00 : f32
    %105 = vector.broadcast %cst_39 : f32 to vector<8x128xf32>
    %106 = arith.addf %105, %104 : vector<8x128xf32>
    %107 = arith.divf %105, %106 : vector<8x128xf32>
    %108 = vector.extract_strided_slice %95 {offsets = [0, 256], sizes = [8, 128], strides = [1, 1]} : vector<8x512xf32> to vector<8x128xf32>
    %109 = vector.extract_strided_slice %95 {offsets = [0, 384], sizes = [8, 128], strides = [1, 1]} : vector<8x512xf32> to vector<8x128xf32>
    %110 = arith.mulf %101, %109 : vector<8x128xf32>
    %111 = arith.addf %108, %110 : vector<8x128xf32>
    %112 = math.tanh %111 : vector<8x128xf32>
    %113 = arith.subf %93, %112 : vector<8x128xf32>
    %114 = arith.mulf %107, %113 : vector<8x128xf32>
    %115 = arith.addf %112, %114 : vector<8x128xf32>
    %cst_40 = arith.constant dense<0.000000e+00> : vector<8x128xf32>
    %116 = tpu.matmul %115, %4, %cst_40 {dimension_numbers = #tpu.dot_dimension_numbers<[1], [0], [0], [1], [0, 0, 1, 1], [], []>} : vector<8x128xf32>, vector<128x128xf32>, vector<8x128xf32> -> vector<8x128xf32>
    %117 = arith.addf %116, %5 : vector<8x128xf32>
    %c1 = arith.constant 1 : index
    %c0_41 = arith.constant 0 : index
    %c0_42 = arith.constant 0 : index
    %118 = vector.load %arg1[%c1, %c0_41, %c0_42] : memref<8x8x128xf32, #tpu.memory_space<vmem>>, vector<1x8x128xf32>
    %119 = vector.shape_cast %118 : vector<1x8x128xf32> to vector<8x128xf32>
    %c1_43 = arith.constant 1 : index
    %c0_44 = arith.constant 0 : index
    %c0_45 = arith.constant 0 : index
    %120 = vector.load %arg0[%c1_43, %c0_44, %c0_45] : memref<8x8x128xf32, #tpu.memory_space<vmem>>, vector<1x8x128xf32>
    %121 = vector.shape_cast %120 : vector<1x8x128xf32> to vector<8x128xf32>
    %122 = arith.mulf %119, %121 : vector<8x128xf32>
    %cst_46 = arith.constant 1.000000e+00 : f32
    %123 = vector.broadcast %cst_46 : f32 to vector<8x128xf32>
    %124 = arith.subf %123, %119 : vector<8x128xf32>
    %125 = arith.mulf %124, %117 : vector<8x128xf32>
    %126 = arith.addf %122, %125 : vector<8x128xf32>
    %c1_47 = arith.constant 1 : index
    %c0_48 = arith.constant 0 : index
    %c0_49 = arith.constant 0 : index
    %127 = vector.load %arg10[%c1_47, %c0_48, %c0_49] : memref<7x8x128xf32, #tpu.memory_space<vmem>>, vector<1x8x128xf32>
    %128 = vector.shape_cast %127 : vector<1x8x128xf32> to vector<8x128xf32>
    %129 = vector.shape_cast %117 : vector<8x128xf32> to vector<1x8x128xf32>
    tpu.vector_store %arg10[%c1_47, %c0_48, %c0_49], %129 {strides = array<i32>} : memref<7x8x128xf32, #tpu.memory_space<vmem>>, vector<1x8x128xf32>,
    %c1_50 = arith.constant 1 : index
    %c0_51 = arith.constant 0 : index
    %c0_52 = arith.constant 0 : index
    %130 = vector.load %arg9[%c1_50, %c0_51, %c0_52] : memref<7x8x128xf32, #tpu.memory_space<vmem>>, vector<1x8x128xf32>
    %131 = vector.shape_cast %130 : vector<1x8x128xf32> to vector<8x128xf32>
    %132 = vector.shape_cast %126 : vector<8x128xf32> to vector<1x8x128xf32>
    tpu.vector_store %arg9[%c1_50, %c0_51, %c0_52], %132 {strides = array<i32>} : memref<7x8x128xf32, #tpu.memory_space<vmem>>, vector<1x8x128xf32>,
    %133 = tpu.concatenate %126, %115 in 1 : vector<8x128xf32>, vector<8x128xf32> -> vector<8x256xf32>
    %cst_53 = arith.constant dense<0.000000e+00> : vector<8x512xf32>
    %134 = tpu.matmul %133, %0, %cst_53 {dimension_numbers = #tpu.dot_dimension_numbers<[1], [0], [0], [1], [0, 0, 1, 1], [], []>} : vector<8x256xf32>, vector<256x512xf32>, vector<8x512xf32> -> vector<8x512xf32>
    %135 = arith.addf %134, %2 : vector<8x512xf32>
    %136 = vector.extract_strided_slice %135 {offsets = [0, 0], sizes = [8, 128], strides = [1, 1]} : vector<8x512xf32> to vector<8x128xf32>
    %137 = arith.negf %136 : vector<8x128xf32>
    %138 = math.exp %137 : vector<8x128xf32>
    %cst_54 = arith.constant 1.000000e+00 : f32
    %139 = vector.broadcast %cst_54 : f32 to vector<8x128xf32>
    %140 = arith.addf %139, %138 : vector<8x128xf32>
    %141 = arith.divf %139, %140 : vector<8x128xf32>
    %142 = vector.extract_strided_slice %135 {offsets = [0, 128], sizes = [8, 128], strides = [1, 1]} : vector<8x512xf32> to vector<8x128xf32>
    %143 = arith.negf %142 : vector<8x128xf32>
    %144 = math.exp %143 : vector<8x128xf32>
    %cst_55 = arith.constant 1.000000e+00 : f32
    %145 = vector.broadcast %cst_55 : f32 to vector<8x128xf32>
    %146 = arith.addf %145, %144 : vector<8x128xf32>
    %147 = arith.divf %145, %146 : vector<8x128xf32>
    %148 = vector.extract_strided_slice %135 {offsets = [0, 256], sizes = [8, 128], strides = [1, 1]} : vector<8x512xf32> to vector<8x128xf32>
    %149 = vector.extract_strided_slice %135 {offsets = [0, 384], sizes = [8, 128], strides = [1, 1]} : vector<8x512xf32> to vector<8x128xf32>
    %150 = arith.mulf %141, %149 : vector<8x128xf32>
    %151 = arith.addf %148, %150 : vector<8x128xf32>
    %152 = math.tanh %151 : vector<8x128xf32>
    %153 = arith.subf %115, %152 : vector<8x128xf32>
    %154 = arith.mulf %147, %153 : vector<8x128xf32>
    %155 = arith.addf %152, %154 : vector<8x128xf32>
    %cst_56 = arith.constant dense<0.000000e+00> : vector<8x512xf32>
    %156 = tpu.matmul %155, %1, %cst_56 {dimension_numbers = #tpu.dot_dimension_numbers<[1], [0], [0], [1], [0, 0, 1, 1], [], []>} : vector<8x128xf32>, vector<128x512xf32>, vector<8x512xf32> -> vector<8x512xf32>
    %157 = arith.addf %156, %3 : vector<8x512xf32>
    %158 = vector.extract_strided_slice %157 {offsets = [0, 0], sizes = [8, 128], strides = [1, 1]} : vector<8x512xf32> to vector<8x128xf32>
    %159 = arith.negf %158 : vector<8x128xf32>
    %160 = math.exp %159 : vector<8x128xf32>
    %cst_57 = arith.constant 1.000000e+00 : f32
    %161 = vector.broadcast %cst_57 : f32 to vector<8x128xf32>
    %162 = arith.addf %161, %160 : vector<8x128xf32>
    %163 = arith.divf %161, %162 : vector<8x128xf32>
    %164 = vector.extract_strided_slice %157 {offsets = [0, 128], sizes = [8, 128], strides = [1, 1]} : vector<8x512xf32> to vector<8x128xf32>
    %165 = arith.negf %164 : vector<8x128xf32>
    %166 = math.exp %165 : vector<8x128xf32>
    %cst_58 = arith.constant 1.000000e+00 : f32
    %167 = vector.broadcast %cst_58 : f32 to vector<8x128xf32>
    %168 = arith.addf %167, %166 : vector<8x128xf32>
    %169 = arith.divf %167, %168 : vector<8x128xf32>
    %170 = vector.extract_strided_slice %157 {offsets = [0, 256], sizes = [8, 128], strides = [1, 1]} : vector<8x512xf32> to vector<8x128xf32>
    %171 = vector.extract_strided_slice %157 {offsets = [0, 384], sizes = [8, 128], strides = [1, 1]} : vector<8x512xf32> to vector<8x128xf32>
    %172 = arith.mulf %163, %171 : vector<8x128xf32>
    %173 = arith.addf %170, %172 : vector<8x128xf32>
    %174 = math.tanh %173 : vector<8x128xf32>
    %175 = arith.subf %155, %174 : vector<8x128xf32>
    %176 = arith.mulf %169, %175 : vector<8x128xf32>
    %177 = arith.addf %174, %176 : vector<8x128xf32>
    %cst_59 = arith.constant dense<0.000000e+00> : vector<8x128xf32>
    %178 = tpu.matmul %177, %4, %cst_59 {dimension_numbers = #tpu.dot_dimension_numbers<[1], [0], [0], [1], [0, 0, 1, 1], [], []>} : vector<8x128xf32>, vector<128x128xf32>, vector<8x128xf32> -> vector<8x128xf32>
    %179 = arith.addf %178, %5 : vector<8x128xf32>
    %c2 = arith.constant 2 : index
    %c0_60 = arith.constant 0 : index
    %c0_61 = arith.constant 0 : index
    %180 = vector.load %arg1[%c2, %c0_60, %c0_61] : memref<8x8x128xf32, #tpu.memory_space<vmem>>, vector<1x8x128xf32>
    %181 = vector.shape_cast %180 : vector<1x8x128xf32> to vector<8x128xf32>
    %c2_62 = arith.constant 2 : index
    %c0_63 = arith.constant 0 : index
    %c0_64 = arith.constant 0 : index
    %182 = vector.load %arg0[%c2_62, %c0_63, %c0_64] : memref<8x8x128xf32, #tpu.memory_space<vmem>>, vector<1x8x128xf32>
    %183 = vector.shape_cast %182 : vector<1x8x128xf32> to vector<8x128xf32>
    %184 = arith.mulf %181, %183 : vector<8x128xf32>
    %cst_65 = arith.constant 1.000000e+00 : f32
    %185 = vector.broadcast %cst_65 : f32 to vector<8x128xf32>
    %186 = arith.subf %185, %181 : vector<8x128xf32>
    %187 = arith.mulf %186, %179 : vector<8x128xf32>
    %188 = arith.addf %184, %187 : vector<8x128xf32>
    %c2_66 = arith.constant 2 : index
    %c0_67 = arith.constant 0 : index
    %c0_68 = arith.constant 0 : index
    %189 = vector.load %arg10[%c2_66, %c0_67, %c0_68] : memref<7x8x128xf32, #tpu.memory_space<vmem>>, vector<1x8x128xf32>
    %190 = vector.shape_cast %189 : vector<1x8x128xf32> to vector<8x128xf32>
    %191 = vector.shape_cast %179 : vector<8x128xf32> to vector<1x8x128xf32>
    tpu.vector_store %arg10[%c2_66, %c0_67, %c0_68], %191 {strides = array<i32>} : memref<7x8x128xf32, #tpu.memory_space<vmem>>, vector<1x8x128xf32>,
    %c2_69 = arith.constant 2 : index
    %c0_70 = arith.constant 0 : index
    %c0_71 = arith.constant 0 : index
    %192 = vector.load %arg9[%c2_69, %c0_70, %c0_71] : memref<7x8x128xf32, #tpu.memory_space<vmem>>, vector<1x8x128xf32>
    %193 = vector.shape_cast %192 : vector<1x8x128xf32> to vector<8x128xf32>
    %194 = vector.shape_cast %188 : vector<8x128xf32> to vector<1x8x128xf32>
    tpu.vector_store %arg9[%c2_69, %c0_70, %c0_71], %194 {strides = array<i32>} : memref<7x8x128xf32, #tpu.memory_space<vmem>>, vector<1x8x128xf32>,
    %195 = tpu.concatenate %188, %177 in 1 : vector<8x128xf32>, vector<8x128xf32> -> vector<8x256xf32>
    %cst_72 = arith.constant dense<0.000000e+00> : vector<8x512xf32>
    %196 = tpu.matmul %195, %0, %cst_72 {dimension_numbers = #tpu.dot_dimension_numbers<[1], [0], [0], [1], [0, 0, 1, 1], [], []>} : vector<8x256xf32>, vector<256x512xf32>, vector<8x512xf32> -> vector<8x512xf32>
    %197 = arith.addf %196, %2 : vector<8x512xf32>
    %198 = vector.extract_strided_slice %197 {offsets = [0, 0], sizes = [8, 128], strides = [1, 1]} : vector<8x512xf32> to vector<8x128xf32>
    %199 = arith.negf %198 : vector<8x128xf32>
    %200 = math.exp %199 : vector<8x128xf32>
    %cst_73 = arith.constant 1.000000e+00 : f32
    %201 = vector.broadcast %cst_73 : f32 to vector<8x128xf32>
    %202 = arith.addf %201, %200 : vector<8x128xf32>
    %203 = arith.divf %201, %202 : vector<8x128xf32>
    %204 = vector.extract_strided_slice %197 {offsets = [0, 128], sizes = [8, 128], strides = [1, 1]} : vector<8x512xf32> to vector<8x128xf32>
    %205 = arith.negf %204 : vector<8x128xf32>
    %206 = math.exp %205 : vector<8x128xf32>
    %cst_74 = arith.constant 1.000000e+00 : f32
    %207 = vector.broadcast %cst_74 : f32 to vector<8x128xf32>
    %208 = arith.addf %207, %206 : vector<8x128xf32>
    %209 = arith.divf %207, %208 : vector<8x128xf32>
    %210 = vector.extract_strided_slice %197 {offsets = [0, 256], sizes = [8, 128], strides = [1, 1]} : vector<8x512xf32> to vector<8x128xf32>
    %211 = vector.extract_strided_slice %197 {offsets = [0, 384], sizes = [8, 128], strides = [1, 1]} : vector<8x512xf32> to vector<8x128xf32>
    %212 = arith.mulf %203, %211 : vector<8x128xf32>
    %213 = arith.addf %210, %212 : vector<8x128xf32>
    %214 = math.tanh %213 : vector<8x128xf32>
    %215 = arith.subf %177, %214 : vector<8x128xf32>
    %216 = arith.mulf %209, %215 : vector<8x128xf32>
    %217 = arith.addf %214, %216 : vector<8x128xf32>
    %cst_75 = arith.constant dense<0.000000e+00> : vector<8x512xf32>
    %218 = tpu.matmul %217, %1, %cst_75 {dimension_numbers = #tpu.dot_dimension_numbers<[1], [0], [0], [1], [0, 0, 1, 1], [], []>} : vector<8x128xf32>, vector<128x512xf32>, vector<8x512xf32> -> vector<8x512xf32>
    %219 = arith.addf %218, %3 : vector<8x512xf32>
    %220 = vector.extract_strided_slice %219 {offsets = [0, 0], sizes = [8, 128], strides = [1, 1]} : vector<8x512xf32> to vector<8x128xf32>
    %221 = arith.negf %220 : vector<8x128xf32>
    %222 = math.exp %221 : vector<8x128xf32>
    %cst_76 = arith.constant 1.000000e+00 : f32
    %223 = vector.broadcast %cst_76 : f32 to vector<8x128xf32>
    %224 = arith.addf %223, %222 : vector<8x128xf32>
    %225 = arith.divf %223, %224 : vector<8x128xf32>
    %226 = vector.extract_strided_slice %219 {offsets = [0, 128], sizes = [8, 128], strides = [1, 1]} : vector<8x512xf32> to vector<8x128xf32>
    %227 = arith.negf %226 : vector<8x128xf32>
    %228 = math.exp %227 : vector<8x128xf32>
    %cst_77 = arith.constant 1.000000e+00 : f32
    %229 = vector.broadcast %cst_77 : f32 to vector<8x128xf32>
    %230 = arith.addf %229, %228 : vector<8x128xf32>
    %231 = arith.divf %229, %230 : vector<8x128xf32>
    %232 = vector.extract_strided_slice %219 {offsets = [0, 256], sizes = [8, 128], strides = [1, 1]} : vector<8x512xf32> to vector<8x128xf32>
    %233 = vector.extract_strided_slice %219 {offsets = [0, 384], sizes = [8, 128], strides = [1, 1]} : vector<8x512xf32> to vector<8x128xf32>
    %234 = arith.mulf %225, %233 : vector<8x128xf32>
    %235 = arith.addf %232, %234 : vector<8x128xf32>
    %236 = math.tanh %235 : vector<8x128xf32>
    %237 = arith.subf %217, %236 : vector<8x128xf32>
    %238 = arith.mulf %231, %237 : vector<8x128xf32>
    %239 = arith.addf %236, %238 : vector<8x128xf32>
    %cst_78 = arith.constant dense<0.000000e+00> : vector<8x128xf32>
    %240 = tpu.matmul %239, %4, %cst_78 {dimension_numbers = #tpu.dot_dimension_numbers<[1], [0], [0], [1], [0, 0, 1, 1], [], []>} : vector<8x128xf32>, vector<128x128xf32>, vector<8x128xf32> -> vector<8x128xf32>
    %241 = arith.addf %240, %5 : vector<8x128xf32>
    %c3 = arith.constant 3 : index
    %c0_79 = arith.constant 0 : index
    %c0_80 = arith.constant 0 : index
    %242 = vector.load %arg1[%c3, %c0_79, %c0_80] : memref<8x8x128xf32, #tpu.memory_space<vmem>>, vector<1x8x128xf32>
    %243 = vector.shape_cast %242 : vector<1x8x128xf32> to vector<8x128xf32>
    %c3_81 = arith.constant 3 : index
    %c0_82 = arith.constant 0 : index
    %c0_83 = arith.constant 0 : index
    %244 = vector.load %arg0[%c3_81, %c0_82, %c0_83] : memref<8x8x128xf32, #tpu.memory_space<vmem>>, vector<1x8x128xf32>
    %245 = vector.shape_cast %244 : vector<1x8x128xf32> to vector<8x128xf32>
    %246 = arith.mulf %243, %245 : vector<8x128xf32>
    %cst_84 = arith.constant 1.000000e+00 : f32
    %247 = vector.broadcast %cst_84 : f32 to vector<8x128xf32>
    %248 = arith.subf %247, %243 : vector<8x128xf32>
    %249 = arith.mulf %248, %241 : vector<8x128xf32>
    %250 = arith.addf %246, %249 : vector<8x128xf32>
    %c3_85 = arith.constant 3 : index
    %c0_86 = arith.constant 0 : index
    %c0_87 = arith.constant 0 : index
    %251 = vector.load %arg10[%c3_85, %c0_86, %c0_87] : memref<7x8x128xf32, #tpu.memory_space<vmem>>, vector<1x8x128xf32>
    %252 = vector.shape_cast %251 : vector<1x8x128xf32> to vector<8x128xf32>
    %253 = vector.shape_cast %241 : vector<8x128xf32> to vector<1x8x128xf32>
    tpu.vector_store %arg10[%c3_85, %c0_86, %c0_87], %253 {strides = array<i32>} : memref<7x8x128xf32, #tpu.memory_space<vmem>>, vector<1x8x128xf32>,
    %c3_88 = arith.constant 3 : index
    %c0_89 = arith.constant 0 : index
    %c0_90 = arith.constant 0 : index
    %254 = vector.load %arg9[%c3_88, %c0_89, %c0_90] : memref<7x8x128xf32, #tpu.memory_space<vmem>>, vector<1x8x128xf32>
    %255 = vector.shape_cast %254 : vector<1x8x128xf32> to vector<8x128xf32>
    %256 = vector.shape_cast %250 : vector<8x128xf32> to vector<1x8x128xf32>
    tpu.vector_store %arg9[%c3_88, %c0_89, %c0_90], %256 {strides = array<i32>} : memref<7x8x128xf32, #tpu.memory_space<vmem>>, vector<1x8x128xf32>,
    %257 = tpu.concatenate %250, %239 in 1 : vector<8x128xf32>, vector<8x128xf32> -> vector<8x256xf32>
    %cst_91 = arith.constant dense<0.000000e+00> : vector<8x512xf32>
    %258 = tpu.matmul %257, %0, %cst_91 {dimension_numbers = #tpu.dot_dimension_numbers<[1], [0], [0], [1], [0, 0, 1, 1], [], []>} : vector<8x256xf32>, vector<256x512xf32>, vector<8x512xf32> -> vector<8x512xf32>
    %259 = arith.addf %258, %2 : vector<8x512xf32>
    %260 = vector.extract_strided_slice %259 {offsets = [0, 0], sizes = [8, 128], strides = [1, 1]} : vector<8x512xf32> to vector<8x128xf32>
    %261 = arith.negf %260 : vector<8x128xf32>
    %262 = math.exp %261 : vector<8x128xf32>
    %cst_92 = arith.constant 1.000000e+00 : f32
    %263 = vector.broadcast %cst_92 : f32 to vector<8x128xf32>
    %264 = arith.addf %263, %262 : vector<8x128xf32>
    %265 = arith.divf %263, %264 : vector<8x128xf32>
    %266 = vector.extract_strided_slice %259 {offsets = [0, 128], sizes = [8, 128], strides = [1, 1]} : vector<8x512xf32> to vector<8x128xf32>
    %267 = arith.negf %266 : vector<8x128xf32>
    %268 = math.exp %267 : vector<8x128xf32>
    %cst_93 = arith.constant 1.000000e+00 : f32
    %269 = vector.broadcast %cst_93 : f32 to vector<8x128xf32>
    %270 = arith.addf %269, %268 : vector<8x128xf32>
    %271 = arith.divf %269, %270 : vector<8x128xf32>
    %272 = vector.extract_strided_slice %259 {offsets = [0, 256], sizes = [8, 128], strides = [1, 1]} : vector<8x512xf32> to vector<8x128xf32>
    %273 = vector.extract_strided_slice %259 {offsets = [0, 384], sizes = [8, 128], strides = [1, 1]} : vector<8x512xf32> to vector<8x128xf32>
    %274 = arith.mulf %265, %273 : vector<8x128xf32>
    %275 = arith.addf %272, %274 : vector<8x128xf32>
    %276 = math.tanh %275 : vector<8x128xf32>
    %277 = arith.subf %239, %276 : vector<8x128xf32>
    %278 = arith.mulf %271, %277 : vector<8x128xf32>
    %279 = arith.addf %276, %278 : vector<8x128xf32>
    %cst_94 = arith.constant dense<0.000000e+00> : vector<8x512xf32>
    %280 = tpu.matmul %279, %1, %cst_94 {dimension_numbers = #tpu.dot_dimension_numbers<[1], [0], [0], [1], [0, 0, 1, 1], [], []>} : vector<8x128xf32>, vector<128x512xf32>, vector<8x512xf32> -> vector<8x512xf32>
    %281 = arith.addf %280, %3 : vector<8x512xf32>
    %282 = vector.extract_strided_slice %281 {offsets = [0, 0], sizes = [8, 128], strides = [1, 1]} : vector<8x512xf32> to vector<8x128xf32>
    %283 = arith.negf %282 : vector<8x128xf32>
    %284 = math.exp %283 : vector<8x128xf32>
    %cst_95 = arith.constant 1.000000e+00 : f32
    %285 = vector.broadcast %cst_95 : f32 to vector<8x128xf32>
    %286 = arith.addf %285, %284 : vector<8x128xf32>
    %287 = arith.divf %285, %286 : vector<8x128xf32>
    %288 = vector.extract_strided_slice %281 {offsets = [0, 128], sizes = [8, 128], strides = [1, 1]} : vector<8x512xf32> to vector<8x128xf32>
    %289 = arith.negf %288 : vector<8x128xf32>
    %290 = math.exp %289 : vector<8x128xf32>
    %cst_96 = arith.constant 1.000000e+00 : f32
    %291 = vector.broadcast %cst_96 : f32 to vector<8x128xf32>
    %292 = arith.addf %291, %290 : vector<8x128xf32>
    %293 = arith.divf %291, %292 : vector<8x128xf32>
    %294 = vector.extract_strided_slice %281 {offsets = [0, 256], sizes = [8, 128], strides = [1, 1]} : vector<8x512xf32> to vector<8x128xf32>
    %295 = vector.extract_strided_slice %281 {offsets = [0, 384], sizes = [8, 128], strides = [1, 1]} : vector<8x512xf32> to vector<8x128xf32>
    %296 = arith.mulf %287, %295 : vector<8x128xf32>
    %297 = arith.addf %294, %296 : vector<8x128xf32>
    %298 = math.tanh %297 : vector<8x128xf32>
    %299 = arith.subf %279, %298 : vector<8x128xf32>
    %300 = arith.mulf %293, %299 : vector<8x128xf32>
    %301 = arith.addf %298, %300 : vector<8x128xf32>
    %cst_97 = arith.constant dense<0.000000e+00> : vector<8x128xf32>
    %302 = tpu.matmul %301, %4, %cst_97 {dimension_numbers = #tpu.dot_dimension_numbers<[1], [0], [0], [1], [0, 0, 1, 1], [], []>} : vector<8x128xf32>, vector<128x128xf32>, vector<8x128xf32> -> vector<8x128xf32>
    %303 = arith.addf %302, %5 : vector<8x128xf32>
    %c4 = arith.constant 4 : index
    %c0_98 = arith.constant 0 : index
    %c0_99 = arith.constant 0 : index
    %304 = vector.load %arg1[%c4, %c0_98, %c0_99] : memref<8x8x128xf32, #tpu.memory_space<vmem>>, vector<1x8x128xf32>
    %305 = vector.shape_cast %304 : vector<1x8x128xf32> to vector<8x128xf32>
    %c4_100 = arith.constant 4 : index
    %c0_101 = arith.constant 0 : index
    %c0_102 = arith.constant 0 : index
    %306 = vector.load %arg0[%c4_100, %c0_101, %c0_102] : memref<8x8x128xf32, #tpu.memory_space<vmem>>, vector<1x8x128xf32>
    %307 = vector.shape_cast %306 : vector<1x8x128xf32> to vector<8x128xf32>
    %308 = arith.mulf %305, %307 : vector<8x128xf32>
    %cst_103 = arith.constant 1.000000e+00 : f32
    %309 = vector.broadcast %cst_103 : f32 to vector<8x128xf32>
    %310 = arith.subf %309, %305 : vector<8x128xf32>
    %311 = arith.mulf %310, %303 : vector<8x128xf32>
    %312 = arith.addf %308, %311 : vector<8x128xf32>
    %c4_104 = arith.constant 4 : index
    %c0_105 = arith.constant 0 : index
    %c0_106 = arith.constant 0 : index
    %313 = vector.load %arg10[%c4_104, %c0_105, %c0_106] : memref<7x8x128xf32, #tpu.memory_space<vmem>>, vector<1x8x128xf32>
    %314 = vector.shape_cast %313 : vector<1x8x128xf32> to vector<8x128xf32>
    %315 = vector.shape_cast %303 : vector<8x128xf32> to vector<1x8x128xf32>
    tpu.vector_store %arg10[%c4_104, %c0_105, %c0_106], %315 {strides = array<i32>} : memref<7x8x128xf32, #tpu.memory_space<vmem>>, vector<1x8x128xf32>,
    %c4_107 = arith.constant 4 : index
    %c0_108 = arith.constant 0 : index
    %c0_109 = arith.constant 0 : index
    %316 = vector.load %arg9[%c4_107, %c0_108, %c0_109] : memref<7x8x128xf32, #tpu.memory_space<vmem>>, vector<1x8x128xf32>
    %317 = vector.shape_cast %316 : vector<1x8x128xf32> to vector<8x128xf32>
    %318 = vector.shape_cast %312 : vector<8x128xf32> to vector<1x8x128xf32>
    tpu.vector_store %arg9[%c4_107, %c0_108, %c0_109], %318 {strides = array<i32>} : memref<7x8x128xf32, #tpu.memory_space<vmem>>, vector<1x8x128xf32>,
    %319 = tpu.concatenate %312, %301 in 1 : vector<8x128xf32>, vector<8x128xf32> -> vector<8x256xf32>
    %cst_110 = arith.constant dense<0.000000e+00> : vector<8x512xf32>
    %320 = tpu.matmul %319, %0, %cst_110 {dimension_numbers = #tpu.dot_dimension_numbers<[1], [0], [0], [1], [0, 0, 1, 1], [], []>} : vector<8x256xf32>, vector<256x512xf32>, vector<8x512xf32> -> vector<8x512xf32>
    %321 = arith.addf %320, %2 : vector<8x512xf32>
    %322 = vector.extract_strided_slice %321 {offsets = [0, 0], sizes = [8, 128], strides = [1, 1]} : vector<8x512xf32> to vector<8x128xf32>
    %323 = arith.negf %322 : vector<8x128xf32>
    %324 = math.exp %323 : vector<8x128xf32>
    %cst_111 = arith.constant 1.000000e+00 : f32
    %325 = vector.broadcast %cst_111 : f32 to vector<8x128xf32>
    %326 = arith.addf %325, %324 : vector<8x128xf32>
    %327 = arith.divf %325, %326 : vector<8x128xf32>
    %328 = vector.extract_strided_slice %321 {offsets = [0, 128], sizes = [8, 128], strides = [1, 1]} : vector<8x512xf32> to vector<8x128xf32>
    %329 = arith.negf %328 : vector<8x128xf32>
    %330 = math.exp %329 : vector<8x128xf32>
    %cst_112 = arith.constant 1.000000e+00 : f32
    %331 = vector.broadcast %cst_112 : f32 to vector<8x128xf32>
    %332 = arith.addf %331, %330 : vector<8x128xf32>
    %333 = arith.divf %331, %332 : vector<8x128xf32>
    %334 = vector.extract_strided_slice %321 {offsets = [0, 256], sizes = [8, 128], strides = [1, 1]} : vector<8x512xf32> to vector<8x128xf32>
    %335 = vector.extract_strided_slice %321 {offsets = [0, 384], sizes = [8, 128], strides = [1, 1]} : vector<8x512xf32> to vector<8x128xf32>
    %336 = arith.mulf %327, %335 : vector<8x128xf32>
    %337 = arith.addf %334, %336 : vector<8x128xf32>
    %338 = math.tanh %337 : vector<8x128xf32>
    %339 = arith.subf %301, %338 : vector<8x128xf32>
    %340 = arith.mulf %333, %339 : vector<8x128xf32>
    %341 = arith.addf %338, %340 : vector<8x128xf32>
    %cst_113 = arith.constant dense<0.000000e+00> : vector<8x512xf32>
    %342 = tpu.matmul %341, %1, %cst_113 {dimension_numbers = #tpu.dot_dimension_numbers<[1], [0], [0], [1], [0, 0, 1, 1], [], []>} : vector<8x128xf32>, vector<128x512xf32>, vector<8x512xf32> -> vector<8x512xf32>
    %343 = arith.addf %342, %3 : vector<8x512xf32>
    %344 = vector.extract_strided_slice %343 {offsets = [0, 0], sizes = [8, 128], strides = [1, 1]} : vector<8x512xf32> to vector<8x128xf32>
    %345 = arith.negf %344 : vector<8x128xf32>
    %346 = math.exp %345 : vector<8x128xf32>
    %cst_114 = arith.constant 1.000000e+00 : f32
    %347 = vector.broadcast %cst_114 : f32 to vector<8x128xf32>
    %348 = arith.addf %347, %346 : vector<8x128xf32>
    %349 = arith.divf %347, %348 : vector<8x128xf32>
    %350 = vector.extract_strided_slice %343 {offsets = [0, 128], sizes = [8, 128], strides = [1, 1]} : vector<8x512xf32> to vector<8x128xf32>
    %351 = arith.negf %350 : vector<8x128xf32>
    %352 = math.exp %351 : vector<8x128xf32>
    %cst_115 = arith.constant 1.000000e+00 : f32
    %353 = vector.broadcast %cst_115 : f32 to vector<8x128xf32>
    %354 = arith.addf %353, %352 : vector<8x128xf32>
    %355 = arith.divf %353, %354 : vector<8x128xf32>
    %356 = vector.extract_strided_slice %343 {offsets = [0, 256], sizes = [8, 128], strides = [1, 1]} : vector<8x512xf32> to vector<8x128xf32>
    %357 = vector.extract_strided_slice %343 {offsets = [0, 384], sizes = [8, 128], strides = [1, 1]} : vector<8x512xf32> to vector<8x128xf32>
    %358 = arith.mulf %349, %357 : vector<8x128xf32>
    %359 = arith.addf %356, %358 : vector<8x128xf32>
    %360 = math.tanh %359 : vector<8x128xf32>
    %361 = arith.subf %341, %360 : vector<8x128xf32>
    %362 = arith.mulf %355, %361 : vector<8x128xf32>
    %363 = arith.addf %360, %362 : vector<8x128xf32>
    %cst_116 = arith.constant dense<0.000000e+00> : vector<8x128xf32>
    %364 = tpu.matmul %363, %4, %cst_116 {dimension_numbers = #tpu.dot_dimension_numbers<[1], [0], [0], [1], [0, 0, 1, 1], [], []>} : vector<8x128xf32>, vector<128x128xf32>, vector<8x128xf32> -> vector<8x128xf32>
    %365 = arith.addf %364, %5 : vector<8x128xf32>
    %c5 = arith.constant 5 : index
    %c0_117 = arith.constant 0 : index
    %c0_118 = arith.constant 0 : index
    %366 = vector.load %arg1[%c5, %c0_117, %c0_118] : memref<8x8x128xf32, #tpu.memory_space<vmem>>, vector<1x8x128xf32>
    %367 = vector.shape_cast %366 : vector<1x8x128xf32> to vector<8x128xf32>
    %c5_119 = arith.constant 5 : index
    %c0_120 = arith.constant 0 : index
    %c0_121 = arith.constant 0 : index
    %368 = vector.load %arg0[%c5_119, %c0_120, %c0_121] : memref<8x8x128xf32, #tpu.memory_space<vmem>>, vector<1x8x128xf32>
    %369 = vector.shape_cast %368 : vector<1x8x128xf32> to vector<8x128xf32>
    %370 = arith.mulf %367, %369 : vector<8x128xf32>
    %cst_122 = arith.constant 1.000000e+00 : f32
    %371 = vector.broadcast %cst_122 : f32 to vector<8x128xf32>
    %372 = arith.subf %371, %367 : vector<8x128xf32>
    %373 = arith.mulf %372, %365 : vector<8x128xf32>
    %374 = arith.addf %370, %373 : vector<8x128xf32>
    %c5_123 = arith.constant 5 : index
    %c0_124 = arith.constant 0 : index
    %c0_125 = arith.constant 0 : index
    %375 = vector.load %arg10[%c5_123, %c0_124, %c0_125] : memref<7x8x128xf32, #tpu.memory_space<vmem>>, vector<1x8x128xf32>
    %376 = vector.shape_cast %375 : vector<1x8x128xf32> to vector<8x128xf32>
    %377 = vector.shape_cast %365 : vector<8x128xf32> to vector<1x8x128xf32>
    tpu.vector_store %arg10[%c5_123, %c0_124, %c0_125], %377 {strides = array<i32>} : memref<7x8x128xf32, #tpu.memory_space<vmem>>, vector<1x8x128xf32>,
    %c5_126 = arith.constant 5 : index
    %c0_127 = arith.constant 0 : index
    %c0_128 = arith.constant 0 : index
    %378 = vector.load %arg9[%c5_126, %c0_127, %c0_128] : memref<7x8x128xf32, #tpu.memory_space<vmem>>, vector<1x8x128xf32>
    %379 = vector.shape_cast %378 : vector<1x8x128xf32> to vector<8x128xf32>
    %380 = vector.shape_cast %374 : vector<8x128xf32> to vector<1x8x128xf32>
    tpu.vector_store %arg9[%c5_126, %c0_127, %c0_128], %380 {strides = array<i32>} : memref<7x8x128xf32, #tpu.memory_space<vmem>>, vector<1x8x128xf32>,
    %381 = tpu.concatenate %374, %363 in 1 : vector<8x128xf32>, vector<8x128xf32> -> vector<8x256xf32>
    %cst_129 = arith.constant dense<0.000000e+00> : vector<8x512xf32>
    %382 = tpu.matmul %381, %0, %cst_129 {dimension_numbers = #tpu.dot_dimension_numbers<[1], [0], [0], [1], [0, 0, 1, 1], [], []>} : vector<8x256xf32>, vector<256x512xf32>, vector<8x512xf32> -> vector<8x512xf32>
    %383 = arith.addf %382, %2 : vector<8x512xf32>
    %384 = vector.extract_strided_slice %383 {offsets = [0, 0], sizes = [8, 128], strides = [1, 1]} : vector<8x512xf32> to vector<8x128xf32>
    %385 = arith.negf %384 : vector<8x128xf32>
    %386 = math.exp %385 : vector<8x128xf32>
    %cst_130 = arith.constant 1.000000e+00 : f32
    %387 = vector.broadcast %cst_130 : f32 to vector<8x128xf32>
    %388 = arith.addf %387, %386 : vector<8x128xf32>
    %389 = arith.divf %387, %388 : vector<8x128xf32>
    %390 = vector.extract_strided_slice %383 {offsets = [0, 128], sizes = [8, 128], strides = [1, 1]} : vector<8x512xf32> to vector<8x128xf32>
    %391 = arith.negf %390 : vector<8x128xf32>
    %392 = math.exp %391 : vector<8x128xf32>
    %cst_131 = arith.constant 1.000000e+00 : f32
    %393 = vector.broadcast %cst_131 : f32 to vector<8x128xf32>
    %394 = arith.addf %393, %392 : vector<8x128xf32>
    %395 = arith.divf %393, %394 : vector<8x128xf32>
    %396 = vector.extract_strided_slice %383 {offsets = [0, 256], sizes = [8, 128], strides = [1, 1]} : vector<8x512xf32> to vector<8x128xf32>
    %397 = vector.extract_strided_slice %383 {offsets = [0, 384], sizes = [8, 128], strides = [1, 1]} : vector<8x512xf32> to vector<8x128xf32>
    %398 = arith.mulf %389, %397 : vector<8x128xf32>
    %399 = arith.addf %396, %398 : vector<8x128xf32>
    %400 = math.tanh %399 : vector<8x128xf32>
    %401 = arith.subf %363, %400 : vector<8x128xf32>
    %402 = arith.mulf %395, %401 : vector<8x128xf32>
    %403 = arith.addf %400, %402 : vector<8x128xf32>
    %cst_132 = arith.constant dense<0.000000e+00> : vector<8x512xf32>
    %404 = tpu.matmul %403, %1, %cst_132 {dimension_numbers = #tpu.dot_dimension_numbers<[1], [0], [0], [1], [0, 0, 1, 1], [], []>} : vector<8x128xf32>, vector<128x512xf32>, vector<8x512xf32> -> vector<8x512xf32>
    %405 = arith.addf %404, %3 : vector<8x512xf32>
    %406 = vector.extract_strided_slice %405 {offsets = [0, 0], sizes = [8, 128], strides = [1, 1]} : vector<8x512xf32> to vector<8x128xf32>
    %407 = arith.negf %406 : vector<8x128xf32>
    %408 = math.exp %407 : vector<8x128xf32>
    %cst_133 = arith.constant 1.000000e+00 : f32
    %409 = vector.broadcast %cst_133 : f32 to vector<8x128xf32>
    %410 = arith.addf %409, %408 : vector<8x128xf32>
    %411 = arith.divf %409, %410 : vector<8x128xf32>
    %412 = vector.extract_strided_slice %405 {offsets = [0, 128], sizes = [8, 128], strides = [1, 1]} : vector<8x512xf32> to vector<8x128xf32>
    %413 = arith.negf %412 : vector<8x128xf32>
    %414 = math.exp %413 : vector<8x128xf32>
    %cst_134 = arith.constant 1.000000e+00 : f32
    %415 = vector.broadcast %cst_134 : f32 to vector<8x128xf32>
    %416 = arith.addf %415, %414 : vector<8x128xf32>
    %417 = arith.divf %415, %416 : vector<8x128xf32>
    %418 = vector.extract_strided_slice %405 {offsets = [0, 256], sizes = [8, 128], strides = [1, 1]} : vector<8x512xf32> to vector<8x128xf32>
    %419 = vector.extract_strided_slice %405 {offsets = [0, 384], sizes = [8, 128], strides = [1, 1]} : vector<8x512xf32> to vector<8x128xf32>
    %420 = arith.mulf %411, %419 : vector<8x128xf32>
    %421 = arith.addf %418, %420 : vector<8x128xf32>
    %422 = math.tanh %421 : vector<8x128xf32>
    %423 = arith.subf %403, %422 : vector<8x128xf32>
    %424 = arith.mulf %417, %423 : vector<8x128xf32>
    %425 = arith.addf %422, %424 : vector<8x128xf32>
    %cst_135 = arith.constant dense<0.000000e+00> : vector<8x128xf32>
    %426 = tpu.matmul %425, %4, %cst_135 {dimension_numbers = #tpu.dot_dimension_numbers<[1], [0], [0], [1], [0, 0, 1, 1], [], []>} : vector<8x128xf32>, vector<128x128xf32>, vector<8x128xf32> -> vector<8x128xf32>
    %427 = arith.addf %426, %5 : vector<8x128xf32>
    %c6 = arith.constant 6 : index
    %c0_136 = arith.constant 0 : index
    %c0_137 = arith.constant 0 : index
    %428 = vector.load %arg1[%c6, %c0_136, %c0_137] : memref<8x8x128xf32, #tpu.memory_space<vmem>>, vector<1x8x128xf32>
    %429 = vector.shape_cast %428 : vector<1x8x128xf32> to vector<8x128xf32>
    %c6_138 = arith.constant 6 : index
    %c0_139 = arith.constant 0 : index
    %c0_140 = arith.constant 0 : index
    %430 = vector.load %arg0[%c6_138, %c0_139, %c0_140] : memref<8x8x128xf32, #tpu.memory_space<vmem>>, vector<1x8x128xf32>
    %431 = vector.shape_cast %430 : vector<1x8x128xf32> to vector<8x128xf32>
    %432 = arith.mulf %429, %431 : vector<8x128xf32>
    %cst_141 = arith.constant 1.000000e+00 : f32
    %433 = vector.broadcast %cst_141 : f32 to vector<8x128xf32>
    %434 = arith.subf %433, %429 : vector<8x128xf32>
    %435 = arith.mulf %434, %427 : vector<8x128xf32>
    %436 = arith.addf %432, %435 : vector<8x128xf32>
    %c6_142 = arith.constant 6 : index
    %c0_143 = arith.constant 0 : index
    %c0_144 = arith.constant 0 : index
    %437 = vector.load %arg10[%c6_142, %c0_143, %c0_144] : memref<7x8x128xf32, #tpu.memory_space<vmem>>, vector<1x8x128xf32>
    %438 = vector.shape_cast %437 : vector<1x8x128xf32> to vector<8x128xf32>
    %439 = vector.shape_cast %427 : vector<8x128xf32> to vector<1x8x128xf32>
    tpu.vector_store %arg10[%c6_142, %c0_143, %c0_144], %439 {strides = array<i32>} : memref<7x8x128xf32, #tpu.memory_space<vmem>>, vector<1x8x128xf32>,
    %c6_145 = arith.constant 6 : index
    %c0_146 = arith.constant 0 : index
    %c0_147 = arith.constant 0 : index
    %440 = vector.load %arg9[%c6_145, %c0_146, %c0_147] : memref<7x8x128xf32, #tpu.memory_space<vmem>>, vector<1x8x128xf32>
    %441 = vector.shape_cast %440 : vector<1x8x128xf32> to vector<8x128xf32>
    %442 = vector.shape_cast %436 : vector<8x128xf32> to vector<1x8x128xf32>
    tpu.vector_store %arg9[%c6_145, %c0_146, %c0_147], %442 {strides = array<i32>} : memref<7x8x128xf32, #tpu.memory_space<vmem>>, vector<1x8x128xf32>,
    %443 = tpu.concatenate %436, %425 in 1 : vector<8x128xf32>, vector<8x128xf32> -> vector<8x256xf32>
    %cst_148 = arith.constant dense<0.000000e+00> : vector<8x512xf32>
    %444 = tpu.matmul %443, %0, %cst_148 {dimension_numbers = #tpu.dot_dimension_numbers<[1], [0], [0], [1], [0, 0, 1, 1], [], []>} : vector<8x256xf32>, vector<256x512xf32>, vector<8x512xf32> -> vector<8x512xf32>
    %445 = arith.addf %444, %2 : vector<8x512xf32>
    %446 = vector.extract_strided_slice %445 {offsets = [0, 0], sizes = [8, 128], strides = [1, 1]} : vector<8x512xf32> to vector<8x128xf32>
    %447 = arith.negf %446 : vector<8x128xf32>
    %448 = math.exp %447 : vector<8x128xf32>
    %cst_149 = arith.constant 1.000000e+00 : f32
    %449 = vector.broadcast %cst_149 : f32 to vector<8x128xf32>
    %450 = arith.addf %449, %448 : vector<8x128xf32>
    %451 = arith.divf %449, %450 : vector<8x128xf32>
    %452 = vector.extract_strided_slice %445 {offsets = [0, 128], sizes = [8, 128], strides = [1, 1]} : vector<8x512xf32> to vector<8x128xf32>
    %453 = arith.negf %452 : vector<8x128xf32>
    %454 = math.exp %453 : vector<8x128xf32>
    %cst_150 = arith.constant 1.000000e+00 : f32
    %455 = vector.broadcast %cst_150 : f32 to vector<8x128xf32>
    %456 = arith.addf %455, %454 : vector<8x128xf32>
    %457 = arith.divf %455, %456 : vector<8x128xf32>
    %458 = vector.extract_strided_slice %445 {offsets = [0, 256], sizes = [8, 128], strides = [1, 1]} : vector<8x512xf32> to vector<8x128xf32>
    %459 = vector.extract_strided_slice %445 {offsets = [0, 384], sizes = [8, 128], strides = [1, 1]} : vector<8x512xf32> to vector<8x128xf32>
    %460 = arith.mulf %451, %459 : vector<8x128xf32>
    %461 = arith.addf %458, %460 : vector<8x128xf32>
    %462 = math.tanh %461 : vector<8x128xf32>
    %463 = arith.subf %425, %462 : vector<8x128xf32>
    %464 = arith.mulf %457, %463 : vector<8x128xf32>
    %465 = arith.addf %462, %464 : vector<8x128xf32>
    %cst_151 = arith.constant dense<0.000000e+00> : vector<8x512xf32>
    %466 = tpu.matmul %465, %1, %cst_151 {dimension_numbers = #tpu.dot_dimension_numbers<[1], [0], [0], [1], [0, 0, 1, 1], [], []>} : vector<8x128xf32>, vector<128x512xf32>, vector<8x512xf32> -> vector<8x512xf32>
    %467 = arith.addf %466, %3 : vector<8x512xf32>
    %468 = vector.extract_strided_slice %467 {offsets = [0, 0], sizes = [8, 128], strides = [1, 1]} : vector<8x512xf32> to vector<8x128xf32>
    %469 = arith.negf %468 : vector<8x128xf32>
    %470 = math.exp %469 : vector<8x128xf32>
    %cst_152 = arith.constant 1.000000e+00 : f32
    %471 = vector.broadcast %cst_152 : f32 to vector<8x128xf32>
    %472 = arith.addf %471, %470 : vector<8x128xf32>
    %473 = arith.divf %471, %472 : vector<8x128xf32>
    %474 = vector.extract_strided_slice %467 {offsets = [0, 128], sizes = [8, 128], strides = [1, 1]} : vector<8x512xf32> to vector<8x128xf32>
    %475 = arith.negf %474 : vector<8x128xf32>
    %476 = math.exp %475 : vector<8x128xf32>
    %cst_153 = arith.constant 1.000000e+00 : f32
    %477 = vector.broadcast %cst_153 : f32 to vector<8x128xf32>
    %478 = arith.addf %477, %476 : vector<8x128xf32>
    %479 = arith.divf %477, %478 : vector<8x128xf32>
    %480 = vector.extract_strided_slice %467 {offsets = [0, 256], sizes = [8, 128], strides = [1, 1]} : vector<8x512xf32> to vector<8x128xf32>
    %481 = vector.extract_strided_slice %467 {offsets = [0, 384], sizes = [8, 128], strides = [1, 1]} : vector<8x512xf32> to vector<8x128xf32>
    %482 = arith.mulf %473, %481 : vector<8x128xf32>
    %483 = arith.addf %480, %482 : vector<8x128xf32>
    %484 = math.tanh %483 : vector<8x128xf32>
    %485 = arith.subf %465, %484 : vector<8x128xf32>
    %486 = arith.mulf %479, %485 : vector<8x128xf32>
    %487 = arith.addf %484, %486 : vector<8x128xf32>
    %c0_154 = arith.constant 0 : index
    %c0_155 = arith.constant 0 : index
    %488 = vector.load %arg8[%c0_154, %c0_155] : memref<8x128xf32, #tpu.memory_space<vmem>>, vector<8x128xf32>
    tpu.vector_store %arg8[%c0_154, %c0_155], %487 {strides = array<i32>} : memref<8x128xf32, #tpu.memory_space<vmem>>, vector<8x128xf32>,
    return
  }
}

</mosaic_0001>

<bundles_post_ra>
// kernel: tpu_custom_call.1
= control target key start
LH: loop header
LB: loop body
LE: loop exit
PB: predicated region body
PF: predicated region fallthrough
CT: control target
= control target key end

     0   :  { %16 = vsyncpa [#allocation3], 0  ;;  %s8035_s0 = inlined_call_operand.hbm [shape: f32[8,8,128], index: 0, kind: input, shape index: {}]   ;;  %s8036_s1 = inlined_call_operand.hbm [shape: f32[8,8,128], index: 1, kind: input, shape index: {}]   ;;  %s8037_s2 = inlined_call_operand.hbm [shape: f32[256,512], index: 2, kind: input, shape index: {}]   ;;  %s8038_s3 = inlined_call_operand.hbm [shape: f32[8,512], index: 3, kind: input, shape index: {}]   ;;  %s8039_s4 = inlined_call_operand.hbm [shape: f32[128,512], index: 4, kind: input, shape index: {}]   ;;  %s8040_s5 = inlined_call_operand.hbm [shape: f32[8,512], index: 5, kind: input, shape index: {}]   ;;  %s8041_s6 = inlined_call_operand.hbm [shape: f32[128,128], index: 6, kind: input, shape index: {}]   ;;  %s8042_s7 = inlined_call_operand.hbm [shape: f32[8,128], index: 7, kind: input, shape index: {}]   ;;  %s8043_s8 = inlined_call_operand.hbm [shape: f32[8,128], index: 8, kind: output, shape index: {0}]   ;;  %s8044_s9 = inlined_call_operand.hbm [shape: f32[7,8,128], index: 9, kind: output, shape index: {1}]   ;;  %s8045_s10 = inlined_call_operand.hbm [shape: f32[7,8,128], index: 10, kind: output, shape index: {2}]  }
   0x1   :  { %17 = vsyncpa [#allocation6], 0 }
   0x2   :  { %18 = vsyncpa [#allocation9], 0 }
   0x3   :  { %19 = vsyncpa [#allocation12], 0 }
   0x4   :  { %20 = vsyncpa [#allocation15], 0 }
   0x5   :  { %21 = vsyncpa [#allocation4], 0 }
   0x6   :  { %22 = vsyncpa [#allocation18], 0  ;;  %s40_s15 = sshll.u32 %s8036_s1, 4  ;;  %s4430_s16 = smov [#allocation5]   ;;  %s41_s15 = int_to_ptr.hbm [resolvable:$true] %s40_s15 }
   0x7   :  { %s42_s17 = sshll.u32 %s4430_s16, 4  ;;  %s67_s20 = sshll.u32 %s8038_s3, 4  ;;  %s43_s17 = int_to_ptr.vmem [resolvable:$true] %s42_s17  ;;  %s68_s20 = int_to_ptr.hbm [resolvable:$true] %s67_s20 }
   0x8   :  { %s4431_s21 = smov 128   ;;  %s4432_s22 = smov 8  }
   0x9   :  { %48 = dma.hbm_to_vmem [thread:$0]  %s41_s15, 1024, %s43_s17, [#allocation6], %s4431_s21, %s4431_s21, %s4432_s22  }
   0xa   :  { %s4433_s23 = smov [#allocation8]   ;;  %s91_s1 = sshll.u32 %s8040_s5, 4  ;;  %s92_s1 = int_to_ptr.hbm [resolvable:$true] %s91_s1 }
   0xb   :  { %s69_s24 = sshll.u32 %s4433_s23, 4  ;;  %s27_s3 = sshll.u32 %s8035_s0, 4  ;;  %s70_s24 = int_to_ptr.vmem [resolvable:$true] %s69_s24  ;;  %s28_s3 = int_to_ptr.hbm [resolvable:$true] %s27_s3 }
   0xc   :  { %72 = dma.hbm_to_vmem [thread:$0]  %s68_s20, 512, %s70_s24, [#allocation9]  }
   0xd   :  { %s4434_s29 = smov [#allocation11]   ;;  %s4435_s11 = smov [#allocation2]  }
   0xe   :  { %s93_s30 = sshll.u32 %s4434_s29, 4  ;;  %s29_s12 = sshll.u32 %s4435_s11, 4  ;;  %s94_s30 = int_to_ptr.vmem [resolvable:$true] %s93_s30  ;;  %s30_s12 = int_to_ptr.vmem [resolvable:$true] %s29_s12 }
   0xf   :  { %96 = dma.hbm_to_vmem [thread:$0]  %s92_s1, 512, %s94_s30, [#allocation12]  }
  0x10   :  { %s53_s15 = sshll.u32 %s8037_s2, 4  ;;  %s4436_s5 = smov [#allocation7]   ;;  %s54_s15 = int_to_ptr.hbm [resolvable:$true] %s53_s15 }
  0x11   :  { %35 = dma.hbm_to_vmem [thread:$0]  %s28_s3, 1024, %s30_s12, [#allocation3], %s4431_s21, %s4431_s21, %s4432_s22  }
  0x12   :  { %s55_s16 = sshll.u32 %s4436_s5, 4  ;;  %s77_s18 = sshll.u32 %s8039_s4, 4  ;;  %s56_s16 = int_to_ptr.vmem [resolvable:$true] %s55_s16  ;;  %s78_s18 = int_to_ptr.hbm [resolvable:$true] %s77_s18 }
  0x13   :  { %s4437_s19 = smov 512   ;;  %s4438_s20 = smov 32  }
  0x14   :  { %61 = dma.hbm_to_vmem [thread:$0]  %s54_s15, 16384, %s56_s16, [#allocation6], %s4437_s19, %s4437_s19, %s4438_s20  }
  0x15   :  { %s4439_s23 = smov [#allocation10]   ;;  %s101_s26 = sshll.u32 %s8041_s6, 4  ;;  %s102_s26 = int_to_ptr.hbm [resolvable:$true] %s101_s26 }
  0x16   :  { %s79_s24 = sshll.u32 %s4439_s23, 4  ;;  %s115_s28 = sshll.u32 %s8042_s7, 4  ;;  %s80_s24 = int_to_ptr.vmem [resolvable:$true] %s79_s24  ;;  %s116_s28 = int_to_ptr.hbm [resolvable:$true] %s115_s28 }
  0x17   :  { %85 = dma.hbm_to_vmem [thread:$0]  %s78_s18, 8192, %s80_s24, [#allocation9], %s4437_s19, %s4437_s19, %s4438_s20  }
  0x18   :  { %s4440_s3 = smov [#allocation13]   ;;  %s4441_s4 = smov [#allocation14]  }
  0x19   :  { %s103_s29 = sshll.u32 %s4440_s3, 4  ;;  %s117_s30 = sshll.u32 %s4441_s4, 4  ;;  %s104_s29 = int_to_ptr.vmem [resolvable:$true] %s103_s29  ;;  %s118_s30 = int_to_ptr.vmem [resolvable:$true] %s117_s30 }
  0x1a   :  { %109 = dma.hbm_to_vmem [thread:$0]  %s102_s26, 2048, %s104_s29, [#allocation12], %s4431_s21, %s4431_s21, %s4432_s22  }
  0x1b   :  { %120 = dma.hbm_to_vmem [thread:$0]  %s116_s28, 128, %s118_s30, [#allocation15]  }
  0x1c   :  { %4416 = dma.done.wait [#allocation3], 1024  }
  0x1d   :  { %4417 = vsyncadd [#allocation3], 4294966272 }
  0x1e   :  { %4418 = dma.done.wait [#allocation6], 17408  }
  0x1f   :  { %4419 = vsyncadd [#allocation6], 4294949888 }
  0x20   :  { %4420 = dma.done.wait [#allocation9], 8704  }
  0x21   :  { %4421 = vsyncadd [#allocation9], 4294958592 }
  0x22   :  { %4422 = dma.done.wait [#allocation12], 2560  }
  0x23   :  { %4423 = vsyncadd [#allocation12], 4294964736 }
  0x24   :  { %4424 = dma.done.wait [#allocation15], 128  }
  0x25   :  { %4425 = vsyncadd [#allocation15], 4294967168  ;;  %v4534_v0 = vld [vmem:[#allocation7 + $0x1e0] sm:$0xff]  ;;  %v4536_v1 = vld [vmem:[#allocation7 + $0x1e8] sm:$0xff]  ;;  %s3232_s11 = sshll.u32 %s8044_s9, 4  ;;  %s4443_s12 = smov [#allocation17]   ;;  %s3233_s11 = int_to_ptr.hbm [resolvable:$true] %s3232_s11 }
  0x26   :  { %v4538_v2 = vld [vmem:[#allocation7 + $0x1c0] sm:$0xff]  ;;  %371 = vmatpush.msra.mxu0 %v4534_v0  ;;  %411 = vmatpush.msra.mxu2 %v4536_v1  ;;  %v4544_v4 = vld [vmem:[#allocation7 + $0x1c8] sm:$0xff]  ;;  %v4676_v63 = vld [vmem:[#allocation7 + $0x1f8] sm:$0xff]  ;;  %s3230_s13 = sshll.u32 %s4443_s12, 4  ;;  %s4444_s14 = smov [#allocation19]   ;;  %s3231_s13 = int_to_ptr.vmem [resolvable:$true] %s3230_s13 }
  0x27   :  { %v4542_v3 = vld [vmem:[#allocation7 + $0x3e0] sm:$0xff]  ;;  %v278_v5 = vld [vmem:[#allocation7 + $0x3e8] sm:$0xff]  ;;  %s3243_s15 = sshll.u32 %s4444_s14, 4  ;;  %s3245_s0 = sshll.u32 %s8045_s10, 4  ;;  %s3244_s15 = int_to_ptr.vmem [resolvable:$true] %s3243_s15  ;;  %s3246_s0 = int_to_ptr.hbm [resolvable:$true] %s3245_s0 }
  0x28   :  { %391 = vmatpush.msra.mxu1 %v4542_v3  ;;  %431 = vmatpush.msra.mxu3 %v278_v5  ;;  %v4547_v6 = vld [vmem:[#allocation7 + $0x1a0] sm:$0xff]  ;;  %v4551_v8 = vld [vmem:[#allocation7 + $0x1a8] sm:$0xff]  ;;  %s4445_s9 = smov [#allocation16]   ;;  %s3222_s17 = sshll.u32 %s8043_s8, 4  ;;  %s3223_s17 = int_to_ptr.hbm [resolvable:$true] %s3222_s17 }
  0x29   :  { %v4549_v7 = vld [vmem:[#allocation7 + $0x3c0] sm:$0xff]  ;;  %372 = vmatpush.msra.mxu0 %v4538_v2  ;;  %412 = vmatpush.msra.mxu2 %v4544_v4  ;;  %v274_v9 = vld [vmem:[#allocation7 + $0x3c8] sm:$0xff]  ;;  %s3220_s10 = sshll.u32 %s4445_s9, 4  ;;  %s3221_s10 = int_to_ptr.vmem [resolvable:$true] %s3220_s10 }
  0x2a   :  { %v4555_v10 = vld [vmem:[#allocation7 + $0x3a0] sm:$0xff]  ;;  %392 = vmatpush.msra.mxu1 %v4549_v7  ;;  %432 = vmatpush.msra.mxu3 %v274_v9  ;;  %v4560_v12 = vld [vmem:[#allocation7 + $0x188] sm:$0xff] }
  0x2b   :  { %v4558_v11 = vld [vmem:[#allocation7 + $0x180] sm:$0xff]  ;;  %v270_v13 = vld [vmem:[#allocation7 + $0x3a8] sm:$0xff]  ;;  %373 = vmatpush.msra.mxu0 %v4547_v6  ;;  %413 = vmatpush.msra.mxu2 %v4551_v8 }
  0x2c   :  { %v4564_v14 = vld [vmem:[#allocation7 + $0x380] sm:$0xff]  ;;  %v266_v15 = vld [vmem:[#allocation7 + $0x388] sm:$0xff]  ;;  %393 = vmatpush.msra.mxu1 %v4555_v10  ;;  %433 = vmatpush.msra.mxu3 %v270_v13  ;;  %v4686_v13 = vld [vmem:[#allocation7 + $0x1d8] sm:$0xff] }
  0x2d   :  { %v4567_v16 = vld [vmem:[#allocation7 + $0x160] sm:$0xff]  ;;  %v4569_v17 = vld [vmem:[#allocation7 + $0x168] sm:$0xff]  ;;  %374 = vmatpush.msra.mxu0 %v4558_v11  ;;  %414 = vmatpush.msra.mxu2 %v4560_v12  ;;  %8580 = vst [vmem:[#allocation29_spill] sm:$0xff] %v4686_v13 }
  0x2e   :  { %v4573_v18 = vld [vmem:[#allocation7 + $0x360] sm:$0xff]  ;;  %v262_v19 = vld [vmem:[#allocation7 + $0x368] sm:$0xff]  ;;  %394 = vmatpush.msra.mxu1 %v4564_v14  ;;  %434 = vmatpush.msra.mxu3 %v266_v15  ;;  %v280_v15 = vld [vmem:[#allocation7 + $0x3f8] sm:$0xff] }
  0x2f   :  { %v4576_v20 = vld [vmem:[#allocation7 + $0x140] sm:$0xff]  ;;  %v4578_v21 = vld [vmem:[#allocation7 + $0x148] sm:$0xff]  ;;  %375 = vmatpush.msra.mxu0 %v4567_v16  ;;  %415 = vmatpush.msra.mxu2 %v4569_v17 }
  0x30   :  { %v4582_v22 = vld [vmem:[#allocation7 + $0x340] sm:$0xff]  ;;  %v258_v23 = vld [vmem:[#allocation7 + $0x348] sm:$0xff]  ;;  %395 = vmatpush.msra.mxu1 %v4573_v18  ;;  %435 = vmatpush.msra.mxu3 %v262_v19  ;;  %v4692_v19 = vld [vmem:[#allocation7 + $0x1b8] sm:$0xff] }
  0x31   :  { %v4585_v24 = vld [vmem:[#allocation7 + $0x120] sm:$0xff]  ;;  %v4587_v25 = vld [vmem:[#allocation7 + $0x128] sm:$0xff]  ;;  %376 = vmatpush.msra.mxu0 %v4576_v20  ;;  %416 = vmatpush.msra.mxu2 %v4578_v21  ;;  %8581 = vst [vmem:[#allocation30_spill] sm:$0xff] %v4692_v19 }
  0x32   :  { %v4591_v26 = vld [vmem:[#allocation7 + $0x320] sm:$0xff]  ;;  %v254_v27 = vld [vmem:[#allocation7 + $0x328] sm:$0xff]  ;;  %396 = vmatpush.msra.mxu1 %v4582_v22  ;;  %436 = vmatpush.msra.mxu3 %v258_v23  ;;  %v8047_v23 = vmov 0.0  }
  0x33   :  { %v4594_v28 = vld [vmem:[#allocation7 + $0x100] sm:$0xff]  ;;  %v4596_v29 = vld [vmem:[#allocation7 + $0x108] sm:$0xff]  ;;  %377 = vmatpush.msra.mxu0 %v4585_v24  ;;  %417 = vmatpush.msra.mxu2 %v4587_v25 }
  0x34   :  { %v4600_v30 = vld [vmem:[#allocation7 + $0x300] sm:$0xff]  ;;  %v250_v31 = vld [vmem:[#allocation7 + $0x308] sm:$0xff]  ;;  %397 = vmatpush.msra.mxu1 %v4591_v26  ;;  %437 = vmatpush.msra.mxu3 %v254_v27  ;;  %v276_v27 = vld [vmem:[#allocation7 + $0x3d8] sm:$0xff] }
  0x35   :  { %v4603_v32 = vld [vmem:[#allocation7 + $0xe0] sm:$0xff]  ;;  %v4605_v33 = vld [vmem:[#allocation7 + $0xe8] sm:$0xff]  ;;  %378 = vmatpush.msra.mxu0 %v4594_v28  ;;  %418 = vmatpush.msra.mxu2 %v4596_v29 }
  0x36   :  { %v4609_v34 = vld [vmem:[#allocation7 + $0x2e0] sm:$0xff]  ;;  %v246_v35 = vld [vmem:[#allocation7 + $0x2e8] sm:$0xff]  ;;  %398 = vmatpush.msra.mxu1 %v4600_v30  ;;  %438 = vmatpush.msra.mxu3 %v250_v31  ;;  %v4696_v31 = vld [vmem:[#allocation7 + $0x1f0] sm:$0xff] }
  0x37   :  { %v4612_v36 = vld [vmem:[#allocation7 + $0xc0] sm:$0xff]  ;;  %v4614_v37 = vld [vmem:[#allocation7 + $0xc8] sm:$0xff]  ;;  %379 = vmatpush.msra.mxu0 %v4603_v32  ;;  %419 = vmatpush.msra.mxu2 %v4605_v33 }
  0x38   :  { %v4618_v38 = vld [vmem:[#allocation7 + $0x2c0] sm:$0xff]  ;;  %v242_v39 = vld [vmem:[#allocation7 + $0x2c8] sm:$0xff]  ;;  %399 = vmatpush.msra.mxu1 %v4609_v34  ;;  %439 = vmatpush.msra.mxu3 %v246_v35  ;;  %v4699_v35 = vld [vmem:[#allocation7 + $0x198] sm:$0xff] }
  0x39   :  { %v4621_v40 = vld [vmem:[#allocation7 + $0xa0] sm:$0xff]  ;;  %v4623_v41 = vld [vmem:[#allocation7 + $0xa8] sm:$0xff]  ;;  %380 = vmatpush.msra.mxu0 %v4612_v36  ;;  %420 = vmatpush.msra.mxu2 %v4614_v37  ;;  %8582 = vst [vmem:[#allocation31_spill] sm:$0xff] %v4699_v35 }
  0x3a   :  { %v4627_v42 = vld [vmem:[#allocation7 + $0x2a0] sm:$0xff]  ;;  %v238_v43 = vld [vmem:[#allocation7 + $0x2a8] sm:$0xff]  ;;  %400 = vmatpush.msra.mxu1 %v4618_v38  ;;  %440 = vmatpush.msra.mxu3 %v242_v39  ;;  %v4701_v39 = vld [vmem:[#allocation7 + $0x3f0] sm:$0xff] }
  0x3b   :  { %v4630_v44 = vld [vmem:[#allocation7 + $0x80] sm:$0xff]  ;;  %v4632_v45 = vld [vmem:[#allocation7 + $0x88] sm:$0xff]  ;;  %381 = vmatpush.msra.mxu0 %v4621_v40  ;;  %421 = vmatpush.msra.mxu2 %v4623_v41 }
  0x3c   :  { %v4636_v46 = vld [vmem:[#allocation7 + $0x280] sm:$0xff]  ;;  %v234_v47 = vld [vmem:[#allocation7 + $0x288] sm:$0xff]  ;;  %401 = vmatpush.msra.mxu1 %v4627_v42  ;;  %441 = vmatpush.msra.mxu3 %v238_v43  ;;  %v272_v43 = vld [vmem:[#allocation7 + $0x3b8] sm:$0xff] }
  0x3d   :  { %v4639_v48 = vld [vmem:[#allocation7 + $0x60] sm:$0xff]  ;;  %v4641_v49 = vld [vmem:[#allocation7 + $0x68] sm:$0xff]  ;;  %382 = vmatpush.msra.mxu0 %v4630_v44  ;;  %422 = vmatpush.msra.mxu2 %v4632_v45 }
  0x3e   :  { %v4645_v50 = vld [vmem:[#allocation7 + $0x260] sm:$0xff]  ;;  %v230_v51 = vld [vmem:[#allocation7 + $0x268] sm:$0xff]  ;;  %402 = vmatpush.msra.mxu1 %v4636_v46  ;;  %442 = vmatpush.msra.mxu3 %v234_v47  ;;  %v4705_v47 = vld [vmem:[#allocation7 + $0x1d0] sm:$0xff] }
  0x3f   :  { %v4648_v52 = vld [vmem:[#allocation7 + $0x40] sm:$0xff]  ;;  %v4650_v53 = vld [vmem:[#allocation7 + $0x48] sm:$0xff]  ;;  %383 = vmatpush.msra.mxu0 %v4639_v48  ;;  %423 = vmatpush.msra.mxu2 %v4641_v49  ;;  %8583 = vst [vmem:[#allocation32_spill] sm:$0xff] %v4705_v47 }
  0x40   :  { %v4654_v54 = vld [vmem:[#allocation7 + $0x240] sm:$0xff]  ;;  %v226_v55 = vld [vmem:[#allocation7 + $0x248] sm:$0xff]  ;;  %403 = vmatpush.msra.mxu1 %v4645_v50  ;;  %443 = vmatpush.msra.mxu3 %v230_v51  ;;  %v4708_v51 = vld [vmem:[#allocation7 + $0x178] sm:$0xff] }
  0x41   :  { %v4657_v56 = vld [vmem:[#allocation7 + $0x20] sm:$0xff]  ;;  %v4659_v57 = vld [vmem:[#allocation7 + $0x28] sm:$0xff]  ;;  %384 = vmatpush.msra.mxu0 %v4648_v52  ;;  %424 = vmatpush.msra.mxu2 %v4650_v53  ;;  %8584 = vst [vmem:[#allocation33_spill] sm:$0xff] %v4708_v51 }
  0x42   :  { %v4663_v58 = vld [vmem:[#allocation7 + $0x220] sm:$0xff]  ;;  %v4665_v59 = vld [vmem:[#allocation7 + $0x228] sm:$0xff]  ;;  %404 = vmatpush.msra.mxu1 %v4654_v54  ;;  %444 = vmatpush.msra.mxu3 %v226_v55  ;;  %v4710_v55 = vld [vmem:[#allocation7 + $0x3d0] sm:$0xff] }
  0x43   :  { %8578 = vst [vmem:[#allocation27_spill] sm:$0xff] %v4665_v59  ;;  %v4668_v60 = vld [vmem:[#allocation7] sm:$0xff]  ;;  %v4670_v61 = vld [vmem:[#allocation7 + $0x8] sm:$0xff]  ;;  %385 = vmatpush.msra.mxu0 %v4657_v56  ;;  %425 = vmatpush.msra.mxu2 %v4659_v57 }
  0x44   :  { %v4674_v62 = vld [vmem:[#allocation2] sm:$0xff]  ;;  %405 = vmatpush.msra.mxu1 %v4663_v58  ;;  %445 = vmatpush.msra.mxu3 %v4665_v59  ;;  %v4682_v9 = vld [vmem:[#allocation7 + $0x208] sm:$0xff]  ;;  %v4719_v59 = vld [vmem:[#allocation7 + $0x3b0] sm:$0xff] }
  0x45   :  { %v4680_v5 = vld [vmem:[#allocation7 + $0x200] sm:$0xff]  ;;  %8579 = vst [vmem:[#allocation28_spill] sm:$0xff] %v4682_v9  ;;  %386 = vmatpush.msra.mxu0 %v4668_v60  ;;  %426 = vmatpush.msra.mxu2 %v4670_v61 }
  0x46   :  { %387 = vmatmul.f32.vlgmr.msra.gmra.mxu0 %v4674_v62  ;;  %406 = vmatpush.msra.mxu1 %v4680_v5  ;;  %8587 = vst [vmem:[#allocation36_spill] sm:$0xff] %v4719_v59 }
  0x47   :  { %491 = vmatpush.msrb.mxu2 %v4676_v63  ;;  %446 = vmatpush.msra.mxu3 %v4682_v9  ;;  %v4714_v9 = vld [vmem:[#allocation7 + $0x1b0] sm:$0xff] }
  0x48   :  { %407 = vmatmul.f32.vlgmr.msra.gmra.mxu1 %v8047_v23  ;;  %427 = vmatmul.f32.vlgmr.msra.gmra.mxu2 %v4674_v62  ;;  %8585 = vst [vmem:[#allocation34_spill] sm:$0xff] %v4714_v9 }
  0x49   :  { %492 = vmatpush.msrb.mxu2 %v4686_v13  ;;  %511 = vmatpush.msrb.mxu3 %v280_v15  ;;  %v268_v15 = vld [vmem:[#allocation7 + $0x398] sm:$0xff]  ;;  %v4728_v13 = vld [vmem:[#allocation7 + $0x390] sm:$0xff] }
  0x4a   :  { %447 = vmatmul.f32.vlgmr.msra.gmra.mxu3 %v8047_v23  ;;  %451 = vmatpush.msrb.mxu0 %v4696_v31  ;;  %v4717_v23 = vld [vmem:[#allocation7 + $0x158] sm:$0xff]  ;;  %8590 = vst [vmem:[#allocation39_spill] sm:$0xff] %v4728_v13 }
  0x4b   :  { %493 = vmatpush.msrb.mxu2 %v4692_v19  ;;  %512 = vmatpush.msrb.mxu3 %v276_v27  ;;  %8586 = vst [vmem:[#allocation35_spill] sm:$0xff] %v4717_v23  ;;  %v264_v27 = vld [vmem:[#allocation7 + $0x378] sm:$0xff]  ;;  %v4723_v19 = vld [vmem:[#allocation7 + $0x190] sm:$0xff] }
  0x4c   :  { %471 = vmatpush.msrb.mxu1 %v4701_v39  ;;  %452 = vmatpush.msrb.mxu0 %v4705_v47  ;;  %8588 = vst [vmem:[#allocation37_spill] sm:$0xff] %v4723_v19  ;;  %v4734_v47 = vld [vmem:[#allocation7 + $0x170] sm:$0xff] }
  0x4d   :  { %494 = vmatpush.msrb.mxu2 %v4699_v35  ;;  %513 = vmatpush.msrb.mxu3 %v272_v43  ;;  %v4726_v35 = vld [vmem:[#allocation7 + $0x138] sm:$0xff]  ;;  %8592 = vst [vmem:[#allocation41_spill] sm:$0xff] %v4734_v47 }
  0x4e   :  { %472 = vmatpush.msrb.mxu1 %v4710_v55  ;;  %453 = vmatpush.msrb.mxu0 %v4714_v9  ;;  %8589 = vst [vmem:[#allocation38_spill] sm:$0xff] %v4726_v35  ;;  %v4731_v43 = vld [vmem:[#allocation7 + $0x358] sm:$0xff] }
  0x4f   :  { %495 = vmatpush.msrb.mxu2 %v4708_v51  ;;  %514 = vmatpush.msrb.mxu3 %v268_v15  ;;  %8591 = vst [vmem:[#allocation40_spill] sm:$0xff] %v4731_v43  ;;  %v4737_v51 = vld [vmem:[#allocation7 + $0x118] sm:$0xff]  ;;  %v4739_v15 = vld [vmem:[#allocation7 + $0x370] sm:$0xff] }
  0x50   :  { %473 = vmatpush.msrb.mxu1 %v4719_v59  ;;  %454 = vmatpush.msrb.mxu0 %v4723_v19  ;;  %8593 = vst [vmem:[#allocation42_spill] sm:$0xff] %v4737_v51  ;;  %v4742_v9 = vld [vmem:[#allocation7 + $0x338] sm:$0xff] }
  0x51   :  { %496 = vmatpush.msrb.mxu2 %v4717_v23  ;;  %515 = vmatpush.msrb.mxu3 %v264_v27  ;;  %8594 = vst [vmem:[#allocation43_spill] sm:$0xff] %v4739_v15  ;;  %v4745_v23 = vld [vmem:[#allocation7 + $0x150] sm:$0xff]  ;;  %v4749_v59 = vld [vmem:[#allocation7 + $0xf8] sm:$0xff] }
  0x52   :  { %8595 = vst [vmem:[#allocation44_spill] sm:$0xff] %v4742_v9  ;;  %474 = vmatpush.msrb.mxu1 %v4728_v13  ;;  %455 = vmatpush.msrb.mxu0 %v4734_v47  ;;  %v4751_v27 = vld [vmem:[#allocation7 + $0x350] sm:$0xff]  ;;  %v4754_v19 = vld [vmem:[#allocation7 + $0x318] sm:$0xff] }
  0x53   :  { %497 = vmatpush.msrb.mxu2 %v4726_v35  ;;  %8596 = vst [vmem:[#allocation45_spill] sm:$0xff] %v4745_v23  ;;  %516 = vmatpush.msrb.mxu3 %v4731_v43  ;;  %v4757_v35 = vld [vmem:[#allocation7 + $0x130] sm:$0xff]  ;;  %v4761_v13 = vld [vmem:[#allocation7 + $0xd8] sm:$0xff] }
  0x54   :  { %8597 = vst [vmem:[#allocation46_spill] sm:$0xff] %v4749_v59  ;;  %475 = vmatpush.msrb.mxu1 %v4739_v15  ;;  %456 = vmatpush.msrb.mxu0 %v4745_v23  ;;  %v4763_v43 = vld [vmem:[#allocation7 + $0x330] sm:$0xff]  ;;  %v4766_v47 = vld [vmem:[#allocation7 + $0x2f8] sm:$0xff] }
  0x55   :  { %8598 = vst [vmem:[#allocation47_spill] sm:$0xff] %v4751_v27  ;;  %498 = vmatpush.msrb.mxu2 %v4737_v51  ;;  %517 = vmatpush.msrb.mxu3 %v4742_v9  ;;  %v4769_v51 = vld [vmem:[#allocation7 + $0x110] sm:$0xff]  ;;  %v4773_v15 = vld [vmem:[#allocation7 + $0xb8] sm:$0xff] }
  0x56   :  { %8599 = vst [vmem:[#allocation48_spill] sm:$0xff] %v4754_v19  ;;  %476 = vmatpush.msrb.mxu1 %v4751_v27  ;;  %457 = vmatpush.msrb.mxu0 %v4757_v35  ;;  %v4775_v9 = vld [vmem:[#allocation7 + $0x310] sm:$0xff]  ;;  %v4778_v23 = vld [vmem:[#allocation7 + $0x2d8] sm:$0xff] }
  0x57   :  { %8600 = vst [vmem:[#allocation49_spill] sm:$0xff] %v4757_v35  ;;  %499 = vmatpush.msrb.mxu2 %v4749_v59  ;;  %518 = vmatpush.msrb.mxu3 %v4754_v19  ;;  %v4781_v59 = vld [vmem:[#allocation7 + $0xf0] sm:$0xff]  ;;  %v4785_v27 = vld [vmem:[#allocation7 + $0x98] sm:$0xff] }
  0x58   :  { %8601 = vst [vmem:[#allocation50_spill] sm:$0xff] %v4761_v13  ;;  %477 = vmatpush.msrb.mxu1 %v4763_v43  ;;  %458 = vmatpush.msrb.mxu0 %v4769_v51  ;;  %v4787_v19 = vld [vmem:[#allocation7 + $0x2f0] sm:$0xff]  ;;  %v4790_v35 = vld [vmem:[#allocation7 + $0x2b8] sm:$0xff] }
  0x59   :  { %8602 = vst [vmem:[#allocation51_spill] sm:$0xff] %v4763_v43  ;;  %500 = vmatpush.msrb.mxu2 %v4761_v13  ;;  %519 = vmatpush.msrb.mxu3 %v4766_v47  ;;  %v4793_v13 = vld [vmem:[#allocation7 + $0xd0] sm:$0xff]  ;;  %v4797_v43 = vld [vmem:[#allocation7 + $0x78] sm:$0xff] }
  0x5a   :  { %8603 = vst [vmem:[#allocation52_spill] sm:$0xff] %v4766_v47  ;;  %478 = vmatpush.msrb.mxu1 %v4775_v9  ;;  %459 = vmatpush.msrb.mxu0 %v4781_v59  ;;  %v4799_v47 = vld [vmem:[#allocation7 + $0x2d0] sm:$0xff] }
  0x5b   :  { %8604 = vst [vmem:[#allocation53_spill] sm:$0xff] %v4769_v51  ;;  %501 = vmatpush.msrb.mxu2 %v4773_v15  ;;  %520 = vmatpush.msrb.mxu3 %v4778_v23  ;;  %v4802_v51 = vld [vmem:[#allocation7 + $0x298] sm:$0xff] }
  0x5c   :  { %8605 = vst [vmem:[#allocation54_spill] sm:$0xff] %v4773_v15  ;;  %479 = vmatpush.msrb.mxu1 %v4787_v19  ;;  %v4805_v15 = vld [vmem:[#allocation7 + $0xb0] sm:$0xff]  ;;  %460 = vmatpush.msrb.mxu0 %v4793_v13 }
  0x5d   :  { %8606 = vst [vmem:[#allocation55_spill] sm:$0xff] %v4775_v9  ;;  %502 = vmatpush.msrb.mxu2 %v4785_v27  ;;  %521 = vmatpush.msrb.mxu3 %v4790_v35  ;;  %v4809_v9 = vld [vmem:[#allocation7 + $0x58] sm:$0xff] }
  0x5e   :  { %8607 = vst [vmem:[#allocation56_spill] sm:$0xff] %v4778_v23  ;;  %v4811_v23 = vld [vmem:[#allocation7 + $0x2b0] sm:$0xff]  ;;  %480 = vmatpush.msrb.mxu1 %v4799_v47  ;;  %461 = vmatpush.msrb.mxu0 %v4805_v15 }
  0x5f   :  { %8608 = vst [vmem:[#allocation57_spill] sm:$0xff] %v4781_v59  ;;  %503 = vmatpush.msrb.mxu2 %v4797_v43  ;;  %v4814_v59 = vld [vmem:[#allocation7 + $0x278] sm:$0xff]  ;;  %522 = vmatpush.msrb.mxu3 %v4802_v51 }
  0x60   :  { %8609 = vst [vmem:[#allocation58_spill] sm:$0xff] %v4785_v27  ;;  %v4817_v27 = vld [vmem:[#allocation7 + $0x90] sm:$0xff]  ;;  %481 = vmatpush.msrb.mxu1 %v4811_v23 }
  0x61   :  { %8610 = vst [vmem:[#allocation59_spill] sm:$0xff] %v4787_v19  ;;  %v4821_v19 = vld [vmem:[#allocation7 + $0x38] sm:$0xff]  ;;  %504 = vmatpush.msrb.mxu2 %v4809_v9  ;;  %523 = vmatpush.msrb.mxu3 %v4814_v59 }
  0x62   :  { %8611 = vst [vmem:[#allocation60_spill] sm:$0xff] %v4790_v35  ;;  %v4823_v35 = vld [vmem:[#allocation7 + $0x290] sm:$0xff]  ;;  %462 = vmatpush.msrb.mxu0 %v4817_v27 }
  0x63   :  { %8612 = vst [vmem:[#allocation61_spill] sm:$0xff] %v4793_v13  ;;  %v4826_v13 = vld [vmem:[#allocation7 + $0x258] sm:$0xff]  ;;  %505 = vmatpush.msrb.mxu2 %v4821_v19  ;;  %482 = vmatpush.msrb.mxu1 %v4823_v35 }
  0x64   :  { %8613 = vst [vmem:[#allocation62_spill] sm:$0xff] %v4797_v43  ;;  %v4829_v43 = vld [vmem:[#allocation7 + $0x70] sm:$0xff]  ;;  %524 = vmatpush.msrb.mxu3 %v4826_v13 }
  0x65   :  { %8614 = vst [vmem:[#allocation63_spill] sm:$0xff] %v4799_v47  ;;  %v4833_v47 = vld [vmem:[#allocation7 + $0x18] sm:$0xff]  ;;  %463 = vmatpush.msrb.mxu0 %v4829_v43 }
  0x66   :  { %8615 = vst [vmem:[#allocation64_spill] sm:$0xff] %v4802_v51  ;;  %v4835_v51 = vld [vmem:[#allocation7 + $0x270] sm:$0xff]  ;;  %506 = vmatpush.msrb.mxu2 %v4833_v47 }
  0x67   :  { %8616 = vst [vmem:[#allocation65_spill] sm:$0xff] %v4805_v15  ;;  %v4838_v15 = vld [vmem:[#allocation7 + $0x238] sm:$0xff]  ;;  %483 = vmatpush.msrb.mxu1 %v4835_v51  ;;  %507 = vmatmul.f32.vlgmr.msrb.gmra.mxu2 %v4674_v62 }
  0x68   :  { %8617 = vst [vmem:[#allocation66_spill] sm:$0xff] %v4809_v9  ;;  %v4843_v9 = vld [vmem:[#allocation7 + $0x50] sm:$0xff]  ;;  %525 = vmatpush.msrb.mxu3 %v4838_v15 }
  0x69   :  { %8618 = vst [vmem:[#allocation67_spill] sm:$0xff] %v4811_v23  ;;  %v4845_v23 = vld [vmem:[#allocation7 + $0x250] sm:$0xff]  ;;  %464 = vmatpush.msrb.mxu0 %v4843_v9 }
  0x6a   :  { %8619 = vst [vmem:[#allocation68_spill] sm:$0xff] %v4814_v59  ;;  %v4848_v59 = vld [vmem:[#allocation7 + $0x218] sm:$0xff]  ;;  %484 = vmatpush.msrb.mxu1 %v4845_v23 }
  0x6b   :  { %8620 = vst [vmem:[#allocation69_spill] sm:$0xff] %v4817_v27  ;;  %526 = vmatpush.msrb.mxu3 %v4848_v59  ;;  %v4911_v27 = vld [vmem:[#allocation10 + $0x190] sm:$0xff] }
  0x6c   :  { %8621 = vst [vmem:[#allocation70_spill] sm:$0xff] %v4821_v19  ;;  %v4853_v19 = vld [vmem:[#allocation7 + $0x30] sm:$0xff] }
  0x6d   :  { %8622 = vst [vmem:[#allocation71_spill] sm:$0xff] %v4823_v35  ;;  %465 = vmatpush.msrb.mxu0 %v4853_v19 }
  0x6e   :  { %8623 = vst [vmem:[#allocation72_spill] sm:$0xff] %v4826_v13  ;;  %v4857_v13 = vld [vmem:[#allocation7 + $0x230] sm:$0xff] }
  0x6f   :  { %8624 = vst [vmem:[#allocation73_spill] sm:$0xff] %v4829_v43  ;;  %v4860_v43 = vld [vmem:[#allocation7 + $0x10] sm:$0xff]  ;;  %485 = vmatpush.msrb.mxu1 %v4857_v13 }
  0x70   :  { %8625 = vst [vmem:[#allocation74_spill] sm:$0xff] %v4833_v47  ;;  %v8634_v47 = vmov 0.0   ;;  %466 = vmatpush.msrb.mxu0 %v4860_v43 }
  0x71   :  { %8626 = vst [vmem:[#allocation75_spill] sm:$0xff] %v4835_v51  ;;  %527 = vmatmul.f32.vlgmr.msrb.gmra.mxu3 %v8634_v47  ;;  %v4864_v51 = vld [vmem:[#allocation7 + $0x210] sm:$0xff]  ;;  %467 = vmatmul.f32.vlgmr.msrb.gmra.mxu0 %v4674_v62  ;;  %v4883_v62 = vld [vmem:[#allocation10 + $0x1c0] sm:$0xff] }
  0x72   :  { %8627 = vst [vmem:[#allocation76_spill] sm:$0xff] %v4838_v15  ;;  %486 = vmatpush.msrb.mxu1 %v4864_v51  ;;  %v4871_v15 = vld [vmem:[#allocation10 + $0x1e0] sm:$0xff] }
  0x73   :  { %8628 = vst [vmem:[#allocation77_spill] sm:$0xff] %v4843_v9  ;;  %487 = vmatmul.f32.vlgmr.msrb.gmra.mxu1 %v8634_v47  ;;  %v4875_v9 = vld [vmem:[#allocation10 + $0x1f0] sm:$0xff]  ;;  %575 = vmatpush.msra.mxu0 %v4871_v15  ;;  %v4885_v47 = vld [vmem:[#allocation10 + $0x1c8] sm:$0xff] }
  0x74   :  { %8629 = vst [vmem:[#allocation78_spill] sm:$0xff] %v4845_v23  ;;  %v345_v23 = vld [vmem:[#allocation8] sm:$0xff]  ;;  %615 = vmatpush.msra.mxu2 %v4875_v9 }
  0x75   :  { %8630 = vst [vmem:[#allocation79_spill] sm:$0xff] %v4848_v59  ;;  %v4873_v59 = vld [vmem:[#allocation10 + $0x1e8] sm:$0xff]  ;;  %576 = vmatpush.msra.mxu0 %v4883_v62 }
  0x76   :  { %8631 = vst [vmem:[#allocation80_spill] sm:$0xff] %v4853_v19  ;;  %595 = vmatpush.msra.mxu1 %v4873_v59  ;;  %v4879_v19 = vld [vmem:[#allocation10 + $0x1f8] sm:$0xff] }
  0x77   :  { %8632 = vst [vmem:[#allocation81_spill] sm:$0xff] %v4857_v13  ;;  %635 = vmatpush.msra.mxu3 %v4879_v19 }
  0x78   :  { %8633 = vst [vmem:[#allocation82_spill] sm:$0xff] %v4860_v43  ;;  %v4887_v43 = vld [vmem:[#allocation10 + $0x1d0] sm:$0xff]  ;;  %596 = vmatpush.msra.mxu1 %v4885_v47 }
  0x79   :  { %8635 = vst [vmem:[#allocation83_spill] sm:$0xff] %v4864_v51  ;;  %v4891_v51 = vld [vmem:[#allocation10 + $0x1d8] sm:$0xff]  ;;  %616 = vmatpush.msra.mxu2 %v4887_v43 }
  0x7a   :  { %8636 = vst [vmem:[#allocation84_spill] sm:$0xff] %v4871_v15  ;;  %636 = vmatpush.msra.mxu3 %v4891_v51 }
  0x7b   :  { %8637 = vst [vmem:[#allocation85_spill] sm:$0xff] %v4873_v59  ;;  %v4899_v59 = vld [vmem:[#allocation10 + $0x1b0] sm:$0xff] }
  0x7c   :  { %8638 = vst [vmem:[#allocation86_spill] sm:$0xff] %v4875_v9  ;;  %v4895_v9 = vld [vmem:[#allocation10 + $0x1a0] sm:$0xff]  ;;  %617 = vmatpush.msra.mxu2 %v4899_v59 }
  0x7d   :  { %8639 = vst [vmem:[#allocation87_spill] sm:$0xff] %v4879_v19  ;;  %v4897_v19 = vld [vmem:[#allocation10 + $0x1a8] sm:$0xff]  ;;  %577 = vmatpush.msra.mxu0 %v4895_v9 }
  0x7e   :  { %8640 = vst [vmem:[#allocation88_spill] sm:$0xff] %v4883_v62  ;;  %597 = vmatpush.msra.mxu1 %v4897_v19  ;;  %v4903_v62 = vld [vmem:[#allocation10 + $0x1b8] sm:$0xff]  ;;  %618 = vmatpush.msra.mxu2 %v4911_v27 }
  0x7f   :  { %8641 = vst [vmem:[#allocation89_spill] sm:$0xff] %v4885_v47  ;;  %637 = vmatpush.msra.mxu3 %v4903_v62 }
  0x80   :  { %8642 = vst [vmem:[#allocation90_spill] sm:$0xff] %v4887_v43  ;;  %v4907_v43 = vld [vmem:[#allocation10 + $0x180] sm:$0xff] }
  0x81   :  { %8643 = vst [vmem:[#allocation91_spill] sm:$0xff] %v4891_v51  ;;  %v4909_v51 = vld [vmem:[#allocation10 + $0x188] sm:$0xff]  ;;  %578 = vmatpush.msra.mxu0 %v4907_v43 }
  0x82   :  { %8644 = vst [vmem:[#allocation92_spill] sm:$0xff] %v4895_v9  ;;  %598 = vmatpush.msra.mxu1 %v4909_v51  ;;  %v4923_v9 = vld [vmem:[#allocation10 + $0x170] sm:$0xff] }
  0x83   :  { %8645 = vst [vmem:[#allocation93_spill] sm:$0xff] %v4897_v19  ;;  %619 = vmatpush.msra.mxu2 %v4923_v9  ;;  %v5054_v19 = vld [vmem:[#allocation10 + $0x30] sm:$0xff] }
  0x84   :  { %8646 = vst [vmem:[#allocation94_spill] sm:$0xff] %v4899_v59  ;;  %v4921_v59 = vld [vmem:[#allocation10 + $0x168] sm:$0xff] }
  0x85   :  { %8647 = vst [vmem:[#allocation95_spill] sm:$0xff] %v4903_v62  ;;  %599 = vmatpush.msra.mxu1 %v4921_v59 }
  0x86   :  { %8648 = vst [vmem:[#allocation96_spill] sm:$0xff] %v4907_v43  ;;  %v4935_v43 = vld [vmem:[#allocation10 + $0x150] sm:$0xff] }
  0x87   :  { %8649 = vst [vmem:[#allocation97_spill] sm:$0xff] %v4909_v51  ;;  %620 = vmatpush.msra.mxu2 %v4935_v43  ;;  %v4959_v51 = vld [vmem:[#allocation10 + $0x110] sm:$0xff] }
  0x88   :  { %8650 = vst [vmem:[#allocation98_spill] sm:$0xff] %v4911_v27  ;;  %v4933_v27 = vld [vmem:[#allocation10 + $0x148] sm:$0xff] }
  0x89   :  { %8653 = vst [vmem:[#allocation101_spill] sm:$0xff] %v4921_v59  ;;  %600 = vmatpush.msra.mxu1 %v4933_v27 }
  0x8a   :  { %8654 = vst [vmem:[#allocation102_spill] sm:$0xff] %v4923_v9  ;;  %v4943_v9 = vld [vmem:[#allocation10 + $0x120] sm:$0xff] }
  0x8b   :  { %8657 = vst [vmem:[#allocation105_spill] sm:$0xff] %v4933_v27 }
  0x8c   :  { %8658 = vst [vmem:[#allocation106_spill] sm:$0xff] %v4935_v43  ;;  %v4955_v43 = vld [vmem:[#allocation10 + $0x100] sm:$0xff] }
  0x8d   :  { %8660 = vst [vmem:[#allocation108_spill] sm:$0xff] %v4943_v9 }
  0x8e   :  { %8664 = vst [vmem:[#allocation112_spill] sm:$0xff] %v4955_v43 }
  0x8f   :  { %8666 = vst [vmem:[#allocation114_spill] sm:$0xff] %v4959_v51 }
  0x90   :  { %8693 = vst [vmem:[#allocation141_spill] sm:$0xff] %v5054_v19 }
  0xc3   :  { %v388_v15 = vpop.f32.mrf.mxu0 }
  0xc4   :  { %v389_v13 = vadd.f32 %v388_v15, %v345_v23  ;;  %v4915_v23 = vld [vmem:[#allocation10 + $0x198] sm:$0xff]  ;;  %v4919_v15 = vld [vmem:[#allocation10 + $0x160] sm:$0xff] }
  0xc5   :  { %v408_v47 = vpop.f32.mrf.mxu1  ;;  %8651 = vst [vmem:[#allocation99_spill] sm:$0xff] %v4915_v23  ;;  %638 = vmatpush.msra.mxu3 %v4915_v23  ;;  %579 = vmatpush.msra.mxu0 %v4919_v15  ;;  %v346_v23 = vld [vmem:[#allocation8 + $0x8] sm:$0xff] }
  0xc6   :  { %v409_v35 = vadd.f32 %v408_v47, %v389_v13  ;;  %8652 = vst [vmem:[#allocation100_spill] sm:$0xff] %v4919_v15  ;;  %v4927_v13 = vld [vmem:[#allocation10 + $0x178] sm:$0xff]  ;;  %v4931_v47 = vld [vmem:[#allocation10 + $0x140] sm:$0xff]  ;;  %v4945_v15 = vld [vmem:[#allocation10 + $0x128] sm:$0xff] }
  0xc7   :  { %8655 = vst [vmem:[#allocation103_spill] sm:$0xff] %v4927_v13  ;;  %639 = vmatpush.msra.mxu3 %v4927_v13  ;;  %580 = vmatpush.msra.mxu0 %v4931_v47  ;;  %v4947_v13 = vld [vmem:[#allocation10 + $0x130] sm:$0xff] }
  0xc8   :  { %v3271_v62 = vmul.f32 -1.442695, %v409_v35  ;;  %8656 = vst [vmem:[#allocation104_spill] sm:$0xff] %v4931_v47  ;;  %v4939_v35 = vld [vmem:[#allocation10 + $0x158] sm:$0xff]  ;;  %601 = vmatpush.msra.mxu1 %v4945_v15  ;;  %621 = vmatpush.msra.mxu2 %v4947_v13 }
  0xc9   :  { %8659 = vst [vmem:[#allocation107_spill] sm:$0xff] %v4939_v35  ;;  %640 = vmatpush.msra.mxu3 %v4939_v35  ;;  %581 = vmatpush.msra.mxu0 %v4943_v9  ;;  %v4957_v35 = vld [vmem:[#allocation10 + $0x108] sm:$0xff]  ;;  %v4963_v9 = vld [vmem:[#allocation10 + $0x118] sm:$0xff] }
  0xca   :  { %3319 = vpow2.f32 %v3271_v62  ;;  %8661 = vst [vmem:[#allocation109_spill] sm:$0xff] %v4945_v15  ;;  %v4951_v62 = vld [vmem:[#allocation10 + $0x138] sm:$0xff]  ;;  %602 = vmatpush.msra.mxu1 %v4957_v35  ;;  %622 = vmatpush.msra.mxu2 %v4959_v51  ;;  %v4983_v51 = vld [vmem:[#allocation10 + $0xc8] sm:$0xff] }
  0xcb   :  { %8662 = vst [vmem:[#allocation110_spill] sm:$0xff] %v4947_v13  ;;  %v428_v59 = vpop.f32.mrf.mxu2  ;;  %641 = vmatpush.msra.mxu3 %v4951_v62  ;;  %582 = vmatpush.msra.mxu0 %v4955_v43  ;;  %v4971_v13 = vld [vmem:[#allocation10 + $0xf0] sm:$0xff]  ;;  %v4975_v43 = vld [vmem:[#allocation10 + $0xf8] sm:$0xff] }
  0xcc   :  { %8663 = vst [vmem:[#allocation111_spill] sm:$0xff] %v4951_v62  ;;  %v429_v47 = vadd.f32 %v428_v59, %v346_v23  ;;  %v4967_v59 = vld [vmem:[#allocation10 + $0xe0] sm:$0xff]  ;;  %v4969_v23 = vld [vmem:[#allocation10 + $0xe8] sm:$0xff]  ;;  %623 = vmatpush.msra.mxu2 %v4971_v13 }
  0xcd   :  { %v448_v27 = vpop.f32.mrf.mxu3  ;;  %8665 = vst [vmem:[#allocation113_spill] sm:$0xff] %v4957_v35  ;;  %642 = vmatpush.msra.mxu3 %v4963_v9  ;;  %583 = vmatpush.msra.mxu0 %v4967_v59 }
  0xce   :  { %8667 = vst [vmem:[#allocation115_spill] sm:$0xff] %v4963_v9  ;;  %v449_v15 = vadd.f32 %v448_v27, %v429_v47  ;;  %603 = vmatpush.msra.mxu1 %v4969_v23  ;;  %v4981_v47 = vld [vmem:[#allocation10 + $0xc0] sm:$0xff]  ;;  %v4985_v9 = vld [vmem:[#allocation10 + $0xd0] sm:$0xff] }
  0xcf   :  { %8668 = vst [vmem:[#allocation116_spill] sm:$0xff] %v4967_v59  ;;  %643 = vmatpush.msra.mxu3 %v4975_v43  ;;  %584 = vmatpush.msra.mxu0 %v4981_v47  ;;  %v4989_v59 = vld [vmem:[#allocation10 + $0xd8] sm:$0xff] }
  0xd0   :  { %8669 = vst [vmem:[#allocation117_spill] sm:$0xff] %v4969_v23  ;;  %v3320_v62 = vpop.eup %3319  ;;  %v3272_v27 = vmul.f32 -1.442695, %v449_v15  ;;  %604 = vmatpush.msra.mxu1 %v4983_v51  ;;  %624 = vmatpush.msra.mxu2 %v4985_v9  ;;  %v4994_v15 = vld [vmem:[#allocation10 + $0xa0] sm:$0xff] }
  0xd1   :  { %8670 = vst [vmem:[#allocation118_spill] sm:$0xff] %v4971_v13  ;;  %v4977_v35 = vadd.f32 1.0, %v3320_v62  ;;  %644 = vmatpush.msra.mxu3 %v4989_v59  ;;  %v4996_v62 = vld [vmem:[#allocation10 + $0xa8] sm:$0xff]  ;;  %v4998_v13 = vld [vmem:[#allocation10 + $0xb0] sm:$0xff]  ;;  %585 = vmatpush.msra.mxu0 %v4994_v15 }
  0xd2   :  { %8671 = vst [vmem:[#allocation119_spill] sm:$0xff] %v4975_v43  ;;  %605 = vmatpush.msra.mxu1 %v4996_v62  ;;  %625 = vmatpush.msra.mxu2 %v4998_v13  ;;  %v5010_v43 = vld [vmem:[#allocation10 + $0x90] sm:$0xff] }
  0xd3   :  { %8672 = vst [vmem:[#allocation120_spill] sm:$0xff] %v4981_v47  ;;  %3321 = vrcp.f32 %v4977_v35  ;;  %v5002_v47 = vld [vmem:[#allocation10 + $0xb8] sm:$0xff]  ;;  %vm540_vm0 = vweird.f32 %v4977_v35 }
  0xd4   :  { %8673 = vst [vmem:[#allocation121_spill] sm:$0xff] %v4983_v51  ;;  %3323 = vpow2.f32 %v3272_v27  ;;  %645 = vmatpush.msra.mxu3 %v5002_v47  ;;  %v5014_v27 = vld [vmem:[#allocation10 + $0x98] sm:$0xff]  ;;  %626 = vmatpush.msra.mxu2 %v5010_v43 }
  0xd5   :  { %8674 = vst [vmem:[#allocation122_spill] sm:$0xff] %v4985_v9  ;;  %v5006_v9 = vld [vmem:[#allocation10 + $0x80] sm:$0xff] }
  0xd6   :  { %8675 = vst [vmem:[#allocation123_spill] sm:$0xff] %v4989_v59  ;;  %v5008_v59 = vld [vmem:[#allocation10 + $0x88] sm:$0xff]  ;;  %586 = vmatpush.msra.mxu0 %v5006_v9  ;;  %646 = vmatpush.msra.mxu3 %v5014_v27 }
  0xd7   :  { %8676 = vst [vmem:[#allocation124_spill] sm:$0xff] %v4994_v15  ;;  %606 = vmatpush.msra.mxu1 %v5008_v59  ;;  %v5018_v15 = vld [vmem:[#allocation10 + $0x60] sm:$0xff] }
  0xd8   :  { %8677 = vst [vmem:[#allocation125_spill] sm:$0xff] %v4996_v62  ;;  %587 = vmatpush.msra.mxu0 %v5018_v15  ;;  %v5026_v62 = vld [vmem:[#allocation10 + $0x78] sm:$0xff] }
  0xd9   :  { %8678 = vst [vmem:[#allocation126_spill] sm:$0xff] %v4998_v13  ;;  %v5020_v13 = vld [vmem:[#allocation10 + $0x68] sm:$0xff]  ;;  %647 = vmatpush.msra.mxu3 %v5026_v62 }
  0xda   :  { %8679 = vst [vmem:[#allocation127_spill] sm:$0xff] %v5002_v47  ;;  %v5022_v47 = vld [vmem:[#allocation10 + $0x70] sm:$0xff]  ;;  %607 = vmatpush.msra.mxu1 %v5020_v13 }
  0xdb   :  { %8680 = vst [vmem:[#allocation128_spill] sm:$0xff] %v5006_v9  ;;  %v5028_v9 = vpop.eup %3321  ;;  %627 = vmatpush.msra.mxu2 %v5022_v47 }
  0xdc   :  { %8681 = vst [vmem:[#allocation129_spill] sm:$0xff] %v5008_v59  ;;  %v5036_v59 = vld [vmem:[#allocation10 + $0x50] sm:$0xff]  ;;  %v3324_v51 = vpop.eup %3323  ;;  %vm541_vm1 = vweird.f32 %v5028_v9 }
  0xdd   :  { %8682 = vst [vmem:[#allocation130_spill] sm:$0xff] %v5010_v43  ;;  %v5032_v43 = vld [vmem:[#allocation10 + $0x40] sm:$0xff]  ;;  %v5044_v23 = vadd.f32 1.0, %v3324_v51  ;;  %628 = vmatpush.msra.mxu2 %v5036_v59  ;;  %vm5123_vm2 = vmor %vm540_vm0, %vm541_vm1 }
  0xde   :  { %8683 = vst [vmem:[#allocation131_spill] sm:$0xff] %v5014_v27  ;;  %v5034_v27 = vld [vmem:[#allocation10 + $0x48] sm:$0xff]  ;;  %588 = vmatpush.msra.mxu0 %v5032_v43  ;;  %v5060_v51 = vld [vmem:[#allocation10] sm:$0xff] }
  0xdf   :  { %8684 = vst [vmem:[#allocation132_spill] sm:$0xff] %v5018_v15  ;;  %v536_v15 = vmul.f32 %v5028_v9, %v4977_v35  ;;  %608 = vmatpush.msra.mxu1 %v5034_v27  ;;  %629 = vmatpush.msra.mxu2 %v5054_v19  ;;  %3325 = vrcp.f32 %v5044_v23  ;;  %v5073_v19 = vld [vmem:[#allocation13 + $0x78] sm:$0xff]  ;;  %vm559_vm4 = vweird.f32 %v5044_v23 }
  0xe0   :  { %8685 = vst [vmem:[#allocation133_spill] sm:$0xff] %v5020_v13  ;;  %v5042_v13 = vld [vmem:[#allocation10 + $0x58] sm:$0xff] }
  0xe1   :  { %8686 = vst [vmem:[#allocation134_spill] sm:$0xff] %v5022_v47  ;;  %648 = vmatpush.msra.mxu3 %v5042_v13  ;;  %v5048_v47 = vld [vmem:[#allocation10 + $0x20] sm:$0xff] }
  0xe2   :  { %8687 = vst [vmem:[#allocation135_spill] sm:$0xff] %v5026_v62  ;;  %v5050_v62 = vld [vmem:[#allocation10 + $0x28] sm:$0xff]  ;;  %589 = vmatpush.msra.mxu0 %v5048_v47 }
  0xe3   :  { %8688 = vst [vmem:[#allocation136_spill] sm:$0xff] %v5032_v43  ;;  %609 = vmatpush.msra.mxu1 %v5050_v62  ;;  %v5056_v43 = vld [vmem:[#allocation10 + $0x38] sm:$0xff] }
  0xe4   :  { %8689 = vst [vmem:[#allocation137_spill] sm:$0xff] %v5034_v27  ;;  %649 = vmatpush.msra.mxu3 %v5056_v43  ;;  %v537_v27 = vsub.f32 1.0, %v536_v15  ;;  %590 = vmatpush.msra.mxu0 %v5060_v51 }
  0xe5   :  { %8690 = vst [vmem:[#allocation138_spill] sm:$0xff] %v5036_v59  ;;  %v5062_v59 = vld [vmem:[#allocation10 + $0x8] sm:$0xff] }
  0xe6   :  { %8691 = vst [vmem:[#allocation139_spill] sm:$0xff] %v5042_v13  ;;  %v5064_v13 = vld [vmem:[#allocation10 + $0x10] sm:$0xff]  ;;  %610 = vmatpush.msra.mxu1 %v5062_v59  ;;  %699 = vmatpush.msrb.mxu0 %v5073_v19  ;;  %v538_v15 = vmul.f32 %v5028_v9, %v537_v27  ;;  %v544_v27 = vand.u32 2147483647, %v4977_v35 }
  0xe7   :  { %8692 = vst [vmem:[#allocation140_spill] sm:$0xff] %v5048_v47  ;;  %v5069_v47 = vld [vmem:[#allocation10 + $0x18] sm:$0xff]  ;;  %630 = vmatpush.msra.mxu2 %v5064_v13 }
  0xe8   :  { %8694 = vst [vmem:[#allocation142_spill] sm:$0xff] %v5056_v43  ;;  %650 = vmatpush.msra.mxu3 %v5069_v47  ;;  %v5075_v43 = vld [vmem:[#allocation13 + $0x70] sm:$0xff]  ;;  %726 = vmatpush.msrb.mxu1 %v4534_v0  ;;  %v5096_v0 = vld [vmem:[#allocation8 + $0x18] sm:$0xff]  ;;  %vm545_vm3 = vcmp.eq.f32.partialorder %v544_v27, 8.507059e+37 }
  0xe9   :  { %8695 = vst [vmem:[#allocation143_spill] sm:$0xff] %v5060_v51  ;;  %746 = vmatpush.msrb.mxu2 %v4542_v3  ;;  %v5082_v51 = vld [vmem:[#allocation13 + $0x68] sm:$0xff]  ;;  %700 = vmatpush.msrb.mxu0 %v5075_v43  ;;  %v5090_v3 = vld [vmem:[#allocation13 + $0x60] sm:$0xff]  ;;  %v8733_v27 = vld [vmem:[#allocation69_spill] sm:$0xff] }
  0xea   :  { %8696 = vst [vmem:[#allocation144_spill] sm:$0xff] %v5064_v13  ;;  %766 = vmatpush.msrb.mxu3 %v4536_v1  ;;  %727 = vmatpush.msrb.mxu1 %v4538_v2  ;;  %v5088_v13 = vpop.eup %3325  ;;  %v5098_v1 = vld [vmem:[#allocation8 + $0x10] sm:$0xff]  ;;  %v539_v2 = vadd.f32 %v5028_v9, %v538_v15 }
  0xeb   :  { %747 = vmatpush.msrb.mxu2 %v4549_v7  ;;  %8697 = vst [vmem:[#allocation145_spill] sm:$0xff] %v5090_v3  ;;  %701 = vmatpush.msrb.mxu0 %v5082_v51  ;;  %v546_v7 = vand.u32 2147483648, %v4977_v35  ;;  %v5113_v15 = vld [vmem:[#allocation13 + $0x50] sm:$0xff]  ;;  %vm560_vm5 = vweird.f32 %v5088_v13 }
  0xec   :  { %767 = vmatpush.msrb.mxu3 %v4544_v4  ;;  %728 = vmatpush.msrb.mxu1 %v4547_v6  ;;  %8698 = vst [vmem:[#allocation146_spill] sm:$0xff] %v5098_v1  ;;  %v5103_v4 = vld [vmem:[#allocation13 + $0x58] sm:$0xff]  ;;  %v555_v6 = vmul.f32 %v5088_v13, %v5044_v23  ;;  %vm5157_vm6 = vmor %vm559_vm4, %vm560_vm5 }
  0xed   :  { %748 = vmatpush.msrb.mxu2 %v4555_v10  ;;  %702 = vmatpush.msrb.mxu0 %v5090_v3 }
  0xee   :  { %768 = vmatpush.msrb.mxu3 %v4551_v8  ;;  %729 = vmatpush.msrb.mxu1 %v4558_v11  ;;  %v508_v8 = vpop.f32.mrf.mxu2  ;;  %v468_v10 = vpop.f32.mrf.mxu0  ;;  %v556_v35 = vsub.f32 1.0, %v555_v6  ;;  %v8731_v6 = vld [vmem:[#allocation54_spill] sm:$0xff] }
  0xef   :  { %749 = vmatpush.msrb.mxu2 %v4564_v14  ;;  %v509_v11 = vadd.f32 %v508_v8, %v5096_v0  ;;  %v469_v14 = vadd.f32 %v468_v10, %v5098_v1  ;;  %703 = vmatpush.msrb.mxu0 %v5103_v4  ;;  %v547_v10 = vor.u32 1.1754944e-38, %v546_v7  ;;  %v8732_v7 = vld [vmem:[#allocation71_spill] sm:$0xff] }
  0xf0   :  { %769 = vmatpush.msrb.mxu3 %v4560_v12  ;;  %730 = vmatpush.msrb.mxu1 %v4567_v16  ;;  %v488_v3 = vpop.f32.mrf.mxu1  ;;  %v543_v16 = vsel %vm5123_vm2, %v5028_v9, %v539_v2  ;;  %v8730_v2 = vld [vmem:[#allocation65_spill] sm:$0xff] }
  0xf1   :  { %750 = vmatpush.msrb.mxu2 %v4573_v18  ;;  %v5132_v18 = vld [vmem:[#allocation13 + $0x48] sm:$0xff]  ;;  %704 = vmatpush.msrb.mxu0 %v5113_v15  ;;  %v548_v9 = vsel %vm545_vm3, %v547_v10, %v543_v16  ;;  %v8736_v12 = vld [vmem:[#allocation73_spill] sm:$0xff]  ;;  %v8737_v16 = vld [vmem:[#allocation62_spill] sm:$0xff] }
  0xf2   :  { %770 = vmatpush.msrb.mxu3 %v4569_v17  ;;  %731 = vmatpush.msrb.mxu1 %v4576_v20  ;;  %v489_v17 = vadd.f32 %v488_v3, %v469_v14  ;;  %v8728_v3 = vld [vmem:[#allocation50_spill] sm:$0xff]  ;;  %v8735_v14 = vld [vmem:[#allocation75_spill] sm:$0xff] }
  0xf3   :  { %751 = vmatpush.msrb.mxu2 %v4582_v22  ;;  %705 = vmatpush.msrb.mxu0 %v5132_v18  ;;  %v557_v22 = vmul.f32 %v5088_v13, %v556_v35  ;;  %v8738_v35 = vld [vmem:[#allocation78_spill] sm:$0xff] }
  0xf4   :  { %v528_v8 = vpop.f32.mrf.mxu3  ;;  %771 = vmatpush.msrb.mxu3 %v4578_v21  ;;  %732 = vmatpush.msrb.mxu1 %v4585_v24  ;;  %v565_v24 = vand.u32 2147483648, %v5044_v23  ;;  %v8740_v10 = vld [vmem:[#allocation66_spill] sm:$0xff] }
  0xf5   :  { %v529_v1 = vadd.f32 %v528_v8, %v509_v11  ;;  %752 = vmatpush.msrb.mxu2 %v4591_v26  ;;  %v563_v26 = vand.u32 2147483647, %v5044_v23  ;;  %v8727_v23 = vld [vmem:[#allocation61_spill] sm:$0xff]  ;;  %v8734_v11 = vld [vmem:[#allocation58_spill] sm:$0xff] }
  0xf6   :  { %772 = vmatpush.msrb.mxu3 %v4587_v25  ;;  %733 = vmatpush.msrb.mxu1 %v4594_v28  ;;  %v558_v25 = vadd.f32 %v5088_v13, %v557_v22  ;;  %v8739_v8 = vld [vmem:[#allocation77_spill] sm:$0xff]  ;;  %v8744_v22 = vld [vmem:[#allocation83_spill] sm:$0xff] }
  0xf7   :  { %v569_v20 = vmul.f32 %v548_v9, %v529_v1  ;;  %753 = vmatpush.msrb.mxu2 %v4600_v30  ;;  %vm564_vm7 = vcmp.eq.f32.partialorder %v563_v26, 8.507059e+37  ;;  %v8729_v1 = vld [vmem:[#allocation67_spill] sm:$0xff]  ;;  %v8742_v9 = vld [vmem:[#allocation80_spill] sm:$0xff]  ;;  %v5239_v26 = vld [vmem:[#allocation13 + $0x38] sm:$0xff] }
  0xf8   :  { %773 = vmatpush.msrb.mxu3 %v4596_v29  ;;  %734 = vmatpush.msrb.mxu1 %v4603_v32  ;;  %v566_v29 = vor.u32 1.1754944e-38, %v565_v24  ;;  %v562_v30 = vsel %vm5157_vm6, %v5088_v13, %v558_v25  ;;  %v8726_v13 = vld [vmem:[#allocation63_spill] sm:$0xff]  ;;  %v8746_v24 = vld [vmem:[#allocation74_spill] sm:$0xff]  ;;  %v5242_v28 = vld [vmem:[#allocation13 + $0x30] sm:$0xff] }
  0xf9   :  { %v570_v21 = vadd.f32 %v569_v20, %v489_v17  ;;  %754 = vmatpush.msrb.mxu2 %v4609_v34  ;;  %v8741_v17 = vld [vmem:[#allocation81_spill] sm:$0xff]  ;;  %v8743_v20 = vld [vmem:[#allocation70_spill] sm:$0xff]  ;;  %v5236_v25 = vld [vmem:[#allocation13 + $0x40] sm:$0xff] }
  0xfa   :  { %774 = vmatpush.msrb.mxu3 %v4605_v33  ;;  %735 = vmatpush.msrb.mxu1 %v4612_v36  ;;  %v567_v34 = vsel %vm564_vm7, %v566_v29, %v562_v30  ;;  %v5245_v29 = vld [vmem:[#allocation13 + $0x28] sm:$0xff]  ;;  %v5248_v30 = vld [vmem:[#allocation13 + $0x20] sm:$0xff] }
  0xfb   :  { %3327 = vtanh.f32 %v570_v21  ;;  %755 = vmatpush.msrb.mxu2 %v4618_v38  ;;  %v8703_v38 = vld [vmem:[#allocation32_spill] sm:$0xff]  ;;  %v8745_v21 = vld [vmem:[#allocation82_spill] sm:$0xff]  ;;  %706 = vmatpush.msrb.mxu0 %v5236_v25 }
  0xfc   :  { %775 = vmatpush.msrb.mxu3 %v4614_v37  ;;  %736 = vmatpush.msrb.mxu1 %v4621_v40  ;;  %v8704_v40 = vld [vmem:[#allocation29_spill] sm:$0xff] }
  0xfd   :  { %756 = vmatpush.msrb.mxu2 %v4627_v42  ;;  %v8706_v42 = vld [vmem:[#allocation34_spill] sm:$0xff]  ;;  %707 = vmatpush.msrb.mxu0 %v5239_v26 }
  0xfe   :  { %776 = vmatpush.msrb.mxu3 %v4623_v41  ;;  %737 = vmatpush.msrb.mxu1 %v4630_v44  ;;  %v8705_v41 = vld [vmem:[#allocation36_spill] sm:$0xff]  ;;  %v8707_v44 = vld [vmem:[#allocation30_spill] sm:$0xff] }
  0xff   :  { %757 = vmatpush.msrb.mxu2 %v4636_v46  ;;  %v8709_v46 = vld [vmem:[#allocation37_spill] sm:$0xff]  ;;  %708 = vmatpush.msrb.mxu0 %v5242_v28 }
 0x100   :  { %777 = vmatpush.msrb.mxu3 %v4632_v45  ;;  %738 = vmatpush.msrb.mxu1 %v4639_v48  ;;  %v8708_v45 = vld [vmem:[#allocation39_spill] sm:$0xff] }
 0x101   :  { %v3328_v32 = vpop.eup %3327  ;;  %758 = vmatpush.msrb.mxu2 %v4645_v50  ;;  %v8710_v48 = vld [vmem:[#allocation31_spill] sm:$0xff]  ;;  %v8712_v50 = vld [vmem:[#allocation41_spill] sm:$0xff]  ;;  %709 = vmatpush.msrb.mxu0 %v5245_v29 }
 0x102   :  { %v572_v33 = vsub.f32 0.0, %v3328_v32  ;;  %778 = vmatpush.msrb.mxu3 %v4641_v49  ;;  %739 = vmatpush.msrb.mxu1 %v4648_v52  ;;  %v8711_v49 = vld [vmem:[#allocation43_spill] sm:$0xff]  ;;  %v8713_v52 = vld [vmem:[#allocation33_spill] sm:$0xff] }
 0x103   :  { %759 = vmatpush.msrb.mxu2 %v4654_v54  ;;  %v8715_v54 = vld [vmem:[#allocation45_spill] sm:$0xff]  ;;  %710 = vmatpush.msrb.mxu0 %v5248_v30 }
 0x104   :  { %v573_v36 = vmul.f32 %v572_v33, %v567_v34  ;;  %779 = vmatpush.msrb.mxu3 %v4650_v53  ;;  %740 = vmatpush.msrb.mxu1 %v4657_v56  ;;  %v8714_v53 = vld [vmem:[#allocation47_spill] sm:$0xff]  ;;  %v5254_v33 = vld [vmem:[#allocation13 + $0x10] sm:$0xff]  ;;  %v5257_v34 = vld [vmem:[#allocation13 + $0x8] sm:$0xff] }
 0x105   :  { %760 = vmatpush.msrb.mxu2 %v4663_v58  ;;  %v8716_v56 = vld [vmem:[#allocation35_spill] sm:$0xff]  ;;  %v8718_v58 = vld [vmem:[#allocation49_spill] sm:$0xff] }
 0x106   :  { %v5178_v37 = vadd.f32 %v3328_v32, %v573_v36  ;;  %780 = vmatpush.msrb.mxu3 %v4659_v57  ;;  %741 = vmatpush.msrb.mxu1 %v4668_v60  ;;  %v8717_v57 = vld [vmem:[#allocation51_spill] sm:$0xff]  ;;  %v8719_v60 = vld [vmem:[#allocation38_spill] sm:$0xff] }
 0x107   :  { %761 = vmatpush.msrb.mxu2 %v4680_v5  ;;  %v8722_v5 = vld [vmem:[#allocation42_spill] sm:$0xff]  ;;  %v5260_v36 = vld [vmem:[#allocation13] sm:$0xff] }
 0x108   :  { %591 = vmatmul.f32.vlgmr.msra.gmra.mxu0 %v5178_v37  ;;  %611 = vmatmul.f32.vlgmr.msra.gmra.mxu1 %v5178_v37  ;;  %v5251_v32 = vld [vmem:[#allocation13 + $0x18] sm:$0xff] }
 0x109   :  { %631 = vmatmul.f32.vlgmr.msra.gmra.mxu2 %v5178_v37  ;;  %651 = vmatmul.f32.vlgmr.msra.gmra.mxu3 %v5178_v37 }
 0x10a   :  { %826 = vmatpush.msra.mxu2 %v4701_v39  ;;  %781 = vmatpush.msrb.mxu3 %v4670_v61  ;;  %v8720_v61 = vld [vmem:[#allocation55_spill] sm:$0xff]  ;;  %v8724_v39 = vld [vmem:[#allocation57_spill] sm:$0xff] }
 0x10b   :  { %806 = vmatpush.msra.mxu1 %v4696_v31  ;;  %v8723_v31 = vld [vmem:[#allocation59_spill] sm:$0xff]  ;;  %711 = vmatpush.msrb.mxu0 %v5251_v32 }
 0x10c   :  { %846 = vmatpush.msra.mxu3 %v4676_v63  ;;  %827 = vmatpush.msra.mxu2 %v4710_v55  ;;  %v8721_v63 = vld [vmem:[#allocation53_spill] sm:$0xff]  ;;  %v8725_v55 = vld [vmem:[#allocation46_spill] sm:$0xff] }
 0x10d   :  { %807 = vmatpush.msra.mxu1 %v8703_v38  ;;  %712 = vmatpush.msrb.mxu0 %v5254_v33  ;;  %v5263_v38 = vld [vmem:[#allocation7 + $0x3e8] sm:$0xff] }
 0x10e   :  { %847 = vmatpush.msra.mxu3 %v8704_v40  ;;  %828 = vmatpush.msra.mxu2 %v8705_v41  ;;  %v5266_v40 = vld [vmem:[#allocation7 + $0x3c8] sm:$0xff] }
 0x10f   :  { %808 = vmatpush.msra.mxu1 %v8706_v42  ;;  %713 = vmatpush.msrb.mxu0 %v5257_v34  ;;  %v5269_v41 = vld [vmem:[#allocation7 + $0x3a8] sm:$0xff] }
 0x110   :  { %848 = vmatpush.msra.mxu3 %v8707_v44  ;;  %829 = vmatpush.msra.mxu2 %v8708_v45  ;;  %v5272_v42 = vld [vmem:[#allocation7 + $0x388] sm:$0xff] }
 0x111   :  { %809 = vmatpush.msra.mxu1 %v8709_v46  ;;  %714 = vmatpush.msrb.mxu0 %v5260_v36  ;;  %v5275_v44 = vld [vmem:[#allocation7 + $0x368] sm:$0xff]  ;;  %v5281_v46 = vld [vmem:[#allocation11] sm:$0xff] }
 0x112   :  { %849 = vmatpush.msra.mxu3 %v8710_v48  ;;  %830 = vmatpush.msra.mxu2 %v8711_v49  ;;  %v5278_v45 = vld [vmem:[#allocation7 + $0x348] sm:$0xff] }
 0x113   :  { %810 = vmatpush.msra.mxu1 %v8712_v50  ;;  %786 = vmatpush.msra.mxu0 %v5263_v38  ;;  %v5283_v48 = vld [vmem:[#allocation11 + $0x8] sm:$0xff] }
 0x114   :  { %850 = vmatpush.msra.mxu3 %v8713_v52  ;;  %831 = vmatpush.msra.mxu2 %v8714_v53  ;;  %v5285_v49 = vld [vmem:[#allocation7 + $0x328] sm:$0xff] }
 0x115   :  { %811 = vmatpush.msra.mxu1 %v8715_v54  ;;  %787 = vmatpush.msra.mxu0 %v5266_v40  ;;  %v5288_v53 = vld [vmem:[#allocation7 + $0x308] sm:$0xff] }
 0x116   :  { %851 = vmatpush.msra.mxu3 %v8716_v56  ;;  %832 = vmatpush.msra.mxu2 %v8717_v57  ;;  %v5293_v57 = vld [vmem:[#allocation7 + $0x2e8] sm:$0xff] }
 0x117   :  { %812 = vmatpush.msra.mxu1 %v8718_v58  ;;  %788 = vmatpush.msra.mxu0 %v5269_v41 }
 0x118   :  { %852 = vmatpush.msra.mxu3 %v8719_v60  ;;  %833 = vmatpush.msra.mxu2 %v8720_v61  ;;  %v5296_v61 = vld [vmem:[#allocation7 + $0x2c8] sm:$0xff] }
 0x119   :  { %813 = vmatpush.msra.mxu1 %v8721_v63  ;;  %789 = vmatpush.msra.mxu0 %v5272_v42  ;;  %v5299_v63 = vld [vmem:[#allocation7 + $0x2a8] sm:$0xff] }
 0x11a   :  { %853 = vmatpush.msra.mxu3 %v8722_v5  ;;  %834 = vmatpush.msra.mxu2 %v8723_v31  ;;  %v5302_v5 = vld [vmem:[#allocation7 + $0x288] sm:$0xff] }
 0x11b   :  { %814 = vmatpush.msra.mxu1 %v8724_v39  ;;  %790 = vmatpush.msra.mxu0 %v5275_v44  ;;  %v5305_v31 = vld [vmem:[#allocation7 + $0x268] sm:$0xff] }
 0x11c   :  { %854 = vmatpush.msra.mxu3 %v8725_v55  ;;  %835 = vmatpush.msra.mxu2 %v8726_v13 }
 0x11d   :  { %815 = vmatpush.msra.mxu1 %v8727_v23  ;;  %791 = vmatpush.msra.mxu0 %v5278_v45  ;;  %v5308_v23 = vld [vmem:[#allocation7 + $0x248] sm:$0xff] }
 0x11e   :  { %855 = vmatpush.msra.mxu3 %v8728_v3  ;;  %836 = vmatpush.msra.mxu2 %v8729_v1  ;;  %v8747_v1 = vld [vmem:[#allocation27_spill] sm:$0xff] }
 0x11f   :  { %816 = vmatpush.msra.mxu1 %v8730_v2  ;;  %792 = vmatpush.msra.mxu0 %v5285_v49  ;;  %v8748_v2 = vld [vmem:[#allocation28_spill] sm:$0xff] }
 0x120   :  { %856 = vmatpush.msra.mxu3 %v8731_v6  ;;  %837 = vmatpush.msra.mxu2 %v8732_v7 }
 0x121   :  { %817 = vmatpush.msra.mxu1 %v8733_v27  ;;  %793 = vmatpush.msra.mxu0 %v5288_v53 }
 0x122   :  { %857 = vmatpush.msra.mxu3 %v8734_v11  ;;  %838 = vmatpush.msra.mxu2 %v8735_v14 }
 0x123   :  { %818 = vmatpush.msra.mxu1 %v8736_v12  ;;  %794 = vmatpush.msra.mxu0 %v5293_v57 }
 0x124   :  { %858 = vmatpush.msra.mxu3 %v8737_v16  ;;  %839 = vmatpush.msra.mxu2 %v8738_v35 }
 0x125   :  { %819 = vmatpush.msra.mxu1 %v8739_v8  ;;  %795 = vmatpush.msra.mxu0 %v5296_v61  ;;  %v5313_v8 = vld [vmem:[#allocation11 + $0x18] sm:$0xff] }
 0x126   :  { %859 = vmatpush.msra.mxu3 %v8740_v10  ;;  %840 = vmatpush.msra.mxu2 %v8741_v17 }
 0x127   :  { %820 = vmatpush.msra.mxu1 %v8742_v9  ;;  %796 = vmatpush.msra.mxu0 %v5299_v63 }
 0x128   :  { %860 = vmatpush.msra.mxu3 %v8743_v20  ;;  %841 = vmatpush.msra.mxu2 %v8744_v22  ;;  %v5315_v20 = vld [vmem:[#allocation11 + $0x10] sm:$0xff] }
 0x129   :  { %821 = vmatpush.msra.mxu1 %v8745_v21  ;;  %797 = vmatpush.msra.mxu0 %v5302_v5 }
 0x12a   :  { %861 = vmatpush.msra.mxu3 %v8746_v24 }
 0x12b   :  { %798 = vmatpush.msra.mxu0 %v5305_v31 }
 0x12d   :  { %799 = vmatpush.msra.mxu0 %v5308_v23 }
 0x12f   :  { %800 = vmatpush.msra.mxu0 %v8747_v1 }
 0x131   :  { %801 = vmatpush.msra.mxu0 %v8748_v2 }
 0x185   :  { %v592_v50 = vpop.f32.mrf.mxu0  ;;  %v612_v52 = vpop.f32.mrf.mxu1 }
 0x186   :  { %v593_v54 = vadd.f32 %v592_v50, %v5281_v46  ;;  %v613_v56 = vadd.f32 %v612_v52, %v5283_v48 }
 0x188   :  { %v3273_v58 = vmul.f32 -1.442695, %v593_v54  ;;  %v3274_v60 = vmul.f32 -1.442695, %v613_v56 }
 0x18a   :  { %3329 = vpow2.f32 %v3273_v58 }
 0x18b   :  { %3331 = vpow2.f32 %v3274_v60 }
 0x18c   :  { %v652_v10 = vpop.f32.mrf.mxu3  ;;  %v632_v22 = vpop.f32.mrf.mxu2 }
 0x18d   :  { %v653_v24 = vadd.f32 %v652_v10, %v5313_v8  ;;  %v633_v54 = vadd.f32 %v632_v22, %v5315_v20  ;;  %v8751_v10 = vld [vmem:[#allocation93_spill] sm:$0xff]  ;;  %v5342_v22 = vld [vmem:[#allocation7 + $0x378] sm:$0xff] }
 0x190   :  { %v3330_v39 = vpop.eup %3329 }
 0x191   :  { %v3332_v55 = vpop.eup %3331  ;;  %v658_v13 = vadd.f32 1.0, %v3330_v39 }
 0x192   :  { %v677_v3 = vadd.f32 1.0, %v3332_v55 }
 0x193   :  { %3333 = vrcp.f32 %v658_v13  ;;  %v670_v12 = vand.u32 2147483648, %v658_v13  ;;  %v668_v35 = vand.u32 2147483647, %v658_v13  ;;  %vm664_vm9 = vweird.f32 %v658_v13 }
 0x194   :  { %3335 = vrcp.f32 %v677_v3  ;;  %v689_v55 = vand.u32 2147483648, %v677_v3  ;;  %vm683_vm13 = vweird.f32 %v677_v3 }
 0x195   :  { %v671_v21 = vor.u32 1.1754944e-38, %v670_v12  ;;  %vm669_vm11 = vcmp.eq.f32.partialorder %v668_v35, 8.507059e+37  ;;  %v8750_v35 = vld [vmem:[#allocation89_spill] sm:$0xff] }
 0x199   :  { %v3334_v6 = vpop.eup %3333 }
 0x19a   :  { %v3336_v7 = vpop.eup %3335  ;;  %v660_v27 = vmul.f32 %v3334_v6, %v658_v13  ;;  %vm665_vm8 = vweird.f32 %v3334_v6  ;;  %v687_v13 = vand.u32 2147483647, %v677_v3 }
 0x19b   :  { %v679_v14 = vmul.f32 %v3336_v7, %v677_v3  ;;  %vm666_vm10 = vmor %vm664_vm9, %vm665_vm8  ;;  %vm684_vm12 = vweird.f32 %v3336_v7  ;;  %v8749_v3 = vld [vmem:[#allocation85_spill] sm:$0xff] }
 0x19c   :  { %v661_v11 = vsub.f32 1.0, %v660_v27  ;;  %vm685_vm14 = vmor %vm683_vm13, %vm684_vm12  ;;  %v690_v27 = vor.u32 1.1754944e-38, %v689_v55  ;;  %vm688_vm15 = vcmp.eq.f32.partialorder %v687_v13, 8.507059e+37  ;;  %v8762_v55 = vld [vmem:[#allocation56_spill] sm:$0xff]  ;;  %v8763_v13 = vld [vmem:[#allocation121_spill] sm:$0xff] }
 0x19d   :  { %v680_v9 = vsub.f32 1.0, %v679_v14 }
 0x19e   :  { %v662_v16 = vmul.f32 %v3334_v6, %v661_v11 }
 0x19f   :  { %v681_v58 = vmul.f32 %v3336_v7, %v680_v9  ;;  %v8752_v9 = vld [vmem:[#allocation97_spill] sm:$0xff] }
 0x1a0   :  { %v663_v17 = vadd.f32 %v3334_v6, %v662_v16  ;;  %v5324_v16 = vld [vmem:[#allocation7 + $0x3f8] sm:$0xff] }
 0x1a1   :  { %v682_v39 = vadd.f32 %v3336_v7, %v681_v58  ;;  %v8759_v58 = vld [vmem:[#allocation113_spill] sm:$0xff] }
 0x1a2   :  { %v667_v50 = vsel %vm666_vm10, %v3334_v6, %v663_v17  ;;  %v5336_v17 = vld [vmem:[#allocation7 + $0x398] sm:$0xff] }
 0x1a3   :  { %v672_v52 = vsel %vm669_vm11, %v671_v21, %v667_v50  ;;  %v686_v1 = vsel %vm685_vm14, %v3336_v7, %v682_v39  ;;  %v5328_v7 = vld [vmem:[#allocation7 + $0x3d8] sm:$0xff]  ;;  %v8753_v21 = vld [vmem:[#allocation101_spill] sm:$0xff] }
 0x1a4   :  { %v693_v56 = vmul.f32 %v672_v52, %v653_v24  ;;  %v691_v11 = vsel %vm688_vm15, %v690_v27, %v686_v1  ;;  %v8754_v24 = vld [vmem:[#allocation40_spill] sm:$0xff]  ;;  %v8755_v50 = vld [vmem:[#allocation105_spill] sm:$0xff] }
 0x1a5   :  { %v8756_v52 = vld [vmem:[#allocation44_spill] sm:$0xff]  ;;  %v8761_v39 = vld [vmem:[#allocation117_spill] sm:$0xff] }
 0x1a6   :  { %v694_v60 = vadd.f32 %v693_v56, %v633_v54  ;;  %v8757_v54 = vld [vmem:[#allocation109_spill] sm:$0xff]  ;;  %v8758_v56 = vld [vmem:[#allocation48_spill] sm:$0xff] }
 0x1a7   :  { %v8764_v1 = vld [vmem:[#allocation60_spill] sm:$0xff] }
 0x1a8   :  { %3337 = vtanh.f32 %v694_v60  ;;  %v8760_v60 = vld [vmem:[#allocation52_spill] sm:$0xff] }
 0x1a9   :  { %v8766_v27 = vld [vmem:[#allocation64_spill] sm:$0xff] }
 0x1ae   :  { %v3338_v2 = vpop.eup %3337 }
 0x1af   :  { %v696_v6 = vsub.f32 %v5178_v37, %v3338_v2  ;;  %v5332_v37 = vld [vmem:[#allocation7 + $0x3b8] sm:$0xff] }
 0x1b1   :  { %v697_v14 = vmul.f32 %v696_v6, %v691_v11  ;;  %v8767_v6 = vld [vmem:[#allocation129_spill] sm:$0xff]  ;;  %v8768_v11 = vld [vmem:[#allocation68_spill] sm:$0xff] }
 0x1b3   :  { %v5320_v12 = vadd.f32 %v3338_v2, %v697_v14  ;;  %v8765_v2 = vld [vmem:[#allocation125_spill] sm:$0xff] }
 0x1b4   :  { %v8769_v14 = vld [vmem:[#allocation133_spill] sm:$0xff] }
 0x1b5   :  { %715 = vmatmul.f32.vlgmr.msrb.gmra.mxu0 %v5320_v12  ;;  %762 = vmatmul.f32.vlgmr.msrb.gmra.mxu2 %v5320_v12 }
 0x1b6   :  { %866 = vmatpush.msrb.mxu0 %v5324_v16  ;;  %950 = vmatpush.msrb.mxu2 %v8749_v3  ;;  %v8770_v3 = vld [vmem:[#allocation72_spill] sm:$0xff] }
 0x1b8   :  { %867 = vmatpush.msrb.mxu0 %v5328_v7  ;;  %951 = vmatpush.msrb.mxu2 %v8750_v35  ;;  %v8771_v35 = vld [vmem:[#allocation137_spill] sm:$0xff] }
 0x1ba   :  { %868 = vmatpush.msrb.mxu0 %v5332_v37  ;;  %952 = vmatpush.msrb.mxu2 %v8751_v10  ;;  %v8772_v10 = vld [vmem:[#allocation76_spill] sm:$0xff] }
 0x1bc   :  { %869 = vmatpush.msrb.mxu0 %v5336_v17  ;;  %953 = vmatpush.msrb.mxu2 %v8752_v9  ;;  %v8773_v9 = vld [vmem:[#allocation79_spill] sm:$0xff] }
 0x1bd   :  { %802 = vmatmul.f32.vlgmr.msra.gmra.mxu0 %v5320_v12  ;;  %842 = vmatmul.f32.vlgmr.msra.gmra.mxu2 %v5320_v12 }
 0x1be   :  { %870 = vmatpush.msrb.mxu0 %v5342_v22  ;;  %954 = vmatpush.msrb.mxu2 %v8753_v21  ;;  %v5369_v21 = vld [vmem:[#allocation7 + $0x1e0] sm:$0xff] }
 0x1c0   :  { %871 = vmatpush.msrb.mxu0 %v8754_v24  ;;  %955 = vmatpush.msrb.mxu2 %v8755_v50  ;;  %v8774_v24 = vld [vmem:[#allocation87_spill] sm:$0xff] }
 0x1c1   :  { %v5373_v50 = vld [vmem:[#allocation7 + $0x1c0] sm:$0xff] }
 0x1c2   :  { %872 = vmatpush.msrb.mxu0 %v8756_v52  ;;  %956 = vmatpush.msrb.mxu2 %v8757_v54  ;;  %v8775_v52 = vld [vmem:[#allocation91_spill] sm:$0xff] }
 0x1c3   :  { %v5377_v54 = vld [vmem:[#allocation7 + $0x1a0] sm:$0xff] }
 0x1c4   :  { %873 = vmatpush.msrb.mxu0 %v8758_v56  ;;  %957 = vmatpush.msrb.mxu2 %v8759_v58  ;;  %v8777_v56 = vld [vmem:[#allocation99_spill] sm:$0xff] }
 0x1c5   :  { %v5385_v58 = vld [vmem:[#allocation7 + $0x160] sm:$0xff] }
 0x1c6   :  { %874 = vmatpush.msrb.mxu0 %v8760_v60  ;;  %958 = vmatpush.msrb.mxu2 %v8761_v39  ;;  %v8778_v60 = vld [vmem:[#allocation103_spill] sm:$0xff] }
 0x1c7   :  { %v5389_v39 = vld [vmem:[#allocation7 + $0x140] sm:$0xff] }
 0x1c8   :  { %875 = vmatpush.msrb.mxu0 %v8762_v55  ;;  %959 = vmatpush.msrb.mxu2 %v8763_v13  ;;  %v8779_v55 = vld [vmem:[#allocation107_spill] sm:$0xff] }
 0x1c9   :  { %v5393_v13 = vld [vmem:[#allocation7 + $0x120] sm:$0xff] }
 0x1ca   :  { %876 = vmatpush.msrb.mxu0 %v8764_v1  ;;  %960 = vmatpush.msrb.mxu2 %v8765_v2  ;;  %v8780_v1 = vld [vmem:[#allocation111_spill] sm:$0xff] }
 0x1cb   :  { %v5397_v2 = vld [vmem:[#allocation7 + $0x100] sm:$0xff] }
 0x1cc   :  { %877 = vmatpush.msrb.mxu0 %v8766_v27  ;;  %961 = vmatpush.msrb.mxu2 %v8767_v6  ;;  %v8781_v27 = vld [vmem:[#allocation115_spill] sm:$0xff] }
 0x1cd   :  { %v5401_v6 = vld [vmem:[#allocation7 + $0xe0] sm:$0xff] }
 0x1ce   :  { %878 = vmatpush.msrb.mxu0 %v8768_v11  ;;  %962 = vmatpush.msrb.mxu2 %v8769_v14  ;;  %v8782_v11 = vld [vmem:[#allocation119_spill] sm:$0xff] }
 0x1cf   :  { %v5405_v14 = vld [vmem:[#allocation7 + $0xc0] sm:$0xff] }
 0x1d0   :  { %879 = vmatpush.msrb.mxu0 %v8770_v3  ;;  %963 = vmatpush.msrb.mxu2 %v8771_v35  ;;  %8783 = vst [vmem:[#allocation32_spill] sm:$0xff] %v5405_v14  ;;  %v8784_v3 = vld [vmem:[#allocation123_spill] sm:$0xff] }
 0x1d1   :  { %v5409_v35 = vld [vmem:[#allocation7 + $0xa0] sm:$0xff] }
 0x1d2   :  { %880 = vmatpush.msrb.mxu0 %v8772_v10  ;;  %964 = vmatpush.msrb.mxu2 %v5050_v62  ;;  %v8776_v62 = vld [vmem:[#allocation95_spill] sm:$0xff]  ;;  %8785 = vst [vmem:[#allocation29_spill] sm:$0xff] %v5409_v35 }
 0x1d3   :  { %v8786_v10 = vld [vmem:[#allocation127_spill] sm:$0xff] }
 0x1d4   :  { %881 = vmatpush.msrb.mxu0 %v8773_v9  ;;  %965 = vmatpush.msrb.mxu2 %v5062_v59  ;;  %v5381_v59 = vld [vmem:[#allocation7 + $0x180] sm:$0xff] }
 0x1d5   :  { %882 = vmatmul.f32.vlgmr.msrb.gmra.mxu0 %v5320_v12  ;;  %v5413_v9 = vld [vmem:[#allocation7 + $0x80] sm:$0xff] }
 0x1d6   :  { %1086 = vmatpush.msra.mxu2 %v5369_v21  ;;  %990 = vmatpush.msra.mxu0 %v8774_v24  ;;  %8787 = vst [vmem:[#allocation36_spill] sm:$0xff] %v5413_v9  ;;  %v8788_v24 = vld [vmem:[#allocation131_spill] sm:$0xff] }
 0x1d8   :  { %1087 = vmatpush.msra.mxu2 %v5373_v50  ;;  %991 = vmatpush.msra.mxu0 %v8775_v52  ;;  %v5417_v52 = vld [vmem:[#allocation7 + $0x60] sm:$0xff] }
 0x1d9   :  { %8789 = vst [vmem:[#allocation34_spill] sm:$0xff] %v5417_v52 }
 0x1da   :  { %1088 = vmatpush.msra.mxu2 %v5377_v54  ;;  %992 = vmatpush.msra.mxu0 %v8776_v62  ;;  %v8790_v62 = vld [vmem:[#allocation135_spill] sm:$0xff] }
 0x1dc   :  { %1089 = vmatpush.msra.mxu2 %v5381_v59  ;;  %993 = vmatpush.msra.mxu0 %v8777_v56  ;;  %v5421_v56 = vld [vmem:[#allocation7 + $0x40] sm:$0xff] }
 0x1dd   :  { %8791 = vst [vmem:[#allocation30_spill] sm:$0xff] %v5421_v56 }
 0x1de   :  { %1090 = vmatpush.msra.mxu2 %v5385_v58  ;;  %994 = vmatpush.msra.mxu0 %v8778_v60  ;;  %v8792_v60 = vld [vmem:[#allocation139_spill] sm:$0xff] }
 0x1e0   :  { %1091 = vmatpush.msra.mxu2 %v5389_v39  ;;  %995 = vmatpush.msra.mxu0 %v8779_v55  ;;  %v5425_v55 = vld [vmem:[#allocation7 + $0x20] sm:$0xff] }
 0x1e1   :  { %8793 = vst [vmem:[#allocation39_spill] sm:$0xff] %v5425_v55 }
 0x1e2   :  { %1092 = vmatpush.msra.mxu2 %v5393_v13  ;;  %996 = vmatpush.msra.mxu0 %v8780_v1  ;;  %v8794_v1 = vld [vmem:[#allocation142_spill] sm:$0xff] }
 0x1e4   :  { %1093 = vmatpush.msra.mxu2 %v5397_v2  ;;  %997 = vmatpush.msra.mxu0 %v8781_v27  ;;  %v5429_v27 = vld [vmem:[#allocation7] sm:$0xff] }
 0x1e5   :  { %8795 = vst [vmem:[#allocation37_spill] sm:$0xff] %v5429_v27 }
 0x1e6   :  { %1094 = vmatpush.msra.mxu2 %v5401_v6  ;;  %998 = vmatpush.msra.mxu0 %v8782_v11  ;;  %v5433_v11 = vld [vmem:[#allocation7 + $0x1e8] sm:$0xff] }
 0x1e7   :  { %8796 = vst [vmem:[#allocation31_spill] sm:$0xff] %v5433_v11 }
 0x1e8   :  { %1095 = vmatpush.msra.mxu2 %v5405_v14  ;;  %999 = vmatpush.msra.mxu0 %v8784_v3  ;;  %v5436_v3 = vld [vmem:[#allocation7 + $0x1c8] sm:$0xff]  ;;  %v8817_v14 = vld [vmem:[#allocation94_spill] sm:$0xff] }
 0x1e9   :  { %8797 = vst [vmem:[#allocation43_spill] sm:$0xff] %v5436_v3 }
 0x1ea   :  { %1096 = vmatpush.msra.mxu2 %v5409_v35  ;;  %1000 = vmatpush.msra.mxu0 %v8786_v10  ;;  %v5439_v10 = vld [vmem:[#allocation7 + $0x1a8] sm:$0xff] }
 0x1eb   :  { %8798 = vst [vmem:[#allocation41_spill] sm:$0xff] %v5439_v10  ;;  %v8816_v35 = vld [vmem:[#allocation92_spill] sm:$0xff] }
 0x1ec   :  { %1097 = vmatpush.msra.mxu2 %v5413_v9  ;;  %1001 = vmatpush.msra.mxu0 %v8788_v24  ;;  %v5442_v24 = vld [vmem:[#allocation7 + $0x188] sm:$0xff]  ;;  %v8815_v9 = vld [vmem:[#allocation90_spill] sm:$0xff] }
 0x1ed   :  { %8799 = vst [vmem:[#allocation33_spill] sm:$0xff] %v5442_v24 }
 0x1ee   :  { %1098 = vmatpush.msra.mxu2 %v5417_v52  ;;  %1002 = vmatpush.msra.mxu0 %v8790_v62  ;;  %v5445_v62 = vld [vmem:[#allocation7 + $0x168] sm:$0xff]  ;;  %v8813_v52 = vld [vmem:[#allocation86_spill] sm:$0xff] }
 0x1ef   :  { %8800 = vst [vmem:[#allocation47_spill] sm:$0xff] %v5445_v62 }
 0x1f0   :  { %1099 = vmatpush.msra.mxu2 %v5421_v56  ;;  %1003 = vmatpush.msra.mxu0 %v8792_v60  ;;  %v5451_v60 = vld [vmem:[#allocation7 + $0x128] sm:$0xff] }
 0x1f1   :  { %8802 = vst [vmem:[#allocation35_spill] sm:$0xff] %v5451_v60 }
 0x1f2   :  { %1100 = vmatpush.msra.mxu2 %v5425_v55  ;;  %1004 = vmatpush.msra.mxu0 %v8794_v1  ;;  %v5454_v1 = vld [vmem:[#allocation7 + $0x108] sm:$0xff] }
 0x1f3   :  { %8803 = vst [vmem:[#allocation51_spill] sm:$0xff] %v5454_v1 }
 0x1f4   :  { %1101 = vmatpush.msra.mxu2 %v5429_v27  ;;  %1005 = vmatpush.msra.mxu0 %v5069_v47  ;;  %v5448_v47 = vld [vmem:[#allocation7 + $0x148] sm:$0xff] }
 0x1f5   :  { %8801 = vst [vmem:[#allocation45_spill] sm:$0xff] %v5448_v47 }
 0x1f6   :  { %1126 = vmatpush.msrb.mxu0 %v5433_v11 }
 0x1f8   :  { %1127 = vmatpush.msrb.mxu0 %v5436_v3  ;;  %v5481_v3 = vld [vmem:[#allocation14] sm:$0xff] }
 0x1fa   :  { %1128 = vmatpush.msrb.mxu0 %v5439_v10  ;;  %v5457_v10 = vld [vmem:[#allocation7 + $0xe8] sm:$0xff] }
 0x1fb   :  { %8804 = vst [vmem:[#allocation49_spill] sm:$0xff] %v5457_v10 }
 0x1fc   :  { %1129 = vmatpush.msrb.mxu0 %v5442_v24  ;;  %v5460_v24 = vld [vmem:[#allocation7 + $0xc8] sm:$0xff] }
 0x1fd   :  { %8805 = vst [vmem:[#allocation38_spill] sm:$0xff] %v5460_v24 }
 0x1fe   :  { %1130 = vmatpush.msrb.mxu0 %v5445_v62  ;;  %v5463_v62 = vld [vmem:[#allocation7 + $0xa8] sm:$0xff] }
 0x1ff   :  { %8806 = vst [vmem:[#allocation55_spill] sm:$0xff] %v5463_v62 }
 0x200   :  { %1131 = vmatpush.msrb.mxu0 %v5448_v47  ;;  %v5466_v47 = vld [vmem:[#allocation7 + $0x88] sm:$0xff] }
 0x201   :  { %8807 = vst [vmem:[#allocation53_spill] sm:$0xff] %v5466_v47 }
 0x202   :  { %1132 = vmatpush.msrb.mxu0 %v5451_v60  ;;  %v5469_v60 = vld [vmem:[#allocation7 + $0x68] sm:$0xff] }
 0x203   :  { %8808 = vst [vmem:[#allocation42_spill] sm:$0xff] %v5469_v60 }
 0x204   :  { %1133 = vmatpush.msrb.mxu0 %v5454_v1  ;;  %v5472_v1 = vld [vmem:[#allocation7 + $0x48] sm:$0xff] }
 0x205   :  { %8809 = vst [vmem:[#allocation59_spill] sm:$0xff] %v5472_v1 }
 0x206   :  { %1134 = vmatpush.msrb.mxu0 %v5457_v10  ;;  %v5475_v10 = vld [vmem:[#allocation7 + $0x28] sm:$0xff] }
 0x207   :  { %8810 = vst [vmem:[#allocation57_spill] sm:$0xff] %v5475_v10 }
 0x208   :  { %1135 = vmatpush.msrb.mxu0 %v5460_v24  ;;  %v5478_v24 = vld [vmem:[#allocation7 + $0x8] sm:$0xff] }
 0x209   :  { %8811 = vst [vmem:[#allocation46_spill] sm:$0xff] %v5478_v24 }
 0x20a   :  { %1136 = vmatpush.msrb.mxu0 %v5463_v62  ;;  %v719_v62 = vld [vmem:[#allocation5] sm:$0xff] }
 0x20c   :  { %1137 = vmatpush.msrb.mxu0 %v5466_v47  ;;  %v721_v47 = vsub.f32 1.0, %v719_v62 }
 0x20e   :  { %1138 = vmatpush.msrb.mxu0 %v5469_v60  ;;  %v3530_v60 = vld [vmem:[#allocation2] sm:$0xff] }
 0x20f   :  { %v720_v55 = vmul.f32 %v3530_v60, %v719_v62  ;;  %v8819_v62 = vld [vmem:[#allocation98_spill] sm:$0xff]  ;;  %v8830_v60 = vld [vmem:[#allocation120_spill] sm:$0xff] }
 0x210   :  { %1139 = vmatpush.msrb.mxu0 %v5472_v1 }
 0x212   :  { %1140 = vmatpush.msrb.mxu0 %v5475_v10  ;;  %v8812_v10 = vld [vmem:[#allocation84_spill] sm:$0xff] }
 0x214   :  { %1141 = vmatpush.msrb.mxu0 %v5478_v24  ;;  %v8814_v24 = vld [vmem:[#allocation88_spill] sm:$0xff] }
 0x232   :  { %v716_v11 = vpop.f32.mrf.mxu0 }
 0x233   :  { %v717_v27 = vadd.f32 %v716_v11, %v5481_v3  ;;  %v8818_v11 = vld [vmem:[#allocation96_spill] sm:$0xff] }
 0x235   :  { %v722_v56 = vmul.f32 %v721_v47, %v717_v27  ;;  %724 = vst [vmem:[#allocation19] sm:$0xff] %v717_v27  ;;  %v8822_v27 = vld [vmem:[#allocation104_spill] sm:$0xff]  ;;  %v8829_v47 = vld [vmem:[#allocation118_spill] sm:$0xff] }
 0x237   :  { %v723_v1 = vadd.f32 %v722_v56, %v720_v55  ;;  %v8820_v56 = vld [vmem:[#allocation100_spill] sm:$0xff]  ;;  %v8821_v55 = vld [vmem:[#allocation102_spill] sm:$0xff] }
 0x239   :  { %725 = vst [vmem:[#allocation17] sm:$0xff] %v723_v1  ;;  %742 = vmatmul.f32.vlgmr.msrb.gmra.mxu1 %v723_v1  ;;  %782 = vmatmul.f32.vlgmr.msrb.gmra.mxu3 %v723_v1 }
 0x23a   :  { %930 = vmatpush.msrb.mxu1 %v8812_v10  ;;  %970 = vmatpush.msrb.mxu3 %v8813_v52  ;;  %v8823_v52 = vld [vmem:[#allocation106_spill] sm:$0xff]  ;;  %v8824_v10 = vld [vmem:[#allocation108_spill] sm:$0xff] }
 0x23c   :  { %931 = vmatpush.msrb.mxu1 %v8814_v24  ;;  %971 = vmatpush.msrb.mxu3 %v8815_v9  ;;  %v8825_v9 = vld [vmem:[#allocation110_spill] sm:$0xff]  ;;  %v8828_v24 = vld [vmem:[#allocation116_spill] sm:$0xff] }
 0x23e   :  { %932 = vmatpush.msrb.mxu1 %v8816_v35  ;;  %972 = vmatpush.msrb.mxu3 %v8817_v14  ;;  %v8826_v35 = vld [vmem:[#allocation112_spill] sm:$0xff]  ;;  %v8827_v14 = vld [vmem:[#allocation114_spill] sm:$0xff] }
 0x240   :  { %933 = vmatpush.msrb.mxu1 %v8818_v11  ;;  %973 = vmatpush.msrb.mxu3 %v8819_v62  ;;  %v8832_v11 = vld [vmem:[#allocation124_spill] sm:$0xff]  ;;  %v8833_v62 = vld [vmem:[#allocation126_spill] sm:$0xff] }
 0x241   :  { %822 = vmatmul.f32.vlgmr.msra.gmra.mxu1 %v723_v1  ;;  %862 = vmatmul.f32.vlgmr.msra.gmra.mxu3 %v723_v1  ;;  %v8831_v1 = vld [vmem:[#allocation122_spill] sm:$0xff] }
 0x242   :  { %934 = vmatpush.msrb.mxu1 %v8820_v56  ;;  %974 = vmatpush.msrb.mxu3 %v8821_v55  ;;  %v8834_v56 = vld [vmem:[#allocation128_spill] sm:$0xff]  ;;  %v8835_v55 = vld [vmem:[#allocation130_spill] sm:$0xff] }
 0x244   :  { %935 = vmatpush.msrb.mxu1 %v8822_v27  ;;  %975 = vmatpush.msrb.mxu3 %v8823_v52  ;;  %v8836_v27 = vld [vmem:[#allocation132_spill] sm:$0xff]  ;;  %v8837_v52 = vld [vmem:[#allocation134_spill] sm:$0xff] }
 0x246   :  { %936 = vmatpush.msrb.mxu1 %v8824_v10  ;;  %976 = vmatpush.msrb.mxu3 %v8825_v9  ;;  %v8838_v10 = vld [vmem:[#allocation136_spill] sm:$0xff]  ;;  %v8839_v9 = vld [vmem:[#allocation138_spill] sm:$0xff] }
 0x248   :  { %937 = vmatpush.msrb.mxu1 %v8826_v35  ;;  %977 = vmatpush.msrb.mxu3 %v8827_v14  ;;  %v8840_v35 = vld [vmem:[#allocation140_spill] sm:$0xff]  ;;  %v8841_v14 = vld [vmem:[#allocation141_spill] sm:$0xff] }
 0x24a   :  { %938 = vmatpush.msrb.mxu1 %v8828_v24  ;;  %978 = vmatpush.msrb.mxu3 %v8829_v47  ;;  %v8842_v24 = vld [vmem:[#allocation143_spill] sm:$0xff]  ;;  %v8843_v47 = vld [vmem:[#allocation144_spill] sm:$0xff] }
 0x24c   :  { %939 = vmatpush.msrb.mxu1 %v8830_v60  ;;  %979 = vmatpush.msrb.mxu3 %v8831_v1  ;;  %v5517_v60 = vld [vmem:[#allocation7 + $0x3e0] sm:$0xff] }
 0x24d   :  { %v5521_v1 = vld [vmem:[#allocation7 + $0x3c0] sm:$0xff] }
 0x24e   :  { %940 = vmatpush.msrb.mxu1 %v8832_v11  ;;  %980 = vmatpush.msrb.mxu3 %v8833_v62  ;;  %v5525_v11 = vld [vmem:[#allocation7 + $0x3a0] sm:$0xff]  ;;  %v8844_v62 = vld [vmem:[#allocation145_spill] sm:$0xff] }
 0x250   :  { %941 = vmatpush.msrb.mxu1 %v8834_v56  ;;  %981 = vmatpush.msrb.mxu3 %v8835_v55  ;;  %v5529_v56 = vld [vmem:[#allocation7 + $0x380] sm:$0xff] }
 0x251   :  { %v5545_v55 = vld [vmem:[#allocation7 + $0x300] sm:$0xff] }
 0x252   :  { %942 = vmatpush.msrb.mxu1 %v8836_v27  ;;  %982 = vmatpush.msrb.mxu3 %v8837_v52  ;;  %8848 = vst [vmem:[#allocation67_spill] sm:$0xff] %v5545_v55  ;;  %v5580_v27 = vld [vmem:[#allocation8] sm:$0xff]  ;;  %v763_v52 = vpop.f32.mrf.mxu2 }
 0x253   :  { %8857 = vst [vmem:[#allocation78_spill] sm:$0xff] %v5580_v27 }
 0x254   :  { %943 = vmatpush.msrb.mxu1 %v8838_v10  ;;  %983 = vmatpush.msrb.mxu3 %v8839_v9 }
 0x256   :  { %944 = vmatpush.msrb.mxu1 %v8840_v35  ;;  %984 = vmatpush.msrb.mxu3 %v8841_v14 }
 0x258   :  { %945 = vmatpush.msrb.mxu1 %v8842_v24  ;;  %985 = vmatpush.msrb.mxu3 %v8843_v47  ;;  %v803_v24 = vpop.f32.mrf.mxu0 }
 0x25a   :  { %1054 = vmatpush.msra.mxu1 %v5073_v19  ;;  %1106 = vmatpush.msra.mxu3 %v5517_v60  ;;  %v5533_v19 = vld [vmem:[#allocation7 + $0x360] sm:$0xff] }
 0x25b   :  { %8845 = vst [vmem:[#allocation63_spill] sm:$0xff] %v5533_v19 }
 0x25c   :  { %1055 = vmatpush.msra.mxu1 %v5075_v43  ;;  %1107 = vmatpush.msra.mxu3 %v5521_v1  ;;  %v5537_v43 = vld [vmem:[#allocation7 + $0x340] sm:$0xff] }
 0x25d   :  { %8846 = vst [vmem:[#allocation61_spill] sm:$0xff] %v5537_v43 }
 0x25e   :  { %1056 = vmatpush.msra.mxu1 %v5082_v51  ;;  %1108 = vmatpush.msra.mxu3 %v5525_v11  ;;  %v5541_v51 = vld [vmem:[#allocation7 + $0x320] sm:$0xff] }
 0x25f   :  { %8847 = vst [vmem:[#allocation50_spill] sm:$0xff] %v5541_v51 }
 0x260   :  { %1057 = vmatpush.msra.mxu1 %v8844_v62  ;;  %1109 = vmatpush.msra.mxu3 %v5529_v56 }
 0x262   :  { %1058 = vmatpush.msra.mxu1 %v5103_v4  ;;  %1110 = vmatpush.msra.mxu3 %v5533_v19  ;;  %v5549_v4 = vld [vmem:[#allocation7 + $0x2e0] sm:$0xff] }
 0x263   :  { %8849 = vst [vmem:[#allocation65_spill] sm:$0xff] %v5549_v4 }
 0x264   :  { %1059 = vmatpush.msra.mxu1 %v5113_v15  ;;  %1111 = vmatpush.msra.mxu3 %v5537_v43  ;;  %v5553_v15 = vld [vmem:[#allocation7 + $0x2c0] sm:$0xff] }
 0x265   :  { %8850 = vst [vmem:[#allocation54_spill] sm:$0xff] %v5553_v15 }
 0x266   :  { %1060 = vmatpush.msra.mxu1 %v5132_v18  ;;  %1112 = vmatpush.msra.mxu3 %v5541_v51  ;;  %v5557_v18 = vld [vmem:[#allocation7 + $0x2a0] sm:$0xff] }
 0x267   :  { %8851 = vst [vmem:[#allocation71_spill] sm:$0xff] %v5557_v18 }
 0x268   :  { %1061 = vmatpush.msra.mxu1 %v5236_v25  ;;  %1113 = vmatpush.msra.mxu3 %v5545_v55  ;;  %v5561_v25 = vld [vmem:[#allocation7 + $0x280] sm:$0xff] }
 0x269   :  { %8852 = vst [vmem:[#allocation69_spill] sm:$0xff] %v5561_v25 }
 0x26a   :  { %1062 = vmatpush.msra.mxu1 %v5239_v26  ;;  %1114 = vmatpush.msra.mxu3 %v5549_v4  ;;  %v5565_v26 = vld [vmem:[#allocation7 + $0x260] sm:$0xff] }
 0x26b   :  { %8853 = vst [vmem:[#allocation58_spill] sm:$0xff] %v5565_v26 }
 0x26c   :  { %1063 = vmatpush.msra.mxu1 %v5242_v28  ;;  %1115 = vmatpush.msra.mxu3 %v5553_v15  ;;  %v5569_v28 = vld [vmem:[#allocation7 + $0x240] sm:$0xff] }
 0x26d   :  { %8854 = vst [vmem:[#allocation75_spill] sm:$0xff] %v5569_v28 }
 0x26e   :  { %1064 = vmatpush.msra.mxu1 %v5245_v29  ;;  %1116 = vmatpush.msra.mxu3 %v5557_v18  ;;  %v5573_v29 = vld [vmem:[#allocation7 + $0x220] sm:$0xff] }
 0x26f   :  { %8855 = vst [vmem:[#allocation73_spill] sm:$0xff] %v5573_v29 }
 0x270   :  { %1065 = vmatpush.msra.mxu1 %v5248_v30  ;;  %1117 = vmatpush.msra.mxu3 %v5561_v25  ;;  %v5577_v30 = vld [vmem:[#allocation7 + $0x200] sm:$0xff] }
 0x271   :  { %8856 = vst [vmem:[#allocation62_spill] sm:$0xff] %v5577_v30 }
 0x272   :  { %1066 = vmatpush.msra.mxu1 %v5251_v32  ;;  %1118 = vmatpush.msra.mxu3 %v5565_v26 }
 0x274   :  { %1067 = vmatpush.msra.mxu1 %v5254_v33  ;;  %1119 = vmatpush.msra.mxu3 %v5569_v28 }
 0x276   :  { %1068 = vmatpush.msra.mxu1 %v5257_v34  ;;  %1120 = vmatpush.msra.mxu3 %v5573_v29  ;;  %v5583_v34 = vld [vmem:[#allocation8 + $0x8] sm:$0xff] }
 0x277   :  { %8858 = vst [vmem:[#allocation77_spill] sm:$0xff] %v5583_v34 }
 0x278   :  { %1069 = vmatpush.msra.mxu1 %v5260_v36  ;;  %1121 = vmatpush.msra.mxu3 %v5577_v30 }
 0x2b6   :  { %v743_v32 = vpop.f32.mrf.mxu1 }
 0x2b7   :  { %v744_v33 = vadd.f32 %v5580_v27, %v743_v32 }
 0x2b9   :  { %v764_v10 = vadd.f32 %v763_v52, %v744_v33 }
 0x2bb   :  { %v3275_v9 = vmul.f32 -1.442695, %v764_v10 }
 0x2bc   :  { %v783_v35 = vpop.f32.mrf.mxu3 }
 0x2bd   :  { %3339 = vpow2.f32 %v3275_v9  ;;  %v784_v14 = vadd.f32 %v5583_v34, %v783_v35  ;;  %v883_v34 = vpop.f32.mrf.mxu0 }
 0x2be   :  { %v823_v10 = vpop.f32.mrf.mxu1 }
 0x2bf   :  { %v804_v36 = vadd.f32 %v803_v24, %v784_v14 }
 0x2c1   :  { %v3276_v47 = vmul.f32 -1.442695, %v804_v36  ;;  %v8859_v36 = vld [vmem:[#allocation146_spill] sm:$0xff] }
 0x2c3   :  { %v3340_v62 = vpop.eup %3339  ;;  %3341 = vpow2.f32 %v3276_v47  ;;  %v824_v47 = vadd.f32 %v823_v10, %v8859_v36  ;;  %v5646_v36 = vld [vmem:[#allocation7 + $0x350] sm:$0xff] }
 0x2c4   :  { %v889_v30 = vadd.f32 1.0, %v3340_v62  ;;  %v863_v33 = vpop.f32.mrf.mxu3 }
 0x2c5   :  { %v864_v27 = vadd.f32 %v863_v33, %v5096_v0 }
 0x2c6   :  { %3343 = vrcp.f32 %v889_v30  ;;  %v901_v9 = vand.u32 2147483648, %v889_v30  ;;  %v899_v35 = vand.u32 2147483647, %v889_v30  ;;  %vm895_vm1 = vweird.f32 %v889_v30 }
 0x2c7   :  { %v884_v15 = vadd.f32 %v883_v34, %v864_v27 }
 0x2c8   :  { %vm900_vm3 = vcmp.eq.f32.partialorder %v899_v35, 8.507059e+37  ;;  %v5629_v35 = vld [vmem:[#allocation7 + $0x190] sm:$0xff] }
 0x2c9   :  { %v3342_v29 = vpop.eup %3341 }
 0x2ca   :  { %v908_v28 = vadd.f32 1.0, %v3342_v29  ;;  %v902_v29 = vor.u32 1.1754944e-38, %v901_v9 }
 0x2cc   :  { %v3344_v26 = vpop.eup %3343  ;;  %3345 = vrcp.f32 %v908_v28  ;;  %v920_v19 = vand.u32 2147483648, %v908_v28  ;;  %vm914_vm5 = vweird.f32 %v908_v28 }
 0x2cd   :  { %v891_v32 = vmul.f32 %v3344_v26, %v889_v30  ;;  %vm896_vm0 = vweird.f32 %v3344_v26 }
 0x2ce   :  { %vm897_vm2 = vmor %vm895_vm1, %vm896_vm0  ;;  %v921_v9 = vor.u32 1.1754944e-38, %v920_v19  ;;  %v5602_v19 = vld [vmem:[#allocation7 + $0x1f8] sm:$0xff] }
 0x2cf   :  { %v892_v52 = vsub.f32 1.0, %v891_v32  ;;  %v843_v32 = vpop.f32.mrf.mxu2 }
 0x2d0   :  { %v844_v51 = vadd.f32 %v843_v32, %v824_v47  ;;  %v5649_v47 = vld [vmem:[#allocation7 + $0x150] sm:$0xff] }
 0x2d1   :  { %v893_v25 = vmul.f32 %v3344_v26, %v892_v52  ;;  %v5666_v32 = vld [vmem:[#allocation7 + $0x310] sm:$0xff] }
 0x2d2   :  { %v3346_v14 = vpop.eup %3345  ;;  %8862 = vst [vmem:[#allocation80_spill] sm:$0xff] %v5666_v32 }
 0x2d3   :  { %v910_v24 = vmul.f32 %v3346_v14, %v908_v28  ;;  %v894_v62 = vadd.f32 %v3344_v26, %v893_v25  ;;  %vm915_vm4 = vweird.f32 %v3346_v14  ;;  %v918_v25 = vand.u32 2147483647, %v908_v28  ;;  %v5626_v28 = vld [vmem:[#allocation7 + $0x390] sm:$0xff] }
 0x2d4   :  { %vm916_vm6 = vmor %vm914_vm5, %vm915_vm4 }
 0x2d5   :  { %v911_v18 = vsub.f32 1.0, %v910_v24  ;;  %v898_v4 = vsel %vm897_vm2, %v3344_v26, %v894_v62  ;;  %vm919_vm7 = vcmp.eq.f32.partialorder %v918_v25, 8.507059e+37  ;;  %v5639_v24 = vld [vmem:[#allocation7 + $0x170] sm:$0xff] }
 0x2d6   :  { %v903_v55 = vsel %vm900_vm3, %v902_v29, %v898_v4  ;;  %v5656_v62 = vld [vmem:[#allocation7 + $0x330] sm:$0xff] }
 0x2d7   :  { %v924_v0 = vmul.f32 %v903_v55, %v884_v15  ;;  %v912_v33 = vmul.f32 %v3346_v14, %v911_v18  ;;  %v5609_v55 = vld [vmem:[#allocation7 + $0x1d0] sm:$0xff] }
 0x2d8   :  { %v5616_v15 = vld [vmem:[#allocation7 + $0x3b0] sm:$0xff] }
 0x2d9   :  { %v925_v52 = vadd.f32 %v924_v0, %v844_v51  ;;  %v913_v43 = vadd.f32 %v3346_v14, %v912_v33  ;;  %v5606_v51 = vld [vmem:[#allocation7 + $0x3d0] sm:$0xff] }
 0x2da   :  { %v5619_v18 = vld [vmem:[#allocation7 + $0x1b0] sm:$0xff] }
 0x2db   :  { %3347 = vtanh.f32 %v925_v52  ;;  %v917_v30 = vsel %vm916_vm6, %v3346_v14, %v913_v43  ;;  %v5596_v43 = vld [vmem:[#allocation7 + $0x3f0] sm:$0xff] }
 0x2dc   :  { %v922_v26 = vsel %vm919_vm7, %v921_v9, %v917_v30  ;;  %v5636_v14 = vld [vmem:[#allocation7 + $0x370] sm:$0xff] }
 0x2dd   :  { %v5659_v29 = vld [vmem:[#allocation7 + $0x130] sm:$0xff] }
 0x2de   :  { %8860 = vst [vmem:[#allocation66_spill] sm:$0xff] %v5659_v29  ;;  %v5669_v0 = vld [vmem:[#allocation7 + $0x110] sm:$0xff] }
 0x2df   :  { %8863 = vst [vmem:[#allocation70_spill] sm:$0xff] %v5669_v0  ;;  %v5676_v33 = vld [vmem:[#allocation7 + $0x2f0] sm:$0xff] }
 0x2e0   :  { %8865 = vst [vmem:[#allocation82_spill] sm:$0xff] %v5676_v33  ;;  %v5679_v52 = vld [vmem:[#allocation7 + $0xf0] sm:$0xff] }
 0x2e1   :  { %v3348_v10 = vpop.eup %3347  ;;  %8866 = vst [vmem:[#allocation74_spill] sm:$0xff] %v5679_v52  ;;  %v5686_v25 = vld [vmem:[#allocation7 + $0x2d0] sm:$0xff] }
 0x2e2   :  { %v927_v27 = vsub.f32 %v5320_v12, %v3348_v10  ;;  %v5599_v12 = vld [vmem:[#allocation7 + $0x1f0] sm:$0xff]  ;;  %8868 = vst [vmem:[#allocation28_spill] sm:$0xff] %v5686_v25 }
 0x2e3   :  { %v5689_v30 = vld [vmem:[#allocation7 + $0xd0] sm:$0xff] }
 0x2e4   :  { %v928_v34 = vmul.f32 %v927_v27, %v922_v26  ;;  %8869 = vst [vmem:[#allocation85_spill] sm:$0xff] %v5689_v30  ;;  %v5699_v9 = vld [vmem:[#allocation7 + $0xb0] sm:$0xff] }
 0x2e5   :  { %8872 = vst [vmem:[#allocation97_spill] sm:$0xff] %v5699_v9  ;;  %v5706_v27 = vld [vmem:[#allocation7 + $0x290] sm:$0xff] }
 0x2e6   :  { %v5589_v4 = vadd.f32 %v3348_v10, %v928_v34  ;;  %v5696_v10 = vld [vmem:[#allocation7 + $0x2b0] sm:$0xff]  ;;  %8874 = vst [vmem:[#allocation40_spill] sm:$0xff] %v5706_v27 }
 0x2e7   :  { %8871 = vst [vmem:[#allocation93_spill] sm:$0xff] %v5696_v10  ;;  %v5709_v26 = vld [vmem:[#allocation7 + $0x90] sm:$0xff] }
 0x2e8   :  { %946 = vmatmul.f32.vlgmr.msrb.gmra.mxu1 %v5589_v4  ;;  %966 = vmatmul.f32.vlgmr.msrb.gmra.mxu2 %v5589_v4  ;;  %8875 = vst [vmem:[#allocation105_spill] sm:$0xff] %v5709_v26  ;;  %v5716_v34 = vld [vmem:[#allocation7 + $0x270] sm:$0xff] }
 0x2e9   :  { %986 = vmatmul.f32.vlgmr.msrb.gmra.mxu3 %v5589_v4  ;;  %1006 = vmatmul.f32.vlgmr.msra.gmra.mxu0 %v5589_v4  ;;  %8877 = vst [vmem:[#allocation109_spill] sm:$0xff] %v5716_v34 }
 0x2ea   :  { %1146 = vmatpush.msrb.mxu1 %v5263_v38  ;;  %1186 = vmatpush.msrb.mxu3 %v5596_v43  ;;  %v5612_v38 = vld [vmem:[#allocation7 + $0x1d8] sm:$0xff] }
 0x2eb   :  { %1166 = vmatpush.msrb.mxu2 %v5599_v12  ;;  %1206 = vmatpush.msra.mxu0 %v5602_v19 }
 0x2ec   :  { %1147 = vmatpush.msrb.mxu1 %v5266_v40  ;;  %1187 = vmatpush.msrb.mxu3 %v5606_v51  ;;  %v5622_v40 = vld [vmem:[#allocation7 + $0x1b8] sm:$0xff] }
 0x2ed   :  { %1167 = vmatpush.msrb.mxu2 %v5609_v55  ;;  %1207 = vmatpush.msra.mxu0 %v5612_v38 }
 0x2ee   :  { %1148 = vmatpush.msrb.mxu1 %v5269_v41  ;;  %1188 = vmatpush.msrb.mxu3 %v5616_v15  ;;  %v5632_v41 = vld [vmem:[#allocation7 + $0x198] sm:$0xff] }
 0x2ef   :  { %1168 = vmatpush.msrb.mxu2 %v5619_v18  ;;  %1208 = vmatpush.msra.mxu0 %v5622_v40 }
 0x2f0   :  { %1149 = vmatpush.msrb.mxu1 %v5272_v42  ;;  %1189 = vmatpush.msrb.mxu3 %v5626_v28  ;;  %v5642_v42 = vld [vmem:[#allocation7 + $0x178] sm:$0xff] }
 0x2f1   :  { %1169 = vmatpush.msrb.mxu2 %v5629_v35  ;;  %1209 = vmatpush.msra.mxu0 %v5632_v41 }
 0x2f2   :  { %1150 = vmatpush.msrb.mxu1 %v5275_v44  ;;  %1190 = vmatpush.msrb.mxu3 %v5636_v14  ;;  %v5652_v44 = vld [vmem:[#allocation7 + $0x158] sm:$0xff] }
 0x2f3   :  { %1170 = vmatpush.msrb.mxu2 %v5639_v24  ;;  %1210 = vmatpush.msra.mxu0 %v5642_v42 }
 0x2f4   :  { %1151 = vmatpush.msrb.mxu1 %v5278_v45  ;;  %1191 = vmatpush.msrb.mxu3 %v5646_v36  ;;  %v5662_v45 = vld [vmem:[#allocation7 + $0x138] sm:$0xff] }
 0x2f5   :  { %1171 = vmatpush.msrb.mxu2 %v5649_v47  ;;  %1211 = vmatpush.msra.mxu0 %v5652_v44  ;;  %8861 = vst [vmem:[#allocation81_spill] sm:$0xff] %v5662_v45 }
 0x2f6   :  { %1152 = vmatpush.msrb.mxu1 %v5285_v49  ;;  %1192 = vmatpush.msrb.mxu3 %v5656_v62  ;;  %v5672_v49 = vld [vmem:[#allocation7 + $0x118] sm:$0xff] }
 0x2f7   :  { %1172 = vmatpush.msrb.mxu2 %v5659_v29  ;;  %1212 = vmatpush.msra.mxu0 %v5662_v45  ;;  %8864 = vst [vmem:[#allocation83_spill] sm:$0xff] %v5672_v49 }
 0x2f8   :  { %1153 = vmatpush.msrb.mxu1 %v5288_v53  ;;  %1193 = vmatpush.msrb.mxu3 %v5666_v32  ;;  %v5682_v53 = vld [vmem:[#allocation7 + $0xf8] sm:$0xff] }
 0x2f9   :  { %1173 = vmatpush.msrb.mxu2 %v5669_v0  ;;  %1213 = vmatpush.msra.mxu0 %v5672_v49  ;;  %8867 = vst [vmem:[#allocation27_spill] sm:$0xff] %v5682_v53 }
 0x2fa   :  { %1154 = vmatpush.msrb.mxu1 %v5293_v57  ;;  %1194 = vmatpush.msrb.mxu3 %v5676_v33  ;;  %v5692_v57 = vld [vmem:[#allocation7 + $0xd8] sm:$0xff] }
 0x2fb   :  { %1174 = vmatpush.msrb.mxu2 %v5679_v52  ;;  %1214 = vmatpush.msra.mxu0 %v5682_v53  ;;  %8870 = vst [vmem:[#allocation89_spill] sm:$0xff] %v5692_v57 }
 0x2fc   :  { %1155 = vmatpush.msrb.mxu1 %v5296_v61  ;;  %1195 = vmatpush.msrb.mxu3 %v5686_v25  ;;  %v5702_v61 = vld [vmem:[#allocation7 + $0xb8] sm:$0xff] }
 0x2fd   :  { %1175 = vmatpush.msrb.mxu2 %v5689_v30  ;;  %1215 = vmatpush.msra.mxu0 %v5692_v57  ;;  %8873 = vst [vmem:[#allocation101_spill] sm:$0xff] %v5702_v61 }
 0x2fe   :  { %1156 = vmatpush.msrb.mxu1 %v5299_v63  ;;  %1196 = vmatpush.msrb.mxu3 %v5696_v10  ;;  %v5712_v63 = vld [vmem:[#allocation7 + $0x98] sm:$0xff] }
 0x2ff   :  { %1176 = vmatpush.msrb.mxu2 %v5699_v9  ;;  %1216 = vmatpush.msra.mxu0 %v5702_v61  ;;  %8876 = vst [vmem:[#allocation44_spill] sm:$0xff] %v5712_v63  ;;  %v5719_v61 = vld [vmem:[#allocation7 + $0x70] sm:$0xff] }
 0x300   :  { %1157 = vmatpush.msrb.mxu1 %v5302_v5  ;;  %1197 = vmatpush.msrb.mxu3 %v5706_v27  ;;  %8878 = vst [vmem:[#allocation48_spill] sm:$0xff] %v5719_v61  ;;  %v5722_v5 = vld [vmem:[#allocation7 + $0x78] sm:$0xff] }
 0x301   :  { %1177 = vmatpush.msrb.mxu2 %v5709_v26  ;;  %1217 = vmatpush.msra.mxu0 %v5712_v63  ;;  %8879 = vst [vmem:[#allocation113_spill] sm:$0xff] %v5722_v5  ;;  %v5726_v26 = vld [vmem:[#allocation7 + $0x250] sm:$0xff] }
 0x302   :  { %1158 = vmatpush.msrb.mxu1 %v5305_v31  ;;  %1198 = vmatpush.msrb.mxu3 %v5716_v34  ;;  %8880 = vst [vmem:[#allocation52_spill] sm:$0xff] %v5726_v26  ;;  %v5729_v63 = vld [vmem:[#allocation7 + $0x50] sm:$0xff]  ;;  %v5732_v31 = vld [vmem:[#allocation7 + $0x58] sm:$0xff]  ;;  %v5735_v34 = vld [vmem:[#allocation7 + $0x228] sm:$0xff] }
 0x303   :  { %1178 = vmatpush.msrb.mxu2 %v5719_v61  ;;  %1218 = vmatpush.msra.mxu0 %v5722_v5  ;;  %8881 = vst [vmem:[#allocation117_spill] sm:$0xff] %v5729_v63  ;;  %v5738_v61 = vld [vmem:[#allocation7 + $0x230] sm:$0xff] }
 0x304   :  { %1159 = vmatpush.msrb.mxu1 %v5308_v23  ;;  %1199 = vmatpush.msrb.mxu3 %v5726_v26  ;;  %8882 = vst [vmem:[#allocation56_spill] sm:$0xff] %v5732_v31  ;;  %v5741_v23 = vld [vmem:[#allocation7 + $0x30] sm:$0xff]  ;;  %v5744_v26 = vld [vmem:[#allocation7 + $0x38] sm:$0xff] }
 0x305   :  { %1179 = vmatpush.msrb.mxu2 %v5729_v63  ;;  %1219 = vmatpush.msra.mxu0 %v5732_v31  ;;  %8883 = vst [vmem:[#allocation121_spill] sm:$0xff] %v5735_v34  ;;  %v5747_v63 = vld [vmem:[#allocation7 + $0x208] sm:$0xff]  ;;  %v5750_v31 = vld [vmem:[#allocation7 + $0x210] sm:$0xff] }
 0x306   :  { %1160 = vmatpush.msrb.mxu1 %v5735_v34  ;;  %8884 = vst [vmem:[#allocation60_spill] sm:$0xff] %v5738_v61  ;;  %1200 = vmatpush.msrb.mxu3 %v5738_v61  ;;  %v5753_v34 = vld [vmem:[#allocation7 + $0x10] sm:$0xff]  ;;  %v5756_v61 = vld [vmem:[#allocation7 + $0x18] sm:$0xff] }
 0x307   :  { %8885 = vst [vmem:[#allocation125_spill] sm:$0xff] %v5741_v23  ;;  %1180 = vmatpush.msrb.mxu2 %v5741_v23  ;;  %1220 = vmatpush.msra.mxu0 %v5744_v26 }
 0x308   :  { %8886 = vst [vmem:[#allocation64_spill] sm:$0xff] %v5744_v26  ;;  %1161 = vmatpush.msrb.mxu1 %v5747_v63  ;;  %1201 = vmatpush.msrb.mxu3 %v5750_v31 }
 0x309   :  { %8887 = vst [vmem:[#allocation129_spill] sm:$0xff] %v5747_v63  ;;  %1181 = vmatpush.msrb.mxu2 %v5753_v34  ;;  %1221 = vmatpush.msra.mxu0 %v5756_v61 }
 0x30a   :  { %8888 = vst [vmem:[#allocation68_spill] sm:$0xff] %v5750_v31 }
 0x30b   :  { %8889 = vst [vmem:[#allocation133_spill] sm:$0xff] %v5753_v34 }
 0x30c   :  { %8890 = vst [vmem:[#allocation72_spill] sm:$0xff] %v5756_v61 }
 0x365   :  { %v947_v23 = vpop.f32.mrf.mxu1 }
 0x366   :  { %v948_v5 = vadd.f32 %v947_v23, %v5281_v46 }
 0x368   :  { %v3277_v26 = vmul.f32 -1.442695, %v948_v5 }
 0x36a   :  { %3349 = vpow2.f32 %v3277_v26  ;;  %v1007_v26 = vpop.f32.mrf.mxu0 }
 0x36b   :  { %v967_v27 = vpop.f32.mrf.mxu2 }
 0x36c   :  { %v968_v63 = vadd.f32 %v967_v27, %v5283_v48 }
 0x36e   :  { %v3278_v9 = vmul.f32 -1.442695, %v968_v63 }
 0x370   :  { %v3350_v10 = vpop.eup %3349  ;;  %3351 = vpow2.f32 %v3278_v9  ;;  %v987_v9 = vpop.f32.mrf.mxu3 }
 0x371   :  { %v1013_v31 = vadd.f32 1.0, %v3350_v10  ;;  %v1008_v10 = vadd.f32 %v1007_v26, %v5313_v8  ;;  %v5817_v26 = vld [vmem:[#allocation10 + $0xc8] sm:$0xff] }
 0x373   :  { %3353 = vrcp.f32 %v1013_v31  ;;  %v1025_v61 = vand.u32 2147483648, %v1013_v31  ;;  %v1023_v46 = vand.u32 2147483647, %v1013_v31  ;;  %vm1019_vm9 = vweird.f32 %v1013_v31 }
 0x375   :  { %v1026_v27 = vor.u32 1.1754944e-38, %v1025_v61  ;;  %vm1024_vm11 = vcmp.eq.f32.partialorder %v1023_v46, 8.507059e+37 }
 0x376   :  { %v3352_v57 = vpop.eup %3351 }
 0x377   :  { %v1032_v30 = vadd.f32 1.0, %v3352_v57 }
 0x379   :  { %v3354_v34 = vpop.eup %3353  ;;  %3355 = vrcp.f32 %v1032_v30  ;;  %vm1038_vm13 = vweird.f32 %v1032_v30 }
 0x37a   :  { %v1015_v25 = vmul.f32 %v3354_v34, %v1013_v31  ;;  %vm1020_vm8 = vweird.f32 %v3354_v34  ;;  %v1042_v31 = vand.u32 2147483647, %v1032_v30 }
 0x37b   :  { %vm1021_vm10 = vmor %vm1019_vm9, %vm1020_vm8 }
 0x37c   :  { %v1016_v53 = vsub.f32 1.0, %v1015_v25  ;;  %v988_v25 = vadd.f32 %v987_v9, %v5315_v20  ;;  %vm1043_vm15 = vcmp.eq.f32.partialorder %v1042_v31, 8.507059e+37  ;;  %v5769_v20 = vld [vmem:[#allocation10 + $0x1e8] sm:$0xff]  ;;  %v5850_v31 = vld [vmem:[#allocation7 + $0x218] sm:$0xff] }
 0x37d   :  { %v5829_v9 = vld [vmem:[#allocation10 + $0x88] sm:$0xff]  ;;  %8897 = vst [vmem:[#allocation99_spill] sm:$0xff] %v5850_v31 }
 0x37e   :  { %v1017_v52 = vmul.f32 %v3354_v34, %v1016_v53 }
 0x37f   :  { %v3356_v5 = vpop.eup %3355 }
 0x380   :  { %v1018_v23 = vadd.f32 %v3354_v34, %v1017_v52  ;;  %v1034_v48 = vmul.f32 %v3356_v5, %v1032_v30  ;;  %vm1039_vm12 = vweird.f32 %v3356_v5  ;;  %v1044_v52 = vand.u32 2147483648, %v1032_v30  ;;  %v5811_v30 = vld [vmem:[#allocation10 + $0xe8] sm:$0xff] }
 0x381   :  { %vm1040_vm14 = vmor %vm1038_vm13, %vm1039_vm12 }
 0x382   :  { %v1022_v63 = vsel %vm1021_vm10, %v3354_v34, %v1018_v23  ;;  %v1035_v57 = vsub.f32 1.0, %v1034_v48  ;;  %v1045_v29 = vor.u32 1.1754944e-38, %v1044_v52  ;;  %v5820_v23 = vld [vmem:[#allocation7 + $0x2b8] sm:$0xff]  ;;  %v5823_v48 = vld [vmem:[#allocation10 + $0xa8] sm:$0xff] }
 0x383   :  { %v1027_v33 = vsel %vm1024_vm11, %v1026_v27, %v1022_v63  ;;  %v5826_v27 = vld [vmem:[#allocation7 + $0x298] sm:$0xff]  ;;  %v5835_v63 = vld [vmem:[#allocation10 + $0x68] sm:$0xff] }
 0x384   :  { %v1048_v49 = vmul.f32 %v1027_v33, %v1008_v10  ;;  %v1036_v53 = vmul.f32 %v3356_v5, %v1035_v57  ;;  %v5832_v10 = vld [vmem:[#allocation7 + $0x278] sm:$0xff]  ;;  %8892 = vst [vmem:[#allocation76_spill] sm:$0xff] %v5835_v63  ;;  %v5847_v52 = vld [vmem:[#allocation10 + $0x28] sm:$0xff] }
 0x385   :  { %8891 = vst [vmem:[#allocation137_spill] sm:$0xff] %v5832_v10  ;;  %v5838_v57 = vld [vmem:[#allocation7 + $0x258] sm:$0xff] }
 0x386   :  { %v1049_v0 = vadd.f32 %v1048_v49, %v988_v25  ;;  %v1037_v32 = vadd.f32 %v3356_v5, %v1036_v53  ;;  %v5808_v49 = vld [vmem:[#allocation7 + $0x2f8] sm:$0xff]  ;;  %8893 = vst [vmem:[#allocation79_spill] sm:$0xff] %v5838_v57  ;;  %v5841_v25 = vld [vmem:[#allocation10 + $0x48] sm:$0xff] }
 0x387   :  { %8894 = vst [vmem:[#allocation87_spill] sm:$0xff] %v5841_v25  ;;  %v5844_v53 = vld [vmem:[#allocation7 + $0x238] sm:$0xff] }
 0x388   :  { %3357 = vtanh.f32 %v1049_v0  ;;  %v1041_v61 = vsel %vm1040_vm14, %v3356_v5, %v1037_v32  ;;  %v5773_v32 = vld [vmem:[#allocation10 + $0x1c8] sm:$0xff]  ;;  %v5814_v5 = vld [vmem:[#allocation7 + $0x2d8] sm:$0xff]  ;;  %8895 = vst [vmem:[#allocation91_spill] sm:$0xff] %v5844_v53 }
 0x389   :  { %v1046_v34 = vsel %vm1043_vm15, %v1045_v29, %v1041_v61  ;;  %v5781_v29 = vld [vmem:[#allocation10 + $0x188] sm:$0xff]  ;;  %8896 = vst [vmem:[#allocation95_spill] sm:$0xff] %v5847_v52 }
 0x38a   :  { %v5805_v0 = vld [vmem:[#allocation10 + $0x108] sm:$0xff] }
 0x38b   :  { %v5853_v61 = vld [vmem:[#allocation10 + $0x8] sm:$0xff] }
 0x38c   :  { %8898 = vst [vmem:[#allocation103_spill] sm:$0xff] %v5853_v61 }
 0x38e   :  { %v3358_v45 = vpop.eup %3357 }
 0x38f   :  { %v1051_v8 = vsub.f32 %v5589_v4, %v3358_v45  ;;  %v5777_v4 = vld [vmem:[#allocation10 + $0x1a8] sm:$0xff] }
 0x391   :  { %v1052_v46 = vmul.f32 %v1051_v8, %v1046_v34  ;;  %v5858_v8 = vld [vmem:[#allocation10 + $0x1f8] sm:$0xff] }
 0x392   :  { %8899 = vst [vmem:[#allocation107_spill] sm:$0xff] %v5858_v8  ;;  %v5862_v34 = vld [vmem:[#allocation10 + $0x1d8] sm:$0xff] }
 0x393   :  { %v5764_v33 = vadd.f32 %v3358_v45, %v1052_v46  ;;  %v5799_v45 = vld [vmem:[#allocation10 + $0x128] sm:$0xff]  ;;  %8900 = vst [vmem:[#allocation111_spill] sm:$0xff] %v5862_v34  ;;  %v5866_v46 = vld [vmem:[#allocation10 + $0x1b8] sm:$0xff] }
 0x394   :  { %8901 = vst [vmem:[#allocation115_spill] sm:$0xff] %v5866_v46 }
 0x395   :  { %1070 = vmatmul.f32.vlgmr.msra.gmra.mxu1 %v5764_v33  ;;  %1122 = vmatmul.f32.vlgmr.msra.gmra.mxu3 %v5764_v33 }
 0x396   :  { %1226 = vmatpush.msra.mxu1 %v5324_v16  ;;  %1310 = vmatpush.msra.mxu3 %v5769_v20  ;;  %v5787_v16 = vld [vmem:[#allocation10 + $0x168] sm:$0xff] }
 0x398   :  { %1227 = vmatpush.msra.mxu1 %v5328_v7  ;;  %1311 = vmatpush.msra.mxu3 %v5773_v32  ;;  %v5790_v7 = vld [vmem:[#allocation7 + $0x358] sm:$0xff] }
 0x39a   :  { %1228 = vmatpush.msra.mxu1 %v5332_v37  ;;  %1312 = vmatpush.msra.mxu3 %v5777_v4  ;;  %v5793_v37 = vld [vmem:[#allocation10 + $0x148] sm:$0xff] }
 0x39c   :  { %1229 = vmatpush.msra.mxu1 %v5336_v17  ;;  %1313 = vmatpush.msra.mxu3 %v5781_v29  ;;  %v5796_v17 = vld [vmem:[#allocation7 + $0x338] sm:$0xff] }
 0x39d   :  { %1162 = vmatmul.f32.vlgmr.msrb.gmra.mxu1 %v5764_v33  ;;  %1202 = vmatmul.f32.vlgmr.msrb.gmra.mxu3 %v5764_v33 }
 0x39e   :  { %1230 = vmatpush.msra.mxu1 %v5342_v22  ;;  %1314 = vmatpush.msra.mxu3 %v5787_v16  ;;  %v5802_v22 = vld [vmem:[#allocation7 + $0x318] sm:$0xff] }
 0x3a0   :  { %1231 = vmatpush.msra.mxu1 %v5790_v7  ;;  %1315 = vmatpush.msra.mxu3 %v5793_v37 }
 0x3a2   :  { %1232 = vmatpush.msra.mxu1 %v5796_v17  ;;  %1316 = vmatpush.msra.mxu3 %v5799_v45 }
 0x3a4   :  { %1233 = vmatpush.msra.mxu1 %v5802_v22  ;;  %1317 = vmatpush.msra.mxu3 %v5805_v0 }
 0x3a6   :  { %1234 = vmatpush.msra.mxu1 %v5808_v49  ;;  %1318 = vmatpush.msra.mxu3 %v5811_v30 }
 0x3a8   :  { %1235 = vmatpush.msra.mxu1 %v5814_v5  ;;  %1319 = vmatpush.msra.mxu3 %v5817_v26 }
 0x3aa   :  { %1236 = vmatpush.msra.mxu1 %v5820_v23  ;;  %1320 = vmatpush.msra.mxu3 %v5823_v48 }
 0x3ac   :  { %1237 = vmatpush.msra.mxu1 %v5826_v27  ;;  %1321 = vmatpush.msra.mxu3 %v5829_v9 }
 0x3ae   :  { %1238 = vmatpush.msra.mxu1 %v5832_v10  ;;  %1322 = vmatpush.msra.mxu3 %v5835_v63 }
 0x3b0   :  { %1239 = vmatpush.msra.mxu1 %v5838_v57  ;;  %1323 = vmatpush.msra.mxu3 %v5841_v25 }
 0x3b2   :  { %1240 = vmatpush.msra.mxu1 %v5844_v53  ;;  %1324 = vmatpush.msra.mxu3 %v5847_v52 }
 0x3b4   :  { %1241 = vmatpush.msra.mxu1 %v5850_v31  ;;  %1325 = vmatpush.msra.mxu3 %v5853_v61  ;;  %v5870_v61 = vld [vmem:[#allocation10 + $0x198] sm:$0xff] }
 0x3b5   :  { %1242 = vmatmul.f32.vlgmr.msra.gmra.mxu1 %v5764_v33  ;;  %8902 = vst [vmem:[#allocation119_spill] sm:$0xff] %v5870_v61 }
 0x3b6   :  { %1446 = vmatpush.msrb.mxu3 %v5369_v21  ;;  %1350 = vmatpush.msrb.mxu1 %v5858_v8  ;;  %v5874_v21 = vld [vmem:[#allocation10 + $0x178] sm:$0xff] }
 0x3b7   :  { %8903 = vst [vmem:[#allocation123_spill] sm:$0xff] %v5874_v21 }
 0x3b8   :  { %1447 = vmatpush.msrb.mxu3 %v5373_v50  ;;  %1351 = vmatpush.msrb.mxu1 %v5862_v34  ;;  %v5878_v50 = vld [vmem:[#allocation10 + $0x158] sm:$0xff] }
 0x3b9   :  { %8904 = vst [vmem:[#allocation127_spill] sm:$0xff] %v5878_v50 }
 0x3ba   :  { %1448 = vmatpush.msrb.mxu3 %v5377_v54  ;;  %1352 = vmatpush.msrb.mxu1 %v5866_v46  ;;  %v5882_v54 = vld [vmem:[#allocation10 + $0x138] sm:$0xff] }
 0x3bb   :  { %8905 = vst [vmem:[#allocation131_spill] sm:$0xff] %v5882_v54  ;;  %v8931_v46 = vld [vmem:[#allocation38_spill] sm:$0xff] }
 0x3bc   :  { %1449 = vmatpush.msrb.mxu3 %v5381_v59  ;;  %1353 = vmatpush.msrb.mxu1 %v5870_v61  ;;  %v5886_v59 = vld [vmem:[#allocation10 + $0x118] sm:$0xff]  ;;  %v8928_v61 = vld [vmem:[#allocation35_spill] sm:$0xff] }
 0x3bd   :  { %8906 = vst [vmem:[#allocation135_spill] sm:$0xff] %v5886_v59 }
 0x3be   :  { %1450 = vmatpush.msrb.mxu3 %v5385_v58  ;;  %1354 = vmatpush.msrb.mxu1 %v5874_v21  ;;  %v5890_v58 = vld [vmem:[#allocation10 + $0xf8] sm:$0xff]  ;;  %v8925_v21 = vld [vmem:[#allocation33_spill] sm:$0xff] }
 0x3bf   :  { %8907 = vst [vmem:[#allocation139_spill] sm:$0xff] %v5890_v58 }
 0x3c0   :  { %1451 = vmatpush.msrb.mxu3 %v5389_v39  ;;  %1355 = vmatpush.msrb.mxu1 %v5878_v50  ;;  %v8908_v39 = vld [vmem:[#allocation32_spill] sm:$0xff]  ;;  %v5894_v50 = vld [vmem:[#allocation10 + $0xd8] sm:$0xff] }
 0x3c1   :  { %8909 = vst [vmem:[#allocation142_spill] sm:$0xff] %v5894_v50 }
 0x3c2   :  { %1452 = vmatpush.msrb.mxu3 %v5393_v13  ;;  %1356 = vmatpush.msrb.mxu1 %v5882_v54  ;;  %v8910_v13 = vld [vmem:[#allocation29_spill] sm:$0xff]  ;;  %v5898_v54 = vld [vmem:[#allocation10 + $0xb8] sm:$0xff] }
 0x3c3   :  { %8911 = vst [vmem:[#allocation84_spill] sm:$0xff] %v5898_v54 }
 0x3c4   :  { %1453 = vmatpush.msrb.mxu3 %v5397_v2  ;;  %1357 = vmatpush.msrb.mxu1 %v5886_v59  ;;  %v8912_v2 = vld [vmem:[#allocation36_spill] sm:$0xff]  ;;  %v5902_v59 = vld [vmem:[#allocation10 + $0x98] sm:$0xff] }
 0x3c5   :  { %8913 = vst [vmem:[#allocation86_spill] sm:$0xff] %v5902_v59 }
 0x3c6   :  { %1454 = vmatpush.msrb.mxu3 %v5401_v6  ;;  %1358 = vmatpush.msrb.mxu1 %v5890_v58  ;;  %v8914_v6 = vld [vmem:[#allocation34_spill] sm:$0xff] }
 0x3c7   :  { %v5906_v58 = vld [vmem:[#allocation10 + $0x78] sm:$0xff] }
 0x3c8   :  { %1455 = vmatpush.msrb.mxu3 %v8908_v39  ;;  %1359 = vmatpush.msrb.mxu1 %v5894_v50  ;;  %8915 = vst [vmem:[#allocation88_spill] sm:$0xff] %v5906_v58  ;;  %v8916_v39 = vld [vmem:[#allocation30_spill] sm:$0xff] }
 0x3c9   :  { %v5910_v50 = vld [vmem:[#allocation10 + $0x58] sm:$0xff] }
 0x3ca   :  { %1456 = vmatpush.msrb.mxu3 %v8910_v13  ;;  %1360 = vmatpush.msrb.mxu1 %v5898_v54  ;;  %8917 = vst [vmem:[#allocation90_spill] sm:$0xff] %v5910_v50  ;;  %v8918_v13 = vld [vmem:[#allocation39_spill] sm:$0xff]  ;;  %v5914_v54 = vld [vmem:[#allocation10 + $0x38] sm:$0xff] }
 0x3cb   :  { %8919 = vst [vmem:[#allocation92_spill] sm:$0xff] %v5914_v54 }
 0x3cc   :  { %1457 = vmatpush.msrb.mxu3 %v8912_v2  ;;  %1361 = vmatpush.msrb.mxu1 %v5902_v59  ;;  %v8920_v2 = vld [vmem:[#allocation37_spill] sm:$0xff]  ;;  %v5918_v59 = vld [vmem:[#allocation10 + $0x18] sm:$0xff] }
 0x3cd   :  { %8921 = vst [vmem:[#allocation94_spill] sm:$0xff] %v5918_v59 }
 0x3ce   :  { %1458 = vmatpush.msrb.mxu3 %v8914_v6  ;;  %1362 = vmatpush.msrb.mxu1 %v5906_v58  ;;  %v8922_v6 = vld [vmem:[#allocation31_spill] sm:$0xff] }
 0x3cf   :  { %v8923_v58 = vld [vmem:[#allocation43_spill] sm:$0xff] }
 0x3d0   :  { %1459 = vmatpush.msrb.mxu3 %v8916_v39  ;;  %1363 = vmatpush.msrb.mxu1 %v5910_v50  ;;  %v8924_v39 = vld [vmem:[#allocation41_spill] sm:$0xff]  ;;  %v8926_v50 = vld [vmem:[#allocation47_spill] sm:$0xff] }
 0x3d2   :  { %1460 = vmatpush.msrb.mxu3 %v8918_v13  ;;  %1364 = vmatpush.msrb.mxu1 %v5914_v54  ;;  %v8927_v13 = vld [vmem:[#allocation45_spill] sm:$0xff]  ;;  %v8929_v54 = vld [vmem:[#allocation51_spill] sm:$0xff] }
 0x3d4   :  { %1461 = vmatpush.msrb.mxu3 %v8920_v2  ;;  %1365 = vmatpush.msrb.mxu1 %v5918_v59  ;;  %v8930_v2 = vld [vmem:[#allocation49_spill] sm:$0xff]  ;;  %v8932_v59 = vld [vmem:[#allocation55_spill] sm:$0xff] }
 0x3d6   :  { %1486 = vmatpush.msra.mxu1 %v8922_v6  ;;  %v8933_v6 = vld [vmem:[#allocation53_spill] sm:$0xff] }
 0x3d8   :  { %1487 = vmatpush.msra.mxu1 %v8923_v58  ;;  %v8934_v58 = vld [vmem:[#allocation42_spill] sm:$0xff] }
 0x3da   :  { %1488 = vmatpush.msra.mxu1 %v8924_v39  ;;  %v8935_v39 = vld [vmem:[#allocation59_spill] sm:$0xff] }
 0x3dc   :  { %1489 = vmatpush.msra.mxu1 %v8925_v21  ;;  %v8936_v21 = vld [vmem:[#allocation57_spill] sm:$0xff] }
 0x3de   :  { %1490 = vmatpush.msra.mxu1 %v8926_v50  ;;  %v8937_v50 = vld [vmem:[#allocation46_spill] sm:$0xff] }
 0x3e0   :  { %1491 = vmatpush.msra.mxu1 %v8927_v13  ;;  %v1075_v13 = vld [vmem:[#allocation5 + $0x8] sm:$0xff] }
 0x3e1   :  { %v1079_v34 = vsub.f32 1.0, %v1075_v13 }
 0x3e2   :  { %1492 = vmatpush.msra.mxu1 %v8928_v61  ;;  %v1077_v61 = vld [vmem:[#allocation2 + $0x8] sm:$0xff] }
 0x3e3   :  { %v1078_v8 = vmul.f32 %v1077_v61, %v1075_v13  ;;  %v5962_v13 = vld [vmem:[#allocation10 + $0x160] sm:$0xff]  ;;  %v5965_v61 = vld [vmem:[#allocation10 + $0x170] sm:$0xff] }
 0x3e4   :  { %1493 = vmatpush.msra.mxu1 %v8929_v54  ;;  %8946 = vst [vmem:[#allocation112_spill] sm:$0xff] %v5962_v13 }
 0x3e5   :  { %8947 = vst [vmem:[#allocation114_spill] sm:$0xff] %v5965_v61 }
 0x3e6   :  { %1494 = vmatpush.msra.mxu1 %v8930_v2 }
 0x3e8   :  { %1495 = vmatpush.msra.mxu1 %v8931_v46 }
 0x3ea   :  { %1496 = vmatpush.msra.mxu1 %v8932_v59 }
 0x3ec   :  { %1497 = vmatpush.msra.mxu1 %v8933_v6  ;;  %v5938_v6 = vld [vmem:[#allocation10 + $0x1e0] sm:$0xff] }
 0x3ed   :  { %8938 = vst [vmem:[#allocation96_spill] sm:$0xff] %v5938_v6 }
 0x3ee   :  { %1498 = vmatpush.msra.mxu1 %v8934_v58  ;;  %v5941_v58 = vld [vmem:[#allocation10 + $0x1f0] sm:$0xff] }
 0x3ef   :  { %8939 = vst [vmem:[#allocation98_spill] sm:$0xff] %v5941_v58 }
 0x3f0   :  { %1499 = vmatpush.msra.mxu1 %v8935_v39  ;;  %v5944_v39 = vld [vmem:[#allocation10 + $0x1c0] sm:$0xff] }
 0x3f1   :  { %8940 = vst [vmem:[#allocation100_spill] sm:$0xff] %v5944_v39 }
 0x3f2   :  { %1500 = vmatpush.msra.mxu1 %v8936_v21  ;;  %v5956_v21 = vld [vmem:[#allocation10 + $0x180] sm:$0xff] }
 0x3f3   :  { %8944 = vst [vmem:[#allocation108_spill] sm:$0xff] %v5956_v21 }
 0x3f4   :  { %1501 = vmatpush.msra.mxu1 %v8937_v50  ;;  %v5959_v50 = vld [vmem:[#allocation10 + $0x190] sm:$0xff] }
 0x3f5   :  { %8945 = vst [vmem:[#allocation110_spill] sm:$0xff] %v5959_v50 }
 0x412   :  { %v1071_v54 = vpop.f32.mrf.mxu1 }
 0x413   :  { %v1072_v2 = vadd.f32 %v1071_v54, %v5481_v3  ;;  %v5947_v3 = vld [vmem:[#allocation10 + $0x1d0] sm:$0xff]  ;;  %v5968_v54 = vld [vmem:[#allocation10 + $0x140] sm:$0xff] }
 0x414   :  { %8941 = vst [vmem:[#allocation102_spill] sm:$0xff] %v5947_v3 }
 0x415   :  { %v1080_v46 = vmul.f32 %v1079_v34, %v1072_v2  ;;  %1083 = vst [vmem:[#allocation19 + $0x8] sm:$0xff] %v1072_v2  ;;  %v5953_v34 = vld [vmem:[#allocation10 + $0x1b0] sm:$0xff] }
 0x416   :  { %8943 = vst [vmem:[#allocation106_spill] sm:$0xff] %v5953_v34  ;;  %v5971_v2 = vld [vmem:[#allocation10 + $0x150] sm:$0xff] }
 0x417   :  { %v1081_v59 = vadd.f32 %v1080_v46, %v1078_v8  ;;  %v5950_v8 = vld [vmem:[#allocation10 + $0x1a0] sm:$0xff]  ;;  %8948 = vst [vmem:[#allocation116_spill] sm:$0xff] %v5968_v54 }
 0x418   :  { %8942 = vst [vmem:[#allocation104_spill] sm:$0xff] %v5950_v8  ;;  %v5974_v46 = vld [vmem:[#allocation10 + $0x120] sm:$0xff] }
 0x419   :  { %1085 = vst [vmem:[#allocation17 + $0x8] sm:$0xff] %v1081_v59  ;;  %1102 = vmatmul.f32.vlgmr.msra.gmra.mxu2 %v1081_v59  ;;  %1142 = vmatmul.f32.vlgmr.msrb.gmra.mxu0 %v1081_v59 }
 0x41a   :  { %1290 = vmatpush.msra.mxu2 %v5938_v6  ;;  %1330 = vmatpush.msrb.mxu0 %v5941_v58  ;;  %8949 = vst [vmem:[#allocation118_spill] sm:$0xff] %v5971_v2 }
 0x41b   :  { %8950 = vst [vmem:[#allocation120_spill] sm:$0xff] %v5974_v46 }
 0x41c   :  { %1291 = vmatpush.msra.mxu2 %v5944_v39  ;;  %1331 = vmatpush.msrb.mxu0 %v5947_v3 }
 0x41e   :  { %1292 = vmatpush.msra.mxu2 %v5950_v8  ;;  %1332 = vmatpush.msrb.mxu0 %v5953_v34  ;;  %v1123_v8 = vpop.f32.mrf.mxu3 }
 0x420   :  { %1293 = vmatpush.msra.mxu2 %v5956_v21  ;;  %1333 = vmatpush.msrb.mxu0 %v5959_v50 }
 0x421   :  { %1182 = vmatmul.f32.vlgmr.msrb.gmra.mxu2 %v1081_v59  ;;  %1222 = vmatmul.f32.vlgmr.msra.gmra.mxu0 %v1081_v59  ;;  %v5977_v59 = vld [vmem:[#allocation10 + $0x130] sm:$0xff] }
 0x422   :  { %1294 = vmatpush.msra.mxu2 %v5962_v13  ;;  %1334 = vmatpush.msrb.mxu0 %v5965_v61  ;;  %8951 = vst [vmem:[#allocation122_spill] sm:$0xff] %v5977_v59  ;;  %v5980_v13 = vld [vmem:[#allocation10 + $0x100] sm:$0xff]  ;;  %v5983_v61 = vld [vmem:[#allocation10 + $0x110] sm:$0xff] }
 0x423   :  { %8952 = vst [vmem:[#allocation124_spill] sm:$0xff] %v5980_v13 }
 0x424   :  { %1295 = vmatpush.msra.mxu2 %v5968_v54  ;;  %1335 = vmatpush.msrb.mxu0 %v5971_v2  ;;  %8953 = vst [vmem:[#allocation126_spill] sm:$0xff] %v5983_v61  ;;  %v5986_v54 = vld [vmem:[#allocation10 + $0xe0] sm:$0xff]  ;;  %v5989_v2 = vld [vmem:[#allocation10 + $0xf0] sm:$0xff] }
 0x425   :  { %8954 = vst [vmem:[#allocation128_spill] sm:$0xff] %v5986_v54 }
 0x426   :  { %1296 = vmatpush.msra.mxu2 %v5974_v46  ;;  %1336 = vmatpush.msrb.mxu0 %v5977_v59  ;;  %8955 = vst [vmem:[#allocation130_spill] sm:$0xff] %v5989_v2  ;;  %v5992_v46 = vld [vmem:[#allocation10 + $0xc0] sm:$0xff]  ;;  %v5995_v59 = vld [vmem:[#allocation10 + $0xd0] sm:$0xff]  ;;  %v1203_v25 = vpop.f32.mrf.mxu3 }
 0x427   :  { %8956 = vst [vmem:[#allocation132_spill] sm:$0xff] %v5992_v46 }
 0x428   :  { %1297 = vmatpush.msra.mxu2 %v5980_v13  ;;  %1337 = vmatpush.msrb.mxu0 %v5983_v61  ;;  %8957 = vst [vmem:[#allocation134_spill] sm:$0xff] %v5995_v59  ;;  %v5998_v13 = vld [vmem:[#allocation10 + $0xa0] sm:$0xff]  ;;  %v6001_v61 = vld [vmem:[#allocation10 + $0xb0] sm:$0xff] }
 0x429   :  { %8958 = vst [vmem:[#allocation136_spill] sm:$0xff] %v5998_v13 }
 0x42a   :  { %1298 = vmatpush.msra.mxu2 %v5986_v54  ;;  %1338 = vmatpush.msrb.mxu0 %v5989_v2  ;;  %8959 = vst [vmem:[#allocation138_spill] sm:$0xff] %v6001_v61  ;;  %v6004_v54 = vld [vmem:[#allocation10 + $0x80] sm:$0xff]  ;;  %v6007_v2 = vld [vmem:[#allocation10 + $0x90] sm:$0xff] }
 0x42b   :  { %8960 = vst [vmem:[#allocation140_spill] sm:$0xff] %v6004_v54 }
 0x42c   :  { %1299 = vmatpush.msra.mxu2 %v5992_v46  ;;  %1339 = vmatpush.msrb.mxu0 %v5995_v59  ;;  %8961 = vst [vmem:[#allocation141_spill] sm:$0xff] %v6007_v2  ;;  %v6010_v46 = vld [vmem:[#allocation10 + $0x60] sm:$0xff]  ;;  %v6013_v59 = vld [vmem:[#allocation10 + $0x70] sm:$0xff] }
 0x42d   :  { %8962 = vst [vmem:[#allocation143_spill] sm:$0xff] %v6010_v46 }
 0x42e   :  { %1300 = vmatpush.msra.mxu2 %v5998_v13  ;;  %1340 = vmatpush.msrb.mxu0 %v6001_v61  ;;  %8963 = vst [vmem:[#allocation144_spill] sm:$0xff] %v6013_v59  ;;  %v6016_v13 = vld [vmem:[#allocation10 + $0x40] sm:$0xff]  ;;  %v6019_v61 = vld [vmem:[#allocation10 + $0x50] sm:$0xff] }
 0x42f   :  { %8964 = vst [vmem:[#allocation145_spill] sm:$0xff] %v6016_v13 }
 0x430   :  { %1301 = vmatpush.msra.mxu2 %v6004_v54  ;;  %1341 = vmatpush.msrb.mxu0 %v6007_v2  ;;  %8965 = vst [vmem:[#allocation146_spill] sm:$0xff] %v6019_v61  ;;  %v6022_v54 = vld [vmem:[#allocation10 + $0x20] sm:$0xff]  ;;  %v6025_v2 = vld [vmem:[#allocation10 + $0x30] sm:$0xff] }
 0x431   :  { %8966 = vst [vmem:[#allocation32_spill] sm:$0xff] %v6022_v54 }
 0x432   :  { %1302 = vmatpush.msra.mxu2 %v6010_v46  ;;  %1342 = vmatpush.msrb.mxu0 %v6013_v59  ;;  %8967 = vst [vmem:[#allocation29_spill] sm:$0xff] %v6025_v2  ;;  %v6028_v46 = vld [vmem:[#allocation10] sm:$0xff]  ;;  %v6031_v59 = vld [vmem:[#allocation10 + $0x10] sm:$0xff] }
 0x433   :  { %8968 = vst [vmem:[#allocation36_spill] sm:$0xff] %v6028_v46 }
 0x434   :  { %1303 = vmatpush.msra.mxu2 %v6016_v13  ;;  %1343 = vmatpush.msrb.mxu0 %v6019_v61  ;;  %8969 = vst [vmem:[#allocation34_spill] sm:$0xff] %v6031_v59  ;;  %v6034_v13 = vld [vmem:[#allocation13 + $0x78] sm:$0xff]  ;;  %v6038_v61 = vld [vmem:[#allocation13 + $0x70] sm:$0xff] }
 0x435   :  { %8970 = vst [vmem:[#allocation30_spill] sm:$0xff] %v6034_v13 }
 0x436   :  { %1304 = vmatpush.msra.mxu2 %v6022_v54  ;;  %1344 = vmatpush.msrb.mxu0 %v6025_v2  ;;  %8971 = vst [vmem:[#allocation39_spill] sm:$0xff] %v6038_v61  ;;  %v6042_v2 = vld [vmem:[#allocation13 + $0x68] sm:$0xff]  ;;  %v1163_v54 = vpop.f32.mrf.mxu1 }
 0x437   :  { %8972 = vst [vmem:[#allocation37_spill] sm:$0xff] %v6042_v2 }
 0x438   :  { %1305 = vmatpush.msra.mxu2 %v6028_v46  ;;  %1345 = vmatpush.msrb.mxu0 %v6031_v59  ;;  %v6046_v46 = vld [vmem:[#allocation13 + $0x60] sm:$0xff] }
 0x439   :  { %8973 = vst [vmem:[#allocation31_spill] sm:$0xff] %v6046_v46 }
 0x43a   :  { %1414 = vmatpush.msrb.mxu2 %v6034_v13  ;;  %1466 = vmatpush.msra.mxu0 %v5517_v60  ;;  %v6050_v13 = vld [vmem:[#allocation13 + $0x58] sm:$0xff]  ;;  %v8975_v60 = vld [vmem:[#allocation63_spill] sm:$0xff] }
 0x43b   :  { %8974 = vst [vmem:[#allocation43_spill] sm:$0xff] %v6050_v13 }
 0x43c   :  { %1415 = vmatpush.msrb.mxu2 %v6038_v61  ;;  %1467 = vmatpush.msra.mxu0 %v5521_v1  ;;  %v6054_v61 = vld [vmem:[#allocation13 + $0x50] sm:$0xff] }
 0x43d   :  { %8976 = vst [vmem:[#allocation41_spill] sm:$0xff] %v6054_v61  ;;  %v8977_v1 = vld [vmem:[#allocation61_spill] sm:$0xff] }
 0x43e   :  { %1416 = vmatpush.msrb.mxu2 %v6042_v2  ;;  %1468 = vmatpush.msra.mxu0 %v5525_v11  ;;  %v6058_v2 = vld [vmem:[#allocation13 + $0x48] sm:$0xff]  ;;  %v8979_v11 = vld [vmem:[#allocation50_spill] sm:$0xff] }
 0x43f   :  { %8978 = vst [vmem:[#allocation33_spill] sm:$0xff] %v6058_v2 }
 0x440   :  { %1417 = vmatpush.msrb.mxu2 %v6046_v46  ;;  %1469 = vmatpush.msra.mxu0 %v5529_v56  ;;  %v6062_v46 = vld [vmem:[#allocation13 + $0x40] sm:$0xff] }
 0x441   :  { %8980 = vst [vmem:[#allocation47_spill] sm:$0xff] %v6062_v46  ;;  %v8981_v56 = vld [vmem:[#allocation67_spill] sm:$0xff] }
 0x442   :  { %1418 = vmatpush.msrb.mxu2 %v6050_v13  ;;  %1470 = vmatpush.msra.mxu0 %v8975_v60  ;;  %v6066_v13 = vld [vmem:[#allocation13 + $0x38] sm:$0xff]  ;;  %v8983_v60 = vld [vmem:[#allocation65_spill] sm:$0xff] }
 0x443   :  { %8982 = vst [vmem:[#allocation45_spill] sm:$0xff] %v6066_v13 }
 0x444   :  { %1419 = vmatpush.msrb.mxu2 %v6054_v61  ;;  %1471 = vmatpush.msra.mxu0 %v8977_v1  ;;  %v6070_v61 = vld [vmem:[#allocation13 + $0x30] sm:$0xff]  ;;  %v8985_v1 = vld [vmem:[#allocation54_spill] sm:$0xff] }
 0x445   :  { %8984 = vst [vmem:[#allocation35_spill] sm:$0xff] %v6070_v61 }
 0x446   :  { %1420 = vmatpush.msrb.mxu2 %v6058_v2  ;;  %1472 = vmatpush.msra.mxu0 %v8979_v11  ;;  %v6074_v2 = vld [vmem:[#allocation13 + $0x28] sm:$0xff]  ;;  %v8987_v11 = vld [vmem:[#allocation71_spill] sm:$0xff] }
 0x447   :  { %8986 = vst [vmem:[#allocation51_spill] sm:$0xff] %v6074_v2 }
 0x448   :  { %1421 = vmatpush.msrb.mxu2 %v6062_v46  ;;  %1473 = vmatpush.msra.mxu0 %v8981_v56  ;;  %v6078_v46 = vld [vmem:[#allocation13 + $0x20] sm:$0xff]  ;;  %v8989_v56 = vld [vmem:[#allocation69_spill] sm:$0xff] }
 0x449   :  { %8988 = vst [vmem:[#allocation49_spill] sm:$0xff] %v6078_v46 }
 0x44a   :  { %1422 = vmatpush.msrb.mxu2 %v6066_v13  ;;  %1474 = vmatpush.msra.mxu0 %v8983_v60  ;;  %v6082_v13 = vld [vmem:[#allocation13 + $0x18] sm:$0xff] }
 0x44b   :  { %8990 = vst [vmem:[#allocation38_spill] sm:$0xff] %v6082_v13  ;;  %v8991_v60 = vld [vmem:[#allocation58_spill] sm:$0xff] }
 0x44c   :  { %1423 = vmatpush.msrb.mxu2 %v6070_v61  ;;  %1475 = vmatpush.msra.mxu0 %v8985_v1  ;;  %v6086_v61 = vld [vmem:[#allocation13 + $0x10] sm:$0xff]  ;;  %v8993_v1 = vld [vmem:[#allocation75_spill] sm:$0xff] }
 0x44d   :  { %8992 = vst [vmem:[#allocation55_spill] sm:$0xff] %v6086_v61 }
 0x44e   :  { %1424 = vmatpush.msrb.mxu2 %v6074_v2  ;;  %1476 = vmatpush.msra.mxu0 %v8987_v11  ;;  %v6090_v2 = vld [vmem:[#allocation13 + $0x8] sm:$0xff]  ;;  %v8995_v11 = vld [vmem:[#allocation73_spill] sm:$0xff] }
 0x44f   :  { %8994 = vst [vmem:[#allocation53_spill] sm:$0xff] %v6090_v2 }
 0x450   :  { %1425 = vmatpush.msrb.mxu2 %v6078_v46  ;;  %1477 = vmatpush.msra.mxu0 %v8989_v56  ;;  %v6094_v46 = vld [vmem:[#allocation13] sm:$0xff]  ;;  %v8997_v56 = vld [vmem:[#allocation62_spill] sm:$0xff] }
 0x451   :  { %8996 = vst [vmem:[#allocation42_spill] sm:$0xff] %v6094_v46 }
 0x452   :  { %1426 = vmatpush.msrb.mxu2 %v6082_v13  ;;  %1478 = vmatpush.msra.mxu0 %v8991_v60  ;;  %v8998_v60 = vld [vmem:[#allocation77_spill] sm:$0xff] }
 0x454   :  { %1427 = vmatpush.msrb.mxu2 %v6086_v61  ;;  %1479 = vmatpush.msra.mxu0 %v8993_v1  ;;  %v8999_v1 = vld [vmem:[#allocation78_spill] sm:$0xff] }
 0x456   :  { %1428 = vmatpush.msrb.mxu2 %v6090_v2  ;;  %1480 = vmatpush.msra.mxu0 %v8995_v11 }
 0x458   :  { %1429 = vmatpush.msrb.mxu2 %v6094_v46  ;;  %1481 = vmatpush.msra.mxu0 %v8997_v56 }
 0x496   :  { %v1143_v13 = vpop.f32.mrf.mxu0 }
 0x497   :  { %v1144_v59 = vadd.f32 %v8998_v60, %v1143_v13 }
 0x499   :  { %v1164_v50 = vadd.f32 %v1163_v54, %v1144_v59 }
 0x49b   :  { %v3280_v61 = vmul.f32 -1.442695, %v1164_v50 }
 0x49c   :  { %v1103_v21 = vpop.f32.mrf.mxu2 }
 0x49d   :  { %v1104_v34 = vadd.f32 %v8999_v1, %v1103_v21  ;;  %3359 = vpow2.f32 %v3280_v61  ;;  %v6100_v21 = vld [vmem:[#allocation8 + $0x18] sm:$0xff]  ;;  %v1243_v1 = vpop.f32.mrf.mxu1 }
 0x49e   :  { %v1223_v60 = vpop.f32.mrf.mxu0  ;;  %9000 = vst [vmem:[#allocation59_spill] sm:$0xff] %v6100_v21 }
 0x49f   :  { %v1124_v3 = vadd.f32 %v1123_v8, %v1104_v34  ;;  %v1224_v8 = vadd.f32 %v6100_v21, %v1223_v60 }
 0x4a1   :  { %v3279_v2 = vmul.f32 -1.442695, %v1124_v3  ;;  %v1244_v52 = vadd.f32 %v1243_v1, %v1224_v8  ;;  %v9021_v1 = vld [vmem:[#allocation113_spill] sm:$0xff] }
 0x4a3   :  { %3361 = vpow2.f32 %v3279_v2  ;;  %v3360_v11 = vpop.eup %3359 }
 0x4a4   :  { %v1268_v58 = vadd.f32 1.0, %v3360_v11  ;;  %v1183_v31 = vpop.f32.mrf.mxu2 }
 0x4a6   :  { %vm1274_vm5 = vweird.f32 %v1268_v58  ;;  %v1278_v10 = vand.u32 2147483647, %v1268_v58 }
 0x4a8   :  { %vm1279_vm7 = vcmp.eq.f32.partialorder %v1278_v10, 8.507059e+37  ;;  %v6125_v10 = vld [vmem:[#allocation7 + $0x3a8] sm:$0xff] }
 0x4a9   :  { %v3362_v39 = vpop.eup %3361 }
 0x4aa   :  { %v1249_v46 = vadd.f32 1.0, %v3362_v39  ;;  %v6103_v39 = vld [vmem:[#allocation8 + $0x10] sm:$0xff] }
 0x4ab   :  { %9001 = vst [vmem:[#allocation57_spill] sm:$0xff] %v6103_v39  ;;  %v1184_v2 = vadd.f32 %v6103_v39, %v1183_v31 }
 0x4ac   :  { %3363 = vrcp.f32 %v1249_v46  ;;  %v1261_v59 = vand.u32 2147483648, %v1249_v46  ;;  %v1259_v34 = vand.u32 2147483647, %v1249_v46  ;;  %vm1255_vm1 = vweird.f32 %v1249_v46 }
 0x4ad   :  { %3365 = vrcp.f32 %v1268_v58  ;;  %v1204_v60 = vadd.f32 %v1203_v25, %v1184_v2  ;;  %v9014_v25 = vld [vmem:[#allocation97_spill] sm:$0xff]  ;;  %v9020_v2 = vld [vmem:[#allocation48_spill] sm:$0xff] }
 0x4ae   :  { %vm1260_vm3 = vcmp.eq.f32.partialorder %v1259_v34, 8.507059e+37  ;;  %v9018_v34 = vld [vmem:[#allocation44_spill] sm:$0xff] }
 0x4b2   :  { %v3364_v56 = vpop.eup %3363 }
 0x4b3   :  { %v3366_v6 = vpop.eup %3365  ;;  %v1251_v13 = vmul.f32 %v3364_v56, %v1249_v46  ;;  %vm1256_vm0 = vweird.f32 %v3364_v56 }
 0x4b4   :  { %v1270_v50 = vmul.f32 %v3366_v6, %v1268_v58  ;;  %vm1257_vm2 = vmor %vm1255_vm1, %vm1256_vm0  ;;  %vm1275_vm4 = vweird.f32 %v3366_v6 }
 0x4b5   :  { %v1252_v54 = vsub.f32 1.0, %v1251_v13  ;;  %v1262_v13 = vor.u32 1.1754944e-38, %v1261_v59  ;;  %vm1276_vm6 = vmor %vm1274_vm5, %vm1275_vm4 }
 0x4b6   :  { %v1271_v11 = vsub.f32 1.0, %v1270_v50 }
 0x4b7   :  { %v1253_v3 = vmul.f32 %v3364_v56, %v1252_v54 }
 0x4b8   :  { %v1272_v54 = vmul.f32 %v3366_v6, %v1271_v11  ;;  %v6191_v11 = vld [vmem:[#allocation7 + $0x248] sm:$0xff] }
 0x4b9   :  { %v1254_v61 = vadd.f32 %v3364_v56, %v1253_v3  ;;  %v1280_v3 = vand.u32 2147483648, %v1268_v58  ;;  %v9016_v58 = vld [vmem:[#allocation40_spill] sm:$0xff] }
 0x4ba   :  { %v1273_v46 = vadd.f32 %v3366_v6, %v1272_v54  ;;  %v9024_v54 = vld [vmem:[#allocation56_spill] sm:$0xff] }
 0x4bb   :  { %v1258_v53 = vsel %vm1257_vm2, %v3364_v56, %v1254_v61  ;;  %v1281_v39 = vor.u32 1.1754944e-38, %v1280_v3  ;;  %v6185_v61 = vld [vmem:[#allocation7 + $0x268] sm:$0xff] }
 0x4bc   :  { %v1263_v57 = vsel %vm1260_vm3, %v1262_v13, %v1258_v53  ;;  %v1277_v31 = vsel %vm1276_vm6, %v3366_v6, %v1273_v46  ;;  %v6179_v6 = vld [vmem:[#allocation7 + $0x288] sm:$0xff]  ;;  %v9025_v46 = vld [vmem:[#allocation121_spill] sm:$0xff] }
 0x4bd   :  { %v1284_v63 = vmul.f32 %v1263_v57, %v1244_v52  ;;  %v1282_v56 = vsel %vm1279_vm7, %v1281_v39, %v1277_v31  ;;  %v9013_v57 = vld [vmem:[#allocation93_spill] sm:$0xff]  ;;  %v9022_v13 = vld [vmem:[#allocation52_spill] sm:$0xff] }
 0x4be   :  { %v9015_v52 = vld [vmem:[#allocation101_spill] sm:$0xff]  ;;  %v9026_v3 = vld [vmem:[#allocation60_spill] sm:$0xff] }
 0x4bf   :  { %v1285_v21 = vadd.f32 %v1284_v63, %v1204_v60  ;;  %v6113_v63 = vld [vmem:[#allocation7 + $0x3e8] sm:$0xff]  ;;  %v9019_v39 = vld [vmem:[#allocation109_spill] sm:$0xff] }
 0x4c0   :  { %v9023_v60 = vld [vmem:[#allocation117_spill] sm:$0xff] }
 0x4c1   :  { %3367 = vtanh.f32 %v1285_v21  ;;  %v9017_v21 = vld [vmem:[#allocation105_spill] sm:$0xff] }
 0x4c2   :  { %v9027_v31 = vld [vmem:[#allocation125_spill] sm:$0xff] }
 0x4c7   :  { %v3368_v50 = vpop.eup %3367 }
 0x4c8   :  { %v1287_v59 = vsub.f32 %v5764_v33, %v3368_v50  ;;  %v6119_v33 = vld [vmem:[#allocation7 + $0x3c8] sm:$0xff] }
 0x4ca   :  { %v1288_v8 = vmul.f32 %v1287_v59, %v1282_v56  ;;  %v9029_v59 = vld [vmem:[#allocation129_spill] sm:$0xff]  ;;  %v9030_v56 = vld [vmem:[#allocation68_spill] sm:$0xff] }
 0x4cc   :  { %v6107_v53 = vadd.f32 %v3368_v50, %v1288_v8  ;;  %v9028_v50 = vld [vmem:[#allocation64_spill] sm:$0xff]  ;;  %v9031_v8 = vld [vmem:[#allocation133_spill] sm:$0xff] }
 0x4ce   :  { %1306 = vmatmul.f32.vlgmr.msra.gmra.mxu2 %v6107_v53  ;;  %1326 = vmatmul.f32.vlgmr.msra.gmra.mxu3 %v6107_v53 }
 0x4cf   :  { %1346 = vmatmul.f32.vlgmr.msrb.gmra.mxu0 %v6107_v53  ;;  %1366 = vmatmul.f32.vlgmr.msrb.gmra.mxu1 %v6107_v53 }
 0x4d0   :  { %1506 = vmatpush.msra.mxu2 %v6113_v63  ;;  %1546 = vmatpush.msrb.mxu0 %v5596_v43  ;;  %v6131_v43 = vld [vmem:[#allocation7 + $0x388] sm:$0xff] }
 0x4d1   :  { %1526 = vmatpush.msra.mxu3 %v5599_v12  ;;  %1566 = vmatpush.msrb.mxu1 %v5602_v19  ;;  %v6137_v12 = vld [vmem:[#allocation7 + $0x368] sm:$0xff] }
 0x4d2   :  { %1507 = vmatpush.msra.mxu2 %v6119_v33  ;;  %1547 = vmatpush.msrb.mxu0 %v5606_v51  ;;  %v6143_v19 = vld [vmem:[#allocation7 + $0x348] sm:$0xff] }
 0x4d3   :  { %1527 = vmatpush.msra.mxu3 %v5609_v55  ;;  %1567 = vmatpush.msrb.mxu1 %v5612_v38  ;;  %v6149_v51 = vld [vmem:[#allocation7 + $0x328] sm:$0xff]  ;;  %v9002_v55 = vld [vmem:[#allocation66_spill] sm:$0xff]  ;;  %v9003_v38 = vld [vmem:[#allocation81_spill] sm:$0xff] }
 0x4d4   :  { %1508 = vmatpush.msra.mxu2 %v6125_v10  ;;  %1548 = vmatpush.msrb.mxu0 %v5616_v15  ;;  %v6155_v15 = vld [vmem:[#allocation7 + $0x308] sm:$0xff] }
 0x4d5   :  { %1528 = vmatpush.msra.mxu3 %v5619_v18  ;;  %1568 = vmatpush.msrb.mxu1 %v5622_v40  ;;  %v9004_v18 = vld [vmem:[#allocation80_spill] sm:$0xff]  ;;  %v9005_v40 = vld [vmem:[#allocation70_spill] sm:$0xff] }
 0x4d6   :  { %1509 = vmatpush.msra.mxu2 %v6131_v43  ;;  %1549 = vmatpush.msrb.mxu0 %v5626_v28  ;;  %v9006_v28 = vld [vmem:[#allocation83_spill] sm:$0xff] }
 0x4d7   :  { %1529 = vmatpush.msra.mxu3 %v5629_v35  ;;  %1569 = vmatpush.msrb.mxu1 %v5632_v41  ;;  %v6161_v35 = vld [vmem:[#allocation7 + $0x2e8] sm:$0xff]  ;;  %v9007_v41 = vld [vmem:[#allocation82_spill] sm:$0xff] }
 0x4d8   :  { %1510 = vmatpush.msra.mxu2 %v6137_v12  ;;  %1550 = vmatpush.msrb.mxu0 %v5636_v14  ;;  %v9008_v14 = vld [vmem:[#allocation74_spill] sm:$0xff] }
 0x4d9   :  { %1530 = vmatpush.msra.mxu3 %v5639_v24  ;;  %1570 = vmatpush.msrb.mxu1 %v5642_v42  ;;  %v9009_v24 = vld [vmem:[#allocation27_spill] sm:$0xff]  ;;  %v6167_v42 = vld [vmem:[#allocation7 + $0x2c8] sm:$0xff] }
 0x4da   :  { %1511 = vmatpush.msra.mxu2 %v6143_v19  ;;  %1551 = vmatpush.msrb.mxu0 %v5646_v36  ;;  %v9010_v36 = vld [vmem:[#allocation28_spill] sm:$0xff] }
 0x4db   :  { %1531 = vmatpush.msra.mxu3 %v5649_v47  ;;  %1571 = vmatpush.msrb.mxu1 %v5652_v44  ;;  %v9011_v47 = vld [vmem:[#allocation85_spill] sm:$0xff] }
 0x4dc   :  { %1512 = vmatpush.msra.mxu2 %v6149_v51  ;;  %1552 = vmatpush.msrb.mxu0 %v5656_v62  ;;  %v9012_v44 = vld [vmem:[#allocation89_spill] sm:$0xff]  ;;  %v6173_v62 = vld [vmem:[#allocation7 + $0x2a8] sm:$0xff] }
 0x4dd   :  { %1532 = vmatpush.msra.mxu3 %v9002_v55  ;;  %1572 = vmatpush.msrb.mxu1 %v9003_v38  ;;  %v9032_v55 = vld [vmem:[#allocation72_spill] sm:$0xff] }
 0x4de   :  { %1513 = vmatpush.msra.mxu2 %v6155_v15  ;;  %1553 = vmatpush.msrb.mxu0 %v9004_v18 }
 0x4df   :  { %1533 = vmatpush.msra.mxu3 %v9005_v40  ;;  %1573 = vmatpush.msrb.mxu1 %v9006_v28  ;;  %v6205_v40 = vld [vmem:[#allocation11] sm:$0xff] }
 0x4e0   :  { %1514 = vmatpush.msra.mxu2 %v6161_v35  ;;  %1554 = vmatpush.msrb.mxu0 %v9007_v41  ;;  %v6208_v41 = vld [vmem:[#allocation11 + $0x8] sm:$0xff] }
 0x4e1   :  { %1534 = vmatpush.msra.mxu3 %v9008_v14  ;;  %1574 = vmatpush.msrb.mxu1 %v9009_v24 }
 0x4e2   :  { %1515 = vmatpush.msra.mxu2 %v6167_v42  ;;  %1555 = vmatpush.msrb.mxu0 %v9010_v36 }
 0x4e3   :  { %1535 = vmatpush.msra.mxu3 %v9011_v47  ;;  %1575 = vmatpush.msrb.mxu1 %v9012_v44 }
 0x4e4   :  { %1516 = vmatpush.msra.mxu2 %v6173_v62  ;;  %1556 = vmatpush.msrb.mxu0 %v9013_v57 }
 0x4e5   :  { %1536 = vmatpush.msra.mxu3 %v9014_v25  ;;  %1576 = vmatpush.msrb.mxu1 %v9015_v52 }
 0x4e6   :  { %1517 = vmatpush.msra.mxu2 %v6179_v6  ;;  %1557 = vmatpush.msrb.mxu0 %v9016_v58 }
 0x4e7   :  { %1537 = vmatpush.msra.mxu3 %v9017_v21  ;;  %1577 = vmatpush.msrb.mxu1 %v9018_v34 }
 0x4e8   :  { %1518 = vmatpush.msra.mxu2 %v6185_v61  ;;  %1558 = vmatpush.msrb.mxu0 %v9019_v39 }
 0x4e9   :  { %1538 = vmatpush.msra.mxu3 %v9020_v2  ;;  %1578 = vmatpush.msrb.mxu1 %v9021_v1 }
 0x4ea   :  { %1519 = vmatpush.msra.mxu2 %v6191_v11  ;;  %1559 = vmatpush.msrb.mxu0 %v9022_v13 }
 0x4eb   :  { %1539 = vmatpush.msra.mxu3 %v9023_v60  ;;  %1579 = vmatpush.msrb.mxu1 %v9024_v54 }
 0x4ec   :  { %1520 = vmatpush.msra.mxu2 %v9025_v46  ;;  %1560 = vmatpush.msrb.mxu0 %v9026_v3 }
 0x4ed   :  { %1540 = vmatpush.msra.mxu3 %v9027_v31  ;;  %1580 = vmatpush.msrb.mxu1 %v9028_v50  ;;  %v6211_v50 = vld [vmem:[#allocation11 + $0x18] sm:$0xff] }
 0x4ee   :  { %1521 = vmatpush.msra.mxu2 %v9029_v59  ;;  %1561 = vmatpush.msrb.mxu0 %v9030_v56 }
 0x4ef   :  { %1541 = vmatpush.msra.mxu3 %v9031_v8  ;;  %1581 = vmatpush.msrb.mxu1 %v9032_v55  ;;  %v6214_v55 = vld [vmem:[#allocation11 + $0x10] sm:$0xff] }
 0x54c   :  { %v1367_v60 = vpop.f32.mrf.mxu1  ;;  %v1347_v46 = vpop.f32.mrf.mxu0 }
 0x54d   :  { %v1368_v59 = vadd.f32 %v6211_v50, %v1367_v60  ;;  %v9046_v60 = vld [vmem:[#allocation127_spill] sm:$0xff] }
 0x551   :  { %v1307_v38 = vpop.f32.mrf.mxu2  ;;  %v1327_v18 = vpop.f32.mrf.mxu3 }
 0x552   :  { %v1308_v28 = vadd.f32 %v6205_v40, %v1307_v38  ;;  %v1328_v14 = vadd.f32 %v6208_v41, %v1327_v18  ;;  %v1348_v38 = vadd.f32 %v6214_v55, %v1347_v46  ;;  %v9047_v46 = vld [vmem:[#allocation131_spill] sm:$0xff] }
 0x554   :  { %v3281_v24 = vmul.f32 -1.442695, %v1308_v28  ;;  %v3282_v36 = vmul.f32 -1.442695, %v1328_v14 }
 0x556   :  { %3369 = vpow2.f32 %v3281_v24 }
 0x557   :  { %3371 = vpow2.f32 %v3282_v36 }
 0x55c   :  { %v3370_v47 = vpop.eup %3369 }
 0x55d   :  { %v3372_v44 = vpop.eup %3371  ;;  %v1373_v57 = vadd.f32 1.0, %v3370_v47 }
 0x55e   :  { %v1392_v25 = vadd.f32 1.0, %v3372_v44 }
 0x55f   :  { %3373 = vrcp.f32 %v1373_v57  ;;  %v1385_v39 = vand.u32 2147483648, %v1373_v57  ;;  %v1383_v13 = vand.u32 2147483647, %v1373_v57  ;;  %vm1379_vm9 = vweird.f32 %v1373_v57 }
 0x560   :  { %3375 = vrcp.f32 %v1392_v25  ;;  %v1404_v36 = vand.u32 2147483648, %v1392_v25  ;;  %vm1398_vm13 = vweird.f32 %v1392_v25  ;;  %v1402_v47 = vand.u32 2147483647, %v1392_v25 }
 0x561   :  { %v1386_v3 = vor.u32 1.1754944e-38, %v1385_v39  ;;  %vm1384_vm11 = vcmp.eq.f32.partialorder %v1383_v13, 8.507059e+37  ;;  %v6287_v13 = vld [vmem:[#allocation7 + $0x140] sm:$0xff] }
 0x562   :  { %vm1403_vm15 = vcmp.eq.f32.partialorder %v1402_v47, 8.507059e+37  ;;  %v9053_v47 = vld [vmem:[#allocation88_spill] sm:$0xff] }
 0x565   :  { %v3374_v52 = vpop.eup %3373 }
 0x566   :  { %v3376_v58 = vpop.eup %3375  ;;  %v1375_v21 = vmul.f32 %v3374_v52, %v1373_v57  ;;  %vm1380_vm8 = vweird.f32 %v3374_v52 }
 0x567   :  { %v1394_v2 = vmul.f32 %v3376_v58, %v1392_v25  ;;  %vm1381_vm10 = vmor %vm1379_vm9, %vm1380_vm8  ;;  %vm1399_vm12 = vweird.f32 %v3376_v58  ;;  %v6226_v25 = vld [vmem:[#allocation7 + $0x3d8] sm:$0xff] }
 0x568   :  { %v1376_v34 = vsub.f32 1.0, %v1375_v21  ;;  %vm1400_vm14 = vmor %vm1398_vm13, %vm1399_vm12  ;;  %v1405_v21 = vor.u32 1.1754944e-38, %v1404_v36  ;;  %v6315_v36 = vld [vmem:[#allocation7 + $0x60] sm:$0xff] }
 0x569   :  { %v1395_v31 = vsub.f32 1.0, %v1394_v2 }
 0x56a   :  { %v1377_v1 = vmul.f32 %v3374_v52, %v1376_v34 }
 0x56b   :  { %v1396_v28 = vmul.f32 %v3376_v58, %v1395_v31  ;;  %v9048_v31 = vld [vmem:[#allocation135_spill] sm:$0xff] }
 0x56c   :  { %v1378_v54 = vadd.f32 %v3374_v52, %v1377_v1  ;;  %v6222_v1 = vld [vmem:[#allocation7 + $0x3f8] sm:$0xff] }
 0x56d   :  { %v1397_v24 = vadd.f32 %v3376_v58, %v1396_v28  ;;  %v9051_v28 = vld [vmem:[#allocation84_spill] sm:$0xff] }
 0x56e   :  { %v1382_v56 = vsel %vm1381_vm10, %v3374_v52, %v1378_v54  ;;  %v6291_v54 = vld [vmem:[#allocation7 + $0x120] sm:$0xff] }
 0x56f   :  { %v1387_v8 = vsel %vm1384_vm11, %v1386_v3, %v1382_v56  ;;  %v1401_v44 = vsel %vm1400_vm14, %v3376_v58, %v1397_v24  ;;  %v6234_v58 = vld [vmem:[#allocation7 + $0x398] sm:$0xff]  ;;  %v6295_v3 = vld [vmem:[#allocation7 + $0x100] sm:$0xff] }
 0x570   :  { %v1408_v18 = vmul.f32 %v1387_v8, %v1368_v59  ;;  %v1406_v34 = vsel %vm1403_vm15, %v1405_v21, %v1401_v44  ;;  %v6299_v59 = vld [vmem:[#allocation7 + $0xe0] sm:$0xff]  ;;  %v9052_v24 = vld [vmem:[#allocation86_spill] sm:$0xff] }
 0x571   :  { %v9049_v56 = vld [vmem:[#allocation139_spill] sm:$0xff] }
 0x572   :  { %v1409_v14 = vadd.f32 %v1408_v18, %v1348_v38  ;;  %v6303_v8 = vld [vmem:[#allocation7 + $0xc0] sm:$0xff]  ;;  %v9050_v38 = vld [vmem:[#allocation142_spill] sm:$0xff] }
 0x573   :  { %v6307_v18 = vld [vmem:[#allocation7 + $0xa0] sm:$0xff] }
 0x574   :  { %3377 = vtanh.f32 %v1409_v14  ;;  %v6311_v14 = vld [vmem:[#allocation7 + $0x80] sm:$0xff] }
 0x575   :  { %v6319_v44 = vld [vmem:[#allocation7 + $0x40] sm:$0xff] }
 0x576   :  { %v6323_v21 = vld [vmem:[#allocation7 + $0x20] sm:$0xff] }
 0x577   :  { %9055 = vst [vmem:[#allocation46_spill] sm:$0xff] %v6323_v21 }
 0x57a   :  { %v3378_v57 = vpop.eup %3377 }
 0x57b   :  { %v1411_v52 = vsub.f32 %v6107_v53, %v3378_v57  ;;  %v6230_v53 = vld [vmem:[#allocation7 + $0x3b8] sm:$0xff] }
 0x57d   :  { %v1412_v39 = vmul.f32 %v1411_v52, %v1406_v34  ;;  %v9056_v52 = vld [vmem:[#allocation92_spill] sm:$0xff]  ;;  %v6327_v34 = vld [vmem:[#allocation7] sm:$0xff] }
 0x57e   :  { %9057 = vst [vmem:[#allocation63_spill] sm:$0xff] %v6327_v34 }
 0x57f   :  { %v6218_v2 = vadd.f32 %v3378_v57, %v1412_v39  ;;  %v9054_v57 = vld [vmem:[#allocation90_spill] sm:$0xff] }
 0x580   :  { %v9058_v39 = vld [vmem:[#allocation94_spill] sm:$0xff] }
 0x581   :  { %1430 = vmatmul.f32.vlgmr.msrb.gmra.mxu2 %v6218_v2  ;;  %1482 = vmatmul.f32.vlgmr.msra.gmra.mxu0 %v6218_v2 }
 0x582   :  { %1586 = vmatpush.msrb.mxu2 %v6222_v1  ;;  %1670 = vmatpush.msra.mxu0 %v5769_v20  ;;  %v6240_v20 = vld [vmem:[#allocation7 + $0x378] sm:$0xff] }
 0x584   :  { %1587 = vmatpush.msrb.mxu2 %v6226_v25  ;;  %1671 = vmatpush.msra.mxu0 %v5773_v32  ;;  %v9033_v32 = vld [vmem:[#allocation137_spill] sm:$0xff] }
 0x586   :  { %1588 = vmatpush.msrb.mxu2 %v6230_v53  ;;  %1672 = vmatpush.msra.mxu0 %v5777_v4  ;;  %v9034_v4 = vld [vmem:[#allocation76_spill] sm:$0xff] }
 0x588   :  { %1589 = vmatpush.msrb.mxu2 %v6234_v58  ;;  %1673 = vmatpush.msra.mxu0 %v5781_v29  ;;  %v9035_v29 = vld [vmem:[#allocation79_spill] sm:$0xff] }
 0x589   :  { %1522 = vmatmul.f32.vlgmr.msra.gmra.mxu2 %v6218_v2  ;;  %1562 = vmatmul.f32.vlgmr.msrb.gmra.mxu0 %v6218_v2 }
 0x58a   :  { %1590 = vmatpush.msrb.mxu2 %v6240_v20  ;;  %1674 = vmatpush.msra.mxu0 %v5787_v16  ;;  %v9036_v16 = vld [vmem:[#allocation87_spill] sm:$0xff] }
 0x58c   :  { %1591 = vmatpush.msrb.mxu2 %v5790_v7  ;;  %1675 = vmatpush.msra.mxu0 %v5793_v37  ;;  %v9037_v7 = vld [vmem:[#allocation91_spill] sm:$0xff] }
 0x58d   :  { %v9038_v37 = vld [vmem:[#allocation95_spill] sm:$0xff] }
 0x58e   :  { %1592 = vmatpush.msrb.mxu2 %v5796_v17  ;;  %1676 = vmatpush.msra.mxu0 %v5799_v45  ;;  %v9039_v17 = vld [vmem:[#allocation99_spill] sm:$0xff] }
 0x58f   :  { %v9040_v45 = vld [vmem:[#allocation103_spill] sm:$0xff] }
 0x590   :  { %1593 = vmatpush.msrb.mxu2 %v5802_v22  ;;  %1677 = vmatpush.msra.mxu0 %v5805_v0  ;;  %v6267_v22 = vld [vmem:[#allocation7 + $0x1e0] sm:$0xff] }
 0x591   :  { %v9041_v0 = vld [vmem:[#allocation107_spill] sm:$0xff] }
 0x592   :  { %1594 = vmatpush.msrb.mxu2 %v5808_v49  ;;  %1678 = vmatpush.msra.mxu0 %v5811_v30  ;;  %v6271_v49 = vld [vmem:[#allocation7 + $0x1c0] sm:$0xff] }
 0x593   :  { %v9042_v30 = vld [vmem:[#allocation111_spill] sm:$0xff] }
 0x594   :  { %1595 = vmatpush.msrb.mxu2 %v5814_v5  ;;  %1679 = vmatpush.msra.mxu0 %v5817_v26  ;;  %v6275_v5 = vld [vmem:[#allocation7 + $0x1a0] sm:$0xff] }
 0x595   :  { %v9043_v26 = vld [vmem:[#allocation115_spill] sm:$0xff] }
 0x596   :  { %1596 = vmatpush.msrb.mxu2 %v5820_v23  ;;  %1680 = vmatpush.msra.mxu0 %v5823_v48  ;;  %v6279_v23 = vld [vmem:[#allocation7 + $0x180] sm:$0xff] }
 0x597   :  { %v9044_v48 = vld [vmem:[#allocation119_spill] sm:$0xff] }
 0x598   :  { %1597 = vmatpush.msrb.mxu2 %v5826_v27  ;;  %1681 = vmatpush.msra.mxu0 %v5829_v9  ;;  %v6283_v27 = vld [vmem:[#allocation7 + $0x160] sm:$0xff] }
 0x599   :  { %v9045_v9 = vld [vmem:[#allocation123_spill] sm:$0xff] }
 0x59a   :  { %1598 = vmatpush.msrb.mxu2 %v9033_v32  ;;  %1682 = vmatpush.msra.mxu0 %v9034_v4  ;;  %v6331_v32 = vld [vmem:[#allocation7 + $0x1e8] sm:$0xff] }
 0x59b   :  { %9059 = vst [vmem:[#allocation61_spill] sm:$0xff] %v6331_v32  ;;  %v6334_v4 = vld [vmem:[#allocation7 + $0x1c8] sm:$0xff] }
 0x59c   :  { %1599 = vmatpush.msrb.mxu2 %v9035_v29  ;;  %1683 = vmatpush.msra.mxu0 %v9036_v16  ;;  %9060 = vst [vmem:[#allocation50_spill] sm:$0xff] %v6334_v4  ;;  %v6337_v29 = vld [vmem:[#allocation7 + $0x1a8] sm:$0xff] }
 0x59d   :  { %9061 = vst [vmem:[#allocation67_spill] sm:$0xff] %v6337_v29  ;;  %v6340_v16 = vld [vmem:[#allocation7 + $0x188] sm:$0xff] }
 0x59e   :  { %1600 = vmatpush.msrb.mxu2 %v9037_v7  ;;  %1684 = vmatpush.msra.mxu0 %v9038_v37  ;;  %9062 = vst [vmem:[#allocation65_spill] sm:$0xff] %v6340_v16  ;;  %v6343_v7 = vld [vmem:[#allocation7 + $0x168] sm:$0xff] }
 0x59f   :  { %9063 = vst [vmem:[#allocation54_spill] sm:$0xff] %v6343_v7  ;;  %v6346_v37 = vld [vmem:[#allocation7 + $0x148] sm:$0xff] }
 0x5a0   :  { %1601 = vmatpush.msrb.mxu2 %v9039_v17  ;;  %1685 = vmatpush.msra.mxu0 %v9040_v45  ;;  %9064 = vst [vmem:[#allocation71_spill] sm:$0xff] %v6346_v37  ;;  %v6349_v17 = vld [vmem:[#allocation7 + $0x128] sm:$0xff] }
 0x5a1   :  { %1602 = vmatmul.f32.vlgmr.msrb.gmra.mxu2 %v6218_v2  ;;  %9065 = vst [vmem:[#allocation69_spill] sm:$0xff] %v6349_v17  ;;  %v6352_v45 = vld [vmem:[#allocation7 + $0x108] sm:$0xff] }
 0x5a2   :  { %1806 = vmatpush.msrb.mxu0 %v6267_v22  ;;  %1710 = vmatpush.msra.mxu2 %v9041_v0  ;;  %9066 = vst [vmem:[#allocation58_spill] sm:$0xff] %v6352_v45  ;;  %v6355_v0 = vld [vmem:[#allocation7 + $0xe8] sm:$0xff] }
 0x5a3   :  { %9067 = vst [vmem:[#allocation75_spill] sm:$0xff] %v6355_v0 }
 0x5a4   :  { %1807 = vmatpush.msrb.mxu0 %v6271_v49  ;;  %1711 = vmatpush.msra.mxu2 %v9042_v30  ;;  %v6358_v30 = vld [vmem:[#allocation7 + $0xc8] sm:$0xff] }
 0x5a5   :  { %9068 = vst [vmem:[#allocation73_spill] sm:$0xff] %v6358_v30 }
 0x5a6   :  { %1808 = vmatpush.msrb.mxu0 %v6275_v5  ;;  %1712 = vmatpush.msra.mxu2 %v9043_v26  ;;  %v6361_v26 = vld [vmem:[#allocation7 + $0xa8] sm:$0xff] }
 0x5a7   :  { %9069 = vst [vmem:[#allocation62_spill] sm:$0xff] %v6361_v26 }
 0x5a8   :  { %1809 = vmatpush.msrb.mxu0 %v6279_v23  ;;  %1713 = vmatpush.msra.mxu2 %v9044_v48  ;;  %v6364_v48 = vld [vmem:[#allocation7 + $0x88] sm:$0xff] }
 0x5a9   :  { %9070 = vst [vmem:[#allocation77_spill] sm:$0xff] %v6364_v48 }
 0x5aa   :  { %1810 = vmatpush.msrb.mxu0 %v6283_v27  ;;  %1714 = vmatpush.msra.mxu2 %v9045_v9  ;;  %v6367_v9 = vld [vmem:[#allocation7 + $0x68] sm:$0xff] }
 0x5ab   :  { %9071 = vst [vmem:[#allocation78_spill] sm:$0xff] %v6367_v9 }
 0x5ac   :  { %1811 = vmatpush.msrb.mxu0 %v6287_v13  ;;  %1715 = vmatpush.msra.mxu2 %v9046_v60  ;;  %v6370_v60 = vld [vmem:[#allocation7 + $0x48] sm:$0xff] }
 0x5ad   :  { %9072 = vst [vmem:[#allocation66_spill] sm:$0xff] %v6370_v60 }
 0x5ae   :  { %1812 = vmatpush.msrb.mxu0 %v6291_v54  ;;  %1716 = vmatpush.msra.mxu2 %v9047_v46  ;;  %v6373_v46 = vld [vmem:[#allocation7 + $0x28] sm:$0xff] }
 0x5af   :  { %9073 = vst [vmem:[#allocation81_spill] sm:$0xff] %v6373_v46 }
 0x5b0   :  { %1813 = vmatpush.msrb.mxu0 %v6295_v3  ;;  %1717 = vmatpush.msra.mxu2 %v9048_v31  ;;  %v6376_v31 = vld [vmem:[#allocation7 + $0x8] sm:$0xff] }
 0x5b1   :  { %9074 = vst [vmem:[#allocation80_spill] sm:$0xff] %v6376_v31 }
 0x5b2   :  { %1814 = vmatpush.msrb.mxu0 %v6299_v59  ;;  %1718 = vmatpush.msra.mxu2 %v9049_v56  ;;  %v1435_v56 = vld [vmem:[#allocation5 + $0x10] sm:$0xff] }
 0x5b4   :  { %1815 = vmatpush.msrb.mxu0 %v6303_v8  ;;  %1719 = vmatpush.msra.mxu2 %v9050_v38  ;;  %v1437_v38 = vld [vmem:[#allocation2 + $0x10] sm:$0xff] }
 0x5b6   :  { %1816 = vmatpush.msrb.mxu0 %v6307_v18  ;;  %1720 = vmatpush.msra.mxu2 %v9051_v28  ;;  %v1439_v28 = vsub.f32 1.0, %v1435_v56 }
 0x5b8   :  { %1817 = vmatpush.msrb.mxu0 %v6311_v14  ;;  %1721 = vmatpush.msra.mxu2 %v9052_v24 }
 0x5ba   :  { %1818 = vmatpush.msrb.mxu0 %v6315_v36  ;;  %1722 = vmatpush.msra.mxu2 %v9053_v47  ;;  %v6379_v47 = vld [vmem:[#allocation14] sm:$0xff] }
 0x5bb   :  { %9075 = vst [vmem:[#allocation70_spill] sm:$0xff] %v6379_v47 }
 0x5bc   :  { %1819 = vmatpush.msrb.mxu0 %v6319_v44  ;;  %1723 = vmatpush.msra.mxu2 %v9054_v57 }
 0x5be   :  { %1820 = vmatpush.msrb.mxu0 %v6323_v21  ;;  %1724 = vmatpush.msra.mxu2 %v9056_v52  ;;  %v1438_v52 = vmul.f32 %v1437_v38, %v1435_v56  ;;  %v9083_v56 = vld [vmem:[#allocation110_spill] sm:$0xff]  ;;  %v9084_v38 = vld [vmem:[#allocation112_spill] sm:$0xff] }
 0x5c0   :  { %1821 = vmatpush.msrb.mxu0 %v6327_v34  ;;  %1725 = vmatpush.msra.mxu2 %v9058_v39 }
 0x5c2   :  { %1846 = vmatpush.msrb.mxu2 %v6331_v32 }
 0x5c4   :  { %1847 = vmatpush.msrb.mxu2 %v6334_v4 }
 0x5c6   :  { %1848 = vmatpush.msrb.mxu2 %v6337_v29 }
 0x5c8   :  { %1849 = vmatpush.msrb.mxu2 %v6340_v16 }
 0x5ca   :  { %1850 = vmatpush.msrb.mxu2 %v6343_v7 }
 0x5cc   :  { %1851 = vmatpush.msrb.mxu2 %v6346_v37 }
 0x5ce   :  { %1852 = vmatpush.msrb.mxu2 %v6349_v17 }
 0x5d0   :  { %1853 = vmatpush.msrb.mxu2 %v6352_v45 }
 0x5d2   :  { %1854 = vmatpush.msrb.mxu2 %v6355_v0 }
 0x5d4   :  { %1855 = vmatpush.msrb.mxu2 %v6358_v30  ;;  %v9081_v30 = vld [vmem:[#allocation106_spill] sm:$0xff] }
 0x5d6   :  { %1856 = vmatpush.msrb.mxu2 %v6361_v26  ;;  %v9080_v26 = vld [vmem:[#allocation104_spill] sm:$0xff] }
 0x5d8   :  { %1857 = vmatpush.msrb.mxu2 %v6364_v48  ;;  %v9079_v48 = vld [vmem:[#allocation102_spill] sm:$0xff] }
 0x5da   :  { %1858 = vmatpush.msrb.mxu2 %v6367_v9  ;;  %v9077_v9 = vld [vmem:[#allocation98_spill] sm:$0xff] }
 0x5dc   :  { %1859 = vmatpush.msrb.mxu2 %v6370_v60 }
 0x5de   :  { %1860 = vmatpush.msrb.mxu2 %v6373_v46  ;;  %v9076_v46 = vld [vmem:[#allocation96_spill] sm:$0xff] }
 0x5e0   :  { %1861 = vmatpush.msrb.mxu2 %v6376_v31  ;;  %v9078_v31 = vld [vmem:[#allocation100_spill] sm:$0xff] }
 0x604   :  { %v1431_v24 = vpop.f32.mrf.mxu2 }
 0x605   :  { %v1432_v57 = vadd.f32 %v6379_v47, %v1431_v24  ;;  %v9082_v24 = vld [vmem:[#allocation108_spill] sm:$0xff] }
 0x607   :  { %v1440_v39 = vmul.f32 %v1439_v28, %v1432_v57  ;;  %1443 = vst [vmem:[#allocation19 + $0x10] sm:$0xff] %v1432_v57  ;;  %v9085_v28 = vld [vmem:[#allocation114_spill] sm:$0xff]  ;;  %v9092_v57 = vld [vmem:[#allocation128_spill] sm:$0xff] }
 0x609   :  { %v1441_v60 = vadd.f32 %v1440_v39, %v1438_v52  ;;  %v9093_v52 = vld [vmem:[#allocation130_spill] sm:$0xff] }
 0x60a   :  { %v9095_v39 = vld [vmem:[#allocation134_spill] sm:$0xff] }
 0x60b   :  { %1445 = vst [vmem:[#allocation17 + $0x10] sm:$0xff] %v1441_v60  ;;  %1462 = vmatmul.f32.vlgmr.msrb.gmra.mxu3 %v1441_v60  ;;  %1502 = vmatmul.f32.vlgmr.msra.gmra.mxu1 %v1441_v60 }
 0x60c   :  { %1650 = vmatpush.msrb.mxu3 %v9076_v46  ;;  %1690 = vmatpush.msra.mxu1 %v9077_v9  ;;  %v9086_v46 = vld [vmem:[#allocation116_spill] sm:$0xff]  ;;  %v9087_v9 = vld [vmem:[#allocation118_spill] sm:$0xff] }
 0x60e   :  { %1651 = vmatpush.msrb.mxu3 %v9078_v31  ;;  %1691 = vmatpush.msra.mxu1 %v9079_v48  ;;  %v9088_v31 = vld [vmem:[#allocation120_spill] sm:$0xff]  ;;  %v9089_v48 = vld [vmem:[#allocation122_spill] sm:$0xff] }
 0x610   :  { %1652 = vmatpush.msrb.mxu3 %v9080_v26  ;;  %1692 = vmatpush.msra.mxu1 %v9081_v30  ;;  %v9090_v26 = vld [vmem:[#allocation124_spill] sm:$0xff]  ;;  %v9091_v30 = vld [vmem:[#allocation126_spill] sm:$0xff] }
 0x612   :  { %1653 = vmatpush.msrb.mxu3 %v9082_v24  ;;  %1693 = vmatpush.msra.mxu1 %v9083_v56  ;;  %v9096_v24 = vld [vmem:[#allocation136_spill] sm:$0xff]  ;;  %v9097_v56 = vld [vmem:[#allocation138_spill] sm:$0xff] }
 0x613   :  { %1542 = vmatmul.f32.vlgmr.msra.gmra.mxu3 %v1441_v60  ;;  %1582 = vmatmul.f32.vlgmr.msrb.gmra.mxu1 %v1441_v60  ;;  %v9094_v60 = vld [vmem:[#allocation132_spill] sm:$0xff] }
 0x614   :  { %1654 = vmatpush.msrb.mxu3 %v9084_v38  ;;  %1694 = vmatpush.msra.mxu1 %v9085_v28  ;;  %v9098_v38 = vld [vmem:[#allocation140_spill] sm:$0xff]  ;;  %v9099_v28 = vld [vmem:[#allocation141_spill] sm:$0xff] }
 0x616   :  { %1655 = vmatpush.msrb.mxu3 %v9086_v46  ;;  %1695 = vmatpush.msra.mxu1 %v9087_v9  ;;  %v9100_v46 = vld [vmem:[#allocation143_spill] sm:$0xff]  ;;  %v9101_v9 = vld [vmem:[#allocation144_spill] sm:$0xff] }
 0x618   :  { %1656 = vmatpush.msrb.mxu3 %v9088_v31  ;;  %1696 = vmatpush.msra.mxu1 %v9089_v48  ;;  %v9102_v31 = vld [vmem:[#allocation145_spill] sm:$0xff]  ;;  %v9103_v48 = vld [vmem:[#allocation146_spill] sm:$0xff] }
 0x61a   :  { %1657 = vmatpush.msrb.mxu3 %v9090_v26  ;;  %1697 = vmatpush.msra.mxu1 %v9091_v30  ;;  %v9104_v26 = vld [vmem:[#allocation32_spill] sm:$0xff]  ;;  %v9105_v30 = vld [vmem:[#allocation29_spill] sm:$0xff] }
 0x61c   :  { %1658 = vmatpush.msrb.mxu3 %v9092_v57  ;;  %1698 = vmatpush.msra.mxu1 %v9093_v52  ;;  %v9106_v57 = vld [vmem:[#allocation36_spill] sm:$0xff]  ;;  %v9107_v52 = vld [vmem:[#allocation34_spill] sm:$0xff] }
 0x61e   :  { %1659 = vmatpush.msrb.mxu3 %v9094_v60  ;;  %1699 = vmatpush.msra.mxu1 %v9095_v39  ;;  %v9108_v60 = vld [vmem:[#allocation30_spill] sm:$0xff]  ;;  %v6415_v39 = vld [vmem:[#allocation7 + $0x3e0] sm:$0xff] }
 0x61f   :  { %9109 = vst [vmem:[#allocation83_spill] sm:$0xff] %v6415_v39 }
 0x620   :  { %1660 = vmatpush.msrb.mxu3 %v9096_v24  ;;  %1700 = vmatpush.msra.mxu1 %v9097_v56  ;;  %v9110_v24 = vld [vmem:[#allocation39_spill] sm:$0xff] }
 0x621   :  { %v6419_v56 = vld [vmem:[#allocation7 + $0x3c0] sm:$0xff] }
 0x622   :  { %1661 = vmatpush.msrb.mxu3 %v9098_v38  ;;  %1701 = vmatpush.msra.mxu1 %v9099_v28  ;;  %9111 = vst [vmem:[#allocation82_spill] sm:$0xff] %v6419_v56  ;;  %v9112_v38 = vld [vmem:[#allocation37_spill] sm:$0xff]  ;;  %v6423_v28 = vld [vmem:[#allocation7 + $0x3a0] sm:$0xff] }
 0x623   :  { %9113 = vst [vmem:[#allocation74_spill] sm:$0xff] %v6423_v28 }
 0x624   :  { %1662 = vmatpush.msrb.mxu3 %v9100_v46  ;;  %1702 = vmatpush.msra.mxu1 %v9101_v9  ;;  %v9114_v46 = vld [vmem:[#allocation31_spill] sm:$0xff] }
 0x625   :  { %v6427_v9 = vld [vmem:[#allocation7 + $0x380] sm:$0xff] }
 0x626   :  { %1663 = vmatpush.msrb.mxu3 %v9102_v31  ;;  %1703 = vmatpush.msra.mxu1 %v9103_v48  ;;  %9115 = vst [vmem:[#allocation27_spill] sm:$0xff] %v6427_v9  ;;  %v9116_v31 = vld [vmem:[#allocation43_spill] sm:$0xff] }
 0x627   :  { %v6431_v48 = vld [vmem:[#allocation7 + $0x360] sm:$0xff] }
 0x628   :  { %1664 = vmatpush.msrb.mxu3 %v9104_v26  ;;  %1704 = vmatpush.msra.mxu1 %v9105_v30  ;;  %9117 = vst [vmem:[#allocation28_spill] sm:$0xff] %v6431_v48  ;;  %v9118_v26 = vld [vmem:[#allocation41_spill] sm:$0xff]  ;;  %v6435_v30 = vld [vmem:[#allocation7 + $0x340] sm:$0xff] }
 0x629   :  { %9119 = vst [vmem:[#allocation85_spill] sm:$0xff] %v6435_v30 }
 0x62a   :  { %1665 = vmatpush.msrb.mxu3 %v9106_v57  ;;  %1705 = vmatpush.msra.mxu1 %v9107_v52  ;;  %v9120_v57 = vld [vmem:[#allocation33_spill] sm:$0xff]  ;;  %v6439_v52 = vld [vmem:[#allocation7 + $0x320] sm:$0xff] }
 0x62b   :  { %9121 = vst [vmem:[#allocation89_spill] sm:$0xff] %v6439_v52 }
 0x62c   :  { %1774 = vmatpush.msra.mxu3 %v9108_v60  ;;  %1826 = vmatpush.msrb.mxu1 %v6415_v39  ;;  %v9122_v60 = vld [vmem:[#allocation47_spill] sm:$0xff] }
 0x62e   :  { %1775 = vmatpush.msra.mxu3 %v9110_v24  ;;  %1827 = vmatpush.msrb.mxu1 %v6419_v56  ;;  %v6443_v24 = vld [vmem:[#allocation7 + $0x300] sm:$0xff] }
 0x62f   :  { %9123 = vst [vmem:[#allocation93_spill] sm:$0xff] %v6443_v24 }
 0x630   :  { %1776 = vmatpush.msra.mxu3 %v9112_v38  ;;  %1828 = vmatpush.msrb.mxu1 %v6423_v28  ;;  %v9124_v38 = vld [vmem:[#allocation45_spill] sm:$0xff] }
 0x632   :  { %1777 = vmatpush.msra.mxu3 %v9114_v46  ;;  %1829 = vmatpush.msrb.mxu1 %v6427_v9  ;;  %v6447_v46 = vld [vmem:[#allocation7 + $0x2e0] sm:$0xff] }
 0x633   :  { %9125 = vst [vmem:[#allocation97_spill] sm:$0xff] %v6447_v46 }
 0x634   :  { %1778 = vmatpush.msra.mxu3 %v9116_v31  ;;  %1830 = vmatpush.msrb.mxu1 %v6431_v48  ;;  %v9126_v31 = vld [vmem:[#allocation35_spill] sm:$0xff] }
 0x636   :  { %1779 = vmatpush.msra.mxu3 %v9118_v26  ;;  %1831 = vmatpush.msrb.mxu1 %v6435_v30  ;;  %v6451_v26 = vld [vmem:[#allocation7 + $0x2c0] sm:$0xff]  ;;  %v1523_v30 = vpop.f32.mrf.mxu2 }
 0x637   :  { %9127 = vst [vmem:[#allocation101_spill] sm:$0xff] %v6451_v26 }
 0x638   :  { %1780 = vmatpush.msra.mxu3 %v9120_v57  ;;  %1832 = vmatpush.msrb.mxu1 %v6439_v52  ;;  %v9128_v57 = vld [vmem:[#allocation51_spill] sm:$0xff] }
 0x639   :  { %v6455_v52 = vld [vmem:[#allocation7 + $0x2a0] sm:$0xff] }
 0x63a   :  { %1781 = vmatpush.msra.mxu3 %v9122_v60  ;;  %1833 = vmatpush.msrb.mxu1 %v6443_v24  ;;  %9129 = vst [vmem:[#allocation40_spill] sm:$0xff] %v6455_v52  ;;  %v9130_v60 = vld [vmem:[#allocation49_spill] sm:$0xff]  ;;  %v6459_v24 = vld [vmem:[#allocation7 + $0x280] sm:$0xff] }
 0x63b   :  { %9131 = vst [vmem:[#allocation105_spill] sm:$0xff] %v6459_v24 }
 0x63c   :  { %1782 = vmatpush.msra.mxu3 %v9124_v38  ;;  %1834 = vmatpush.msrb.mxu1 %v6447_v46  ;;  %v9132_v38 = vld [vmem:[#allocation38_spill] sm:$0xff]  ;;  %v6463_v46 = vld [vmem:[#allocation7 + $0x260] sm:$0xff] }
 0x63d   :  { %9133 = vst [vmem:[#allocation44_spill] sm:$0xff] %v6463_v46 }
 0x63e   :  { %1783 = vmatpush.msra.mxu3 %v9126_v31  ;;  %1835 = vmatpush.msrb.mxu1 %v6451_v26  ;;  %v9134_v31 = vld [vmem:[#allocation55_spill] sm:$0xff] }
 0x63f   :  { %v6467_v26 = vld [vmem:[#allocation7 + $0x240] sm:$0xff] }
 0x640   :  { %1784 = vmatpush.msra.mxu3 %v9128_v57  ;;  %1836 = vmatpush.msrb.mxu1 %v6455_v52  ;;  %9135 = vst [vmem:[#allocation109_spill] sm:$0xff] %v6467_v26  ;;  %v9136_v57 = vld [vmem:[#allocation53_spill] sm:$0xff]  ;;  %v6471_v52 = vld [vmem:[#allocation7 + $0x220] sm:$0xff] }
 0x641   :  { %9137 = vst [vmem:[#allocation48_spill] sm:$0xff] %v6471_v52 }
 0x642   :  { %1785 = vmatpush.msra.mxu3 %v9130_v60  ;;  %1837 = vmatpush.msrb.mxu1 %v6459_v24  ;;  %v9138_v60 = vld [vmem:[#allocation42_spill] sm:$0xff]  ;;  %v6475_v24 = vld [vmem:[#allocation7 + $0x200] sm:$0xff] }
 0x643   :  { %9139 = vst [vmem:[#allocation113_spill] sm:$0xff] %v6475_v24 }
 0x644   :  { %1786 = vmatpush.msra.mxu3 %v9132_v38  ;;  %1838 = vmatpush.msrb.mxu1 %v6463_v46  ;;  %v6478_v46 = vld [vmem:[#allocation8 + $0x8] sm:$0xff] }
 0x645   :  { %9140 = vst [vmem:[#allocation52_spill] sm:$0xff] %v6478_v46 }
 0x646   :  { %1787 = vmatpush.msra.mxu3 %v9134_v31  ;;  %1839 = vmatpush.msrb.mxu1 %v6467_v26 }
 0x648   :  { %1788 = vmatpush.msra.mxu3 %v9136_v57  ;;  %1840 = vmatpush.msrb.mxu1 %v6471_v52  ;;  %v6481_v57 = vld [vmem:[#allocation8] sm:$0xff]  ;;  %v1483_v52 = vpop.f32.mrf.mxu0 }
 0x649   :  { %9141 = vst [vmem:[#allocation117_spill] sm:$0xff] %v6481_v57 }
 0x64a   :  { %1789 = vmatpush.msra.mxu3 %v9138_v60  ;;  %1841 = vmatpush.msrb.mxu1 %v6475_v24 }
 0x688   :  { %v1503_v38 = vpop.f32.mrf.mxu1 }
 0x689   :  { %v1504_v31 = vadd.f32 %v6478_v46, %v1503_v38 }
 0x68b   :  { %v1524_v48 = vadd.f32 %v1523_v30, %v1504_v31 }
 0x68d   :  { %v3284_v26 = vmul.f32 -1.442695, %v1524_v48 }
 0x68e   :  { %v1463_v9 = vpop.f32.mrf.mxu3 }
 0x68f   :  { %v1464_v28 = vadd.f32 %v6481_v57, %v1463_v9  ;;  %3379 = vpow2.f32 %v3284_v26  ;;  %v9142_v9 = vld [vmem:[#allocation59_spill] sm:$0xff]  ;;  %v9143_v26 = vld [vmem:[#allocation57_spill] sm:$0xff] }
 0x690   :  { %v1583_v48 = vpop.f32.mrf.mxu1 }
 0x691   :  { %v1484_v56 = vadd.f32 %v1483_v52, %v1464_v28  ;;  %v1584_v57 = vadd.f32 %v9142_v9, %v1583_v48 }
 0x693   :  { %v3283_v60 = vmul.f32 -1.442695, %v1484_v56 }
 0x695   :  { %3381 = vpow2.f32 %v3283_v60  ;;  %v3380_v39 = vpop.eup %3379 }
 0x696   :  { %v1628_v47 = vadd.f32 1.0, %v3380_v39  ;;  %v1543_v37 = vpop.f32.mrf.mxu3 }
 0x697   :  { %v1544_v39 = vadd.f32 %v9143_v26, %v1543_v37  ;;  %v6544_v26 = vld [vmem:[#allocation7 + $0x350] sm:$0xff] }
 0x698   :  { %v1640_v9 = vand.u32 2147483648, %v1628_v47  ;;  %vm1634_vm5 = vweird.f32 %v1628_v47 }
 0x69b   :  { %v3382_v24 = vpop.eup %3381 }
 0x69c   :  { %v1609_v0 = vadd.f32 1.0, %v3382_v24  ;;  %v1603_v24 = vpop.f32.mrf.mxu2 }
 0x69d   :  { %v1604_v16 = vadd.f32 %v1603_v24, %v1584_v57  ;;  %v6554_v24 = vld [vmem:[#allocation7 + $0x330] sm:$0xff] }
 0x69e   :  { %3383 = vrcp.f32 %v1609_v0  ;;  %v1621_v17 = vand.u32 2147483648, %v1609_v0  ;;  %v1619_v56 = vand.u32 2147483647, %v1609_v0  ;;  %vm1615_vm1 = vweird.f32 %v1609_v0 }
 0x69f   :  { %3385 = vrcp.f32 %v1628_v47 }
 0x6a0   :  { %v1622_v7 = vor.u32 1.1754944e-38, %v1621_v17  ;;  %vm1620_vm3 = vcmp.eq.f32.partialorder %v1619_v56, 8.507059e+37  ;;  %v6534_v56 = vld [vmem:[#allocation7 + $0x370] sm:$0xff] }
 0x6a4   :  { %v3384_v38 = vpop.eup %3383 }
 0x6a5   :  { %v3386_v46 = vpop.eup %3385  ;;  %v1611_v30 = vmul.f32 %v3384_v38, %v1609_v0  ;;  %vm1616_vm0 = vweird.f32 %v3384_v38  ;;  %v1638_v0 = vand.u32 2147483647, %v1628_v47 }
 0x6a6   :  { %v1630_v45 = vmul.f32 %v3386_v46, %v1628_v47  ;;  %vm1617_vm2 = vmor %vm1615_vm1, %vm1616_vm0  ;;  %vm1635_vm4 = vweird.f32 %v3386_v46  ;;  %v6524_v47 = vld [vmem:[#allocation7 + $0x390] sm:$0xff] }
 0x6a7   :  { %v1612_v31 = vsub.f32 1.0, %v1611_v30  ;;  %v1563_v30 = vpop.f32.mrf.mxu0  ;;  %vm1636_vm6 = vmor %vm1634_vm5, %vm1635_vm4  ;;  %vm1639_vm7 = vcmp.eq.f32.partialorder %v1638_v0, 8.507059e+37  ;;  %v6584_v0 = vld [vmem:[#allocation7 + $0x2d0] sm:$0xff] }
 0x6a8   :  { %v1631_v60 = vsub.f32 1.0, %v1630_v45  ;;  %v1564_v34 = vadd.f32 %v1563_v30, %v1544_v39  ;;  %v6547_v39 = vld [vmem:[#allocation7 + $0x150] sm:$0xff]  ;;  %9151 = vst [vmem:[#allocation133_spill] sm:$0xff] %v6584_v0 }
 0x6a9   :  { %v1613_v28 = vmul.f32 %v3384_v38, %v1612_v31  ;;  %v6564_v30 = vld [vmem:[#allocation7 + $0x310] sm:$0xff] }
 0x6aa   :  { %v1632_v21 = vmul.f32 %v3386_v46, %v1631_v60  ;;  %v6557_v60 = vld [vmem:[#allocation7 + $0x130] sm:$0xff]  ;;  %9145 = vst [vmem:[#allocation121_spill] sm:$0xff] %v6564_v30 }
 0x6ab   :  { %v1614_v52 = vadd.f32 %v3384_v38, %v1613_v28  ;;  %v1641_v28 = vor.u32 1.1754944e-38, %v1640_v9  ;;  %v6577_v9 = vld [vmem:[#allocation7 + $0xf0] sm:$0xff] }
 0x6ac   :  { %v1633_v31 = vadd.f32 %v3386_v46, %v1632_v21  ;;  %v6494_v21 = vld [vmem:[#allocation7 + $0x3f0] sm:$0xff]  ;;  %9149 = vst [vmem:[#allocation129_spill] sm:$0xff] %v6577_v9 }
 0x6ad   :  { %v1618_v29 = vsel %vm1617_vm2, %v3384_v38, %v1614_v52  ;;  %v6537_v52 = vld [vmem:[#allocation7 + $0x170] sm:$0xff] }
 0x6ae   :  { %v1623_v4 = vsel %vm1620_vm3, %v1622_v7, %v1618_v29  ;;  %v1637_v37 = vsel %vm1636_vm6, %v3386_v46, %v1633_v31  ;;  %v6517_v7 = vld [vmem:[#allocation7 + $0x1b0] sm:$0xff] }
 0x6af   :  { %v1644_v32 = vmul.f32 %v1623_v4, %v1604_v16  ;;  %v1642_v57 = vsel %vm1639_vm7, %v1641_v28, %v1637_v37  ;;  %v6507_v4 = vld [vmem:[#allocation7 + $0x1d0] sm:$0xff] }
 0x6b0   :  { %v6514_v16 = vld [vmem:[#allocation7 + $0x3b0] sm:$0xff] }
 0x6b1   :  { %v1645_v48 = vadd.f32 %v1644_v32, %v1564_v34  ;;  %v6500_v34 = vld [vmem:[#allocation7 + $0x1f8] sm:$0xff]  ;;  %v6504_v32 = vld [vmem:[#allocation7 + $0x3d0] sm:$0xff] }
 0x6b2   :  { %v6527_v46 = vld [vmem:[#allocation7 + $0x190] sm:$0xff] }
 0x6b3   :  { %3387 = vtanh.f32 %v1645_v48  ;;  %v6567_v48 = vld [vmem:[#allocation7 + $0x110] sm:$0xff] }
 0x6b4   :  { %9146 = vst [vmem:[#allocation60_spill] sm:$0xff] %v6567_v48  ;;  %v6574_v31 = vld [vmem:[#allocation7 + $0x2f0] sm:$0xff] }
 0x6b5   :  { %9148 = vst [vmem:[#allocation64_spill] sm:$0xff] %v6574_v31  ;;  %v6587_v37 = vld [vmem:[#allocation7 + $0xd0] sm:$0xff] }
 0x6b6   :  { %9152 = vst [vmem:[#allocation72_spill] sm:$0xff] %v6587_v37  ;;  %v6597_v28 = vld [vmem:[#allocation7 + $0xb0] sm:$0xff] }
 0x6b7   :  { %9155 = vst [vmem:[#allocation79_spill] sm:$0xff] %v6597_v28 }
 0x6b9   :  { %v3388_v45 = vpop.eup %3387 }
 0x6ba   :  { %v1647_v17 = vsub.f32 %v6218_v2, %v3388_v45  ;;  %v6497_v2 = vld [vmem:[#allocation7 + $0x1f0] sm:$0xff] }
 0x6bc   :  { %v1648_v38 = vmul.f32 %v1647_v17, %v1642_v57  ;;  %v6604_v17 = vld [vmem:[#allocation7 + $0x290] sm:$0xff] }
 0x6bd   :  { %9157 = vst [vmem:[#allocation91_spill] sm:$0xff] %v6604_v17  ;;  %v6607_v57 = vld [vmem:[#allocation7 + $0x90] sm:$0xff] }
 0x6be   :  { %v6487_v29 = vadd.f32 %v3388_v45, %v1648_v38  ;;  %v6594_v45 = vld [vmem:[#allocation7 + $0x2b0] sm:$0xff]  ;;  %9158 = vst [vmem:[#allocation95_spill] sm:$0xff] %v6607_v57 }
 0x6bf   :  { %9154 = vst [vmem:[#allocation76_spill] sm:$0xff] %v6594_v45  ;;  %v6614_v38 = vld [vmem:[#allocation7 + $0x270] sm:$0xff] }
 0x6c0   :  { %1666 = vmatmul.f32.vlgmr.msrb.gmra.mxu3 %v6487_v29  ;;  %1686 = vmatmul.f32.vlgmr.msra.gmra.mxu0 %v6487_v29  ;;  %9160 = vst [vmem:[#allocation103_spill] sm:$0xff] %v6614_v38 }
 0x6c1   :  { %1706 = vmatmul.f32.vlgmr.msra.gmra.mxu1 %v6487_v29  ;;  %1726 = vmatmul.f32.vlgmr.msra.gmra.mxu2 %v6487_v29 }
 0x6c2   :  { %1866 = vmatpush.msrb.mxu3 %v6113_v63  ;;  %1906 = vmatpush.msra.mxu1 %v6494_v21  ;;  %v6510_v63 = vld [vmem:[#allocation7 + $0x1d8] sm:$0xff] }
 0x6c3   :  { %1886 = vmatpush.msra.mxu0 %v6497_v2  ;;  %1926 = vmatpush.msra.mxu2 %v6500_v34 }
 0x6c4   :  { %1867 = vmatpush.msrb.mxu3 %v6119_v33  ;;  %1907 = vmatpush.msra.mxu1 %v6504_v32  ;;  %v6520_v33 = vld [vmem:[#allocation7 + $0x1b8] sm:$0xff] }
 0x6c5   :  { %1887 = vmatpush.msra.mxu0 %v6507_v4  ;;  %1927 = vmatpush.msra.mxu2 %v6510_v63 }
 0x6c6   :  { %1868 = vmatpush.msrb.mxu3 %v6125_v10  ;;  %1908 = vmatpush.msra.mxu1 %v6514_v16  ;;  %v6530_v10 = vld [vmem:[#allocation7 + $0x198] sm:$0xff] }
 0x6c7   :  { %1888 = vmatpush.msra.mxu0 %v6517_v7  ;;  %1928 = vmatpush.msra.mxu2 %v6520_v33 }
 0x6c8   :  { %1869 = vmatpush.msrb.mxu3 %v6131_v43  ;;  %1909 = vmatpush.msra.mxu1 %v6524_v47  ;;  %v6540_v43 = vld [vmem:[#allocation7 + $0x178] sm:$0xff] }
 0x6c9   :  { %1889 = vmatpush.msra.mxu0 %v6527_v46  ;;  %1929 = vmatpush.msra.mxu2 %v6530_v10 }
 0x6ca   :  { %1870 = vmatpush.msrb.mxu3 %v6137_v12  ;;  %1910 = vmatpush.msra.mxu1 %v6534_v56  ;;  %v6550_v12 = vld [vmem:[#allocation7 + $0x158] sm:$0xff] }
 0x6cb   :  { %1890 = vmatpush.msra.mxu0 %v6537_v52  ;;  %1930 = vmatpush.msra.mxu2 %v6540_v43 }
 0x6cc   :  { %1871 = vmatpush.msrb.mxu3 %v6143_v19  ;;  %1911 = vmatpush.msra.mxu1 %v6544_v26  ;;  %v6560_v19 = vld [vmem:[#allocation7 + $0x138] sm:$0xff] }
 0x6cd   :  { %1891 = vmatpush.msra.mxu0 %v6547_v39  ;;  %1931 = vmatpush.msra.mxu2 %v6550_v12  ;;  %9144 = vst [vmem:[#allocation56_spill] sm:$0xff] %v6560_v19 }
 0x6ce   :  { %1872 = vmatpush.msrb.mxu3 %v6149_v51  ;;  %1912 = vmatpush.msra.mxu1 %v6554_v24  ;;  %v6570_v51 = vld [vmem:[#allocation7 + $0x118] sm:$0xff] }
 0x6cf   :  { %1892 = vmatpush.msra.mxu0 %v6557_v60  ;;  %1932 = vmatpush.msra.mxu2 %v6560_v19  ;;  %9147 = vst [vmem:[#allocation125_spill] sm:$0xff] %v6570_v51 }
 0x6d0   :  { %1873 = vmatpush.msrb.mxu3 %v6155_v15  ;;  %1913 = vmatpush.msra.mxu1 %v6564_v30  ;;  %v6580_v15 = vld [vmem:[#allocation7 + $0xf8] sm:$0xff] }
 0x6d1   :  { %1893 = vmatpush.msra.mxu0 %v6567_v48  ;;  %1933 = vmatpush.msra.mxu2 %v6570_v51  ;;  %9150 = vst [vmem:[#allocation68_spill] sm:$0xff] %v6580_v15 }
 0x6d2   :  { %1874 = vmatpush.msrb.mxu3 %v6161_v35  ;;  %1914 = vmatpush.msra.mxu1 %v6574_v31  ;;  %v6590_v35 = vld [vmem:[#allocation7 + $0xd8] sm:$0xff] }
 0x6d3   :  { %1894 = vmatpush.msra.mxu0 %v6577_v9  ;;  %1934 = vmatpush.msra.mxu2 %v6580_v15  ;;  %9153 = vst [vmem:[#allocation137_spill] sm:$0xff] %v6590_v35 }
 0x6d4   :  { %1875 = vmatpush.msrb.mxu3 %v6167_v42  ;;  %1915 = vmatpush.msra.mxu1 %v6584_v0  ;;  %v6600_v42 = vld [vmem:[#allocation7 + $0xb8] sm:$0xff] }
 0x6d5   :  { %1895 = vmatpush.msra.mxu0 %v6587_v37  ;;  %1935 = vmatpush.msra.mxu2 %v6590_v35  ;;  %9156 = vst [vmem:[#allocation87_spill] sm:$0xff] %v6600_v42 }
 0x6d6   :  { %1876 = vmatpush.msrb.mxu3 %v6173_v62  ;;  %1916 = vmatpush.msra.mxu1 %v6594_v45  ;;  %v6610_v62 = vld [vmem:[#allocation7 + $0x98] sm:$0xff] }
 0x6d7   :  { %1896 = vmatpush.msra.mxu0 %v6597_v28  ;;  %1936 = vmatpush.msra.mxu2 %v6600_v42  ;;  %9159 = vst [vmem:[#allocation99_spill] sm:$0xff] %v6610_v62  ;;  %v6617_v42 = vld [vmem:[#allocation7 + $0x70] sm:$0xff] }
 0x6d8   :  { %1877 = vmatpush.msrb.mxu3 %v6179_v6  ;;  %1917 = vmatpush.msra.mxu1 %v6604_v17  ;;  %9161 = vst [vmem:[#allocation107_spill] sm:$0xff] %v6617_v42  ;;  %v6620_v6 = vld [vmem:[#allocation7 + $0x78] sm:$0xff] }
 0x6d9   :  { %1897 = vmatpush.msra.mxu0 %v6607_v57  ;;  %1937 = vmatpush.msra.mxu2 %v6610_v62  ;;  %9162 = vst [vmem:[#allocation111_spill] sm:$0xff] %v6620_v6  ;;  %v6624_v57 = vld [vmem:[#allocation7 + $0x250] sm:$0xff] }
 0x6da   :  { %1878 = vmatpush.msrb.mxu3 %v6185_v61  ;;  %1918 = vmatpush.msra.mxu1 %v6614_v38  ;;  %9163 = vst [vmem:[#allocation115_spill] sm:$0xff] %v6624_v57  ;;  %v6627_v62 = vld [vmem:[#allocation7 + $0x50] sm:$0xff]  ;;  %v6630_v61 = vld [vmem:[#allocation7 + $0x58] sm:$0xff]  ;;  %v6633_v38 = vld [vmem:[#allocation7 + $0x228] sm:$0xff] }
 0x6db   :  { %1898 = vmatpush.msra.mxu0 %v6617_v42  ;;  %1938 = vmatpush.msra.mxu2 %v6620_v6  ;;  %9164 = vst [vmem:[#allocation119_spill] sm:$0xff] %v6627_v62  ;;  %v6636_v42 = vld [vmem:[#allocation7 + $0x230] sm:$0xff] }
 0x6dc   :  { %1879 = vmatpush.msrb.mxu3 %v6191_v11  ;;  %1919 = vmatpush.msra.mxu1 %v6624_v57  ;;  %9165 = vst [vmem:[#allocation123_spill] sm:$0xff] %v6630_v61  ;;  %v6639_v11 = vld [vmem:[#allocation7 + $0x30] sm:$0xff]  ;;  %v6642_v57 = vld [vmem:[#allocation7 + $0x38] sm:$0xff] }
 0x6dd   :  { %1899 = vmatpush.msra.mxu0 %v6627_v62  ;;  %1939 = vmatpush.msra.mxu2 %v6630_v61  ;;  %9166 = vst [vmem:[#allocation127_spill] sm:$0xff] %v6633_v38  ;;  %v6645_v62 = vld [vmem:[#allocation7 + $0x208] sm:$0xff]  ;;  %v6648_v61 = vld [vmem:[#allocation7 + $0x210] sm:$0xff] }
 0x6de   :  { %1880 = vmatpush.msrb.mxu3 %v6633_v38  ;;  %9167 = vst [vmem:[#allocation131_spill] sm:$0xff] %v6636_v42  ;;  %1920 = vmatpush.msra.mxu1 %v6636_v42  ;;  %v6651_v38 = vld [vmem:[#allocation7 + $0x10] sm:$0xff]  ;;  %v6654_v42 = vld [vmem:[#allocation7 + $0x18] sm:$0xff] }
 0x6df   :  { %9168 = vst [vmem:[#allocation135_spill] sm:$0xff] %v6639_v11  ;;  %1900 = vmatpush.msra.mxu0 %v6639_v11  ;;  %1940 = vmatpush.msra.mxu2 %v6642_v57 }
 0x6e0   :  { %9169 = vst [vmem:[#allocation139_spill] sm:$0xff] %v6642_v57  ;;  %1881 = vmatpush.msrb.mxu3 %v6645_v62  ;;  %1921 = vmatpush.msra.mxu1 %v6648_v61 }
 0x6e1   :  { %9170 = vst [vmem:[#allocation142_spill] sm:$0xff] %v6645_v62  ;;  %1901 = vmatpush.msra.mxu0 %v6651_v38  ;;  %1941 = vmatpush.msra.mxu2 %v6654_v42 }
 0x6e2   :  { %9171 = vst [vmem:[#allocation84_spill] sm:$0xff] %v6648_v61 }
 0x6e3   :  { %9172 = vst [vmem:[#allocation86_spill] sm:$0xff] %v6651_v38 }
 0x6e4   :  { %9173 = vst [vmem:[#allocation88_spill] sm:$0xff] %v6654_v42 }
 0x73d   :  { %v1687_v11 = vpop.f32.mrf.mxu0 }
 0x73e   :  { %v1688_v6 = vadd.f32 %v6208_v41, %v1687_v11 }
 0x740   :  { %v3286_v57 = vmul.f32 -1.442695, %v1688_v6 }
 0x742   :  { %3389 = vpow2.f32 %v3286_v57 }
 0x743   :  { %v1667_v17 = vpop.f32.mrf.mxu3 }
 0x744   :  { %v1668_v28 = vadd.f32 %v6205_v40, %v1667_v17  ;;  %v1727_v11 = vpop.f32.mrf.mxu2  ;;  %v1707_v17 = vpop.f32.mrf.mxu1 }
 0x745   :  { %v1708_v51 = vadd.f32 %v6214_v55, %v1707_v17  ;;  %v6667_v55 = vld [vmem:[#allocation10 + $0x1e8] sm:$0xff]  ;;  %v6718_v17 = vld [vmem:[#allocation7 + $0x2b8] sm:$0xff] }
 0x746   :  { %v3285_v62 = vmul.f32 -1.442695, %v1668_v28 }
 0x748   :  { %3391 = vpow2.f32 %v3285_v62  ;;  %v3390_v45 = vpop.eup %3389 }
 0x749   :  { %v1752_v35 = vadd.f32 1.0, %v3390_v45  ;;  %v1728_v45 = vadd.f32 %v6211_v50, %v1727_v11 }
 0x74b   :  { %v1764_v19 = vand.u32 2147483648, %v1752_v35  ;;  %vm1758_vm13 = vweird.f32 %v1752_v35 }
 0x74e   :  { %v3392_v61 = vpop.eup %3391 }
 0x74f   :  { %v1733_v37 = vadd.f32 1.0, %v3392_v61 }
 0x751   :  { %3393 = vrcp.f32 %v1733_v37  ;;  %v1745_v31 = vand.u32 2147483648, %v1733_v37  ;;  %v1743_v6 = vand.u32 2147483647, %v1733_v37  ;;  %vm1739_vm9 = vweird.f32 %v1733_v37 }
 0x752   :  { %3395 = vrcp.f32 %v1752_v35 }
 0x753   :  { %v1746_v57 = vor.u32 1.1754944e-38, %v1745_v31  ;;  %vm1744_vm11 = vcmp.eq.f32.partialorder %v1743_v6, 8.507059e+37  ;;  %v1765_v31 = vor.u32 1.1754944e-38, %v1764_v19  ;;  %v6671_v19 = vld [vmem:[#allocation10 + $0x1c8] sm:$0xff] }
 0x757   :  { %v3394_v38 = vpop.eup %3393 }
 0x758   :  { %v3396_v0 = vpop.eup %3395  ;;  %v1735_v15 = vmul.f32 %v3394_v38, %v1733_v37  ;;  %vm1740_vm8 = vweird.f32 %v3394_v38  ;;  %v1762_v37 = vand.u32 2147483647, %v1752_v35 }
 0x759   :  { %v1754_v9 = vmul.f32 %v3396_v0, %v1752_v35  ;;  %vm1741_vm10 = vmor %vm1739_vm9, %vm1740_vm8  ;;  %vm1759_vm12 = vweird.f32 %v3396_v0  ;;  %v6709_v35 = vld [vmem:[#allocation10 + $0xe8] sm:$0xff] }
 0x75a   :  { %v1736_v42 = vsub.f32 1.0, %v1735_v15  ;;  %vm1760_vm14 = vmor %vm1758_vm13, %vm1759_vm12  ;;  %vm1763_vm15 = vcmp.eq.f32.partialorder %v1762_v37, 8.507059e+37  ;;  %v6739_v37 = vld [vmem:[#allocation10 + $0x48] sm:$0xff] }
 0x75b   :  { %v1755_v28 = vsub.f32 1.0, %v1754_v9  ;;  %9179 = vst [vmem:[#allocation100_spill] sm:$0xff] %v6739_v37 }
 0x75c   :  { %v1737_v41 = vmul.f32 %v3394_v38, %v1736_v42 }
 0x75d   :  { %v1756_v48 = vmul.f32 %v3396_v0, %v1755_v28  ;;  %v6715_v28 = vld [vmem:[#allocation10 + $0xc8] sm:$0xff] }
 0x75e   :  { %v1738_v40 = vadd.f32 %v3394_v38, %v1737_v41 }
 0x75f   :  { %v1757_v42 = vadd.f32 %v3396_v0, %v1756_v48  ;;  %v6697_v48 = vld [vmem:[#allocation10 + $0x128] sm:$0xff] }
 0x760   :  { %v1742_v62 = vsel %vm1741_vm10, %v3394_v38, %v1738_v40  ;;  %v6712_v40 = vld [vmem:[#allocation7 + $0x2d8] sm:$0xff] }
 0x761   :  { %v1747_v61 = vsel %vm1744_vm11, %v1746_v57, %v1742_v62  ;;  %v1761_v9 = vsel %vm1760_vm14, %v3396_v0, %v1757_v42  ;;  %v6706_v0 = vld [vmem:[#allocation7 + $0x2f8] sm:$0xff]  ;;  %v6721_v57 = vld [vmem:[#allocation10 + $0xa8] sm:$0xff] }
 0x762   :  { %v1768_v15 = vmul.f32 %v1747_v61, %v1728_v45  ;;  %v1766_v38 = vsel %vm1763_vm15, %v1765_v31, %v1761_v9  ;;  %v6724_v45 = vld [vmem:[#allocation7 + $0x298] sm:$0xff]  ;;  %v6727_v62 = vld [vmem:[#allocation10 + $0x88] sm:$0xff] }
 0x763   :  { %9174 = vst [vmem:[#allocation90_spill] sm:$0xff] %v6724_v45  ;;  %v6730_v61 = vld [vmem:[#allocation7 + $0x278] sm:$0xff] }
 0x764   :  { %v1769_v30 = vadd.f32 %v1768_v15, %v1708_v51  ;;  %v6703_v51 = vld [vmem:[#allocation10 + $0x108] sm:$0xff]  ;;  %9175 = vst [vmem:[#allocation92_spill] sm:$0xff] %v6727_v62  ;;  %v6736_v42 = vld [vmem:[#allocation7 + $0x258] sm:$0xff] }
 0x765   :  { %9176 = vst [vmem:[#allocation94_spill] sm:$0xff] %v6730_v61  ;;  %v6733_v15 = vld [vmem:[#allocation10 + $0x68] sm:$0xff]  ;;  %v6742_v9 = vld [vmem:[#allocation7 + $0x238] sm:$0xff] }
 0x766   :  { %3397 = vtanh.f32 %v1769_v30  ;;  %v6679_v30 = vld [vmem:[#allocation10 + $0x188] sm:$0xff]  ;;  %9177 = vst [vmem:[#allocation96_spill] sm:$0xff] %v6733_v15  ;;  %v6748_v31 = vld [vmem:[#allocation7 + $0x218] sm:$0xff] }
 0x767   :  { %9178 = vst [vmem:[#allocation98_spill] sm:$0xff] %v6736_v42 }
 0x768   :  { %9180 = vst [vmem:[#allocation102_spill] sm:$0xff] %v6742_v9 }
 0x769   :  { %9182 = vst [vmem:[#allocation106_spill] sm:$0xff] %v6748_v31 }
 0x76c   :  { %v3398_v41 = vpop.eup %3397 }
 0x76d   :  { %v1771_v50 = vsub.f32 %v6487_v29, %v3398_v41  ;;  %v6675_v29 = vld [vmem:[#allocation10 + $0x1a8] sm:$0xff] }
 0x76f   :  { %v1772_v6 = vmul.f32 %v1771_v50, %v1766_v38  ;;  %v6751_v50 = vld [vmem:[#allocation10 + $0x8] sm:$0xff]  ;;  %v6756_v38 = vld [vmem:[#allocation10 + $0x1f8] sm:$0xff] }
 0x770   :  { %9183 = vst [vmem:[#allocation108_spill] sm:$0xff] %v6751_v50 }
 0x771   :  { %v6662_v11 = vadd.f32 %v3398_v41, %v1772_v6  ;;  %v6745_v41 = vld [vmem:[#allocation10 + $0x28] sm:$0xff]  ;;  %9184 = vst [vmem:[#allocation110_spill] sm:$0xff] %v6756_v38  ;;  %v6760_v6 = vld [vmem:[#allocation10 + $0x1d8] sm:$0xff] }
 0x772   :  { %9181 = vst [vmem:[#allocation104_spill] sm:$0xff] %v6745_v41 }
 0x773   :  { %1790 = vmatmul.f32.vlgmr.msra.gmra.mxu3 %v6662_v11  ;;  %1842 = vmatmul.f32.vlgmr.msrb.gmra.mxu1 %v6662_v11  ;;  %9185 = vst [vmem:[#allocation112_spill] sm:$0xff] %v6760_v6 }
 0x774   :  { %1946 = vmatpush.msra.mxu3 %v6222_v1  ;;  %2030 = vmatpush.msrb.mxu1 %v6667_v55  ;;  %v6685_v1 = vld [vmem:[#allocation10 + $0x168] sm:$0xff] }
 0x776   :  { %1947 = vmatpush.msra.mxu3 %v6226_v25  ;;  %2031 = vmatpush.msrb.mxu1 %v6671_v19  ;;  %v6688_v25 = vld [vmem:[#allocation7 + $0x358] sm:$0xff] }
 0x778   :  { %1948 = vmatpush.msra.mxu3 %v6230_v53  ;;  %2032 = vmatpush.msrb.mxu1 %v6675_v29  ;;  %v6691_v53 = vld [vmem:[#allocation10 + $0x148] sm:$0xff] }
 0x77a   :  { %1949 = vmatpush.msra.mxu3 %v6234_v58  ;;  %2033 = vmatpush.msrb.mxu1 %v6679_v30  ;;  %v6694_v58 = vld [vmem:[#allocation7 + $0x338] sm:$0xff] }
 0x77b   :  { %1882 = vmatmul.f32.vlgmr.msrb.gmra.mxu3 %v6662_v11  ;;  %1922 = vmatmul.f32.vlgmr.msra.gmra.mxu1 %v6662_v11 }
 0x77c   :  { %1950 = vmatpush.msra.mxu3 %v6240_v20  ;;  %2034 = vmatpush.msrb.mxu1 %v6685_v1  ;;  %v6700_v20 = vld [vmem:[#allocation7 + $0x318] sm:$0xff] }
 0x77e   :  { %1951 = vmatpush.msra.mxu3 %v6688_v25  ;;  %2035 = vmatpush.msrb.mxu1 %v6691_v53 }
 0x780   :  { %1952 = vmatpush.msra.mxu3 %v6694_v58  ;;  %2036 = vmatpush.msrb.mxu1 %v6697_v48 }
 0x782   :  { %1953 = vmatpush.msra.mxu3 %v6700_v20  ;;  %2037 = vmatpush.msrb.mxu1 %v6703_v51 }
 0x784   :  { %1954 = vmatpush.msra.mxu3 %v6706_v0  ;;  %2038 = vmatpush.msrb.mxu1 %v6709_v35 }
 0x786   :  { %1955 = vmatpush.msra.mxu3 %v6712_v40  ;;  %2039 = vmatpush.msrb.mxu1 %v6715_v28 }
 0x788   :  { %1956 = vmatpush.msra.mxu3 %v6718_v17  ;;  %2040 = vmatpush.msrb.mxu1 %v6721_v57 }
 0x78a   :  { %1957 = vmatpush.msra.mxu3 %v6724_v45  ;;  %2041 = vmatpush.msrb.mxu1 %v6727_v62 }
 0x78c   :  { %1958 = vmatpush.msra.mxu3 %v6730_v61  ;;  %2042 = vmatpush.msrb.mxu1 %v6733_v15 }
 0x78e   :  { %1959 = vmatpush.msra.mxu3 %v6736_v42  ;;  %2043 = vmatpush.msrb.mxu1 %v6739_v37 }
 0x790   :  { %1960 = vmatpush.msra.mxu3 %v6742_v9  ;;  %2044 = vmatpush.msrb.mxu1 %v6745_v41 }
 0x792   :  { %1961 = vmatpush.msra.mxu3 %v6748_v31  ;;  %2045 = vmatpush.msrb.mxu1 %v6751_v50  ;;  %v6764_v31 = vld [vmem:[#allocation10 + $0x1b8] sm:$0xff] }
 0x793   :  { %1962 = vmatmul.f32.vlgmr.msra.gmra.mxu3 %v6662_v11  ;;  %9186 = vst [vmem:[#allocation114_spill] sm:$0xff] %v6764_v31  ;;  %v6768_v50 = vld [vmem:[#allocation10 + $0x198] sm:$0xff] }
 0x794   :  { %2166 = vmatpush.msra.mxu1 %v6267_v22  ;;  %2070 = vmatpush.msrb.mxu3 %v6756_v38  ;;  %9187 = vst [vmem:[#allocation116_spill] sm:$0xff] %v6768_v50  ;;  %v6772_v22 = vld [vmem:[#allocation10 + $0x178] sm:$0xff] }
 0x795   :  { %9188 = vst [vmem:[#allocation118_spill] sm:$0xff] %v6772_v22 }
 0x796   :  { %2167 = vmatpush.msra.mxu1 %v6271_v49  ;;  %2071 = vmatpush.msrb.mxu3 %v6760_v6  ;;  %v6776_v49 = vld [vmem:[#allocation10 + $0x158] sm:$0xff] }
 0x797   :  { %9189 = vst [vmem:[#allocation120_spill] sm:$0xff] %v6776_v49 }
 0x798   :  { %2168 = vmatpush.msra.mxu1 %v6275_v5  ;;  %2072 = vmatpush.msrb.mxu3 %v6764_v31  ;;  %v6780_v5 = vld [vmem:[#allocation10 + $0x138] sm:$0xff] }
 0x799   :  { %9190 = vst [vmem:[#allocation122_spill] sm:$0xff] %v6780_v5 }
 0x79a   :  { %2169 = vmatpush.msra.mxu1 %v6279_v23  ;;  %2073 = vmatpush.msrb.mxu3 %v6768_v50  ;;  %v6784_v23 = vld [vmem:[#allocation10 + $0x118] sm:$0xff] }
 0x79b   :  { %9191 = vst [vmem:[#allocation124_spill] sm:$0xff] %v6784_v23 }
 0x79c   :  { %2170 = vmatpush.msra.mxu1 %v6283_v27  ;;  %2074 = vmatpush.msrb.mxu3 %v6772_v22  ;;  %v6788_v27 = vld [vmem:[#allocation10 + $0xf8] sm:$0xff] }
 0x79d   :  { %9192 = vst [vmem:[#allocation126_spill] sm:$0xff] %v6788_v27 }
 0x79e   :  { %2171 = vmatpush.msra.mxu1 %v6287_v13  ;;  %2075 = vmatpush.msrb.mxu3 %v6776_v49  ;;  %v6792_v13 = vld [vmem:[#allocation10 + $0xd8] sm:$0xff] }
 0x79f   :  { %9193 = vst [vmem:[#allocation128_spill] sm:$0xff] %v6792_v13  ;;  %v9218_v49 = vld [vmem:[#allocation70_spill] sm:$0xff] }
 0x7a0   :  { %2172 = vmatpush.msra.mxu1 %v6291_v54  ;;  %2076 = vmatpush.msrb.mxu3 %v6780_v5  ;;  %v6796_v54 = vld [vmem:[#allocation10 + $0xb8] sm:$0xff] }
 0x7a1   :  { %9194 = vst [vmem:[#allocation130_spill] sm:$0xff] %v6796_v54 }
 0x7a2   :  { %2173 = vmatpush.msra.mxu1 %v6295_v3  ;;  %2077 = vmatpush.msrb.mxu3 %v6784_v23  ;;  %v6800_v3 = vld [vmem:[#allocation10 + $0x98] sm:$0xff]  ;;  %v9211_v23 = vld [vmem:[#allocation73_spill] sm:$0xff] }
 0x7a3   :  { %9195 = vst [vmem:[#allocation132_spill] sm:$0xff] %v6800_v3 }
 0x7a4   :  { %2174 = vmatpush.msra.mxu1 %v6299_v59  ;;  %2078 = vmatpush.msrb.mxu3 %v6788_v27  ;;  %v6804_v59 = vld [vmem:[#allocation10 + $0x78] sm:$0xff]  ;;  %v9208_v27 = vld [vmem:[#allocation69_spill] sm:$0xff] }
 0x7a5   :  { %9196 = vst [vmem:[#allocation134_spill] sm:$0xff] %v6804_v59 }
 0x7a6   :  { %2175 = vmatpush.msra.mxu1 %v6303_v8  ;;  %2079 = vmatpush.msrb.mxu3 %v6792_v13  ;;  %v6808_v8 = vld [vmem:[#allocation10 + $0x58] sm:$0xff]  ;;  %v9205_v13 = vld [vmem:[#allocation65_spill] sm:$0xff] }
 0x7a7   :  { %9197 = vst [vmem:[#allocation136_spill] sm:$0xff] %v6808_v8 }
 0x7a8   :  { %2176 = vmatpush.msra.mxu1 %v6307_v18  ;;  %2080 = vmatpush.msrb.mxu3 %v6796_v54  ;;  %v9198_v18 = vld [vmem:[#allocation46_spill] sm:$0xff] }
 0x7a9   :  { %v6812_v54 = vld [vmem:[#allocation10 + $0x38] sm:$0xff] }
 0x7aa   :  { %2177 = vmatpush.msra.mxu1 %v6311_v14  ;;  %2081 = vmatpush.msrb.mxu3 %v6800_v3  ;;  %9199 = vst [vmem:[#allocation138_spill] sm:$0xff] %v6812_v54  ;;  %v9200_v14 = vld [vmem:[#allocation63_spill] sm:$0xff]  ;;  %v6816_v3 = vld [vmem:[#allocation10 + $0x18] sm:$0xff] }
 0x7ab   :  { %9201 = vst [vmem:[#allocation140_spill] sm:$0xff] %v6816_v3 }
 0x7ac   :  { %2178 = vmatpush.msra.mxu1 %v6315_v36  ;;  %2082 = vmatpush.msrb.mxu3 %v6804_v59  ;;  %v9202_v36 = vld [vmem:[#allocation61_spill] sm:$0xff]  ;;  %v9203_v59 = vld [vmem:[#allocation50_spill] sm:$0xff] }
 0x7ae   :  { %2179 = vmatpush.msra.mxu1 %v6319_v44  ;;  %2083 = vmatpush.msrb.mxu3 %v6808_v8  ;;  %v9204_v44 = vld [vmem:[#allocation67_spill] sm:$0xff]  ;;  %v9206_v8 = vld [vmem:[#allocation54_spill] sm:$0xff] }
 0x7b0   :  { %2180 = vmatpush.msra.mxu1 %v9198_v18  ;;  %2084 = vmatpush.msrb.mxu3 %v6812_v54  ;;  %v9207_v18 = vld [vmem:[#allocation71_spill] sm:$0xff]  ;;  %v9209_v54 = vld [vmem:[#allocation58_spill] sm:$0xff] }
 0x7b2   :  { %2181 = vmatpush.msra.mxu1 %v9200_v14  ;;  %2085 = vmatpush.msrb.mxu3 %v6816_v3  ;;  %v9210_v14 = vld [vmem:[#allocation75_spill] sm:$0xff]  ;;  %v9212_v3 = vld [vmem:[#allocation62_spill] sm:$0xff] }
 0x7b4   :  { %2206 = vmatpush.msra.mxu3 %v9202_v36  ;;  %v9213_v36 = vld [vmem:[#allocation77_spill] sm:$0xff] }
 0x7b6   :  { %2207 = vmatpush.msra.mxu3 %v9203_v59  ;;  %v9214_v59 = vld [vmem:[#allocation78_spill] sm:$0xff] }
 0x7b8   :  { %2208 = vmatpush.msra.mxu3 %v9204_v44  ;;  %v9215_v44 = vld [vmem:[#allocation66_spill] sm:$0xff] }
 0x7ba   :  { %2209 = vmatpush.msra.mxu3 %v9205_v13  ;;  %v9216_v13 = vld [vmem:[#allocation81_spill] sm:$0xff] }
 0x7bc   :  { %2210 = vmatpush.msra.mxu3 %v9206_v8  ;;  %v9217_v8 = vld [vmem:[#allocation80_spill] sm:$0xff] }
 0x7be   :  { %2211 = vmatpush.msra.mxu3 %v9207_v18  ;;  %v1795_v18 = vld [vmem:[#allocation5 + $0x18] sm:$0xff] }
 0x7bf   :  { %v1799_v5 = vsub.f32 1.0, %v1795_v18 }
 0x7c0   :  { %2212 = vmatpush.msra.mxu3 %v9208_v27  ;;  %v1797_v27 = vld [vmem:[#allocation2 + $0x18] sm:$0xff] }
 0x7c1   :  { %v1798_v22 = vmul.f32 %v1797_v27, %v1795_v18  ;;  %v6860_v18 = vld [vmem:[#allocation10 + $0x160] sm:$0xff]  ;;  %v6863_v27 = vld [vmem:[#allocation10 + $0x170] sm:$0xff] }
 0x7c2   :  { %2213 = vmatpush.msra.mxu3 %v9209_v54  ;;  %9227 = vst [vmem:[#allocation34_spill] sm:$0xff] %v6860_v18 }
 0x7c3   :  { %9228 = vst [vmem:[#allocation30_spill] sm:$0xff] %v6863_v27 }
 0x7c4   :  { %2214 = vmatpush.msra.mxu3 %v9210_v14 }
 0x7c6   :  { %2215 = vmatpush.msra.mxu3 %v9211_v23 }
 0x7c8   :  { %2216 = vmatpush.msra.mxu3 %v9212_v3 }
 0x7ca   :  { %2217 = vmatpush.msra.mxu3 %v9213_v36  ;;  %v6836_v36 = vld [vmem:[#allocation10 + $0x1e0] sm:$0xff] }
 0x7cb   :  { %9219 = vst [vmem:[#allocation141_spill] sm:$0xff] %v6836_v36 }
 0x7cc   :  { %2218 = vmatpush.msra.mxu3 %v9214_v59  ;;  %v6839_v59 = vld [vmem:[#allocation10 + $0x1f0] sm:$0xff] }
 0x7cd   :  { %9220 = vst [vmem:[#allocation143_spill] sm:$0xff] %v6839_v59 }
 0x7ce   :  { %2219 = vmatpush.msra.mxu3 %v9215_v44  ;;  %v6842_v44 = vld [vmem:[#allocation10 + $0x1c0] sm:$0xff] }
 0x7cf   :  { %9221 = vst [vmem:[#allocation144_spill] sm:$0xff] %v6842_v44 }
 0x7d0   :  { %2220 = vmatpush.msra.mxu3 %v9216_v13  ;;  %v6854_v13 = vld [vmem:[#allocation10 + $0x180] sm:$0xff] }
 0x7d1   :  { %9225 = vst [vmem:[#allocation29_spill] sm:$0xff] %v6854_v13 }
 0x7d2   :  { %2221 = vmatpush.msra.mxu3 %v9217_v8  ;;  %v6857_v8 = vld [vmem:[#allocation10 + $0x190] sm:$0xff] }
 0x7d3   :  { %9226 = vst [vmem:[#allocation36_spill] sm:$0xff] %v6857_v8 }
 0x7f6   :  { %v1791_v54 = vpop.f32.mrf.mxu3 }
 0x7f7   :  { %v1792_v14 = vadd.f32 %v9218_v49, %v1791_v54  ;;  %v6845_v49 = vld [vmem:[#allocation10 + $0x1d0] sm:$0xff]  ;;  %v6866_v54 = vld [vmem:[#allocation10 + $0x140] sm:$0xff] }
 0x7f8   :  { %9222 = vst [vmem:[#allocation145_spill] sm:$0xff] %v6845_v49 }
 0x7f9   :  { %v1800_v23 = vmul.f32 %v1799_v5, %v1792_v14  ;;  %1803 = vst [vmem:[#allocation19 + $0x18] sm:$0xff] %v1792_v14  ;;  %v6851_v5 = vld [vmem:[#allocation10 + $0x1b0] sm:$0xff] }
 0x7fa   :  { %9224 = vst [vmem:[#allocation32_spill] sm:$0xff] %v6851_v5  ;;  %v6869_v14 = vld [vmem:[#allocation10 + $0x150] sm:$0xff] }
 0x7fb   :  { %v1801_v3 = vadd.f32 %v1800_v23, %v1798_v22  ;;  %v6848_v22 = vld [vmem:[#allocation10 + $0x1a0] sm:$0xff]  ;;  %9229 = vst [vmem:[#allocation39_spill] sm:$0xff] %v6866_v54 }
 0x7fc   :  { %9223 = vst [vmem:[#allocation146_spill] sm:$0xff] %v6848_v22  ;;  %v6872_v23 = vld [vmem:[#allocation10 + $0x120] sm:$0xff] }
 0x7fd   :  { %1805 = vst [vmem:[#allocation17 + $0x18] sm:$0xff] %v1801_v3  ;;  %1822 = vmatmul.f32.vlgmr.msrb.gmra.mxu0 %v1801_v3  ;;  %1862 = vmatmul.f32.vlgmr.msrb.gmra.mxu2 %v1801_v3 }
 0x7fe   :  { %2010 = vmatpush.msrb.mxu0 %v6836_v36  ;;  %2050 = vmatpush.msrb.mxu2 %v6839_v59  ;;  %9230 = vst [vmem:[#allocation37_spill] sm:$0xff] %v6869_v14  ;;  %v1883_v36 = vpop.f32.mrf.mxu3 }
 0x7ff   :  { %9231 = vst [vmem:[#allocation31_spill] sm:$0xff] %v6872_v23 }
 0x800   :  { %2011 = vmatpush.msrb.mxu0 %v6842_v44  ;;  %2051 = vmatpush.msrb.mxu2 %v6845_v49 }
 0x802   :  { %2012 = vmatpush.msrb.mxu0 %v6848_v22  ;;  %2052 = vmatpush.msrb.mxu2 %v6851_v5  ;;  %v1843_v22 = vpop.f32.mrf.mxu1 }
 0x804   :  { %2013 = vmatpush.msrb.mxu0 %v6854_v13  ;;  %2053 = vmatpush.msrb.mxu2 %v6857_v8  ;;  %v6936_v8 = vld [vmem:[#allocation13 + $0x70] sm:$0xff]  ;;  %v6944_v13 = vld [vmem:[#allocation13 + $0x60] sm:$0xff] }
 0x805   :  { %1902 = vmatmul.f32.vlgmr.msra.gmra.mxu0 %v1801_v3  ;;  %1942 = vmatmul.f32.vlgmr.msra.gmra.mxu2 %v1801_v3  ;;  %v6875_v3 = vld [vmem:[#allocation10 + $0x130] sm:$0xff]  ;;  %9253 = vst [vmem:[#allocation54_spill] sm:$0xff] %v6936_v8 }
 0x806   :  { %2014 = vmatpush.msrb.mxu0 %v6860_v18  ;;  %2054 = vmatpush.msrb.mxu2 %v6863_v27  ;;  %9232 = vst [vmem:[#allocation43_spill] sm:$0xff] %v6875_v3  ;;  %v6878_v18 = vld [vmem:[#allocation10 + $0x100] sm:$0xff]  ;;  %v6881_v27 = vld [vmem:[#allocation10 + $0x110] sm:$0xff] }
 0x807   :  { %9233 = vst [vmem:[#allocation41_spill] sm:$0xff] %v6878_v18 }
 0x808   :  { %2015 = vmatpush.msrb.mxu0 %v6866_v54  ;;  %2055 = vmatpush.msrb.mxu2 %v6869_v14  ;;  %9234 = vst [vmem:[#allocation33_spill] sm:$0xff] %v6881_v27  ;;  %v6884_v54 = vld [vmem:[#allocation10 + $0xe0] sm:$0xff]  ;;  %v6887_v14 = vld [vmem:[#allocation10 + $0xf0] sm:$0xff] }
 0x809   :  { %9235 = vst [vmem:[#allocation47_spill] sm:$0xff] %v6884_v54 }
 0x80a   :  { %2016 = vmatpush.msrb.mxu0 %v6872_v23  ;;  %2056 = vmatpush.msrb.mxu2 %v6875_v3  ;;  %9236 = vst [vmem:[#allocation45_spill] sm:$0xff] %v6887_v14  ;;  %v6890_v23 = vld [vmem:[#allocation10 + $0xc0] sm:$0xff]  ;;  %v6893_v3 = vld [vmem:[#allocation10 + $0xd0] sm:$0xff]  ;;  %v1923_v42 = vpop.f32.mrf.mxu1 }
 0x80b   :  { %9237 = vst [vmem:[#allocation35_spill] sm:$0xff] %v6890_v23 }
 0x80c   :  { %2017 = vmatpush.msrb.mxu0 %v6878_v18  ;;  %2057 = vmatpush.msrb.mxu2 %v6881_v27  ;;  %9238 = vst [vmem:[#allocation51_spill] sm:$0xff] %v6893_v3  ;;  %v6896_v18 = vld [vmem:[#allocation10 + $0xa0] sm:$0xff]  ;;  %v6899_v27 = vld [vmem:[#allocation10 + $0xb0] sm:$0xff] }
 0x80d   :  { %9239 = vst [vmem:[#allocation49_spill] sm:$0xff] %v6896_v18 }
 0x80e   :  { %2018 = vmatpush.msrb.mxu0 %v6884_v54  ;;  %2058 = vmatpush.msrb.mxu2 %v6887_v14  ;;  %9240 = vst [vmem:[#allocation38_spill] sm:$0xff] %v6899_v27  ;;  %v6902_v54 = vld [vmem:[#allocation10 + $0x80] sm:$0xff]  ;;  %v6905_v14 = vld [vmem:[#allocation10 + $0x90] sm:$0xff] }
 0x80f   :  { %9241 = vst [vmem:[#allocation55_spill] sm:$0xff] %v6902_v54 }
 0x810   :  { %2019 = vmatpush.msrb.mxu0 %v6890_v23  ;;  %2059 = vmatpush.msrb.mxu2 %v6893_v3  ;;  %9242 = vst [vmem:[#allocation53_spill] sm:$0xff] %v6905_v14  ;;  %v6908_v23 = vld [vmem:[#allocation10 + $0x60] sm:$0xff]  ;;  %v6911_v3 = vld [vmem:[#allocation10 + $0x70] sm:$0xff] }
 0x811   :  { %9243 = vst [vmem:[#allocation42_spill] sm:$0xff] %v6908_v23 }
 0x812   :  { %2020 = vmatpush.msrb.mxu0 %v6896_v18  ;;  %2060 = vmatpush.msrb.mxu2 %v6899_v27  ;;  %9244 = vst [vmem:[#allocation59_spill] sm:$0xff] %v6911_v3  ;;  %v6914_v18 = vld [vmem:[#allocation10 + $0x40] sm:$0xff]  ;;  %v6917_v27 = vld [vmem:[#allocation10 + $0x50] sm:$0xff] }
 0x813   :  { %9245 = vst [vmem:[#allocation57_spill] sm:$0xff] %v6914_v18 }
 0x814   :  { %2021 = vmatpush.msrb.mxu0 %v6902_v54  ;;  %2061 = vmatpush.msrb.mxu2 %v6905_v14  ;;  %9246 = vst [vmem:[#allocation46_spill] sm:$0xff] %v6917_v27  ;;  %v6920_v54 = vld [vmem:[#allocation10 + $0x20] sm:$0xff]  ;;  %v6923_v14 = vld [vmem:[#allocation10 + $0x30] sm:$0xff] }
 0x815   :  { %9247 = vst [vmem:[#allocation63_spill] sm:$0xff] %v6920_v54 }
 0x816   :  { %2022 = vmatpush.msrb.mxu0 %v6908_v23  ;;  %2062 = vmatpush.msrb.mxu2 %v6911_v3  ;;  %9248 = vst [vmem:[#allocation61_spill] sm:$0xff] %v6923_v14  ;;  %v6926_v23 = vld [vmem:[#allocation10] sm:$0xff]  ;;  %v6929_v3 = vld [vmem:[#allocation10 + $0x10] sm:$0xff] }
 0x817   :  { %9249 = vst [vmem:[#allocation50_spill] sm:$0xff] %v6926_v23 }
 0x818   :  { %2023 = vmatpush.msrb.mxu0 %v6914_v18  ;;  %2063 = vmatpush.msrb.mxu2 %v6917_v27  ;;  %9250 = vst [vmem:[#allocation67_spill] sm:$0xff] %v6929_v3  ;;  %v6932_v18 = vld [vmem:[#allocation13 + $0x78] sm:$0xff]  ;;  %v9252_v27 = vld [vmem:[#allocation83_spill] sm:$0xff] }
 0x819   :  { %9251 = vst [vmem:[#allocation65_spill] sm:$0xff] %v6932_v18 }
 0x81a   :  { %2024 = vmatpush.msrb.mxu0 %v6920_v54  ;;  %2064 = vmatpush.msrb.mxu2 %v6923_v14  ;;  %v9254_v54 = vld [vmem:[#allocation82_spill] sm:$0xff]  ;;  %v6940_v14 = vld [vmem:[#allocation13 + $0x68] sm:$0xff]  ;;  %9257 = vst [vmem:[#allocation69_spill] sm:$0xff] %v6944_v13 }
 0x81b   :  { %9255 = vst [vmem:[#allocation71_spill] sm:$0xff] %v6940_v14 }
 0x81c   :  { %2025 = vmatpush.msrb.mxu0 %v6926_v23  ;;  %2065 = vmatpush.msrb.mxu2 %v6929_v3  ;;  %v9256_v23 = vld [vmem:[#allocation74_spill] sm:$0xff]  ;;  %v9258_v3 = vld [vmem:[#allocation27_spill] sm:$0xff] }
 0x81e   :  { %2134 = vmatpush.msra.mxu0 %v6932_v18  ;;  %2186 = vmatpush.msra.mxu2 %v9252_v27  ;;  %v6948_v18 = vld [vmem:[#allocation13 + $0x58] sm:$0xff]  ;;  %v9260_v27 = vld [vmem:[#allocation28_spill] sm:$0xff] }
 0x81f   :  { %9259 = vst [vmem:[#allocation58_spill] sm:$0xff] %v6948_v18 }
 0x820   :  { %2135 = vmatpush.msra.mxu0 %v6936_v8  ;;  %2187 = vmatpush.msra.mxu2 %v9254_v54  ;;  %v6952_v8 = vld [vmem:[#allocation13 + $0x50] sm:$0xff] }
 0x821   :  { %9261 = vst [vmem:[#allocation75_spill] sm:$0xff] %v6952_v8  ;;  %v9262_v54 = vld [vmem:[#allocation85_spill] sm:$0xff] }
 0x822   :  { %2136 = vmatpush.msra.mxu0 %v6940_v14  ;;  %2188 = vmatpush.msra.mxu2 %v9256_v23  ;;  %v6956_v14 = vld [vmem:[#allocation13 + $0x48] sm:$0xff]  ;;  %v9264_v23 = vld [vmem:[#allocation89_spill] sm:$0xff] }
 0x823   :  { %9263 = vst [vmem:[#allocation73_spill] sm:$0xff] %v6956_v14 }
 0x824   :  { %2137 = vmatpush.msra.mxu0 %v6944_v13  ;;  %2189 = vmatpush.msra.mxu2 %v9258_v3  ;;  %v6960_v13 = vld [vmem:[#allocation13 + $0x40] sm:$0xff]  ;;  %v9266_v3 = vld [vmem:[#allocation93_spill] sm:$0xff] }
 0x825   :  { %9265 = vst [vmem:[#allocation62_spill] sm:$0xff] %v6960_v13 }
 0x826   :  { %2138 = vmatpush.msra.mxu0 %v6948_v18  ;;  %2190 = vmatpush.msra.mxu2 %v9260_v27  ;;  %v6964_v18 = vld [vmem:[#allocation13 + $0x38] sm:$0xff]  ;;  %v9268_v27 = vld [vmem:[#allocation97_spill] sm:$0xff] }
 0x827   :  { %9267 = vst [vmem:[#allocation77_spill] sm:$0xff] %v6964_v18 }
 0x828   :  { %2139 = vmatpush.msra.mxu0 %v6952_v8  ;;  %2191 = vmatpush.msra.mxu2 %v9262_v54  ;;  %v6968_v8 = vld [vmem:[#allocation13 + $0x30] sm:$0xff] }
 0x829   :  { %9269 = vst [vmem:[#allocation78_spill] sm:$0xff] %v6968_v8  ;;  %v9270_v54 = vld [vmem:[#allocation101_spill] sm:$0xff] }
 0x82a   :  { %2140 = vmatpush.msra.mxu0 %v6956_v14  ;;  %2192 = vmatpush.msra.mxu2 %v9264_v23  ;;  %v6972_v14 = vld [vmem:[#allocation13 + $0x28] sm:$0xff] }
 0x82b   :  { %9271 = vst [vmem:[#allocation66_spill] sm:$0xff] %v6972_v14  ;;  %v9272_v23 = vld [vmem:[#allocation40_spill] sm:$0xff] }
 0x82c   :  { %2141 = vmatpush.msra.mxu0 %v6960_v13  ;;  %2193 = vmatpush.msra.mxu2 %v9266_v3  ;;  %v6976_v13 = vld [vmem:[#allocation13 + $0x20] sm:$0xff]  ;;  %v9274_v3 = vld [vmem:[#allocation105_spill] sm:$0xff] }
 0x82d   :  { %9273 = vst [vmem:[#allocation81_spill] sm:$0xff] %v6976_v13 }
 0x82e   :  { %2142 = vmatpush.msra.mxu0 %v6964_v18  ;;  %2194 = vmatpush.msra.mxu2 %v9268_v27  ;;  %v6980_v18 = vld [vmem:[#allocation13 + $0x18] sm:$0xff]  ;;  %v9276_v27 = vld [vmem:[#allocation44_spill] sm:$0xff] }
 0x82f   :  { %9275 = vst [vmem:[#allocation80_spill] sm:$0xff] %v6980_v18 }
 0x830   :  { %2143 = vmatpush.msra.mxu0 %v6968_v8  ;;  %2195 = vmatpush.msra.mxu2 %v9270_v54  ;;  %v6984_v8 = vld [vmem:[#allocation13 + $0x10] sm:$0xff] }
 0x831   :  { %9277 = vst [vmem:[#allocation70_spill] sm:$0xff] %v6984_v8  ;;  %v9278_v54 = vld [vmem:[#allocation109_spill] sm:$0xff] }
 0x832   :  { %2144 = vmatpush.msra.mxu0 %v6972_v14  ;;  %2196 = vmatpush.msra.mxu2 %v9272_v23  ;;  %v6988_v14 = vld [vmem:[#allocation13 + $0x8] sm:$0xff] }
 0x833   :  { %9279 = vst [vmem:[#allocation83_spill] sm:$0xff] %v6988_v14  ;;  %v9280_v23 = vld [vmem:[#allocation48_spill] sm:$0xff] }
 0x834   :  { %2145 = vmatpush.msra.mxu0 %v6976_v13  ;;  %2197 = vmatpush.msra.mxu2 %v9274_v3  ;;  %v6992_v13 = vld [vmem:[#allocation13] sm:$0xff]  ;;  %v9282_v3 = vld [vmem:[#allocation113_spill] sm:$0xff] }
 0x835   :  { %9281 = vst [vmem:[#allocation82_spill] sm:$0xff] %v6992_v13 }
 0x836   :  { %2146 = vmatpush.msra.mxu0 %v6980_v18  ;;  %2198 = vmatpush.msra.mxu2 %v9276_v27  ;;  %v9283_v27 = vld [vmem:[#allocation117_spill] sm:$0xff] }
 0x838   :  { %2147 = vmatpush.msra.mxu0 %v6984_v8  ;;  %2199 = vmatpush.msra.mxu2 %v9278_v54  ;;  %v9284_v54 = vld [vmem:[#allocation52_spill] sm:$0xff] }
 0x83a   :  { %2148 = vmatpush.msra.mxu0 %v6988_v14  ;;  %2200 = vmatpush.msra.mxu2 %v9280_v23 }
 0x83c   :  { %2149 = vmatpush.msra.mxu0 %v6992_v13  ;;  %2201 = vmatpush.msra.mxu2 %v9282_v3 }
 0x87a   :  { %v1823_v18 = vpop.f32.mrf.mxu0 }
 0x87b   :  { %v1824_v5 = vadd.f32 %v9283_v27, %v1823_v18 }
 0x87d   :  { %v1844_v49 = vadd.f32 %v1843_v22, %v1824_v5  ;;  %v6998_v5 = vld [vmem:[#allocation8 + $0x18] sm:$0xff] }
 0x87e   :  { %9285 = vst [vmem:[#allocation74_spill] sm:$0xff] %v6998_v5 }
 0x87f   :  { %v3287_v8 = vmul.f32 -1.442695, %v1844_v49 }
 0x880   :  { %v1863_v44 = vpop.f32.mrf.mxu2 }
 0x881   :  { %3399 = vpow2.f32 %v3287_v8  ;;  %v1864_v59 = vadd.f32 %v9284_v54, %v1863_v44 }
 0x882   :  { %v1903_v22 = vpop.f32.mrf.mxu0 }
 0x883   :  { %v1884_v14 = vadd.f32 %v1883_v36, %v1864_v59 }
 0x885   :  { %v3288_v50 = vmul.f32 -1.442695, %v1884_v14  ;;  %v7001_v14 = vld [vmem:[#allocation8 + $0x10] sm:$0xff] }
 0x887   :  { %v3400_v23 = vpop.eup %3399  ;;  %3401 = vpow2.f32 %v3288_v50 }
 0x888   :  { %v1969_v31 = vadd.f32 1.0, %v3400_v23  ;;  %v1943_v18 = vpop.f32.mrf.mxu2  ;;  %v1963_v23 = vpop.f32.mrf.mxu3 }
 0x889   :  { %v1944_v44 = vadd.f32 %v6998_v5, %v1943_v18 }
 0x88a   :  { %3403 = vrcp.f32 %v1969_v31  ;;  %v1981_v49 = vand.u32 2147483648, %v1969_v31  ;;  %v1979_v36 = vand.u32 2147483647, %v1969_v31  ;;  %vm1975_vm1 = vweird.f32 %v1969_v31 }
 0x88b   :  { %v1964_v9 = vadd.f32 %v1963_v23, %v1944_v44  ;;  %v9306_v23 = vld [vmem:[#allocation119_spill] sm:$0xff] }
 0x88c   :  { %vm1980_vm3 = vcmp.eq.f32.partialorder %v1979_v36, 8.507059e+37 }
 0x88d   :  { %v3402_v13 = vpop.eup %3401 }
 0x88e   :  { %v1988_v6 = vadd.f32 1.0, %v3402_v13  ;;  %v1904_v13 = vadd.f32 %v7001_v14, %v1903_v22 }
 0x890   :  { %v3404_v3 = vpop.eup %3403  ;;  %3405 = vrcp.f32 %v1988_v6  ;;  %v2000_v45 = vand.u32 2147483648, %v1988_v6  ;;  %vm1994_vm5 = vweird.f32 %v1988_v6  ;;  %v1998_v22 = vand.u32 2147483647, %v1988_v6 }
 0x891   :  { %v1971_v38 = vmul.f32 %v3404_v3, %v1969_v31  ;;  %vm1976_vm0 = vweird.f32 %v3404_v3 }
 0x892   :  { %vm1977_vm2 = vmor %vm1975_vm1, %vm1976_vm0  ;;  %vm1999_vm7 = vcmp.eq.f32.partialorder %v1998_v22, 8.507059e+37  ;;  %v9310_v22 = vld [vmem:[#allocation135_spill] sm:$0xff] }
 0x893   :  { %v1972_v27 = vsub.f32 1.0, %v1971_v38  ;;  %v1982_v38 = vor.u32 1.1754944e-38, %v1981_v49  ;;  %v2001_v49 = vor.u32 1.1754944e-38, %v2000_v45  ;;  %v7023_v45 = vld [vmem:[#allocation7 + $0x3a8] sm:$0xff] }
 0x895   :  { %v1973_v8 = vmul.f32 %v3404_v3, %v1972_v27  ;;  %v1924_v27 = vadd.f32 %v1923_v42, %v1904_v13  ;;  %v9299_v42 = vld [vmem:[#allocation91_spill] sm:$0xff]  ;;  %v7089_v13 = vld [vmem:[#allocation7 + $0x248] sm:$0xff] }
 0x896   :  { %v3406_v59 = vpop.eup %3405 }
 0x897   :  { %v1990_v50 = vmul.f32 %v3406_v59, %v1988_v6  ;;  %v1974_v54 = vadd.f32 %v3404_v3, %v1973_v8  ;;  %vm1995_vm4 = vweird.f32 %v3406_v59  ;;  %v7083_v6 = vld [vmem:[#allocation7 + $0x268] sm:$0xff] }
 0x898   :  { %vm1996_vm6 = vmor %vm1994_vm5, %vm1995_vm4 }
 0x899   :  { %v1991_v41 = vsub.f32 1.0, %v1990_v50  ;;  %v1978_v37 = vsel %vm1977_vm2, %v3404_v3, %v1974_v54  ;;  %v9304_v50 = vld [vmem:[#allocation111_spill] sm:$0xff] }
 0x89a   :  { %v1983_v18 = vsel %vm1980_vm3, %v1982_v38, %v1978_v37  ;;  %v9305_v54 = vld [vmem:[#allocation115_spill] sm:$0xff] }
 0x89b   :  { %v2004_v5 = vmul.f32 %v1983_v18, %v1964_v9  ;;  %v1992_v15 = vmul.f32 %v3406_v59, %v1991_v41  ;;  %v9300_v9 = vld [vmem:[#allocation95_spill] sm:$0xff] }
 0x89c   :  { %v9301_v41 = vld [vmem:[#allocation99_spill] sm:$0xff] }
 0x89d   :  { %v2005_v61 = vadd.f32 %v2004_v5, %v1924_v27  ;;  %v1993_v62 = vadd.f32 %v3406_v59, %v1992_v15  ;;  %v7077_v15 = vld [vmem:[#allocation7 + $0x288] sm:$0xff]  ;;  %v9302_v5 = vld [vmem:[#allocation103_spill] sm:$0xff] }
 0x89e   :  { %v9307_v38 = vld [vmem:[#allocation123_spill] sm:$0xff] }
 0x89f   :  { %3407 = vtanh.f32 %v2005_v61  ;;  %v1997_v31 = vsel %vm1996_vm6, %v3406_v59, %v1993_v62  ;;  %v7011_v61 = vld [vmem:[#allocation7 + $0x3e8] sm:$0xff]  ;;  %v9298_v62 = vld [vmem:[#allocation87_spill] sm:$0xff] }
 0x8a0   :  { %v2002_v3 = vsel %vm1999_vm7, %v2001_v49, %v1997_v31  ;;  %v9303_v59 = vld [vmem:[#allocation107_spill] sm:$0xff]  ;;  %v9313_v49 = vld [vmem:[#allocation84_spill] sm:$0xff] }
 0x8a1   :  { %v9308_v18 = vld [vmem:[#allocation127_spill] sm:$0xff] }
 0x8a2   :  { %v9309_v27 = vld [vmem:[#allocation131_spill] sm:$0xff] }
 0x8a3   :  { %v9311_v31 = vld [vmem:[#allocation139_spill] sm:$0xff] }
 0x8a5   :  { %v3408_v8 = vpop.eup %3407 }
 0x8a6   :  { %v2007_v44 = vsub.f32 %v6662_v11, %v3408_v8  ;;  %v7017_v11 = vld [vmem:[#allocation7 + $0x3c8] sm:$0xff] }
 0x8a8   :  { %v2008_v36 = vmul.f32 %v2007_v44, %v2002_v3  ;;  %v9314_v44 = vld [vmem:[#allocation86_spill] sm:$0xff]  ;;  %v9315_v3 = vld [vmem:[#allocation88_spill] sm:$0xff] }
 0x8aa   :  { %v7005_v37 = vadd.f32 %v3408_v8, %v2008_v36  ;;  %v9312_v8 = vld [vmem:[#allocation142_spill] sm:$0xff] }
 0x8ac   :  { %2026 = vmatmul.f32.vlgmr.msrb.gmra.mxu0 %v7005_v37  ;;  %2046 = vmatmul.f32.vlgmr.msrb.gmra.mxu1 %v7005_v37 }
 0x8ad   :  { %2066 = vmatmul.f32.vlgmr.msrb.gmra.mxu2 %v7005_v37  ;;  %2086 = vmatmul.f32.vlgmr.msrb.gmra.mxu3 %v7005_v37 }
 0x8ae   :  { %2226 = vmatpush.msrb.mxu0 %v7011_v61  ;;  %2266 = vmatpush.msrb.mxu2 %v6494_v21  ;;  %v7029_v21 = vld [vmem:[#allocation7 + $0x388] sm:$0xff] }
 0x8af   :  { %2246 = vmatpush.msrb.mxu1 %v6497_v2  ;;  %2286 = vmatpush.msrb.mxu3 %v6500_v34  ;;  %v7035_v2 = vld [vmem:[#allocation7 + $0x368] sm:$0xff] }
 0x8b0   :  { %2227 = vmatpush.msrb.mxu0 %v7017_v11  ;;  %2267 = vmatpush.msrb.mxu2 %v6504_v32  ;;  %v7041_v34 = vld [vmem:[#allocation7 + $0x348] sm:$0xff] }
 0x8b1   :  { %2247 = vmatpush.msrb.mxu1 %v6507_v4  ;;  %2287 = vmatpush.msrb.mxu3 %v6510_v63  ;;  %v7047_v32 = vld [vmem:[#allocation7 + $0x328] sm:$0xff] }
 0x8b2   :  { %2228 = vmatpush.msrb.mxu0 %v7023_v45  ;;  %2268 = vmatpush.msrb.mxu2 %v6514_v16  ;;  %v9286_v4 = vld [vmem:[#allocation56_spill] sm:$0xff]  ;;  %v9287_v16 = vld [vmem:[#allocation121_spill] sm:$0xff] }
 0x8b3   :  { %2248 = vmatpush.msrb.mxu1 %v6517_v7  ;;  %2288 = vmatpush.msrb.mxu3 %v6520_v33  ;;  %v7053_v63 = vld [vmem:[#allocation7 + $0x308] sm:$0xff]  ;;  %v9289_v33 = vld [vmem:[#allocation125_spill] sm:$0xff] }
 0x8b4   :  { %2229 = vmatpush.msrb.mxu0 %v7029_v21  ;;  %2269 = vmatpush.msrb.mxu2 %v6524_v47  ;;  %v9288_v7 = vld [vmem:[#allocation60_spill] sm:$0xff] }
 0x8b5   :  { %2249 = vmatpush.msrb.mxu1 %v6527_v46  ;;  %2289 = vmatpush.msrb.mxu3 %v6530_v10  ;;  %v7059_v47 = vld [vmem:[#allocation7 + $0x2e8] sm:$0xff]  ;;  %v9291_v10 = vld [vmem:[#allocation129_spill] sm:$0xff] }
 0x8b6   :  { %2230 = vmatpush.msrb.mxu0 %v7035_v2  ;;  %2270 = vmatpush.msrb.mxu2 %v6534_v56  ;;  %v9290_v46 = vld [vmem:[#allocation64_spill] sm:$0xff] }
 0x8b7   :  { %2250 = vmatpush.msrb.mxu1 %v6537_v52  ;;  %2290 = vmatpush.msrb.mxu3 %v6540_v43  ;;  %v9292_v56 = vld [vmem:[#allocation68_spill] sm:$0xff]  ;;  %v9293_v43 = vld [vmem:[#allocation133_spill] sm:$0xff] }
 0x8b8   :  { %2231 = vmatpush.msrb.mxu0 %v7041_v34  ;;  %2271 = vmatpush.msrb.mxu2 %v6544_v26  ;;  %v7065_v52 = vld [vmem:[#allocation7 + $0x2c8] sm:$0xff] }
 0x8b9   :  { %2251 = vmatpush.msrb.mxu1 %v6547_v39  ;;  %2291 = vmatpush.msrb.mxu3 %v6550_v12  ;;  %v9294_v26 = vld [vmem:[#allocation72_spill] sm:$0xff]  ;;  %v9295_v39 = vld [vmem:[#allocation137_spill] sm:$0xff] }
 0x8ba   :  { %2232 = vmatpush.msrb.mxu0 %v7047_v32  ;;  %2272 = vmatpush.msrb.mxu2 %v6554_v24  ;;  %v7071_v12 = vld [vmem:[#allocation7 + $0x2a8] sm:$0xff] }
 0x8bb   :  { %2252 = vmatpush.msrb.mxu1 %v6557_v60  ;;  %2292 = vmatpush.msrb.mxu3 %v9286_v4  ;;  %v9296_v24 = vld [vmem:[#allocation76_spill] sm:$0xff]  ;;  %v9297_v60 = vld [vmem:[#allocation79_spill] sm:$0xff] }
 0x8bc   :  { %2233 = vmatpush.msrb.mxu0 %v7053_v63  ;;  %2273 = vmatpush.msrb.mxu2 %v9287_v16  ;;  %v7103_v16 = vld [vmem:[#allocation11] sm:$0xff] }
 0x8bd   :  { %2253 = vmatpush.msrb.mxu1 %v9288_v7  ;;  %2293 = vmatpush.msrb.mxu3 %v9289_v33  ;;  %v7106_v33 = vld [vmem:[#allocation11 + $0x8] sm:$0xff] }
 0x8be   :  { %2234 = vmatpush.msrb.mxu0 %v7059_v47  ;;  %2274 = vmatpush.msrb.mxu2 %v9290_v46 }
 0x8bf   :  { %2254 = vmatpush.msrb.mxu1 %v9291_v10  ;;  %2294 = vmatpush.msrb.mxu3 %v9292_v56 }
 0x8c0   :  { %2235 = vmatpush.msrb.mxu0 %v7065_v52  ;;  %2275 = vmatpush.msrb.mxu2 %v9293_v43 }
 0x8c1   :  { %2255 = vmatpush.msrb.mxu1 %v9294_v26  ;;  %2295 = vmatpush.msrb.mxu3 %v9295_v39 }
 0x8c2   :  { %2236 = vmatpush.msrb.mxu0 %v7071_v12  ;;  %2276 = vmatpush.msrb.mxu2 %v9296_v24 }
 0x8c3   :  { %2256 = vmatpush.msrb.mxu1 %v9297_v60  ;;  %2296 = vmatpush.msrb.mxu3 %v9298_v62 }
 0x8c4   :  { %2237 = vmatpush.msrb.mxu0 %v7077_v15  ;;  %2277 = vmatpush.msrb.mxu2 %v9299_v42 }
 0x8c5   :  { %2257 = vmatpush.msrb.mxu1 %v9300_v9  ;;  %2297 = vmatpush.msrb.mxu3 %v9301_v41 }
 0x8c6   :  { %2238 = vmatpush.msrb.mxu0 %v7083_v6  ;;  %2278 = vmatpush.msrb.mxu2 %v9302_v5 }
 0x8c7   :  { %2258 = vmatpush.msrb.mxu1 %v9303_v59  ;;  %2298 = vmatpush.msrb.mxu3 %v9304_v50 }
 0x8c8   :  { %2239 = vmatpush.msrb.mxu0 %v7089_v13  ;;  %2279 = vmatpush.msrb.mxu2 %v9305_v54 }
 0x8c9   :  { %2259 = vmatpush.msrb.mxu1 %v9306_v23  ;;  %2299 = vmatpush.msrb.mxu3 %v9307_v38 }
 0x8ca   :  { %2240 = vmatpush.msrb.mxu0 %v9308_v18  ;;  %2280 = vmatpush.msrb.mxu2 %v9309_v27 }
 0x8cb   :  { %2260 = vmatpush.msrb.mxu1 %v9310_v22  ;;  %2300 = vmatpush.msrb.mxu3 %v9311_v31  ;;  %v7109_v22 = vld [vmem:[#allocation11 + $0x18] sm:$0xff] }
 0x8cc   :  { %2241 = vmatpush.msrb.mxu0 %v9312_v8  ;;  %2281 = vmatpush.msrb.mxu2 %v9313_v49 }
 0x8cd   :  { %2261 = vmatpush.msrb.mxu1 %v9314_v44  ;;  %2301 = vmatpush.msrb.mxu3 %v9315_v3  ;;  %v7112_v44 = vld [vmem:[#allocation11 + $0x10] sm:$0xff] }
 0x929   :  { %v2027_v36 = vpop.f32.mrf.mxu0  ;;  %v2047_v4 = vpop.f32.mrf.mxu1 }
 0x92a   :  { %v2028_v7 = vadd.f32 %v7103_v16, %v2027_v36  ;;  %v2048_v46 = vadd.f32 %v7106_v33, %v2047_v4 }
 0x92c   :  { %v3289_v10 = vmul.f32 -1.442695, %v2028_v7  ;;  %v3290_v56 = vmul.f32 -1.442695, %v2048_v46 }
 0x92e   :  { %3409 = vpow2.f32 %v3289_v10 }
 0x92f   :  { %3411 = vpow2.f32 %v3290_v56 }
 0x930   :  { %v2087_v54 = vpop.f32.mrf.mxu3  ;;  %v2067_v18 = vpop.f32.mrf.mxu2 }
 0x931   :  { %v2088_v31 = vadd.f32 %v7109_v22, %v2087_v54  ;;  %v2068_v3 = vadd.f32 %v7112_v44, %v2067_v18  ;;  %v7181_v54 = vld [vmem:[#allocation7 + $0x160] sm:$0xff]  ;;  %v9331_v18 = vld [vmem:[#allocation120_spill] sm:$0xff] }
 0x934   :  { %v3410_v43 = vpop.eup %3409 }
 0x935   :  { %v3412_v26 = vpop.eup %3411  ;;  %v2093_v39 = vadd.f32 1.0, %v3410_v43 }
 0x936   :  { %v2112_v24 = vadd.f32 1.0, %v3412_v26 }
 0x937   :  { %3413 = vrcp.f32 %v2093_v39  ;;  %v2105_v5 = vand.u32 2147483648, %v2093_v39  ;;  %v2103_v50 = vand.u32 2147483647, %v2093_v39  ;;  %vm2099_vm9 = vweird.f32 %v2093_v39 }
 0x938   :  { %3415 = vrcp.f32 %v2112_v24  ;;  %v2124_v10 = vand.u32 2147483648, %v2112_v24  ;;  %vm2118_vm13 = vweird.f32 %v2112_v24  ;;  %v2122_v56 = vand.u32 2147483647, %v2112_v24 }
 0x939   :  { %v2106_v27 = vor.u32 1.1754944e-38, %v2105_v5  ;;  %vm2104_vm11 = vcmp.eq.f32.partialorder %v2103_v50, 8.507059e+37  ;;  %v7120_v5 = vld [vmem:[#allocation7 + $0x3f8] sm:$0xff]  ;;  %v9329_v50 = vld [vmem:[#allocation116_spill] sm:$0xff] }
 0x93a   :  { %vm2123_vm15 = vcmp.eq.f32.partialorder %v2122_v56, 8.507059e+37  ;;  %v7209_v56 = vld [vmem:[#allocation7 + $0x80] sm:$0xff] }
 0x93d   :  { %v3414_v60 = vpop.eup %3413 }
 0x93e   :  { %v3416_v62 = vpop.eup %3415  ;;  %v2095_v42 = vmul.f32 %v3414_v60, %v2093_v39  ;;  %vm2100_vm8 = vweird.f32 %v3414_v60  ;;  %v2125_v39 = vor.u32 1.1754944e-38, %v2124_v10  ;;  %v9336_v10 = vld [vmem:[#allocation130_spill] sm:$0xff] }
 0x93f   :  { %v2114_v41 = vmul.f32 %v3416_v62, %v2112_v24  ;;  %vm2101_vm10 = vmor %vm2099_vm9, %vm2100_vm8  ;;  %vm2119_vm12 = vweird.f32 %v3416_v62  ;;  %v7124_v24 = vld [vmem:[#allocation7 + $0x3d8] sm:$0xff] }
 0x940   :  { %v2096_v9 = vsub.f32 1.0, %v2095_v42  ;;  %vm2120_vm14 = vmor %vm2118_vm13, %vm2119_vm12 }
 0x941   :  { %v2115_v38 = vsub.f32 1.0, %v2114_v41 }
 0x942   :  { %v2097_v59 = vmul.f32 %v3414_v60, %v2096_v9 }
 0x943   :  { %v2116_v4 = vmul.f32 %v3416_v62, %v2115_v38  ;;  %v7185_v38 = vld [vmem:[#allocation7 + $0x140] sm:$0xff] }
 0x944   :  { %v2098_v23 = vadd.f32 %v3414_v60, %v2097_v59  ;;  %v7177_v59 = vld [vmem:[#allocation7 + $0x180] sm:$0xff] }
 0x945   :  { %v2117_v46 = vadd.f32 %v3416_v62, %v2116_v4  ;;  %v7201_v4 = vld [vmem:[#allocation7 + $0xc0] sm:$0xff] }
 0x946   :  { %v2102_v8 = vsel %vm2101_vm10, %v3414_v60, %v2098_v23  ;;  %v9330_v23 = vld [vmem:[#allocation118_spill] sm:$0xff] }
 0x947   :  { %v2107_v49 = vsel %vm2104_vm11, %v2106_v27, %v2102_v8  ;;  %v2121_v43 = vsel %vm2120_vm14, %v3416_v62, %v2117_v46  ;;  %v7132_v62 = vld [vmem:[#allocation7 + $0x398] sm:$0xff]  ;;  %v7189_v27 = vld [vmem:[#allocation7 + $0x120] sm:$0xff] }
 0x948   :  { %v2128_v36 = vmul.f32 %v2107_v49, %v2088_v31  ;;  %v2126_v42 = vsel %vm2123_vm15, %v2125_v39, %v2121_v43  ;;  %v9332_v31 = vld [vmem:[#allocation122_spill] sm:$0xff]  ;;  %v7193_v8 = vld [vmem:[#allocation7 + $0x100] sm:$0xff]  ;;  %v9333_v49 = vld [vmem:[#allocation124_spill] sm:$0xff] }
 0x949   :  { %v7205_v46 = vld [vmem:[#allocation7 + $0xa0] sm:$0xff]  ;;  %v9337_v43 = vld [vmem:[#allocation132_spill] sm:$0xff]  ;;  %v9338_v39 = vld [vmem:[#allocation134_spill] sm:$0xff] }
 0x94a   :  { %v2129_v7 = vadd.f32 %v2128_v36, %v2068_v3  ;;  %v7197_v3 = vld [vmem:[#allocation7 + $0xe0] sm:$0xff]  ;;  %v9334_v36 = vld [vmem:[#allocation126_spill] sm:$0xff] }
 0x94c   :  { %3417 = vtanh.f32 %v2129_v7  ;;  %v9335_v7 = vld [vmem:[#allocation128_spill] sm:$0xff] }
 0x952   :  { %v3418_v26 = vpop.eup %3417 }
 0x953   :  { %v2131_v60 = vsub.f32 %v7005_v37, %v3418_v26  ;;  %v7128_v37 = vld [vmem:[#allocation7 + $0x3b8] sm:$0xff] }
 0x955   :  { %v2132_v9 = vmul.f32 %v2131_v60, %v2126_v42  ;;  %v7217_v60 = vld [vmem:[#allocation7 + $0x40] sm:$0xff]  ;;  %v9339_v42 = vld [vmem:[#allocation136_spill] sm:$0xff] }
 0x957   :  { %v7116_v41 = vadd.f32 %v3418_v26, %v2132_v9  ;;  %v7213_v26 = vld [vmem:[#allocation7 + $0x60] sm:$0xff] }
 0x958   :  { %v7221_v9 = vld [vmem:[#allocation7 + $0x20] sm:$0xff] }
 0x959   :  { %2150 = vmatmul.f32.vlgmr.msra.gmra.mxu0 %v7116_v41  ;;  %2202 = vmatmul.f32.vlgmr.msra.gmra.mxu2 %v7116_v41  ;;  %9340 = vst [vmem:[#allocation27_spill] sm:$0xff] %v7221_v9 }
 0x95a   :  { %2306 = vmatpush.msra.mxu0 %v7120_v5  ;;  %2390 = vmatpush.msra.mxu2 %v6667_v55  ;;  %v7138_v55 = vld [vmem:[#allocation7 + $0x378] sm:$0xff] }
 0x95c   :  { %2307 = vmatpush.msra.mxu0 %v7124_v24  ;;  %2391 = vmatpush.msra.mxu2 %v6671_v19  ;;  %v9316_v19 = vld [vmem:[#allocation90_spill] sm:$0xff] }
 0x95e   :  { %2308 = vmatpush.msra.mxu0 %v7128_v37  ;;  %2392 = vmatpush.msra.mxu2 %v6675_v29  ;;  %v9317_v29 = vld [vmem:[#allocation92_spill] sm:$0xff] }
 0x960   :  { %2309 = vmatpush.msra.mxu0 %v7132_v62  ;;  %2393 = vmatpush.msra.mxu2 %v6679_v30  ;;  %v9318_v30 = vld [vmem:[#allocation94_spill] sm:$0xff] }
 0x961   :  { %2242 = vmatmul.f32.vlgmr.msrb.gmra.mxu0 %v7116_v41  ;;  %2282 = vmatmul.f32.vlgmr.msrb.gmra.mxu2 %v7116_v41 }
 0x962   :  { %2310 = vmatpush.msra.mxu0 %v7138_v55  ;;  %2394 = vmatpush.msra.mxu2 %v6685_v1  ;;  %v9319_v1 = vld [vmem:[#allocation96_spill] sm:$0xff] }
 0x964   :  { %2311 = vmatpush.msra.mxu0 %v6688_v25  ;;  %2395 = vmatpush.msra.mxu2 %v6691_v53  ;;  %v9320_v25 = vld [vmem:[#allocation98_spill] sm:$0xff]  ;;  %v9321_v53 = vld [vmem:[#allocation100_spill] sm:$0xff] }
 0x966   :  { %2312 = vmatpush.msra.mxu0 %v6694_v58  ;;  %2396 = vmatpush.msra.mxu2 %v6697_v48  ;;  %v9322_v58 = vld [vmem:[#allocation102_spill] sm:$0xff]  ;;  %v9323_v48 = vld [vmem:[#allocation104_spill] sm:$0xff] }
 0x968   :  { %2313 = vmatpush.msra.mxu0 %v6700_v20  ;;  %2397 = vmatpush.msra.mxu2 %v6703_v51  ;;  %v9324_v20 = vld [vmem:[#allocation106_spill] sm:$0xff]  ;;  %v9325_v51 = vld [vmem:[#allocation108_spill] sm:$0xff] }
 0x96a   :  { %2314 = vmatpush.msra.mxu0 %v6706_v0  ;;  %2398 = vmatpush.msra.mxu2 %v6709_v35  ;;  %v7165_v0 = vld [vmem:[#allocation7 + $0x1e0] sm:$0xff]  ;;  %v9326_v35 = vld [vmem:[#allocation110_spill] sm:$0xff] }
 0x96c   :  { %2315 = vmatpush.msra.mxu0 %v6712_v40  ;;  %2399 = vmatpush.msra.mxu2 %v6715_v28  ;;  %v7169_v40 = vld [vmem:[#allocation7 + $0x1c0] sm:$0xff]  ;;  %v9327_v28 = vld [vmem:[#allocation112_spill] sm:$0xff] }
 0x96e   :  { %2316 = vmatpush.msra.mxu0 %v6718_v17  ;;  %2400 = vmatpush.msra.mxu2 %v6721_v57  ;;  %v7173_v17 = vld [vmem:[#allocation7 + $0x1a0] sm:$0xff]  ;;  %v9328_v57 = vld [vmem:[#allocation114_spill] sm:$0xff] }
 0x970   :  { %2317 = vmatpush.msra.mxu0 %v9316_v19  ;;  %2401 = vmatpush.msra.mxu2 %v9317_v29  ;;  %v9341_v19 = vld [vmem:[#allocation138_spill] sm:$0xff]  ;;  %v7225_v29 = vld [vmem:[#allocation7] sm:$0xff] }
 0x971   :  { %9342 = vst [vmem:[#allocation28_spill] sm:$0xff] %v7225_v29 }
 0x972   :  { %2318 = vmatpush.msra.mxu0 %v9318_v30  ;;  %2402 = vmatpush.msra.mxu2 %v9319_v1  ;;  %v9343_v30 = vld [vmem:[#allocation140_spill] sm:$0xff] }
 0x973   :  { %v7229_v1 = vld [vmem:[#allocation7 + $0x1e8] sm:$0xff] }
 0x974   :  { %2319 = vmatpush.msra.mxu0 %v9320_v25  ;;  %2403 = vmatpush.msra.mxu2 %v9321_v53  ;;  %9344 = vst [vmem:[#allocation85_spill] sm:$0xff] %v7229_v1  ;;  %v7232_v25 = vld [vmem:[#allocation7 + $0x1c8] sm:$0xff] }
 0x975   :  { %9345 = vst [vmem:[#allocation89_spill] sm:$0xff] %v7232_v25  ;;  %v7235_v53 = vld [vmem:[#allocation7 + $0x1a8] sm:$0xff] }
 0x976   :  { %2320 = vmatpush.msra.mxu0 %v9322_v58  ;;  %2404 = vmatpush.msra.mxu2 %v9323_v48  ;;  %9346 = vst [vmem:[#allocation93_spill] sm:$0xff] %v7235_v53  ;;  %v7238_v58 = vld [vmem:[#allocation7 + $0x188] sm:$0xff] }
 0x977   :  { %9347 = vst [vmem:[#allocation97_spill] sm:$0xff] %v7238_v58  ;;  %v7241_v48 = vld [vmem:[#allocation7 + $0x168] sm:$0xff] }
 0x978   :  { %2321 = vmatpush.msra.mxu0 %v9324_v20  ;;  %2405 = vmatpush.msra.mxu2 %v9325_v51  ;;  %9348 = vst [vmem:[#allocation101_spill] sm:$0xff] %v7241_v48  ;;  %v7244_v20 = vld [vmem:[#allocation7 + $0x148] sm:$0xff] }
 0x979   :  { %2322 = vmatmul.f32.vlgmr.msra.gmra.mxu0 %v7116_v41  ;;  %9349 = vst [vmem:[#allocation40_spill] sm:$0xff] %v7244_v20  ;;  %v7247_v51 = vld [vmem:[#allocation7 + $0x128] sm:$0xff] }
 0x97a   :  { %2526 = vmatpush.msrb.mxu2 %v7165_v0  ;;  %2430 = vmatpush.msrb.mxu0 %v9326_v35  ;;  %9350 = vst [vmem:[#allocation105_spill] sm:$0xff] %v7247_v51  ;;  %v7250_v35 = vld [vmem:[#allocation7 + $0x108] sm:$0xff] }
 0x97b   :  { %9351 = vst [vmem:[#allocation44_spill] sm:$0xff] %v7250_v35 }
 0x97c   :  { %2527 = vmatpush.msrb.mxu2 %v7169_v40  ;;  %2431 = vmatpush.msrb.mxu0 %v9327_v28  ;;  %v7253_v28 = vld [vmem:[#allocation7 + $0xe8] sm:$0xff] }
 0x97d   :  { %9352 = vst [vmem:[#allocation109_spill] sm:$0xff] %v7253_v28 }
 0x97e   :  { %2528 = vmatpush.msrb.mxu2 %v7173_v17  ;;  %2432 = vmatpush.msrb.mxu0 %v9328_v57  ;;  %v7256_v57 = vld [vmem:[#allocation7 + $0xc8] sm:$0xff] }
 0x97f   :  { %9353 = vst [vmem:[#allocation48_spill] sm:$0xff] %v7256_v57 }
 0x980   :  { %2529 = vmatpush.msrb.mxu2 %v7177_v59  ;;  %2433 = vmatpush.msrb.mxu0 %v9329_v50  ;;  %v7259_v50 = vld [vmem:[#allocation7 + $0xa8] sm:$0xff] }
 0x981   :  { %9354 = vst [vmem:[#allocation113_spill] sm:$0xff] %v7259_v50 }
 0x982   :  { %2530 = vmatpush.msrb.mxu2 %v7181_v54  ;;  %2434 = vmatpush.msrb.mxu0 %v9330_v23  ;;  %v7262_v23 = vld [vmem:[#allocation7 + $0x88] sm:$0xff] }
 0x983   :  { %9355 = vst [vmem:[#allocation117_spill] sm:$0xff] %v7262_v23 }
 0x984   :  { %2531 = vmatpush.msrb.mxu2 %v7185_v38  ;;  %2435 = vmatpush.msrb.mxu0 %v9331_v18  ;;  %v7265_v18 = vld [vmem:[#allocation7 + $0x68] sm:$0xff] }
 0x985   :  { %9356 = vst [vmem:[#allocation52_spill] sm:$0xff] %v7265_v18 }
 0x986   :  { %2532 = vmatpush.msrb.mxu2 %v7189_v27  ;;  %2436 = vmatpush.msrb.mxu0 %v9332_v31  ;;  %v7268_v31 = vld [vmem:[#allocation7 + $0x48] sm:$0xff] }
 0x987   :  { %9357 = vst [vmem:[#allocation56_spill] sm:$0xff] %v7268_v31 }
 0x988   :  { %2533 = vmatpush.msrb.mxu2 %v7193_v8  ;;  %2437 = vmatpush.msrb.mxu0 %v9333_v49  ;;  %v7271_v49 = vld [vmem:[#allocation7 + $0x28] sm:$0xff] }
 0x989   :  { %9358 = vst [vmem:[#allocation121_spill] sm:$0xff] %v7271_v49 }
 0x98a   :  { %2534 = vmatpush.msrb.mxu2 %v7197_v3  ;;  %2438 = vmatpush.msrb.mxu0 %v9334_v36  ;;  %v7274_v36 = vld [vmem:[#allocation7 + $0x8] sm:$0xff] }
 0x98b   :  { %9359 = vst [vmem:[#allocation60_spill] sm:$0xff] %v7274_v36 }
 0x98c   :  { %2535 = vmatpush.msrb.mxu2 %v7201_v4  ;;  %2439 = vmatpush.msrb.mxu0 %v9335_v7  ;;  %v2155_v7 = vld [vmem:[#allocation5 + $0x20] sm:$0xff] }
 0x98e   :  { %2536 = vmatpush.msrb.mxu2 %v7205_v46  ;;  %2440 = vmatpush.msrb.mxu0 %v9336_v10  ;;  %v2157_v10 = vld [vmem:[#allocation2 + $0x20] sm:$0xff] }
 0x990   :  { %2537 = vmatpush.msrb.mxu2 %v7209_v56  ;;  %2441 = vmatpush.msrb.mxu0 %v9337_v43  ;;  %v2159_v43 = vsub.f32 1.0, %v2155_v7 }
 0x992   :  { %2538 = vmatpush.msrb.mxu2 %v7213_v26  ;;  %2442 = vmatpush.msrb.mxu0 %v9338_v39 }
 0x994   :  { %2539 = vmatpush.msrb.mxu2 %v7217_v60  ;;  %2443 = vmatpush.msrb.mxu0 %v9339_v42  ;;  %v7277_v42 = vld [vmem:[#allocation14] sm:$0xff] }
 0x995   :  { %9360 = vst [vmem:[#allocation125_spill] sm:$0xff] %v7277_v42 }
 0x996   :  { %2540 = vmatpush.msrb.mxu2 %v7221_v9  ;;  %2444 = vmatpush.msrb.mxu0 %v9341_v19 }
 0x998   :  { %2541 = vmatpush.msrb.mxu2 %v7225_v29  ;;  %2445 = vmatpush.msrb.mxu0 %v9343_v30  ;;  %v2158_v30 = vmul.f32 %v2157_v10, %v2155_v7  ;;  %v9368_v7 = vld [vmem:[#allocation36_spill] sm:$0xff]  ;;  %v9370_v10 = vld [vmem:[#allocation30_spill] sm:$0xff] }
 0x99a   :  { %2566 = vmatpush.msra.mxu0 %v7229_v1 }
 0x99c   :  { %2567 = vmatpush.msra.mxu0 %v7232_v25 }
 0x99e   :  { %2568 = vmatpush.msra.mxu0 %v7235_v53 }
 0x9a0   :  { %2569 = vmatpush.msra.mxu0 %v7238_v58 }
 0x9a2   :  { %2570 = vmatpush.msra.mxu0 %v7241_v48 }
 0x9a4   :  { %2571 = vmatpush.msra.mxu0 %v7244_v20 }
 0x9a6   :  { %2572 = vmatpush.msra.mxu0 %v7247_v51 }
 0x9a8   :  { %2573 = vmatpush.msra.mxu0 %v7250_v35 }
 0x9aa   :  { %2574 = vmatpush.msra.mxu0 %v7253_v28  ;;  %v9366_v28 = vld [vmem:[#allocation32_spill] sm:$0xff] }
 0x9ac   :  { %2575 = vmatpush.msra.mxu0 %v7256_v57  ;;  %v9365_v57 = vld [vmem:[#allocation146_spill] sm:$0xff] }
 0x9ae   :  { %2576 = vmatpush.msra.mxu0 %v7259_v50  ;;  %v9364_v50 = vld [vmem:[#allocation145_spill] sm:$0xff] }
 0x9b0   :  { %2577 = vmatpush.msra.mxu0 %v7262_v23  ;;  %v9362_v23 = vld [vmem:[#allocation143_spill] sm:$0xff] }
 0x9b2   :  { %2578 = vmatpush.msra.mxu0 %v7265_v18 }
 0x9b4   :  { %2579 = vmatpush.msra.mxu0 %v7268_v31 }
 0x9b6   :  { %2580 = vmatpush.msra.mxu0 %v7271_v49  ;;  %v9361_v49 = vld [vmem:[#allocation141_spill] sm:$0xff] }
 0x9b8   :  { %2581 = vmatpush.msra.mxu0 %v7274_v36  ;;  %v9363_v36 = vld [vmem:[#allocation144_spill] sm:$0xff] }
 0x9d6   :  { %v2151_v39 = vpop.f32.mrf.mxu0 }
 0x9d7   :  { %v2152_v19 = vadd.f32 %v7277_v42, %v2151_v39  ;;  %v9367_v39 = vld [vmem:[#allocation29_spill] sm:$0xff] }
 0x9d9   :  { %v2160_v18 = vmul.f32 %v2159_v43, %v2152_v19  ;;  %2163 = vst [vmem:[#allocation19 + $0x20] sm:$0xff] %v2152_v19  ;;  %v9377_v43 = vld [vmem:[#allocation47_spill] sm:$0xff]  ;;  %v9378_v19 = vld [vmem:[#allocation45_spill] sm:$0xff] }
 0x9db   :  { %v2161_v31 = vadd.f32 %v2160_v18, %v2158_v30  ;;  %v9369_v18 = vld [vmem:[#allocation34_spill] sm:$0xff]  ;;  %v9380_v30 = vld [vmem:[#allocation51_spill] sm:$0xff] }
 0x9dd   :  { %2165 = vst [vmem:[#allocation17 + $0x20] sm:$0xff] %v2161_v31  ;;  %2182 = vmatmul.f32.vlgmr.msra.gmra.mxu1 %v2161_v31  ;;  %2222 = vmatmul.f32.vlgmr.msra.gmra.mxu3 %v2161_v31 }
 0x9de   :  { %2370 = vmatpush.msra.mxu1 %v9361_v49  ;;  %2410 = vmatpush.msra.mxu3 %v9362_v23  ;;  %v9371_v49 = vld [vmem:[#allocation39_spill] sm:$0xff]  ;;  %v9372_v23 = vld [vmem:[#allocation37_spill] sm:$0xff] }
 0x9e0   :  { %2371 = vmatpush.msra.mxu1 %v9363_v36  ;;  %2411 = vmatpush.msra.mxu3 %v9364_v50  ;;  %v9373_v36 = vld [vmem:[#allocation31_spill] sm:$0xff] }
 0x9e1   :  { %v9374_v50 = vld [vmem:[#allocation43_spill] sm:$0xff] }
 0x9e2   :  { %2372 = vmatpush.msra.mxu1 %v9365_v57  ;;  %2412 = vmatpush.msra.mxu3 %v9366_v28  ;;  %v9375_v57 = vld [vmem:[#allocation41_spill] sm:$0xff] }
 0x9e3   :  { %v9376_v28 = vld [vmem:[#allocation33_spill] sm:$0xff] }
 0x9e4   :  { %2373 = vmatpush.msra.mxu1 %v9367_v39  ;;  %2413 = vmatpush.msra.mxu3 %v9368_v7  ;;  %v9381_v39 = vld [vmem:[#allocation49_spill] sm:$0xff]  ;;  %v9382_v7 = vld [vmem:[#allocation38_spill] sm:$0xff] }
 0x9e5   :  { %2262 = vmatmul.f32.vlgmr.msrb.gmra.mxu1 %v2161_v31  ;;  %2302 = vmatmul.f32.vlgmr.msrb.gmra.mxu3 %v2161_v31  ;;  %v9379_v31 = vld [vmem:[#allocation35_spill] sm:$0xff] }
 0x9e6   :  { %2374 = vmatpush.msra.mxu1 %v9369_v18  ;;  %2414 = vmatpush.msra.mxu3 %v9370_v10  ;;  %v9383_v18 = vld [vmem:[#allocation55_spill] sm:$0xff]  ;;  %v9384_v10 = vld [vmem:[#allocation53_spill] sm:$0xff] }
 0x9e8   :  { %2375 = vmatpush.msra.mxu1 %v9371_v49  ;;  %2415 = vmatpush.msra.mxu3 %v9372_v23  ;;  %v9385_v49 = vld [vmem:[#allocation42_spill] sm:$0xff]  ;;  %v9386_v23 = vld [vmem:[#allocation59_spill] sm:$0xff] }
 0x9ea   :  { %2376 = vmatpush.msra.mxu1 %v9373_v36  ;;  %2416 = vmatpush.msra.mxu3 %v9374_v50  ;;  %v9387_v36 = vld [vmem:[#allocation57_spill] sm:$0xff]  ;;  %v9388_v50 = vld [vmem:[#allocation46_spill] sm:$0xff] }
 0x9ec   :  { %2377 = vmatpush.msra.mxu1 %v9375_v57  ;;  %2417 = vmatpush.msra.mxu3 %v9376_v28  ;;  %v9389_v57 = vld [vmem:[#allocation63_spill] sm:$0xff]  ;;  %v9390_v28 = vld [vmem:[#allocation61_spill] sm:$0xff] }
 0x9ee   :  { %2378 = vmatpush.msra.mxu1 %v9377_v43  ;;  %2418 = vmatpush.msra.mxu3 %v9378_v19  ;;  %v9391_v43 = vld [vmem:[#allocation50_spill] sm:$0xff]  ;;  %v9392_v19 = vld [vmem:[#allocation67_spill] sm:$0xff] }
 0x9f0   :  { %2379 = vmatpush.msra.mxu1 %v9379_v31  ;;  %2419 = vmatpush.msra.mxu3 %v9380_v30  ;;  %v9393_v31 = vld [vmem:[#allocation65_spill] sm:$0xff]  ;;  %v7313_v30 = vld [vmem:[#allocation7 + $0x3e0] sm:$0xff] }
 0x9f1   :  { %9394 = vst [vmem:[#allocation64_spill] sm:$0xff] %v7313_v30 }
 0x9f2   :  { %2380 = vmatpush.msra.mxu1 %v9381_v39  ;;  %2420 = vmatpush.msra.mxu3 %v9382_v7  ;;  %v9395_v39 = vld [vmem:[#allocation54_spill] sm:$0xff]  ;;  %v7317_v7 = vld [vmem:[#allocation7 + $0x3c0] sm:$0xff] }
 0x9f3   :  { %9396 = vst [vmem:[#allocation129_spill] sm:$0xff] %v7317_v7 }
 0x9f4   :  { %2381 = vmatpush.msra.mxu1 %v9383_v18  ;;  %2421 = vmatpush.msra.mxu3 %v9384_v10  ;;  %v9397_v18 = vld [vmem:[#allocation71_spill] sm:$0xff] }
 0x9f5   :  { %v7321_v10 = vld [vmem:[#allocation7 + $0x3a0] sm:$0xff] }
 0x9f6   :  { %2382 = vmatpush.msra.mxu1 %v9385_v49  ;;  %2422 = vmatpush.msra.mxu3 %v9386_v23  ;;  %9398 = vst [vmem:[#allocation68_spill] sm:$0xff] %v7321_v10  ;;  %v9399_v49 = vld [vmem:[#allocation69_spill] sm:$0xff]  ;;  %v7325_v23 = vld [vmem:[#allocation7 + $0x380] sm:$0xff] }
 0x9f7   :  { %9400 = vst [vmem:[#allocation133_spill] sm:$0xff] %v7325_v23 }
 0x9f8   :  { %2383 = vmatpush.msra.mxu1 %v9387_v36  ;;  %2423 = vmatpush.msra.mxu3 %v9388_v50  ;;  %v9401_v36 = vld [vmem:[#allocation58_spill] sm:$0xff]  ;;  %v7329_v50 = vld [vmem:[#allocation7 + $0x360] sm:$0xff] }
 0x9f9   :  { %9402 = vst [vmem:[#allocation72_spill] sm:$0xff] %v7329_v50 }
 0x9fa   :  { %2384 = vmatpush.msra.mxu1 %v9389_v57  ;;  %2424 = vmatpush.msra.mxu3 %v9390_v28  ;;  %v9403_v57 = vld [vmem:[#allocation75_spill] sm:$0xff] }
 0x9fb   :  { %v7333_v28 = vld [vmem:[#allocation7 + $0x340] sm:$0xff] }
 0x9fc   :  { %2385 = vmatpush.msra.mxu1 %v9391_v43  ;;  %2425 = vmatpush.msra.mxu3 %v9392_v19  ;;  %9404 = vst [vmem:[#allocation137_spill] sm:$0xff] %v7333_v28  ;;  %v9405_v43 = vld [vmem:[#allocation73_spill] sm:$0xff]  ;;  %v7337_v19 = vld [vmem:[#allocation7 + $0x320] sm:$0xff] }
 0x9fd   :  { %9406 = vst [vmem:[#allocation76_spill] sm:$0xff] %v7337_v19 }
 0x9fe   :  { %2494 = vmatpush.msrb.mxu1 %v9393_v31  ;;  %2546 = vmatpush.msrb.mxu3 %v7313_v30  ;;  %v9407_v31 = vld [vmem:[#allocation62_spill] sm:$0xff] }
 0xa00   :  { %2495 = vmatpush.msrb.mxu1 %v9395_v39  ;;  %2547 = vmatpush.msrb.mxu3 %v7317_v7  ;;  %v7341_v39 = vld [vmem:[#allocation7 + $0x300] sm:$0xff] }
 0xa01   :  { %9408 = vst [vmem:[#allocation79_spill] sm:$0xff] %v7341_v39 }
 0xa02   :  { %2496 = vmatpush.msrb.mxu1 %v9397_v18  ;;  %2548 = vmatpush.msrb.mxu3 %v7321_v10  ;;  %v9409_v18 = vld [vmem:[#allocation77_spill] sm:$0xff]  ;;  %v2243_v10 = vpop.f32.mrf.mxu0 }
 0xa04   :  { %2497 = vmatpush.msrb.mxu1 %v9399_v49  ;;  %2549 = vmatpush.msrb.mxu3 %v7325_v23  ;;  %v7345_v49 = vld [vmem:[#allocation7 + $0x2e0] sm:$0xff] }
 0xa05   :  { %9410 = vst [vmem:[#allocation87_spill] sm:$0xff] %v7345_v49 }
 0xa06   :  { %2498 = vmatpush.msrb.mxu1 %v9401_v36  ;;  %2550 = vmatpush.msrb.mxu3 %v7329_v50  ;;  %v9411_v36 = vld [vmem:[#allocation78_spill] sm:$0xff] }
 0xa08   :  { %2499 = vmatpush.msrb.mxu1 %v9403_v57  ;;  %2551 = vmatpush.msrb.mxu3 %v7333_v28  ;;  %v7349_v57 = vld [vmem:[#allocation7 + $0x2c0] sm:$0xff]  ;;  %v2203_v28 = vpop.f32.mrf.mxu2 }
 0xa09   :  { %9412 = vst [vmem:[#allocation91_spill] sm:$0xff] %v7349_v57 }
 0xa0a   :  { %2500 = vmatpush.msrb.mxu1 %v9405_v43  ;;  %2552 = vmatpush.msrb.mxu3 %v7337_v19  ;;  %v9413_v43 = vld [vmem:[#allocation66_spill] sm:$0xff]  ;;  %v7353_v19 = vld [vmem:[#allocation7 + $0x2a0] sm:$0xff] }
 0xa0b   :  { %9414 = vst [vmem:[#allocation95_spill] sm:$0xff] %v7353_v19 }
 0xa0c   :  { %2501 = vmatpush.msrb.mxu1 %v9407_v31  ;;  %2553 = vmatpush.msrb.mxu3 %v7341_v39  ;;  %v9415_v31 = vld [vmem:[#allocation81_spill] sm:$0xff]  ;;  %v7357_v39 = vld [vmem:[#allocation7 + $0x280] sm:$0xff] }
 0xa0d   :  { %9416 = vst [vmem:[#allocation99_spill] sm:$0xff] %v7357_v39 }
 0xa0e   :  { %2502 = vmatpush.msrb.mxu1 %v9409_v18  ;;  %2554 = vmatpush.msrb.mxu3 %v7345_v49  ;;  %v9417_v18 = vld [vmem:[#allocation80_spill] sm:$0xff]  ;;  %v7361_v49 = vld [vmem:[#allocation7 + $0x260] sm:$0xff] }
 0xa0f   :  { %9418 = vst [vmem:[#allocation103_spill] sm:$0xff] %v7361_v49 }
 0xa10   :  { %2503 = vmatpush.msrb.mxu1 %v9411_v36  ;;  %2555 = vmatpush.msrb.mxu3 %v7349_v57  ;;  %v9419_v36 = vld [vmem:[#allocation70_spill] sm:$0xff]  ;;  %v7365_v57 = vld [vmem:[#allocation7 + $0x240] sm:$0xff] }
 0xa11   :  { %9420 = vst [vmem:[#allocation107_spill] sm:$0xff] %v7365_v57 }
 0xa12   :  { %2504 = vmatpush.msrb.mxu1 %v9413_v43  ;;  %2556 = vmatpush.msrb.mxu3 %v7353_v19  ;;  %v9421_v43 = vld [vmem:[#allocation83_spill] sm:$0xff] }
 0xa13   :  { %v7369_v19 = vld [vmem:[#allocation7 + $0x220] sm:$0xff] }
 0xa14   :  { %2505 = vmatpush.msrb.mxu1 %v9415_v31  ;;  %2557 = vmatpush.msrb.mxu3 %v7357_v39  ;;  %9422 = vst [vmem:[#allocation111_spill] sm:$0xff] %v7369_v19  ;;  %v9423_v31 = vld [vmem:[#allocation82_spill] sm:$0xff]  ;;  %v7373_v39 = vld [vmem:[#allocation7 + $0x200] sm:$0xff] }
 0xa15   :  { %9424 = vst [vmem:[#allocation115_spill] sm:$0xff] %v7373_v39 }
 0xa16   :  { %2506 = vmatpush.msrb.mxu1 %v9417_v18  ;;  %2558 = vmatpush.msrb.mxu3 %v7361_v49  ;;  %v7376_v49 = vld [vmem:[#allocation8] sm:$0xff] }
 0xa17   :  { %9425 = vst [vmem:[#allocation119_spill] sm:$0xff] %v7376_v49 }
 0xa18   :  { %2507 = vmatpush.msrb.mxu1 %v9419_v36  ;;  %2559 = vmatpush.msrb.mxu3 %v7365_v57 }
 0xa1a   :  { %2508 = vmatpush.msrb.mxu1 %v9421_v43  ;;  %2560 = vmatpush.msrb.mxu3 %v7369_v19  ;;  %v7379_v43 = vld [vmem:[#allocation8 + $0x8] sm:$0xff] }
 0xa1b   :  { %9426 = vst [vmem:[#allocation123_spill] sm:$0xff] %v7379_v43 }
 0xa1c   :  { %2509 = vmatpush.msrb.mxu1 %v9423_v31  ;;  %2561 = vmatpush.msrb.mxu3 %v7373_v39 }
 0xa5a   :  { %v2183_v18 = vpop.f32.mrf.mxu1 }
 0xa5b   :  { %v2184_v36 = vadd.f32 %v7376_v49, %v2183_v18  ;;  %v9427_v49 = vld [vmem:[#allocation74_spill] sm:$0xff] }
 0xa5d   :  { %v2204_v50 = vadd.f32 %v2203_v28, %v2184_v36 }
 0xa5f   :  { %v3291_v57 = vmul.f32 -1.442695, %v2204_v50 }
 0xa60   :  { %v2223_v23 = vpop.f32.mrf.mxu3 }
 0xa61   :  { %3419 = vpow2.f32 %v3291_v57  ;;  %v2224_v19 = vadd.f32 %v7379_v43, %v2223_v23 }
 0xa62   :  { %v2263_v36 = vpop.f32.mrf.mxu1 }
 0xa63   :  { %v2244_v31 = vadd.f32 %v2243_v10, %v2224_v19 }
 0xa65   :  { %v3292_v7 = vmul.f32 -1.442695, %v2244_v31  ;;  %v2323_v31 = vpop.f32.mrf.mxu0 }
 0xa67   :  { %v3420_v30 = vpop.eup %3419  ;;  %3421 = vpow2.f32 %v3292_v7  ;;  %v2264_v7 = vadd.f32 %v7001_v14, %v2263_v36 }
 0xa68   :  { %v2329_v39 = vadd.f32 1.0, %v3420_v30  ;;  %v2303_v28 = vpop.f32.mrf.mxu3 }
 0xa69   :  { %v2304_v20 = vadd.f32 %v9427_v49, %v2303_v28 }
 0xa6a   :  { %3423 = vrcp.f32 %v2329_v39  ;;  %v2341_v57 = vand.u32 2147483648, %v2329_v39  ;;  %v2339_v23 = vand.u32 2147483647, %v2329_v39  ;;  %vm2335_vm1 = vweird.f32 %v2329_v39 }
 0xa6b   :  { %v2324_v58 = vadd.f32 %v2323_v31, %v2304_v20  ;;  %v7452_v31 = vld [vmem:[#allocation7 + $0x330] sm:$0xff] }
 0xa6c   :  { %vm2340_vm3 = vcmp.eq.f32.partialorder %v2339_v23, 8.507059e+37  ;;  %v7425_v23 = vld [vmem:[#allocation7 + $0x190] sm:$0xff] }
 0xa6d   :  { %v3422_v42 = vpop.eup %3421 }
 0xa6e   :  { %v2348_v35 = vadd.f32 1.0, %v3422_v42  ;;  %v2342_v42 = vor.u32 1.1754944e-38, %v2341_v57 }
 0xa70   :  { %v3424_v51 = vpop.eup %3423  ;;  %3425 = vrcp.f32 %v2348_v35  ;;  %v2360_v9 = vand.u32 2147483648, %v2348_v35  ;;  %vm2354_vm5 = vweird.f32 %v2348_v35  ;;  %v2358_v14 = vand.u32 2147483647, %v2348_v35 }
 0xa71   :  { %v2331_v18 = vmul.f32 %v3424_v51, %v2329_v39  ;;  %vm2336_vm0 = vweird.f32 %v3424_v51 }
 0xa72   :  { %vm2337_vm2 = vmor %vm2335_vm1, %vm2336_vm0  ;;  %v2361_v36 = vor.u32 1.1754944e-38, %v2360_v9  ;;  %vm2359_vm7 = vcmp.eq.f32.partialorder %v2358_v14, 8.507059e+37  ;;  %v7398_v9 = vld [vmem:[#allocation7 + $0x1f8] sm:$0xff]  ;;  %v7482_v14 = vld [vmem:[#allocation7 + $0x2d0] sm:$0xff] }
 0xa73   :  { %v2332_v50 = vsub.f32 1.0, %v2331_v18  ;;  %v2283_v18 = vpop.f32.mrf.mxu2  ;;  %9436 = vst [vmem:[#allocation90_spill] sm:$0xff] %v7482_v14 }
 0xa74   :  { %v2284_v1 = vadd.f32 %v2283_v18, %v2264_v7  ;;  %v7442_v7 = vld [vmem:[#allocation7 + $0x350] sm:$0xff] }
 0xa75   :  { %v2333_v48 = vmul.f32 %v3424_v51, %v2332_v50  ;;  %v7462_v18 = vld [vmem:[#allocation7 + $0x310] sm:$0xff] }
 0xa76   :  { %v3426_v10 = vpop.eup %3425  ;;  %9430 = vst [vmem:[#allocation135_spill] sm:$0xff] %v7462_v18 }
 0xa77   :  { %v2350_v19 = vmul.f32 %v3426_v10, %v2348_v35  ;;  %v2334_v30 = vadd.f32 %v3424_v51, %v2333_v48  ;;  %vm2355_vm4 = vweird.f32 %v3426_v10  ;;  %v7415_v35 = vld [vmem:[#allocation7 + $0x1b0] sm:$0xff] }
 0xa78   :  { %vm2356_vm6 = vmor %vm2354_vm5, %vm2355_vm4 }
 0xa79   :  { %v2351_v43 = vsub.f32 1.0, %v2350_v19  ;;  %v2338_v53 = vsel %vm2337_vm2, %v3424_v51, %v2334_v30  ;;  %v7435_v19 = vld [vmem:[#allocation7 + $0x170] sm:$0xff] }
 0xa7a   :  { %v2343_v25 = vsel %vm2340_vm3, %v2342_v42, %v2338_v53  ;;  %v7445_v30 = vld [vmem:[#allocation7 + $0x150] sm:$0xff] }
 0xa7b   :  { %v2364_v49 = vmul.f32 %v2343_v25, %v2324_v58  ;;  %v2352_v28 = vmul.f32 %v3426_v10, %v2351_v43  ;;  %v7405_v25 = vld [vmem:[#allocation7 + $0x1d0] sm:$0xff] }
 0xa7c   :  { %v7412_v58 = vld [vmem:[#allocation7 + $0x3b0] sm:$0xff] }
 0xa7d   :  { %v2365_v50 = vadd.f32 %v2364_v49, %v2284_v1  ;;  %v2353_v29 = vadd.f32 %v3426_v10, %v2352_v28  ;;  %v7402_v1 = vld [vmem:[#allocation7 + $0x3d0] sm:$0xff] }
 0xa7e   :  { %v7422_v43 = vld [vmem:[#allocation7 + $0x390] sm:$0xff] }
 0xa7f   :  { %3427 = vtanh.f32 %v2365_v50  ;;  %v2357_v48 = vsel %vm2356_vm6, %v3426_v10, %v2353_v29  ;;  %v7392_v29 = vld [vmem:[#allocation7 + $0x3f0] sm:$0xff] }
 0xa80   :  { %v2362_v51 = vsel %vm2359_vm7, %v2361_v36, %v2357_v48  ;;  %v7432_v10 = vld [vmem:[#allocation7 + $0x370] sm:$0xff] }
 0xa81   :  { %v7455_v42 = vld [vmem:[#allocation7 + $0x130] sm:$0xff] }
 0xa82   :  { %9428 = vst [vmem:[#allocation127_spill] sm:$0xff] %v7455_v42  ;;  %v7465_v49 = vld [vmem:[#allocation7 + $0x110] sm:$0xff] }
 0xa83   :  { %9431 = vst [vmem:[#allocation139_spill] sm:$0xff] %v7465_v49  ;;  %v7472_v28 = vld [vmem:[#allocation7 + $0x2f0] sm:$0xff] }
 0xa84   :  { %9433 = vst [vmem:[#allocation84_spill] sm:$0xff] %v7472_v28  ;;  %v7475_v50 = vld [vmem:[#allocation7 + $0xf0] sm:$0xff] }
 0xa85   :  { %v3428_v39 = vpop.eup %3427  ;;  %9434 = vst [vmem:[#allocation86_spill] sm:$0xff] %v7475_v50  ;;  %v7485_v48 = vld [vmem:[#allocation7 + $0xd0] sm:$0xff] }
 0xa86   :  { %v2367_v20 = vsub.f32 %v7116_v41, %v3428_v39  ;;  %v7395_v41 = vld [vmem:[#allocation7 + $0x1f0] sm:$0xff]  ;;  %9437 = vst [vmem:[#allocation92_spill] sm:$0xff] %v7485_v48 }
 0xa87   :  { %v7495_v36 = vld [vmem:[#allocation7 + $0xb0] sm:$0xff] }
 0xa88   :  { %v2368_v57 = vmul.f32 %v2367_v20, %v2362_v51  ;;  %9440 = vst [vmem:[#allocation98_spill] sm:$0xff] %v7495_v36  ;;  %v7502_v20 = vld [vmem:[#allocation7 + $0x290] sm:$0xff] }
 0xa89   :  { %9442 = vst [vmem:[#allocation102_spill] sm:$0xff] %v7502_v20  ;;  %v7505_v51 = vld [vmem:[#allocation7 + $0x90] sm:$0xff] }
 0xa8a   :  { %v7385_v53 = vadd.f32 %v3428_v39, %v2368_v57  ;;  %v7492_v39 = vld [vmem:[#allocation7 + $0x2b0] sm:$0xff]  ;;  %9443 = vst [vmem:[#allocation104_spill] sm:$0xff] %v7505_v51 }
 0xa8b   :  { %9439 = vst [vmem:[#allocation96_spill] sm:$0xff] %v7492_v39  ;;  %v7512_v57 = vld [vmem:[#allocation7 + $0x270] sm:$0xff] }
 0xa8c   :  { %2386 = vmatmul.f32.vlgmr.msra.gmra.mxu1 %v7385_v53  ;;  %2406 = vmatmul.f32.vlgmr.msra.gmra.mxu2 %v7385_v53  ;;  %9445 = vst [vmem:[#allocation108_spill] sm:$0xff] %v7512_v57 }
 0xa8d   :  { %2426 = vmatmul.f32.vlgmr.msra.gmra.mxu3 %v7385_v53  ;;  %2446 = vmatmul.f32.vlgmr.msrb.gmra.mxu0 %v7385_v53 }
 0xa8e   :  { %2586 = vmatpush.msra.mxu1 %v7011_v61  ;;  %2626 = vmatpush.msra.mxu3 %v7392_v29  ;;  %v7408_v61 = vld [vmem:[#allocation7 + $0x1d8] sm:$0xff] }
 0xa8f   :  { %2606 = vmatpush.msra.mxu2 %v7395_v41  ;;  %2646 = vmatpush.msrb.mxu0 %v7398_v9 }
 0xa90   :  { %2587 = vmatpush.msra.mxu1 %v7017_v11  ;;  %2627 = vmatpush.msra.mxu3 %v7402_v1  ;;  %v7418_v11 = vld [vmem:[#allocation7 + $0x1b8] sm:$0xff] }
 0xa91   :  { %2607 = vmatpush.msra.mxu2 %v7405_v25  ;;  %2647 = vmatpush.msrb.mxu0 %v7408_v61 }
 0xa92   :  { %2588 = vmatpush.msra.mxu1 %v7023_v45  ;;  %2628 = vmatpush.msra.mxu3 %v7412_v58  ;;  %v7428_v45 = vld [vmem:[#allocation7 + $0x198] sm:$0xff] }
 0xa93   :  { %2608 = vmatpush.msra.mxu2 %v7415_v35  ;;  %2648 = vmatpush.msrb.mxu0 %v7418_v11 }
 0xa94   :  { %2589 = vmatpush.msra.mxu1 %v7029_v21  ;;  %2629 = vmatpush.msra.mxu3 %v7422_v43  ;;  %v7438_v21 = vld [vmem:[#allocation7 + $0x178] sm:$0xff] }
 0xa95   :  { %2609 = vmatpush.msra.mxu2 %v7425_v23  ;;  %2649 = vmatpush.msrb.mxu0 %v7428_v45 }
 0xa96   :  { %2590 = vmatpush.msra.mxu1 %v7035_v2  ;;  %2630 = vmatpush.msra.mxu3 %v7432_v10  ;;  %v7448_v2 = vld [vmem:[#allocation7 + $0x158] sm:$0xff] }
 0xa97   :  { %2610 = vmatpush.msra.mxu2 %v7435_v19  ;;  %2650 = vmatpush.msrb.mxu0 %v7438_v21 }
 0xa98   :  { %2591 = vmatpush.msra.mxu1 %v7041_v34  ;;  %2631 = vmatpush.msra.mxu3 %v7442_v7  ;;  %v7458_v34 = vld [vmem:[#allocation7 + $0x138] sm:$0xff] }
 0xa99   :  { %2611 = vmatpush.msra.mxu2 %v7445_v30  ;;  %2651 = vmatpush.msrb.mxu0 %v7448_v2  ;;  %9429 = vst [vmem:[#allocation131_spill] sm:$0xff] %v7458_v34 }
 0xa9a   :  { %2592 = vmatpush.msra.mxu1 %v7047_v32  ;;  %2632 = vmatpush.msra.mxu3 %v7452_v31  ;;  %v7468_v32 = vld [vmem:[#allocation7 + $0x118] sm:$0xff] }
 0xa9b   :  { %2612 = vmatpush.msra.mxu2 %v7455_v42  ;;  %2652 = vmatpush.msrb.mxu0 %v7458_v34  ;;  %9432 = vst [vmem:[#allocation142_spill] sm:$0xff] %v7468_v32 }
 0xa9c   :  { %2593 = vmatpush.msra.mxu1 %v7053_v63  ;;  %2633 = vmatpush.msra.mxu3 %v7462_v18  ;;  %v7478_v63 = vld [vmem:[#allocation7 + $0xf8] sm:$0xff] }
 0xa9d   :  { %2613 = vmatpush.msra.mxu2 %v7465_v49  ;;  %2653 = vmatpush.msrb.mxu0 %v7468_v32  ;;  %9435 = vst [vmem:[#allocation88_spill] sm:$0xff] %v7478_v63 }
 0xa9e   :  { %2594 = vmatpush.msra.mxu1 %v7059_v47  ;;  %2634 = vmatpush.msra.mxu3 %v7472_v28  ;;  %v7488_v47 = vld [vmem:[#allocation7 + $0xd8] sm:$0xff] }
 0xa9f   :  { %2614 = vmatpush.msra.mxu2 %v7475_v50  ;;  %2654 = vmatpush.msrb.mxu0 %v7478_v63  ;;  %9438 = vst [vmem:[#allocation94_spill] sm:$0xff] %v7488_v47 }
 0xaa0   :  { %2595 = vmatpush.msra.mxu1 %v7065_v52  ;;  %2635 = vmatpush.msra.mxu3 %v7482_v14  ;;  %v7498_v52 = vld [vmem:[#allocation7 + $0xb8] sm:$0xff] }
 0xaa1   :  { %2615 = vmatpush.msra.mxu2 %v7485_v48  ;;  %2655 = vmatpush.msrb.mxu0 %v7488_v47  ;;  %9441 = vst [vmem:[#allocation100_spill] sm:$0xff] %v7498_v52 }
 0xaa2   :  { %2596 = vmatpush.msra.mxu1 %v7071_v12  ;;  %2636 = vmatpush.msra.mxu3 %v7492_v39  ;;  %v7508_v12 = vld [vmem:[#allocation7 + $0x98] sm:$0xff] }
 0xaa3   :  { %2616 = vmatpush.msra.mxu2 %v7495_v36  ;;  %2656 = vmatpush.msrb.mxu0 %v7498_v52  ;;  %9444 = vst [vmem:[#allocation106_spill] sm:$0xff] %v7508_v12  ;;  %v7515_v52 = vld [vmem:[#allocation7 + $0x70] sm:$0xff] }
 0xaa4   :  { %2597 = vmatpush.msra.mxu1 %v7077_v15  ;;  %2637 = vmatpush.msra.mxu3 %v7502_v20  ;;  %9446 = vst [vmem:[#allocation110_spill] sm:$0xff] %v7515_v52  ;;  %v7518_v15 = vld [vmem:[#allocation7 + $0x78] sm:$0xff] }
 0xaa5   :  { %2617 = vmatpush.msra.mxu2 %v7505_v51  ;;  %2657 = vmatpush.msrb.mxu0 %v7508_v12  ;;  %9447 = vst [vmem:[#allocation112_spill] sm:$0xff] %v7518_v15  ;;  %v7522_v51 = vld [vmem:[#allocation7 + $0x250] sm:$0xff] }
 0xaa6   :  { %2598 = vmatpush.msra.mxu1 %v7083_v6  ;;  %2638 = vmatpush.msra.mxu3 %v7512_v57  ;;  %9448 = vst [vmem:[#allocation114_spill] sm:$0xff] %v7522_v51  ;;  %v7525_v12 = vld [vmem:[#allocation7 + $0x50] sm:$0xff]  ;;  %v7528_v6 = vld [vmem:[#allocation7 + $0x58] sm:$0xff]  ;;  %v7531_v57 = vld [vmem:[#allocation7 + $0x228] sm:$0xff] }
 0xaa7   :  { %2618 = vmatpush.msra.mxu2 %v7515_v52  ;;  %2658 = vmatpush.msrb.mxu0 %v7518_v15  ;;  %9449 = vst [vmem:[#allocation116_spill] sm:$0xff] %v7525_v12  ;;  %v7534_v52 = vld [vmem:[#allocation7 + $0x230] sm:$0xff] }
 0xaa8   :  { %2599 = vmatpush.msra.mxu1 %v7089_v13  ;;  %2639 = vmatpush.msra.mxu3 %v7522_v51  ;;  %9450 = vst [vmem:[#allocation118_spill] sm:$0xff] %v7528_v6  ;;  %v7537_v13 = vld [vmem:[#allocation7 + $0x30] sm:$0xff]  ;;  %v7540_v51 = vld [vmem:[#allocation7 + $0x38] sm:$0xff] }
 0xaa9   :  { %2619 = vmatpush.msra.mxu2 %v7525_v12  ;;  %2659 = vmatpush.msrb.mxu0 %v7528_v6  ;;  %9451 = vst [vmem:[#allocation120_spill] sm:$0xff] %v7531_v57  ;;  %v7543_v12 = vld [vmem:[#allocation7 + $0x208] sm:$0xff]  ;;  %v7546_v6 = vld [vmem:[#allocation7 + $0x210] sm:$0xff] }
 0xaaa   :  { %2600 = vmatpush.msra.mxu1 %v7531_v57  ;;  %9452 = vst [vmem:[#allocation122_spill] sm:$0xff] %v7534_v52  ;;  %2640 = vmatpush.msra.mxu3 %v7534_v52  ;;  %v7549_v57 = vld [vmem:[#allocation7 + $0x10] sm:$0xff]  ;;  %v7552_v52 = vld [vmem:[#allocation7 + $0x18] sm:$0xff] }
 0xaab   :  { %9453 = vst [vmem:[#allocation124_spill] sm:$0xff] %v7537_v13  ;;  %2620 = vmatpush.msra.mxu2 %v7537_v13  ;;  %2660 = vmatpush.msrb.mxu0 %v7540_v51 }
 0xaac   :  { %9454 = vst [vmem:[#allocation126_spill] sm:$0xff] %v7540_v51  ;;  %2601 = vmatpush.msra.mxu1 %v7543_v12  ;;  %2641 = vmatpush.msra.mxu3 %v7546_v6 }
 0xaad   :  { %9455 = vst [vmem:[#allocation128_spill] sm:$0xff] %v7543_v12  ;;  %2621 = vmatpush.msra.mxu2 %v7549_v57  ;;  %2661 = vmatpush.msrb.mxu0 %v7552_v52 }
 0xaae   :  { %9456 = vst [vmem:[#allocation130_spill] sm:$0xff] %v7546_v6 }
 0xaaf   :  { %9457 = vst [vmem:[#allocation132_spill] sm:$0xff] %v7549_v57 }
 0xab0   :  { %9458 = vst [vmem:[#allocation134_spill] sm:$0xff] %v7552_v52 }
 0xb09   :  { %v2387_v13 = vpop.f32.mrf.mxu1 }
 0xb0a   :  { %v2388_v15 = vadd.f32 %v7103_v16, %v2387_v13 }
 0xb0c   :  { %v3293_v51 = vmul.f32 -1.442695, %v2388_v15 }
 0xb0e   :  { %3429 = vpow2.f32 %v3293_v51  ;;  %v2447_v51 = vpop.f32.mrf.mxu0 }
 0xb0f   :  { %v2407_v20 = vpop.f32.mrf.mxu2 }
 0xb10   :  { %v2408_v12 = vadd.f32 %v7106_v33, %v2407_v20 }
 0xb12   :  { %v3294_v36 = vmul.f32 -1.442695, %v2408_v12 }
 0xb14   :  { %v3430_v39 = vpop.eup %3429  ;;  %3431 = vpow2.f32 %v3294_v36  ;;  %v2427_v36 = vpop.f32.mrf.mxu3 }
 0xb15   :  { %v2453_v6 = vadd.f32 1.0, %v3430_v39  ;;  %v2448_v39 = vadd.f32 %v7109_v22, %v2447_v51  ;;  %v7613_v51 = vld [vmem:[#allocation10 + $0xc8] sm:$0xff] }
 0xb17   :  { %3433 = vrcp.f32 %v2453_v6  ;;  %v2465_v52 = vand.u32 2147483648, %v2453_v6  ;;  %v2463_v16 = vand.u32 2147483647, %v2453_v6  ;;  %vm2459_vm9 = vweird.f32 %v2453_v6 }
 0xb19   :  { %v2466_v20 = vor.u32 1.1754944e-38, %v2465_v52  ;;  %vm2464_vm11 = vcmp.eq.f32.partialorder %v2463_v16, 8.507059e+37 }
 0xb1a   :  { %v3432_v47 = vpop.eup %3431 }
 0xb1b   :  { %v2472_v48 = vadd.f32 1.0, %v3432_v47 }
 0xb1d   :  { %v3434_v57 = vpop.eup %3433  ;;  %3435 = vrcp.f32 %v2472_v48  ;;  %vm2478_vm13 = vweird.f32 %v2472_v48 }
 0xb1e   :  { %v2455_v14 = vmul.f32 %v3434_v57, %v2453_v6  ;;  %vm2460_vm8 = vweird.f32 %v3434_v57  ;;  %v2482_v6 = vand.u32 2147483647, %v2472_v48 }
 0xb1f   :  { %vm2461_vm10 = vmor %vm2459_vm9, %vm2460_vm8 }
 0xb20   :  { %v2456_v63 = vsub.f32 1.0, %v2455_v14  ;;  %v2428_v14 = vadd.f32 %v7112_v44, %v2427_v36  ;;  %vm2483_vm15 = vcmp.eq.f32.partialorder %v2482_v6, 8.507059e+37  ;;  %v7565_v44 = vld [vmem:[#allocation10 + $0x1e8] sm:$0xff]  ;;  %v7646_v6 = vld [vmem:[#allocation7 + $0x218] sm:$0xff] }
 0xb21   :  { %v7625_v36 = vld [vmem:[#allocation10 + $0x88] sm:$0xff]  ;;  %9465 = vst [vmem:[#allocation145_spill] sm:$0xff] %v7646_v6 }
 0xb22   :  { %v2457_v50 = vmul.f32 %v3434_v57, %v2456_v63 }
 0xb23   :  { %v3436_v15 = vpop.eup %3435 }
 0xb24   :  { %v2458_v13 = vadd.f32 %v3434_v57, %v2457_v50  ;;  %v2474_v33 = vmul.f32 %v3436_v15, %v2472_v48  ;;  %vm2479_vm12 = vweird.f32 %v3436_v15  ;;  %v2484_v50 = vand.u32 2147483648, %v2472_v48  ;;  %v7607_v48 = vld [vmem:[#allocation10 + $0xe8] sm:$0xff] }
 0xb25   :  { %vm2480_vm14 = vmor %vm2478_vm13, %vm2479_vm12 }
 0xb26   :  { %v2462_v12 = vsel %vm2461_vm10, %v3434_v57, %v2458_v13  ;;  %v2475_v47 = vsub.f32 1.0, %v2474_v33  ;;  %v2485_v42 = vor.u32 1.1754944e-38, %v2484_v50  ;;  %v7616_v13 = vld [vmem:[#allocation7 + $0x2b8] sm:$0xff]  ;;  %v7619_v33 = vld [vmem:[#allocation10 + $0xa8] sm:$0xff] }
 0xb27   :  { %v2467_v28 = vsel %vm2464_vm11, %v2466_v20, %v2462_v12  ;;  %v7622_v20 = vld [vmem:[#allocation7 + $0x298] sm:$0xff]  ;;  %v7631_v12 = vld [vmem:[#allocation10 + $0x68] sm:$0xff] }
 0xb28   :  { %v2488_v32 = vmul.f32 %v2467_v28, %v2448_v39  ;;  %v2476_v63 = vmul.f32 %v3436_v15, %v2475_v47  ;;  %v7628_v39 = vld [vmem:[#allocation7 + $0x278] sm:$0xff]  ;;  %9460 = vst [vmem:[#allocation138_spill] sm:$0xff] %v7631_v12  ;;  %v7643_v50 = vld [vmem:[#allocation10 + $0x28] sm:$0xff] }
 0xb29   :  { %9459 = vst [vmem:[#allocation136_spill] sm:$0xff] %v7628_v39  ;;  %v7634_v47 = vld [vmem:[#allocation7 + $0x258] sm:$0xff] }
 0xb2a   :  { %v2489_v49 = vadd.f32 %v2488_v32, %v2428_v14  ;;  %v2477_v18 = vadd.f32 %v3436_v15, %v2476_v63  ;;  %v7604_v32 = vld [vmem:[#allocation7 + $0x2f8] sm:$0xff]  ;;  %9461 = vst [vmem:[#allocation140_spill] sm:$0xff] %v7634_v47  ;;  %v7637_v14 = vld [vmem:[#allocation10 + $0x48] sm:$0xff] }
 0xb2b   :  { %9462 = vst [vmem:[#allocation141_spill] sm:$0xff] %v7637_v14  ;;  %v7640_v63 = vld [vmem:[#allocation7 + $0x238] sm:$0xff] }
 0xb2c   :  { %3437 = vtanh.f32 %v2489_v49  ;;  %v2481_v52 = vsel %vm2480_vm14, %v3436_v15, %v2477_v18  ;;  %v7569_v18 = vld [vmem:[#allocation10 + $0x1c8] sm:$0xff]  ;;  %v7610_v15 = vld [vmem:[#allocation7 + $0x2d8] sm:$0xff]  ;;  %9463 = vst [vmem:[#allocation143_spill] sm:$0xff] %v7640_v63 }
 0xb2d   :  { %v2486_v57 = vsel %vm2483_vm15, %v2485_v42, %v2481_v52  ;;  %v7577_v42 = vld [vmem:[#allocation10 + $0x188] sm:$0xff]  ;;  %9464 = vst [vmem:[#allocation144_spill] sm:$0xff] %v7643_v50 }
 0xb2e   :  { %v7601_v49 = vld [vmem:[#allocation10 + $0x108] sm:$0xff] }
 0xb2f   :  { %v7649_v52 = vld [vmem:[#allocation10 + $0x8] sm:$0xff] }
 0xb30   :  { %9466 = vst [vmem:[#allocation146_spill] sm:$0xff] %v7649_v52 }
 0xb32   :  { %v3438_v34 = vpop.eup %3437 }
 0xb33   :  { %v2491_v22 = vsub.f32 %v7385_v53, %v3438_v34  ;;  %v7573_v53 = vld [vmem:[#allocation10 + $0x1a8] sm:$0xff] }
 0xb35   :  { %v2492_v16 = vmul.f32 %v2491_v22, %v2486_v57  ;;  %v7654_v22 = vld [vmem:[#allocation10 + $0x1f8] sm:$0xff] }
 0xb36   :  { %9467 = vst [vmem:[#allocation32_spill] sm:$0xff] %v7654_v22  ;;  %v7658_v57 = vld [vmem:[#allocation10 + $0x1d8] sm:$0xff] }
 0xb37   :  { %v7560_v28 = vadd.f32 %v3438_v34, %v2492_v16  ;;  %v7595_v34 = vld [vmem:[#allocation10 + $0x128] sm:$0xff]  ;;  %9468 = vst [vmem:[#allocation29_spill] sm:$0xff] %v7658_v57  ;;  %v7662_v16 = vld [vmem:[#allocation10 + $0x1b8] sm:$0xff] }
 0xb38   :  { %9469 = vst [vmem:[#allocation36_spill] sm:$0xff] %v7662_v16 }
 0xb39   :  { %2510 = vmatmul.f32.vlgmr.msrb.gmra.mxu1 %v7560_v28  ;;  %2562 = vmatmul.f32.vlgmr.msrb.gmra.mxu3 %v7560_v28 }
 0xb3a   :  { %2666 = vmatpush.msrb.mxu1 %v7120_v5  ;;  %2750 = vmatpush.msrb.mxu3 %v7565_v44  ;;  %v7583_v5 = vld [vmem:[#allocation10 + $0x168] sm:$0xff] }
 0xb3c   :  { %2667 = vmatpush.msrb.mxu1 %v7124_v24  ;;  %2751 = vmatpush.msrb.mxu3 %v7569_v18  ;;  %v7586_v24 = vld [vmem:[#allocation7 + $0x358] sm:$0xff] }
 0xb3e   :  { %2668 = vmatpush.msrb.mxu1 %v7128_v37  ;;  %2752 = vmatpush.msrb.mxu3 %v7573_v53  ;;  %v7589_v37 = vld [vmem:[#allocation10 + $0x148] sm:$0xff] }
 0xb40   :  { %2669 = vmatpush.msrb.mxu1 %v7132_v62  ;;  %2753 = vmatpush.msrb.mxu3 %v7577_v42  ;;  %v7592_v62 = vld [vmem:[#allocation7 + $0x338] sm:$0xff] }
 0xb41   :  { %2602 = vmatmul.f32.vlgmr.msra.gmra.mxu1 %v7560_v28  ;;  %2642 = vmatmul.f32.vlgmr.msra.gmra.mxu3 %v7560_v28 }
 0xb42   :  { %2670 = vmatpush.msrb.mxu1 %v7138_v55  ;;  %2754 = vmatpush.msrb.mxu3 %v7583_v5  ;;  %v7598_v55 = vld [vmem:[#allocation7 + $0x318] sm:$0xff] }
 0xb44   :  { %2671 = vmatpush.msrb.mxu1 %v7586_v24  ;;  %2755 = vmatpush.msrb.mxu3 %v7589_v37 }
 0xb46   :  { %2672 = vmatpush.msrb.mxu1 %v7592_v62  ;;  %2756 = vmatpush.msrb.mxu3 %v7595_v34 }
 0xb48   :  { %2673 = vmatpush.msrb.mxu1 %v7598_v55  ;;  %2757 = vmatpush.msrb.mxu3 %v7601_v49 }
 0xb4a   :  { %2674 = vmatpush.msrb.mxu1 %v7604_v32  ;;  %2758 = vmatpush.msrb.mxu3 %v7607_v48 }
 0xb4c   :  { %2675 = vmatpush.msrb.mxu1 %v7610_v15  ;;  %2759 = vmatpush.msrb.mxu3 %v7613_v51 }
 0xb4e   :  { %2676 = vmatpush.msrb.mxu1 %v7616_v13  ;;  %2760 = vmatpush.msrb.mxu3 %v7619_v33 }
 0xb50   :  { %2677 = vmatpush.msrb.mxu1 %v7622_v20  ;;  %2761 = vmatpush.msrb.mxu3 %v7625_v36 }
 0xb52   :  { %2678 = vmatpush.msrb.mxu1 %v7628_v39  ;;  %2762 = vmatpush.msrb.mxu3 %v7631_v12 }
 0xb54   :  { %2679 = vmatpush.msrb.mxu1 %v7634_v47  ;;  %2763 = vmatpush.msrb.mxu3 %v7637_v14 }
 0xb56   :  { %2680 = vmatpush.msrb.mxu1 %v7640_v63  ;;  %2764 = vmatpush.msrb.mxu3 %v7643_v50 }
 0xb58   :  { %2681 = vmatpush.msrb.mxu1 %v7646_v6  ;;  %2765 = vmatpush.msrb.mxu3 %v7649_v52  ;;  %v7666_v52 = vld [vmem:[#allocation10 + $0x198] sm:$0xff] }
 0xb59   :  { %2682 = vmatmul.f32.vlgmr.msrb.gmra.mxu1 %v7560_v28  ;;  %9470 = vst [vmem:[#allocation34_spill] sm:$0xff] %v7666_v52 }
 0xb5a   :  { %2886 = vmatpush.msra.mxu3 %v7165_v0  ;;  %2790 = vmatpush.msra.mxu1 %v7654_v22  ;;  %v7670_v0 = vld [vmem:[#allocation10 + $0x178] sm:$0xff] }
 0xb5b   :  { %9471 = vst [vmem:[#allocation30_spill] sm:$0xff] %v7670_v0 }
 0xb5c   :  { %2887 = vmatpush.msra.mxu3 %v7169_v40  ;;  %2791 = vmatpush.msra.mxu1 %v7658_v57  ;;  %v7674_v40 = vld [vmem:[#allocation10 + $0x158] sm:$0xff] }
 0xb5d   :  { %9472 = vst [vmem:[#allocation39_spill] sm:$0xff] %v7674_v40 }
 0xb5e   :  { %2888 = vmatpush.msra.mxu3 %v7173_v17  ;;  %2792 = vmatpush.msra.mxu1 %v7662_v16  ;;  %v7678_v17 = vld [vmem:[#allocation10 + $0x138] sm:$0xff] }
 0xb5f   :  { %9473 = vst [vmem:[#allocation37_spill] sm:$0xff] %v7678_v17 }
 0xb60   :  { %2889 = vmatpush.msra.mxu3 %v7177_v59  ;;  %2793 = vmatpush.msra.mxu1 %v7666_v52  ;;  %v7682_v59 = vld [vmem:[#allocation10 + $0x118] sm:$0xff] }
 0xb61   :  { %9474 = vst [vmem:[#allocation31_spill] sm:$0xff] %v7682_v59 }
 0xb62   :  { %2890 = vmatpush.msra.mxu3 %v7181_v54  ;;  %2794 = vmatpush.msra.mxu1 %v7670_v0  ;;  %v7686_v54 = vld [vmem:[#allocation10 + $0xf8] sm:$0xff] }
 0xb63   :  { %9475 = vst [vmem:[#allocation43_spill] sm:$0xff] %v7686_v54 }
 0xb64   :  { %2891 = vmatpush.msra.mxu3 %v7185_v38  ;;  %2795 = vmatpush.msra.mxu1 %v7674_v40  ;;  %v7690_v38 = vld [vmem:[#allocation10 + $0xd8] sm:$0xff]  ;;  %v9501_v40 = vld [vmem:[#allocation125_spill] sm:$0xff] }
 0xb65   :  { %9476 = vst [vmem:[#allocation41_spill] sm:$0xff] %v7690_v38 }
 0xb66   :  { %2892 = vmatpush.msra.mxu3 %v7189_v27  ;;  %2796 = vmatpush.msra.mxu1 %v7678_v17  ;;  %v7694_v27 = vld [vmem:[#allocation10 + $0xb8] sm:$0xff] }
 0xb67   :  { %9477 = vst [vmem:[#allocation33_spill] sm:$0xff] %v7694_v27 }
 0xb68   :  { %2893 = vmatpush.msra.mxu3 %v7193_v8  ;;  %2797 = vmatpush.msra.mxu1 %v7682_v59  ;;  %v7698_v8 = vld [vmem:[#allocation10 + $0x98] sm:$0xff]  ;;  %v9494_v59 = vld [vmem:[#allocation48_spill] sm:$0xff] }
 0xb69   :  { %9478 = vst [vmem:[#allocation47_spill] sm:$0xff] %v7698_v8 }
 0xb6a   :  { %2894 = vmatpush.msra.mxu3 %v7197_v3  ;;  %2798 = vmatpush.msra.mxu1 %v7686_v54  ;;  %v7702_v3 = vld [vmem:[#allocation10 + $0x78] sm:$0xff]  ;;  %v9491_v54 = vld [vmem:[#allocation105_spill] sm:$0xff] }
 0xb6b   :  { %9479 = vst [vmem:[#allocation45_spill] sm:$0xff] %v7702_v3 }
 0xb6c   :  { %2895 = vmatpush.msra.mxu3 %v7201_v4  ;;  %2799 = vmatpush.msra.mxu1 %v7690_v38  ;;  %v7706_v4 = vld [vmem:[#allocation10 + $0x58] sm:$0xff]  ;;  %v9488_v38 = vld [vmem:[#allocation97_spill] sm:$0xff] }
 0xb6d   :  { %9480 = vst [vmem:[#allocation35_spill] sm:$0xff] %v7706_v4 }
 0xb6e   :  { %2896 = vmatpush.msra.mxu3 %v7205_v46  ;;  %2800 = vmatpush.msra.mxu1 %v7694_v27  ;;  %v9481_v46 = vld [vmem:[#allocation27_spill] sm:$0xff]  ;;  %v7710_v27 = vld [vmem:[#allocation10 + $0x38] sm:$0xff] }
 0xb6f   :  { %9482 = vst [vmem:[#allocation51_spill] sm:$0xff] %v7710_v27 }
 0xb70   :  { %2897 = vmatpush.msra.mxu3 %v7209_v56  ;;  %2801 = vmatpush.msra.mxu1 %v7698_v8  ;;  %v9483_v56 = vld [vmem:[#allocation28_spill] sm:$0xff]  ;;  %v7714_v8 = vld [vmem:[#allocation10 + $0x18] sm:$0xff] }
 0xb71   :  { %9484 = vst [vmem:[#allocation49_spill] sm:$0xff] %v7714_v8 }
 0xb72   :  { %2898 = vmatpush.msra.mxu3 %v7213_v26  ;;  %2802 = vmatpush.msra.mxu1 %v7702_v3  ;;  %v9485_v26 = vld [vmem:[#allocation85_spill] sm:$0xff] }
 0xb73   :  { %v9486_v3 = vld [vmem:[#allocation89_spill] sm:$0xff] }
 0xb74   :  { %2899 = vmatpush.msra.mxu3 %v7217_v60  ;;  %2803 = vmatpush.msra.mxu1 %v7706_v4  ;;  %v9487_v60 = vld [vmem:[#allocation93_spill] sm:$0xff] }
 0xb75   :  { %v9489_v4 = vld [vmem:[#allocation101_spill] sm:$0xff] }
 0xb76   :  { %2900 = vmatpush.msra.mxu3 %v9481_v46  ;;  %2804 = vmatpush.msra.mxu1 %v7710_v27  ;;  %v9490_v46 = vld [vmem:[#allocation40_spill] sm:$0xff] }
 0xb77   :  { %v9492_v27 = vld [vmem:[#allocation44_spill] sm:$0xff] }
 0xb78   :  { %2901 = vmatpush.msra.mxu3 %v9483_v56  ;;  %2805 = vmatpush.msra.mxu1 %v7714_v8  ;;  %v9493_v56 = vld [vmem:[#allocation109_spill] sm:$0xff] }
 0xb79   :  { %v9495_v8 = vld [vmem:[#allocation113_spill] sm:$0xff] }
 0xb7a   :  { %2926 = vmatpush.msrb.mxu1 %v9485_v26  ;;  %v9496_v26 = vld [vmem:[#allocation117_spill] sm:$0xff] }
 0xb7c   :  { %2927 = vmatpush.msrb.mxu1 %v9486_v3  ;;  %v9497_v3 = vld [vmem:[#allocation52_spill] sm:$0xff] }
 0xb7e   :  { %2928 = vmatpush.msrb.mxu1 %v9487_v60  ;;  %v9498_v60 = vld [vmem:[#allocation56_spill] sm:$0xff] }
 0xb80   :  { %2929 = vmatpush.msrb.mxu1 %v9488_v38  ;;  %v9499_v38 = vld [vmem:[#allocation121_spill] sm:$0xff] }
 0xb82   :  { %2930 = vmatpush.msrb.mxu1 %v9489_v4  ;;  %v9500_v4 = vld [vmem:[#allocation60_spill] sm:$0xff] }
 0xb84   :  { %2931 = vmatpush.msrb.mxu1 %v9490_v46  ;;  %v2515_v46 = vld [vmem:[#allocation5 + $0x28] sm:$0xff] }
 0xb85   :  { %v2519_v17 = vsub.f32 1.0, %v2515_v46 }
 0xb86   :  { %2932 = vmatpush.msrb.mxu1 %v9491_v54  ;;  %v2517_v54 = vld [vmem:[#allocation2 + $0x28] sm:$0xff] }
 0xb87   :  { %v2518_v0 = vmul.f32 %v2517_v54, %v2515_v46  ;;  %v7758_v46 = vld [vmem:[#allocation10 + $0x160] sm:$0xff]  ;;  %v7761_v54 = vld [vmem:[#allocation10 + $0x170] sm:$0xff] }
 0xb88   :  { %2933 = vmatpush.msrb.mxu1 %v9492_v27  ;;  %9510 = vst [vmem:[#allocation61_spill] sm:$0xff] %v7758_v46 }
 0xb89   :  { %9511 = vst [vmem:[#allocation50_spill] sm:$0xff] %v7761_v54 }
 0xb8a   :  { %2934 = vmatpush.msrb.mxu1 %v9493_v56 }
 0xb8c   :  { %2935 = vmatpush.msrb.mxu1 %v9494_v59 }
 0xb8e   :  { %2936 = vmatpush.msrb.mxu1 %v9495_v8 }
 0xb90   :  { %2937 = vmatpush.msrb.mxu1 %v9496_v26  ;;  %v7734_v26 = vld [vmem:[#allocation10 + $0x1e0] sm:$0xff] }
 0xb91   :  { %9502 = vst [vmem:[#allocation38_spill] sm:$0xff] %v7734_v26 }
 0xb92   :  { %2938 = vmatpush.msrb.mxu1 %v9497_v3  ;;  %v7737_v3 = vld [vmem:[#allocation10 + $0x1f0] sm:$0xff] }
 0xb93   :  { %9503 = vst [vmem:[#allocation55_spill] sm:$0xff] %v7737_v3 }
 0xb94   :  { %2939 = vmatpush.msrb.mxu1 %v9498_v60  ;;  %v7740_v60 = vld [vmem:[#allocation10 + $0x1c0] sm:$0xff] }
 0xb95   :  { %9504 = vst [vmem:[#allocation53_spill] sm:$0xff] %v7740_v60 }
 0xb96   :  { %2940 = vmatpush.msrb.mxu1 %v9499_v38  ;;  %v7752_v38 = vld [vmem:[#allocation10 + $0x180] sm:$0xff] }
 0xb97   :  { %9508 = vst [vmem:[#allocation46_spill] sm:$0xff] %v7752_v38 }
 0xb98   :  { %2941 = vmatpush.msrb.mxu1 %v9500_v4  ;;  %v7755_v4 = vld [vmem:[#allocation10 + $0x190] sm:$0xff] }
 0xb99   :  { %9509 = vst [vmem:[#allocation63_spill] sm:$0xff] %v7755_v4 }
 0xbb6   :  { %v2511_v27 = vpop.f32.mrf.mxu1 }
 0xbb7   :  { %v2512_v56 = vadd.f32 %v9501_v40, %v2511_v27  ;;  %v7743_v40 = vld [vmem:[#allocation10 + $0x1d0] sm:$0xff]  ;;  %v7764_v27 = vld [vmem:[#allocation10 + $0x140] sm:$0xff] }
 0xbb8   :  { %9505 = vst [vmem:[#allocation42_spill] sm:$0xff] %v7743_v40 }
 0xbb9   :  { %v2520_v59 = vmul.f32 %v2519_v17, %v2512_v56  ;;  %2523 = vst [vmem:[#allocation19 + $0x28] sm:$0xff] %v2512_v56  ;;  %v7749_v17 = vld [vmem:[#allocation10 + $0x1b0] sm:$0xff] }
 0xbba   :  { %9507 = vst [vmem:[#allocation57_spill] sm:$0xff] %v7749_v17  ;;  %v7767_v56 = vld [vmem:[#allocation10 + $0x150] sm:$0xff] }
 0xbbb   :  { %v2521_v8 = vadd.f32 %v2520_v59, %v2518_v0  ;;  %v7746_v0 = vld [vmem:[#allocation10 + $0x1a0] sm:$0xff]  ;;  %9512 = vst [vmem:[#allocation67_spill] sm:$0xff] %v7764_v27 }
 0xbbc   :  { %9506 = vst [vmem:[#allocation59_spill] sm:$0xff] %v7746_v0  ;;  %v7770_v59 = vld [vmem:[#allocation10 + $0x120] sm:$0xff] }
 0xbbd   :  { %2525 = vst [vmem:[#allocation17 + $0x28] sm:$0xff] %v2521_v8  ;;  %2542 = vmatmul.f32.vlgmr.msrb.gmra.mxu2 %v2521_v8  ;;  %2582 = vmatmul.f32.vlgmr.msra.gmra.mxu0 %v2521_v8 }
 0xbbe   :  { %2730 = vmatpush.msrb.mxu2 %v7734_v26  ;;  %2770 = vmatpush.msra.mxu0 %v7737_v3  ;;  %9513 = vst [vmem:[#allocation65_spill] sm:$0xff] %v7767_v56 }
 0xbbf   :  { %9514 = vst [vmem:[#allocation54_spill] sm:$0xff] %v7770_v59 }
 0xbc0   :  { %2731 = vmatpush.msrb.mxu2 %v7740_v60  ;;  %2771 = vmatpush.msra.mxu0 %v7743_v40  ;;  %v9538_v40 = vld [vmem:[#allocation72_spill] sm:$0xff] }
 0xbc2   :  { %2732 = vmatpush.msrb.mxu2 %v7746_v0  ;;  %2772 = vmatpush.msra.mxu0 %v7749_v17  ;;  %v9536_v17 = vld [vmem:[#allocation68_spill] sm:$0xff]  ;;  %v9537_v0 = vld [vmem:[#allocation133_spill] sm:$0xff] }
 0xbc4   :  { %2733 = vmatpush.msrb.mxu2 %v7752_v38  ;;  %2773 = vmatpush.msra.mxu0 %v7755_v4  ;;  %v9534_v4 = vld [vmem:[#allocation64_spill] sm:$0xff]  ;;  %v9535_v38 = vld [vmem:[#allocation129_spill] sm:$0xff] }
 0xbc5   :  { %2622 = vmatmul.f32.vlgmr.msra.gmra.mxu2 %v2521_v8  ;;  %2662 = vmatmul.f32.vlgmr.msrb.gmra.mxu0 %v2521_v8  ;;  %v7773_v8 = vld [vmem:[#allocation10 + $0x130] sm:$0xff] }
 0xbc6   :  { %2734 = vmatpush.msrb.mxu2 %v7758_v46  ;;  %2774 = vmatpush.msra.mxu0 %v7761_v54  ;;  %9515 = vst [vmem:[#allocation71_spill] sm:$0xff] %v7773_v8  ;;  %v7776_v46 = vld [vmem:[#allocation10 + $0x100] sm:$0xff]  ;;  %v7779_v54 = vld [vmem:[#allocation10 + $0x110] sm:$0xff] }
 0xbc7   :  { %9516 = vst [vmem:[#allocation69_spill] sm:$0xff] %v7776_v46 }
 0xbc8   :  { %2735 = vmatpush.msrb.mxu2 %v7764_v27  ;;  %2775 = vmatpush.msra.mxu0 %v7767_v56  ;;  %9517 = vst [vmem:[#allocation58_spill] sm:$0xff] %v7779_v54  ;;  %v7782_v27 = vld [vmem:[#allocation10 + $0xe0] sm:$0xff]  ;;  %v7785_v56 = vld [vmem:[#allocation10 + $0xf0] sm:$0xff] }
 0xbc9   :  { %9518 = vst [vmem:[#allocation75_spill] sm:$0xff] %v7782_v27 }
 0xbca   :  { %2736 = vmatpush.msrb.mxu2 %v7770_v59  ;;  %2776 = vmatpush.msra.mxu0 %v7773_v8  ;;  %9519 = vst [vmem:[#allocation73_spill] sm:$0xff] %v7785_v56  ;;  %v7788_v59 = vld [vmem:[#allocation10 + $0xc0] sm:$0xff]  ;;  %v7791_v8 = vld [vmem:[#allocation10 + $0xd0] sm:$0xff] }
 0xbcb   :  { %9520 = vst [vmem:[#allocation62_spill] sm:$0xff] %v7788_v59 }
 0xbcc   :  { %2737 = vmatpush.msrb.mxu2 %v7776_v46  ;;  %2777 = vmatpush.msra.mxu0 %v7779_v54  ;;  %9521 = vst [vmem:[#allocation77_spill] sm:$0xff] %v7791_v8  ;;  %v7794_v46 = vld [vmem:[#allocation10 + $0xa0] sm:$0xff]  ;;  %v7797_v54 = vld [vmem:[#allocation10 + $0xb0] sm:$0xff] }
 0xbcd   :  { %9522 = vst [vmem:[#allocation78_spill] sm:$0xff] %v7794_v46 }
 0xbce   :  { %2738 = vmatpush.msrb.mxu2 %v7782_v27  ;;  %2778 = vmatpush.msra.mxu0 %v7785_v56  ;;  %9523 = vst [vmem:[#allocation66_spill] sm:$0xff] %v7797_v54  ;;  %v7800_v27 = vld [vmem:[#allocation10 + $0x80] sm:$0xff]  ;;  %v7803_v56 = vld [vmem:[#allocation10 + $0x90] sm:$0xff] }
 0xbcf   :  { %9524 = vst [vmem:[#allocation81_spill] sm:$0xff] %v7800_v27 }
 0xbd0   :  { %2739 = vmatpush.msrb.mxu2 %v7788_v59  ;;  %2779 = vmatpush.msra.mxu0 %v7791_v8  ;;  %9525 = vst [vmem:[#allocation80_spill] sm:$0xff] %v7803_v56  ;;  %v7806_v59 = vld [vmem:[#allocation10 + $0x60] sm:$0xff]  ;;  %v7809_v8 = vld [vmem:[#allocation10 + $0x70] sm:$0xff] }
 0xbd1   :  { %9526 = vst [vmem:[#allocation70_spill] sm:$0xff] %v7806_v59 }
 0xbd2   :  { %2740 = vmatpush.msrb.mxu2 %v7794_v46  ;;  %2780 = vmatpush.msra.mxu0 %v7797_v54  ;;  %9527 = vst [vmem:[#allocation83_spill] sm:$0xff] %v7809_v8  ;;  %v7812_v46 = vld [vmem:[#allocation10 + $0x40] sm:$0xff]  ;;  %v7815_v54 = vld [vmem:[#allocation10 + $0x50] sm:$0xff] }
 0xbd3   :  { %9528 = vst [vmem:[#allocation82_spill] sm:$0xff] %v7812_v46 }
 0xbd4   :  { %2741 = vmatpush.msrb.mxu2 %v7800_v27  ;;  %2781 = vmatpush.msra.mxu0 %v7803_v56  ;;  %9529 = vst [vmem:[#allocation74_spill] sm:$0xff] %v7815_v54  ;;  %v7818_v27 = vld [vmem:[#allocation10 + $0x20] sm:$0xff]  ;;  %v7821_v56 = vld [vmem:[#allocation10 + $0x30] sm:$0xff] }
 0xbd5   :  { %9530 = vst [vmem:[#allocation27_spill] sm:$0xff] %v7818_v27 }
 0xbd6   :  { %2742 = vmatpush.msrb.mxu2 %v7806_v59  ;;  %2782 = vmatpush.msra.mxu0 %v7809_v8  ;;  %9531 = vst [vmem:[#allocation28_spill] sm:$0xff] %v7821_v56  ;;  %v7824_v59 = vld [vmem:[#allocation10] sm:$0xff]  ;;  %v7827_v8 = vld [vmem:[#allocation10 + $0x10] sm:$0xff] }
 0xbd7   :  { %9532 = vst [vmem:[#allocation85_spill] sm:$0xff] %v7824_v59 }
 0xbd8   :  { %2743 = vmatpush.msrb.mxu2 %v7812_v46  ;;  %2783 = vmatpush.msra.mxu0 %v7815_v54  ;;  %9533 = vst [vmem:[#allocation89_spill] sm:$0xff] %v7827_v8  ;;  %v4108_v46 = vld [vmem:[#allocation13 + $0x78] sm:$0xff]  ;;  %v4109_v54 = vld [vmem:[#allocation13 + $0x70] sm:$0xff] }
 0xbda   :  { %2744 = vmatpush.msrb.mxu2 %v7818_v27  ;;  %2784 = vmatpush.msra.mxu0 %v7821_v56  ;;  %v4110_v27 = vld [vmem:[#allocation13 + $0x68] sm:$0xff]  ;;  %v4111_v56 = vld [vmem:[#allocation13 + $0x60] sm:$0xff] }
 0xbdc   :  { %2745 = vmatpush.msrb.mxu2 %v7824_v59  ;;  %2785 = vmatpush.msra.mxu0 %v7827_v8  ;;  %v4112_v59 = vld [vmem:[#allocation13 + $0x58] sm:$0xff]  ;;  %v4113_v8 = vld [vmem:[#allocation13 + $0x50] sm:$0xff] }
 0xbde   :  { %2854 = vmatpush.msra.mxu2 %v4108_v46  ;;  %2906 = vmatpush.msrb.mxu0 %v9534_v4  ;;  %v9539_v46 = vld [vmem:[#allocation137_spill] sm:$0xff]  ;;  %v4114_v4 = vld [vmem:[#allocation13 + $0x48] sm:$0xff] }
 0xbe0   :  { %2855 = vmatpush.msra.mxu2 %v4109_v54  ;;  %2907 = vmatpush.msrb.mxu0 %v9535_v38  ;;  %v9540_v54 = vld [vmem:[#allocation76_spill] sm:$0xff]  ;;  %v4115_v38 = vld [vmem:[#allocation13 + $0x40] sm:$0xff] }
 0xbe2   :  { %2856 = vmatpush.msra.mxu2 %v4110_v27  ;;  %2908 = vmatpush.msrb.mxu0 %v9536_v17  ;;  %v9541_v27 = vld [vmem:[#allocation79_spill] sm:$0xff]  ;;  %v4116_v17 = vld [vmem:[#allocation13 + $0x38] sm:$0xff] }
 0xbe4   :  { %2857 = vmatpush.msra.mxu2 %v4111_v56  ;;  %2909 = vmatpush.msrb.mxu0 %v9537_v0  ;;  %v9542_v56 = vld [vmem:[#allocation87_spill] sm:$0xff]  ;;  %v4117_v0 = vld [vmem:[#allocation13 + $0x30] sm:$0xff] }
 0xbe6   :  { %2858 = vmatpush.msra.mxu2 %v4112_v59  ;;  %2910 = vmatpush.msrb.mxu0 %v9538_v40  ;;  %v9543_v59 = vld [vmem:[#allocation91_spill] sm:$0xff]  ;;  %v4118_v40 = vld [vmem:[#allocation13 + $0x28] sm:$0xff] }
 0xbe8   :  { %2859 = vmatpush.msra.mxu2 %v4113_v8  ;;  %2911 = vmatpush.msrb.mxu0 %v9539_v46  ;;  %v9544_v8 = vld [vmem:[#allocation95_spill] sm:$0xff] }
 0xbe9   :  { %v4119_v46 = vld [vmem:[#allocation13 + $0x20] sm:$0xff] }
 0xbea   :  { %2860 = vmatpush.msra.mxu2 %v4114_v4  ;;  %2912 = vmatpush.msrb.mxu0 %v9540_v54  ;;  %v9545_v4 = vld [vmem:[#allocation99_spill] sm:$0xff]  ;;  %v4120_v54 = vld [vmem:[#allocation13 + $0x18] sm:$0xff] }
 0xbec   :  { %2861 = vmatpush.msra.mxu2 %v4115_v38  ;;  %2913 = vmatpush.msrb.mxu0 %v9541_v27  ;;  %v9546_v38 = vld [vmem:[#allocation103_spill] sm:$0xff]  ;;  %v4121_v27 = vld [vmem:[#allocation13 + $0x10] sm:$0xff] }
 0xbee   :  { %2862 = vmatpush.msra.mxu2 %v4116_v17  ;;  %2914 = vmatpush.msrb.mxu0 %v9542_v56  ;;  %v9547_v17 = vld [vmem:[#allocation107_spill] sm:$0xff]  ;;  %v4122_v56 = vld [vmem:[#allocation13 + $0x8] sm:$0xff] }
 0xbf0   :  { %2863 = vmatpush.msra.mxu2 %v4117_v0  ;;  %2915 = vmatpush.msrb.mxu0 %v9543_v59  ;;  %v9548_v0 = vld [vmem:[#allocation111_spill] sm:$0xff] }
 0xbf1   :  { %v4123_v59 = vld [vmem:[#allocation13] sm:$0xff] }
 0xbf2   :  { %2864 = vmatpush.msra.mxu2 %v4118_v40  ;;  %2916 = vmatpush.msrb.mxu0 %v9544_v8  ;;  %v9549_v40 = vld [vmem:[#allocation115_spill] sm:$0xff] }
 0xbf4   :  { %2865 = vmatpush.msra.mxu2 %v4119_v46  ;;  %2917 = vmatpush.msrb.mxu0 %v9545_v4  ;;  %v9550_v46 = vld [vmem:[#allocation123_spill] sm:$0xff]  ;;  %v2603_v4 = vpop.f32.mrf.mxu1 }
 0xbf6   :  { %2866 = vmatpush.msra.mxu2 %v4120_v54  ;;  %2918 = vmatpush.msrb.mxu0 %v9546_v38  ;;  %v9551_v38 = vld [vmem:[#allocation119_spill] sm:$0xff] }
 0xbf8   :  { %2867 = vmatpush.msra.mxu2 %v4121_v27  ;;  %2919 = vmatpush.msrb.mxu0 %v9547_v17  ;;  %v2563_v27 = vpop.f32.mrf.mxu3 }
 0xbfa   :  { %2868 = vmatpush.msra.mxu2 %v4122_v56  ;;  %2920 = vmatpush.msrb.mxu0 %v9548_v0 }
 0xbfc   :  { %2869 = vmatpush.msra.mxu2 %v4123_v59  ;;  %2921 = vmatpush.msrb.mxu0 %v9549_v40 }
 0xc00   :  { %v2643_v14 = vpop.f32.mrf.mxu3 }
 0xc3a   :  { %v2583_v8 = vpop.f32.mrf.mxu0 }
 0xc3b   :  { %v2584_v60 = vadd.f32 %v9550_v46, %v2583_v8 }
 0xc3d   :  { %v2604_v3 = vadd.f32 %v2603_v4, %v2584_v60 }
 0xc3f   :  { %v3296_v54 = vmul.f32 -1.442695, %v2604_v3 }
 0xc40   :  { %v2543_v26 = vpop.f32.mrf.mxu2 }
 0xc41   :  { %v2544_v52 = vadd.f32 %v9551_v38, %v2543_v26  ;;  %3439 = vpow2.f32 %v3296_v54  ;;  %v7848_v26 = vld [vmem:[#allocation8 + $0x18] sm:$0xff] }
 0xc42   :  { %v2663_v46 = vpop.f32.mrf.mxu0  ;;  %9552 = vst [vmem:[#allocation93_spill] sm:$0xff] %v7848_v26 }
 0xc43   :  { %v2564_v16 = vadd.f32 %v2563_v27, %v2544_v52  ;;  %v2664_v52 = vadd.f32 %v7848_v26, %v2663_v46  ;;  %v7851_v27 = vld [vmem:[#allocation8 + $0x10] sm:$0xff] }
 0xc44   :  { %9553 = vst [vmem:[#allocation97_spill] sm:$0xff] %v7851_v27 }
 0xc45   :  { %v3295_v17 = vmul.f32 -1.442695, %v2564_v16 }
 0xc47   :  { %3441 = vpow2.f32 %v3295_v17  ;;  %v3440_v56 = vpop.eup %3439 }
 0xc48   :  { %v2708_v57 = vadd.f32 1.0, %v3440_v56  ;;  %v2623_v6 = vpop.f32.mrf.mxu2  ;;  %v2683_v56 = vpop.f32.mrf.mxu1 }
 0xc49   :  { %v2624_v17 = vadd.f32 %v7851_v27, %v2623_v6  ;;  %v2684_v50 = vadd.f32 %v2683_v56, %v2664_v52  ;;  %v9573_v56 = vld [vmem:[#allocation112_spill] sm:$0xff] }
 0xc4a   :  { %vm2714_vm5 = vweird.f32 %v2708_v57  ;;  %v2718_v39 = vand.u32 2147483647, %v2708_v57 }
 0xc4b   :  { %v2644_v46 = vadd.f32 %v2643_v14, %v2624_v17  ;;  %v9566_v14 = vld [vmem:[#allocation98_spill] sm:$0xff] }
 0xc4c   :  { %vm2719_vm7 = vcmp.eq.f32.partialorder %v2718_v39, 8.507059e+37  ;;  %v4128_v39 = vld [vmem:[#allocation7 + $0x3a8] sm:$0xff]  ;;  %v9572_v17 = vld [vmem:[#allocation110_spill] sm:$0xff] }
 0xc4d   :  { %v3442_v0 = vpop.eup %3441 }
 0xc4e   :  { %v2689_v59 = vadd.f32 1.0, %v3442_v0 }
 0xc50   :  { %3443 = vrcp.f32 %v2689_v59  ;;  %v2701_v4 = vand.u32 2147483648, %v2689_v59  ;;  %v2699_v54 = vand.u32 2147483647, %v2689_v59  ;;  %vm2695_vm1 = vweird.f32 %v2689_v59 }
 0xc51   :  { %3445 = vrcp.f32 %v2708_v57 }
 0xc52   :  { %vm2700_vm3 = vcmp.eq.f32.partialorder %v2699_v54, 8.507059e+37  ;;  %v9570_v54 = vld [vmem:[#allocation106_spill] sm:$0xff] }
 0xc56   :  { %v3444_v40 = vpop.eup %3443 }
 0xc57   :  { %v3446_v22 = vpop.eup %3445  ;;  %v2691_v8 = vmul.f32 %v3444_v40, %v2689_v59  ;;  %vm2696_vm0 = vweird.f32 %v3444_v40 }
 0xc58   :  { %v2710_v3 = vmul.f32 %v3446_v22, %v2708_v57  ;;  %vm2697_vm2 = vmor %vm2695_vm1, %vm2696_vm0  ;;  %vm2715_vm4 = vweird.f32 %v3446_v22 }
 0xc59   :  { %v2692_v60 = vsub.f32 1.0, %v2691_v8  ;;  %v2702_v8 = vor.u32 1.1754944e-38, %v2701_v4  ;;  %vm2716_vm6 = vmor %vm2714_vm5, %vm2715_vm4 }
 0xc5a   :  { %v2711_v0 = vsub.f32 1.0, %v2710_v3 }
 0xc5b   :  { %v2693_v16 = vmul.f32 %v3444_v40, %v2692_v60 }
 0xc5c   :  { %v2712_v60 = vmul.f32 %v3446_v22, %v2711_v0  ;;  %v4139_v0 = vld [vmem:[#allocation7 + $0x248] sm:$0xff] }
 0xc5d   :  { %v2694_v38 = vadd.f32 %v3444_v40, %v2693_v16  ;;  %v2720_v16 = vand.u32 2147483648, %v2708_v57  ;;  %v9568_v57 = vld [vmem:[#allocation102_spill] sm:$0xff] }
 0xc5e   :  { %v2713_v59 = vadd.f32 %v3446_v22, %v2712_v60  ;;  %v9576_v60 = vld [vmem:[#allocation118_spill] sm:$0xff] }
 0xc5f   :  { %v2698_v63 = vsel %vm2697_vm2, %v3444_v40, %v2694_v38  ;;  %v2721_v27 = vor.u32 1.1754944e-38, %v2720_v16  ;;  %v4138_v38 = vld [vmem:[#allocation7 + $0x268] sm:$0xff]  ;;  %v9578_v16 = vld [vmem:[#allocation122_spill] sm:$0xff] }
 0xc60   :  { %v2703_v47 = vsel %vm2700_vm3, %v2702_v8, %v2698_v63  ;;  %v2717_v6 = vsel %vm2716_vm6, %v3446_v22, %v2713_v59  ;;  %v4137_v22 = vld [vmem:[#allocation7 + $0x288] sm:$0xff]  ;;  %v9574_v8 = vld [vmem:[#allocation114_spill] sm:$0xff] }
 0xc61   :  { %v2724_v12 = vmul.f32 %v2703_v47, %v2684_v50  ;;  %v2722_v40 = vsel %vm2719_vm7, %v2721_v27, %v2717_v6  ;;  %v9565_v47 = vld [vmem:[#allocation96_spill] sm:$0xff] }
 0xc62   :  { %v9567_v50 = vld [vmem:[#allocation100_spill] sm:$0xff] }
 0xc63   :  { %v2725_v26 = vadd.f32 %v2724_v12, %v2644_v46  ;;  %v4126_v12 = vld [vmem:[#allocation7 + $0x3e8] sm:$0xff] }
 0xc64   :  { %v9571_v27 = vld [vmem:[#allocation108_spill] sm:$0xff] }
 0xc65   :  { %3447 = vtanh.f32 %v2725_v26  ;;  %v9569_v26 = vld [vmem:[#allocation104_spill] sm:$0xff] }
 0xc66   :  { %v9575_v46 = vld [vmem:[#allocation116_spill] sm:$0xff] }
 0xc67   :  { %v9577_v59 = vld [vmem:[#allocation120_spill] sm:$0xff] }
 0xc68   :  { %v9579_v6 = vld [vmem:[#allocation124_spill] sm:$0xff] }
 0xc6b   :  { %v3448_v3 = vpop.eup %3447 }
 0xc6c   :  { %v2727_v4 = vsub.f32 %v7560_v28, %v3448_v3  ;;  %v4127_v28 = vld [vmem:[#allocation7 + $0x3c8] sm:$0xff] }
 0xc6e   :  { %v2728_v52 = vmul.f32 %v2727_v4, %v2722_v40  ;;  %v9581_v4 = vld [vmem:[#allocation128_spill] sm:$0xff]  ;;  %v9582_v40 = vld [vmem:[#allocation130_spill] sm:$0xff] }
 0xc70   :  { %v7855_v63 = vadd.f32 %v3448_v3, %v2728_v52  ;;  %v9580_v3 = vld [vmem:[#allocation126_spill] sm:$0xff]  ;;  %v9583_v52 = vld [vmem:[#allocation132_spill] sm:$0xff] }
 0xc72   :  { %2746 = vmatmul.f32.vlgmr.msrb.gmra.mxu2 %v7855_v63  ;;  %2766 = vmatmul.f32.vlgmr.msrb.gmra.mxu3 %v7855_v63 }
 0xc73   :  { %2786 = vmatmul.f32.vlgmr.msra.gmra.mxu0 %v7855_v63  ;;  %2806 = vmatmul.f32.vlgmr.msra.gmra.mxu1 %v7855_v63 }
 0xc74   :  { %2946 = vmatpush.msrb.mxu2 %v4126_v12  ;;  %2986 = vmatpush.msra.mxu0 %v7392_v29  ;;  %v4129_v29 = vld [vmem:[#allocation7 + $0x388] sm:$0xff]  ;;  %v9584_v12 = vld [vmem:[#allocation134_spill] sm:$0xff] }
 0xc75   :  { %2966 = vmatpush.msrb.mxu3 %v7395_v41  ;;  %3006 = vmatpush.msra.mxu1 %v7398_v9  ;;  %v4130_v41 = vld [vmem:[#allocation7 + $0x368] sm:$0xff] }
 0xc76   :  { %2947 = vmatpush.msrb.mxu2 %v4127_v28  ;;  %2987 = vmatpush.msra.mxu0 %v7402_v1  ;;  %v4131_v9 = vld [vmem:[#allocation7 + $0x348] sm:$0xff] }
 0xc77   :  { %2967 = vmatpush.msrb.mxu3 %v7405_v25  ;;  %3007 = vmatpush.msra.mxu1 %v7408_v61  ;;  %v4132_v1 = vld [vmem:[#allocation7 + $0x328] sm:$0xff]  ;;  %v9554_v25 = vld [vmem:[#allocation127_spill] sm:$0xff] }
 0xc78   :  { %2948 = vmatpush.msrb.mxu2 %v4128_v39  ;;  %2988 = vmatpush.msra.mxu0 %v7412_v58  ;;  %v9555_v61 = vld [vmem:[#allocation131_spill] sm:$0xff]  ;;  %v4133_v58 = vld [vmem:[#allocation7 + $0x308] sm:$0xff] }
 0xc79   :  { %2968 = vmatpush.msrb.mxu3 %v7415_v35  ;;  %3008 = vmatpush.msra.mxu1 %v7418_v11  ;;  %v9556_v35 = vld [vmem:[#allocation135_spill] sm:$0xff] }
 0xc7a   :  { %2949 = vmatpush.msrb.mxu2 %v4129_v29  ;;  %2989 = vmatpush.msra.mxu0 %v7422_v43  ;;  %v9557_v11 = vld [vmem:[#allocation139_spill] sm:$0xff]  ;;  %v9558_v43 = vld [vmem:[#allocation142_spill] sm:$0xff] }
 0xc7b   :  { %2969 = vmatpush.msrb.mxu3 %v7425_v23  ;;  %3009 = vmatpush.msra.mxu1 %v7428_v45  ;;  %v4134_v23 = vld [vmem:[#allocation7 + $0x2e8] sm:$0xff]  ;;  %v7911_v29 = vld [vmem:[#allocation11] sm:$0xff] }
 0xc7c   :  { %2950 = vmatpush.msrb.mxu2 %v4130_v41  ;;  %2990 = vmatpush.msra.mxu0 %v7432_v10  ;;  %v9559_v45 = vld [vmem:[#allocation84_spill] sm:$0xff]  ;;  %v9560_v10 = vld [vmem:[#allocation86_spill] sm:$0xff] }
 0xc7d   :  { %2970 = vmatpush.msrb.mxu3 %v7435_v19  ;;  %3010 = vmatpush.msra.mxu1 %v7438_v21  ;;  %v9561_v19 = vld [vmem:[#allocation88_spill] sm:$0xff] }
 0xc7e   :  { %2951 = vmatpush.msrb.mxu2 %v4131_v9  ;;  %2991 = vmatpush.msra.mxu0 %v7442_v7  ;;  %v4135_v21 = vld [vmem:[#allocation7 + $0x2c8] sm:$0xff]  ;;  %v9562_v7 = vld [vmem:[#allocation90_spill] sm:$0xff] }
 0xc7f   :  { %2971 = vmatpush.msrb.mxu3 %v7445_v30  ;;  %3011 = vmatpush.msra.mxu1 %v7448_v2  ;;  %v9563_v30 = vld [vmem:[#allocation92_spill] sm:$0xff]  ;;  %v9564_v2 = vld [vmem:[#allocation94_spill] sm:$0xff] }
 0xc80   :  { %2952 = vmatpush.msrb.mxu2 %v4132_v1  ;;  %2992 = vmatpush.msra.mxu0 %v7452_v31  ;;  %v4136_v31 = vld [vmem:[#allocation7 + $0x2a8] sm:$0xff] }
 0xc81   :  { %2972 = vmatpush.msrb.mxu3 %v9554_v25  ;;  %3012 = vmatpush.msra.mxu1 %v9555_v61  ;;  %v7914_v9 = vld [vmem:[#allocation11 + $0x8] sm:$0xff] }
 0xc82   :  { %2953 = vmatpush.msrb.mxu2 %v4133_v58  ;;  %2993 = vmatpush.msra.mxu0 %v9556_v35 }
 0xc83   :  { %2973 = vmatpush.msrb.mxu3 %v9557_v11  ;;  %3013 = vmatpush.msra.mxu1 %v9558_v43 }
 0xc84   :  { %2954 = vmatpush.msrb.mxu2 %v4134_v23  ;;  %2994 = vmatpush.msra.mxu0 %v9559_v45 }
 0xc85   :  { %2974 = vmatpush.msrb.mxu3 %v9560_v10  ;;  %3014 = vmatpush.msra.mxu1 %v9561_v19 }
 0xc86   :  { %2955 = vmatpush.msrb.mxu2 %v4135_v21  ;;  %2995 = vmatpush.msra.mxu0 %v9562_v7 }
 0xc87   :  { %2975 = vmatpush.msrb.mxu3 %v9563_v30  ;;  %3015 = vmatpush.msra.mxu1 %v9564_v2 }
 0xc88   :  { %2956 = vmatpush.msrb.mxu2 %v4136_v31  ;;  %2996 = vmatpush.msra.mxu0 %v9565_v47 }
 0xc89   :  { %2976 = vmatpush.msrb.mxu3 %v9566_v14  ;;  %3016 = vmatpush.msra.mxu1 %v9567_v50 }
 0xc8a   :  { %2957 = vmatpush.msrb.mxu2 %v4137_v22  ;;  %2997 = vmatpush.msra.mxu0 %v9568_v57  ;;  %v7917_v57 = vld [vmem:[#allocation11 + $0x18] sm:$0xff] }
 0xc8b   :  { %2977 = vmatpush.msrb.mxu3 %v9569_v26  ;;  %3017 = vmatpush.msra.mxu1 %v9570_v54 }
 0xc8c   :  { %2958 = vmatpush.msrb.mxu2 %v4138_v38  ;;  %2998 = vmatpush.msra.mxu0 %v9571_v27  ;;  %v7920_v27 = vld [vmem:[#allocation11 + $0x10] sm:$0xff] }
 0xc8d   :  { %2978 = vmatpush.msrb.mxu3 %v9572_v17  ;;  %3018 = vmatpush.msra.mxu1 %v9573_v56 }
 0xc8e   :  { %2959 = vmatpush.msrb.mxu2 %v4139_v0  ;;  %2999 = vmatpush.msra.mxu0 %v9574_v8 }
 0xc8f   :  { %2979 = vmatpush.msrb.mxu3 %v9575_v46  ;;  %3019 = vmatpush.msra.mxu1 %v9576_v60 }
 0xc90   :  { %2960 = vmatpush.msrb.mxu2 %v9577_v59  ;;  %3000 = vmatpush.msra.mxu0 %v9578_v16 }
 0xc91   :  { %2980 = vmatpush.msrb.mxu3 %v9579_v6  ;;  %3020 = vmatpush.msra.mxu1 %v9580_v3 }
 0xc92   :  { %2961 = vmatpush.msrb.mxu2 %v9581_v4  ;;  %3001 = vmatpush.msra.mxu0 %v9582_v40 }
 0xc93   :  { %2981 = vmatpush.msrb.mxu3 %v9583_v52  ;;  %3021 = vmatpush.msra.mxu1 %v9584_v12 }
 0xcf0   :  { %v2807_v31 = vpop.f32.mrf.mxu1  ;;  %v2787_v14 = vpop.f32.mrf.mxu0 }
 0xcf1   :  { %v2808_v26 = vadd.f32 %v7917_v57, %v2807_v31  ;;  %v2788_v17 = vadd.f32 %v7920_v27, %v2787_v14  ;;  %v9609_v31 = vld [vmem:[#allocation38_spill] sm:$0xff]  ;;  %v9611_v14 = vld [vmem:[#allocation53_spill] sm:$0xff] }
 0xcf5   :  { %v2747_v28 = vpop.f32.mrf.mxu2  ;;  %v2767_v39 = vpop.f32.mrf.mxu3 }
 0xcf6   :  { %v2748_v41 = vadd.f32 %v7911_v29, %v2747_v28  ;;  %v2768_v1 = vadd.f32 %v7914_v9, %v2767_v39  ;;  %v4144_v28 = vld [vmem:[#allocation7 + $0x3f8] sm:$0xff] }
 0xcf7   :  { %v4145_v39 = vld [vmem:[#allocation7 + $0x3d8] sm:$0xff] }
 0xcf8   :  { %v3297_v25 = vmul.f32 -1.442695, %v2748_v41  ;;  %v3298_v61 = vmul.f32 -1.442695, %v2768_v1  ;;  %v4146_v41 = vld [vmem:[#allocation7 + $0x3b8] sm:$0xff] }
 0xcf9   :  { %v4148_v1 = vld [vmem:[#allocation7 + $0x378] sm:$0xff] }
 0xcfa   :  { %3449 = vpow2.f32 %v3297_v25  ;;  %v9604_v25 = vld [vmem:[#allocation47_spill] sm:$0xff] }
 0xcfb   :  { %3451 = vpow2.f32 %v3298_v61  ;;  %v9605_v61 = vld [vmem:[#allocation45_spill] sm:$0xff] }
 0xd00   :  { %v3450_v58 = vpop.eup %3449 }
 0xd01   :  { %v3452_v35 = vpop.eup %3451  ;;  %v2813_v11 = vadd.f32 1.0, %v3450_v58  ;;  %v9606_v58 = vld [vmem:[#allocation35_spill] sm:$0xff] }
 0xd02   :  { %v2832_v43 = vadd.f32 1.0, %v3452_v35  ;;  %v9607_v35 = vld [vmem:[#allocation51_spill] sm:$0xff] }
 0xd03   :  { %3453 = vrcp.f32 %v2813_v11  ;;  %v2825_v21 = vand.u32 2147483648, %v2813_v11  ;;  %v2823_v2 = vand.u32 2147483647, %v2813_v11  ;;  %vm2819_vm9 = vweird.f32 %v2813_v11 }
 0xd04   :  { %3455 = vrcp.f32 %v2832_v43  ;;  %v2844_v60 = vand.u32 2147483648, %v2832_v43  ;;  %vm2838_vm13 = vweird.f32 %v2832_v43  ;;  %v2842_v59 = vand.u32 2147483647, %v2832_v43 }
 0xd05   :  { %v2826_v50 = vor.u32 1.1754944e-38, %v2825_v21  ;;  %vm2824_vm11 = vcmp.eq.f32.partialorder %v2823_v2, 8.507059e+37 }
 0xd06   :  { %v2845_v3 = vor.u32 1.1754944e-38, %v2844_v60  ;;  %vm2843_vm15 = vcmp.eq.f32.partialorder %v2842_v59, 8.507059e+37  ;;  %v9622_v60 = vld [vmem:[#allocation71_spill] sm:$0xff]  ;;  %v9623_v59 = vld [vmem:[#allocation69_spill] sm:$0xff] }
 0xd09   :  { %v3454_v23 = vpop.eup %3453 }
 0xd0a   :  { %v3456_v45 = vpop.eup %3455  ;;  %v2815_v10 = vmul.f32 %v3454_v23, %v2813_v11  ;;  %vm2820_vm8 = vweird.f32 %v3454_v23  ;;  %v9608_v11 = vld [vmem:[#allocation49_spill] sm:$0xff] }
 0xd0b   :  { %v2834_v7 = vmul.f32 %v3456_v45, %v2832_v43  ;;  %vm2821_vm10 = vmor %vm2819_vm9, %vm2820_vm8  ;;  %vm2839_vm12 = vweird.f32 %v3456_v45  ;;  %v2875_v43 = vld [vmem:[#allocation5 + $0x30] sm:$0xff] }
 0xd0c   :  { %v2816_v19 = vsub.f32 1.0, %v2815_v10  ;;  %vm2840_vm14 = vmor %vm2838_vm13, %vm2839_vm12 }
 0xd0d   :  { %v2835_v22 = vsub.f32 1.0, %v2834_v7 }
 0xd0e   :  { %v2817_v30 = vmul.f32 %v3454_v23, %v2816_v19  ;;  %v4149_v19 = vld [vmem:[#allocation14] sm:$0xff] }
 0xd0f   :  { %v2836_v0 = vmul.f32 %v3456_v45, %v2835_v22  ;;  %v9613_v22 = vld [vmem:[#allocation59_spill] sm:$0xff] }
 0xd10   :  { %v2818_v47 = vadd.f32 %v3454_v23, %v2817_v30 }
 0xd11   :  { %v2837_v46 = vadd.f32 %v3456_v45, %v2836_v0  ;;  %v9619_v0 = vld [vmem:[#allocation67_spill] sm:$0xff] }
 0xd12   :  { %v2822_v54 = vsel %vm2821_vm10, %v3454_v23, %v2818_v47  ;;  %v2877_v23 = vld [vmem:[#allocation2 + $0x30] sm:$0xff]  ;;  %v9610_v47 = vld [vmem:[#allocation55_spill] sm:$0xff] }
 0xd13   :  { %v2827_v38 = vsel %vm2824_vm11, %v2826_v50, %v2822_v54  ;;  %v2841_v16 = vsel %vm2840_vm14, %v3456_v45, %v2837_v46  ;;  %v2879_v45 = vsub.f32 1.0, %v2875_v43  ;;  %v2878_v7 = vmul.f32 %v2877_v23, %v2875_v43  ;;  %v9612_v50 = vld [vmem:[#allocation42_spill] sm:$0xff] }
 0xd14   :  { %v2848_v56 = vmul.f32 %v2827_v38, %v2808_v26  ;;  %v2846_v40 = vsel %vm2843_vm15, %v2845_v3, %v2841_v16  ;;  %v9614_v26 = vld [vmem:[#allocation57_spill] sm:$0xff]  ;;  %v9615_v54 = vld [vmem:[#allocation46_spill] sm:$0xff]  ;;  %v9616_v38 = vld [vmem:[#allocation63_spill] sm:$0xff] }
 0xd15   :  { %v9621_v46 = vld [vmem:[#allocation54_spill] sm:$0xff]  ;;  %v9626_v3 = vld [vmem:[#allocation73_spill] sm:$0xff] }
 0xd16   :  { %v2849_v8 = vadd.f32 %v2848_v56, %v2788_v17  ;;  %v9617_v17 = vld [vmem:[#allocation61_spill] sm:$0xff]  ;;  %v9618_v56 = vld [vmem:[#allocation50_spill] sm:$0xff] }
 0xd17   :  { %v9624_v16 = vld [vmem:[#allocation58_spill] sm:$0xff] }
 0xd18   :  { %3457 = vtanh.f32 %v2849_v8  ;;  %v9620_v8 = vld [vmem:[#allocation65_spill] sm:$0xff] }
 0xd1e   :  { %v3458_v6 = vpop.eup %3457 }
 0xd1f   :  { %v2851_v4 = vsub.f32 %v7855_v63, %v3458_v6  ;;  %v4147_v63 = vld [vmem:[#allocation7 + $0x398] sm:$0xff] }
 0xd21   :  { %v2852_v52 = vmul.f32 %v2851_v4, %v2846_v40  ;;  %v9627_v4 = vld [vmem:[#allocation62_spill] sm:$0xff]  ;;  %v9628_v40 = vld [vmem:[#allocation77_spill] sm:$0xff] }
 0xd23   :  { %v7924_v12 = vadd.f32 %v3458_v6, %v2852_v52  ;;  %v9625_v6 = vld [vmem:[#allocation75_spill] sm:$0xff]  ;;  %v9629_v52 = vld [vmem:[#allocation78_spill] sm:$0xff] }
 0xd25   :  { %2870 = vmatmul.f32.vlgmr.msra.gmra.mxu2 %v7924_v12  ;;  %2922 = vmatmul.f32.vlgmr.msrb.gmra.mxu0 %v7924_v12 }
 0xd26   :  { %3026 = vmatpush.msra.mxu2 %v4144_v28  ;;  %3110 = vmatpush.msrb.mxu0 %v7565_v44  ;;  %v9585_v44 = vld [vmem:[#allocation136_spill] sm:$0xff]  ;;  %v9630_v28 = vld [vmem:[#allocation66_spill] sm:$0xff] }
 0xd28   :  { %3027 = vmatpush.msra.mxu2 %v4145_v39  ;;  %3111 = vmatpush.msrb.mxu0 %v7569_v18  ;;  %v9586_v18 = vld [vmem:[#allocation138_spill] sm:$0xff]  ;;  %v9631_v39 = vld [vmem:[#allocation81_spill] sm:$0xff] }
 0xd2a   :  { %3028 = vmatpush.msra.mxu2 %v4146_v41  ;;  %3112 = vmatpush.msrb.mxu0 %v7573_v53  ;;  %v9587_v53 = vld [vmem:[#allocation140_spill] sm:$0xff] }
 0xd2b   :  { %v9632_v41 = vld [vmem:[#allocation80_spill] sm:$0xff] }
 0xd2c   :  { %3029 = vmatpush.msra.mxu2 %v4147_v63  ;;  %3113 = vmatpush.msrb.mxu0 %v7577_v42  ;;  %v9588_v42 = vld [vmem:[#allocation141_spill] sm:$0xff]  ;;  %v9633_v63 = vld [vmem:[#allocation70_spill] sm:$0xff] }
 0xd2d   :  { %2962 = vmatmul.f32.vlgmr.msrb.gmra.mxu2 %v7924_v12  ;;  %3002 = vmatmul.f32.vlgmr.msra.gmra.mxu0 %v7924_v12 }
 0xd2e   :  { %3030 = vmatpush.msra.mxu2 %v4148_v1  ;;  %3114 = vmatpush.msrb.mxu0 %v7583_v5  ;;  %v9589_v5 = vld [vmem:[#allocation143_spill] sm:$0xff] }
 0xd2f   :  { %v9634_v1 = vld [vmem:[#allocation83_spill] sm:$0xff] }
 0xd30   :  { %3031 = vmatpush.msra.mxu2 %v7586_v24  ;;  %3115 = vmatpush.msrb.mxu0 %v7589_v37  ;;  %v9590_v24 = vld [vmem:[#allocation144_spill] sm:$0xff]  ;;  %v9591_v37 = vld [vmem:[#allocation145_spill] sm:$0xff] }
 0xd32   :  { %3032 = vmatpush.msra.mxu2 %v7592_v62  ;;  %3116 = vmatpush.msrb.mxu0 %v7595_v34  ;;  %v9592_v62 = vld [vmem:[#allocation146_spill] sm:$0xff]  ;;  %v9593_v34 = vld [vmem:[#allocation32_spill] sm:$0xff] }
 0xd34   :  { %3033 = vmatpush.msra.mxu2 %v7598_v55  ;;  %3117 = vmatpush.msrb.mxu0 %v7601_v49  ;;  %v9594_v55 = vld [vmem:[#allocation29_spill] sm:$0xff]  ;;  %v9595_v49 = vld [vmem:[#allocation36_spill] sm:$0xff] }
 0xd36   :  { %3034 = vmatpush.msra.mxu2 %v7604_v32  ;;  %3118 = vmatpush.msrb.mxu0 %v7607_v48  ;;  %v9596_v32 = vld [vmem:[#allocation34_spill] sm:$0xff] }
 0xd37   :  { %v9597_v48 = vld [vmem:[#allocation30_spill] sm:$0xff] }
 0xd38   :  { %3035 = vmatpush.msra.mxu2 %v7610_v15  ;;  %3119 = vmatpush.msrb.mxu0 %v7613_v51  ;;  %v9598_v15 = vld [vmem:[#allocation39_spill] sm:$0xff]  ;;  %v9599_v51 = vld [vmem:[#allocation37_spill] sm:$0xff] }
 0xd3a   :  { %3036 = vmatpush.msra.mxu2 %v7616_v13  ;;  %3120 = vmatpush.msrb.mxu0 %v7619_v33  ;;  %v9600_v13 = vld [vmem:[#allocation31_spill] sm:$0xff] }
 0xd3b   :  { %v9601_v33 = vld [vmem:[#allocation43_spill] sm:$0xff] }
 0xd3c   :  { %3037 = vmatpush.msra.mxu2 %v7622_v20  ;;  %3121 = vmatpush.msrb.mxu0 %v7625_v36  ;;  %v9602_v20 = vld [vmem:[#allocation41_spill] sm:$0xff] }
 0xd3d   :  { %v9603_v36 = vld [vmem:[#allocation33_spill] sm:$0xff] }
 0xd3e   :  { %3038 = vmatpush.msra.mxu2 %v9585_v44  ;;  %3122 = vmatpush.msrb.mxu0 %v9586_v18  ;;  %v9635_v44 = vld [vmem:[#allocation82_spill] sm:$0xff] }
 0xd3f   :  { %v9636_v18 = vld [vmem:[#allocation74_spill] sm:$0xff] }
 0xd40   :  { %3039 = vmatpush.msra.mxu2 %v9587_v53  ;;  %3123 = vmatpush.msrb.mxu0 %v9588_v42  ;;  %v9637_v53 = vld [vmem:[#allocation27_spill] sm:$0xff]  ;;  %v9638_v42 = vld [vmem:[#allocation28_spill] sm:$0xff] }
 0xd42   :  { %3040 = vmatpush.msra.mxu2 %v9589_v5  ;;  %3124 = vmatpush.msrb.mxu0 %v9590_v24  ;;  %v9639_v5 = vld [vmem:[#allocation85_spill] sm:$0xff] }
 0xd43   :  { %v9640_v24 = vld [vmem:[#allocation89_spill] sm:$0xff] }
 0xd44   :  { %3041 = vmatpush.msra.mxu2 %v9591_v37  ;;  %3125 = vmatpush.msrb.mxu0 %v9592_v62  ;;  %v4150_v62 = vld [vmem:[#allocation8 + $0x8] sm:$0xff] }
 0xd45   :  { %3042 = vmatmul.f32.vlgmr.msra.gmra.mxu2 %v7924_v12 }
 0xd46   :  { %3150 = vmatpush.msrb.mxu2 %v9593_v34 }
 0xd48   :  { %3151 = vmatpush.msrb.mxu2 %v9594_v55 }
 0xd4a   :  { %3152 = vmatpush.msrb.mxu2 %v9595_v49 }
 0xd4c   :  { %3153 = vmatpush.msrb.mxu2 %v9596_v32 }
 0xd4e   :  { %3154 = vmatpush.msrb.mxu2 %v9597_v48 }
 0xd50   :  { %3155 = vmatpush.msrb.mxu2 %v9598_v15  ;;  %v4151_v15 = vld [vmem:[#allocation8] sm:$0xff] }
 0xd52   :  { %3156 = vmatpush.msrb.mxu2 %v9599_v51 }
 0xd54   :  { %3157 = vmatpush.msrb.mxu2 %v9600_v13 }
 0xd56   :  { %3158 = vmatpush.msrb.mxu2 %v9601_v33 }
 0xd58   :  { %3159 = vmatpush.msrb.mxu2 %v9602_v20 }
 0xd5a   :  { %3160 = vmatpush.msrb.mxu2 %v9603_v36 }
 0xd5c   :  { %3161 = vmatpush.msrb.mxu2 %v9604_v25 }
 0xd5e   :  { %3162 = vmatpush.msrb.mxu2 %v9605_v61 }
 0xd60   :  { %3163 = vmatpush.msrb.mxu2 %v9606_v58 }
 0xd62   :  { %3164 = vmatpush.msrb.mxu2 %v9607_v35 }
 0xd64   :  { %3165 = vmatpush.msrb.mxu2 %v9608_v11 }
 0xda2   :  { %v2923_v13 = vpop.f32.mrf.mxu0 }
 0xda8   :  { %v2871_v10 = vpop.f32.mrf.mxu2 }
 0xda9   :  { %v2872_v21 = vadd.f32 %v4149_v19, %v2871_v10 }
 0xdab   :  { %v2880_v30 = vmul.f32 %v2879_v45, %v2872_v21  ;;  %2883 = vst [vmem:[#allocation19 + $0x30] sm:$0xff] %v2872_v21 }
 0xdad   :  { %v2881_v2 = vadd.f32 %v2880_v30, %v2878_v7  ;;  %v9641_v7 = vld [vmem:[#allocation93_spill] sm:$0xff] }
 0xdaf   :  { %2885 = vst [vmem:[#allocation17 + $0x30] sm:$0xff] %v2881_v2  ;;  %2902 = vmatmul.f32.vlgmr.msra.gmra.mxu3 %v2881_v2  ;;  %2942 = vmatmul.f32.vlgmr.msrb.gmra.mxu1 %v2881_v2 }
 0xdb0   :  { %3090 = vmatpush.msra.mxu3 %v9609_v31  ;;  %3130 = vmatpush.msrb.mxu1 %v9610_v47  ;;  %v2963_v55 = vpop.f32.mrf.mxu2  ;;  %3238 = dma.vmem_to_hbm [thread:$0]  %s3231_s13, 896, %s3233_s11, [#allocation18], %s4431_s21, %s4431_s21, %s4432_s22  }
 0xdb1   :  { %3251 = dma.vmem_to_hbm [thread:$0]  %s3244_s15, 896, %s3246_s0, [#allocation18], %s4431_s21, %s4431_s21, %s4432_s22  }
 0xdb2   :  { %3091 = vmatpush.msra.mxu3 %v9611_v14  ;;  %3131 = vmatpush.msrb.mxu1 %v9612_v50  ;;  %v9642_v14 = vld [vmem:[#allocation97_spill] sm:$0xff] }
 0xdb4   :  { %3092 = vmatpush.msra.mxu3 %v9613_v22  ;;  %3132 = vmatpush.msrb.mxu1 %v9614_v26 }
 0xdb6   :  { %3093 = vmatpush.msra.mxu3 %v9615_v54  ;;  %3133 = vmatpush.msrb.mxu1 %v9616_v38 }
 0xdb7   :  { %2982 = vmatmul.f32.vlgmr.msrb.gmra.mxu3 %v2881_v2  ;;  %3022 = vmatmul.f32.vlgmr.msra.gmra.mxu1 %v2881_v2 }
 0xdb8   :  { %3094 = vmatpush.msra.mxu3 %v9617_v17  ;;  %3134 = vmatpush.msrb.mxu1 %v9618_v56  ;;  %v3003_v56 = vpop.f32.mrf.mxu0 }
 0xdba   :  { %3095 = vmatpush.msra.mxu3 %v9619_v0  ;;  %3135 = vmatpush.msrb.mxu1 %v9620_v8 }
 0xdbc   :  { %3096 = vmatpush.msra.mxu3 %v9621_v46  ;;  %3136 = vmatpush.msrb.mxu1 %v9622_v60 }
 0xdbe   :  { %3097 = vmatpush.msra.mxu3 %v9623_v59  ;;  %3137 = vmatpush.msrb.mxu1 %v9624_v16 }
 0xdc0   :  { %3098 = vmatpush.msra.mxu3 %v9625_v6  ;;  %3138 = vmatpush.msrb.mxu1 %v9626_v3 }
 0xdc2   :  { %3099 = vmatpush.msra.mxu3 %v9627_v4  ;;  %3139 = vmatpush.msrb.mxu1 %v9628_v40 }
 0xdc4   :  { %3100 = vmatpush.msra.mxu3 %v9629_v52  ;;  %3140 = vmatpush.msrb.mxu1 %v9630_v28 }
 0xdc6   :  { %3101 = vmatpush.msra.mxu3 %v9631_v39  ;;  %3141 = vmatpush.msrb.mxu1 %v9632_v41 }
 0xdc8   :  { %3102 = vmatpush.msra.mxu3 %v9633_v63  ;;  %3142 = vmatpush.msrb.mxu1 %v9634_v1  ;;  %v3043_v22 = vpop.f32.mrf.mxu2 }
 0xdca   :  { %3103 = vmatpush.msra.mxu3 %v9635_v44  ;;  %3143 = vmatpush.msrb.mxu1 %v9636_v18 }
 0xdcc   :  { %3104 = vmatpush.msra.mxu3 %v9637_v53  ;;  %3144 = vmatpush.msrb.mxu1 %v9638_v42 }
 0xdce   :  { %3105 = vmatpush.msra.mxu3 %v9639_v5  ;;  %3145 = vmatpush.msrb.mxu1 %v9640_v24 }
 0xe2c   :  { %v2943_v37 = vpop.f32.mrf.mxu1 }
 0xe2d   :  { %v2944_v34 = vadd.f32 %v4150_v62, %v2943_v37 }
 0xe2f   :  { %v2964_v49 = vadd.f32 %v2963_v55, %v2944_v34 }
 0xe31   :  { %v3300_v32 = vmul.f32 -1.442695, %v2964_v49 }
 0xe32   :  { %v2903_v48 = vpop.f32.mrf.mxu3 }
 0xe33   :  { %v2904_v51 = vadd.f32 %v4151_v15, %v2903_v48  ;;  %3459 = vpow2.f32 %v3300_v32 }
 0xe34   :  { %v3023_v23 = vpop.f32.mrf.mxu1 }
 0xe35   :  { %v2924_v33 = vadd.f32 %v2923_v13, %v2904_v51  ;;  %v3024_v30 = vadd.f32 %v9641_v7, %v3023_v23 }
 0xe37   :  { %v3299_v20 = vmul.f32 -1.442695, %v2924_v33  ;;  %v3044_v38 = vadd.f32 %v3043_v22, %v3024_v30 }
 0xe39   :  { %3461 = vpow2.f32 %v3299_v20  ;;  %v3460_v36 = vpop.eup %3459 }
 0xe3a   :  { %v3068_v61 = vadd.f32 1.0, %v3460_v36  ;;  %v2983_v21 = vpop.f32.mrf.mxu3 }
 0xe3b   :  { %v2984_v50 = vadd.f32 %v9642_v14, %v2983_v21 }
 0xe3c   :  { %v3080_v6 = vand.u32 2147483648, %v3068_v61  ;;  %vm3074_vm5 = vweird.f32 %v3068_v61  ;;  %v3078_v3 = vand.u32 2147483647, %v3068_v61 }
 0xe3d   :  { %v3004_v46 = vadd.f32 %v3003_v56, %v2984_v50 }
 0xe3e   :  { %v3081_v52 = vor.u32 1.1754944e-38, %v3080_v6  ;;  %vm3079_vm7 = vcmp.eq.f32.partialorder %v3078_v3, 8.507059e+37 }
 0xe3f   :  { %v3462_v25 = vpop.eup %3461 }
 0xe40   :  { %v3049_v58 = vadd.f32 1.0, %v3462_v25 }
 0xe42   :  { %3463 = vrcp.f32 %v3049_v58  ;;  %v3061_v19 = vand.u32 2147483648, %v3049_v58  ;;  %v3059_v31 = vand.u32 2147483647, %v3049_v58  ;;  %vm3055_vm1 = vweird.f32 %v3049_v58 }
 0xe43   :  { %3465 = vrcp.f32 %v3068_v61 }
 0xe44   :  { %v3062_v54 = vor.u32 1.1754944e-38, %v3061_v19  ;;  %vm3060_vm3 = vcmp.eq.f32.partialorder %v3059_v31, 8.507059e+37 }
 0xe48   :  { %v3464_v35 = vpop.eup %3463 }
 0xe49   :  { %v3466_v11 = vpop.eup %3465  ;;  %v3051_v43 = vmul.f32 %v3464_v35, %v3049_v58  ;;  %vm3056_vm0 = vweird.f32 %v3464_v35 }
 0xe4a   :  { %v3070_v10 = vmul.f32 %v3466_v11, %v3068_v61  ;;  %vm3057_vm2 = vmor %vm3055_vm1, %vm3056_vm0  ;;  %vm3075_vm4 = vweird.f32 %v3466_v11 }
 0xe4b   :  { %v3052_v45 = vsub.f32 1.0, %v3051_v43  ;;  %vm3076_vm6 = vmor %vm3074_vm5, %vm3075_vm4 }
 0xe4c   :  { %v3071_v26 = vsub.f32 1.0, %v3070_v10 }
 0xe4d   :  { %v3053_v2 = vmul.f32 %v3464_v35, %v3052_v45 }
 0xe4e   :  { %v3072_v60 = vmul.f32 %v3466_v11, %v3071_v26 }
 0xe4f   :  { %v3054_v47 = vadd.f32 %v3464_v35, %v3053_v2 }
 0xe50   :  { %v3073_v16 = vadd.f32 %v3466_v11, %v3072_v60 }
 0xe51   :  { %v3058_v17 = vsel %vm3057_vm2, %v3464_v35, %v3054_v47 }
 0xe52   :  { %v3063_v0 = vsel %vm3060_vm3, %v3062_v54, %v3058_v17  ;;  %v3077_v4 = vsel %vm3076_vm6, %v3466_v11, %v3073_v16 }
 0xe53   :  { %v3084_v8 = vmul.f32 %v3063_v0, %v3044_v38  ;;  %v3082_v39 = vsel %vm3079_vm7, %v3081_v52, %v3077_v4 }
 0xe55   :  { %v3085_v59 = vadd.f32 %v3084_v8, %v3004_v46 }
 0xe57   :  { %3467 = vtanh.f32 %v3085_v59 }
 0xe5d   :  { %v3468_v40 = vpop.eup %3467 }
 0xe5e   :  { %v3087_v28 = vsub.f32 %v7924_v12, %v3468_v40 }
 0xe60   :  { %v3088_v41 = vmul.f32 %v3087_v28, %v3082_v39 }
 0xe62   :  { %v8009_v63 = vadd.f32 %v3468_v40, %v3088_v41 }
 0xe64   :  { %3106 = vmatmul.f32.vlgmr.msra.gmra.mxu3 %v8009_v63  ;;  %3126 = vmatmul.f32.vlgmr.msrb.gmra.mxu0 %v8009_v63 }
 0xe65   :  { %3146 = vmatmul.f32.vlgmr.msrb.gmra.mxu1 %v8009_v63  ;;  %3166 = vmatmul.f32.vlgmr.msrb.gmra.mxu2 %v8009_v63 }
 0xee1   :  { %v3127_v12 = vpop.f32.mrf.mxu0 }
 0xee2   :  { %v3128_v1 = vadd.f32 %v7914_v9, %v3127_v12  ;;  %v3147_v20 = vpop.f32.mrf.mxu1 }
 0xee3   :  { %v3148_v35 = vadd.f32 %v7920_v27, %v3147_v20 }
 0xee4   :  { %v3302_v44 = vmul.f32 -1.442695, %v3128_v1 }
 0xee6   :  { %3469 = vpow2.f32 %v3302_v44 }
 0xee7   :  { %v3107_v18 = vpop.f32.mrf.mxu3 }
 0xee8   :  { %v3108_v53 = vadd.f32 %v7911_v29, %v3107_v18  ;;  %v3167_v13 = vpop.f32.mrf.mxu2 }
 0xee9   :  { %v3168_v25 = vadd.f32 %v7917_v57, %v3167_v13 }
 0xeea   :  { %v3301_v42 = vmul.f32 -1.442695, %v3108_v53 }
 0xeec   :  { %3471 = vpow2.f32 %v3301_v42  ;;  %v3470_v5 = vpop.eup %3469 }
 0xeed   :  { %v3192_v37 = vadd.f32 1.0, %v3470_v5 }
 0xeef   :  { %v3204_v10 = vand.u32 2147483648, %v3192_v37  ;;  %vm3198_vm13 = vweird.f32 %v3192_v37  ;;  %v3202_v19 = vand.u32 2147483647, %v3192_v37 }
 0xef1   :  { %v3205_v30 = vor.u32 1.1754944e-38, %v3204_v10  ;;  %vm3203_vm15 = vcmp.eq.f32.partialorder %v3202_v19, 8.507059e+37 }
 0xef2   :  { %v3472_v24 = vpop.eup %3471 }
 0xef3   :  { %v3173_v62 = vadd.f32 1.0, %v3472_v24 }
 0xef5   :  { %3473 = vrcp.f32 %v3173_v62  ;;  %v3185_v15 = vand.u32 2147483648, %v3173_v62  ;;  %v3183_v51 = vand.u32 2147483647, %v3173_v62  ;;  %vm3179_vm9 = vweird.f32 %v3173_v62 }
 0xef6   :  { %3475 = vrcp.f32 %v3192_v37 }
 0xef7   :  { %v3186_v36 = vor.u32 1.1754944e-38, %v3185_v15  ;;  %vm3184_vm11 = vcmp.eq.f32.partialorder %v3183_v51, 8.507059e+37 }
 0xefb   :  { %v3474_v34 = vpop.eup %3473 }
 0xefc   :  { %v3476_v55 = vpop.eup %3475  ;;  %v3175_v49 = vmul.f32 %v3474_v34, %v3173_v62  ;;  %vm3180_vm8 = vweird.f32 %v3474_v34 }
 0xefd   :  { %v3194_v48 = vmul.f32 %v3476_v55, %v3192_v37  ;;  %vm3181_vm10 = vmor %vm3179_vm9, %vm3180_vm8  ;;  %vm3199_vm12 = vweird.f32 %v3476_v55 }
 0xefe   :  { %v3176_v32 = vsub.f32 1.0, %v3175_v49  ;;  %vm3200_vm14 = vmor %vm3198_vm13, %vm3199_vm12 }
 0xeff   :  { %v3195_v33 = vsub.f32 1.0, %v3194_v48 }
 0xf00   :  { %v3177_v9 = vmul.f32 %v3474_v34, %v3176_v32 }
 0xf01   :  { %v3196_v43 = vmul.f32 %v3476_v55, %v3195_v33 }
 0xf02   :  { %v3178_v29 = vadd.f32 %v3474_v34, %v3177_v9 }
 0xf03   :  { %v3197_v45 = vadd.f32 %v3476_v55, %v3196_v43 }
 0xf04   :  { %v3182_v61 = vsel %vm3181_vm10, %v3474_v34, %v3178_v29 }
 0xf05   :  { %v3187_v58 = vsel %vm3184_vm11, %v3186_v36, %v3182_v61  ;;  %v3201_v21 = vsel %vm3200_vm14, %v3476_v55, %v3197_v45 }
 0xf06   :  { %v3208_v11 = vmul.f32 %v3187_v58, %v3168_v25  ;;  %v3206_v2 = vsel %vm3203_vm15, %v3205_v30, %v3201_v21 }
 0xf08   :  { %v3209_v23 = vadd.f32 %v3208_v11, %v3148_v35 }
 0xf0a   :  { %3477 = vtanh.f32 %v3209_v23 }
 0xf10   :  { %v3478_v7 = vpop.eup %3477 }
 0xf11   :  { %v3211_v57 = vsub.f32 %v8009_v63, %v3478_v7 }
 0xf13   :  { %v3212_v27 = vmul.f32 %v3211_v57, %v3206_v2 }
 0xf15   :  { %v3213_v31 = vadd.f32 %v3478_v7, %v3212_v27 }
 0xf17   :  { %3214 = vst [vmem:[#allocation16] sm:$0xff] %v3213_v31 }
 0xf18   :  { %3225 = dma.vmem_to_hbm [thread:$0]  %s3221_s10, 128, %s3223_s17, [#allocation4]  }
 0xf19   :  { %4426 = dma.done.wait [#allocation4], 128  }
 0xf1a   :  { %4427 = vsyncadd [#allocation4], 4294967168 }
 0xf1b   :  { %4428 = dma.done.wait [#allocation18], 1792  }
 0xf1c   :  { %4429 = vsyncadd [#allocation18], 4294965504 }
 0xf1d   :  { %3264 = vsyncpa [#allocation3], 1 }
 0xf1e   :  { %3265 = vsyncpa [#allocation6], 1 }
 0xf1f   :  { %3266 = vsyncpa [#allocation9], 1 }
 0xf20   :  { %3267 = vsyncpa [#allocation12], 1 }
 0xf21   :  { %3268 = vsyncpa [#allocation15], 1 }
 0xf22   :  { %3269 = vsyncpa [#allocation4], 1 }
 0xf23   :  { %3270 = vsyncpa [#allocation18], 1 }

</bundles_post_ra>
